<compile_context>
chip_gen: v5e
topology: v5e:2x2
jax: 0.10.0
libtpu: 0.0.40
codegen_flags: <defaults>
</compile_context>

<pallas_src>
import jax
import jax.numpy as jnp
from jax.experimental import pallas as pl
from jax.experimental.pallas import tpu as pltpu

D_IN = 1024
D_HID = 1280
D_OUT = 3 * 32 * 32  # 3072
TN = 768             # output-column tile -> grid of 4 (2:2 split on v7x megacore)


def decoder_kernel(x_ref, w1_ref, b1_ref, w2_ref, b2_ref, o_ref):
    # Layer 1 (recomputed per column tile; x/W1/b1 resident in VMEM):
    #   h = relu(x @ W1 + b1), f32 accumulate, bf16 for the second MXU pass.
    h = jnp.dot(x_ref[...], w1_ref[...], preferred_element_type=jnp.float32)
    h = jnp.maximum(h + b1_ref[...], 0.0).astype(jnp.bfloat16)
    # Layer 2, one independent output-column tile:
    #   y_tile = h @ W2_tile + b2_tile
    o_ref[...] = (
        jnp.dot(h, w2_ref[...], preferred_element_type=jnp.float32) + b2_ref[...]
    ).astype(o_ref.dtype)


def decoder_forward(x, w1, b1, w2, b2):
    B = x.shape[0]
    assert x.shape[1] == D_IN
    assert D_OUT % TN == 0
    n_tiles = D_OUT // TN

    x_bf16 = x.astype(jnp.bfloat16)  # halve the x DMA; matches bf16 weight path

    y = pl.pallas_call(
        decoder_kernel,
        out_shape=jax.ShapeDtypeStruct((B, D_OUT), jnp.float32),
        grid=(n_tiles,),
        in_specs=[
            pl.BlockSpec((B, D_IN), lambda j: (0, 0)),       # x      (resident, bf16)
            pl.BlockSpec((D_IN, D_HID), lambda j: (0, 0)),   # W1     (resident, bf16)
            pl.BlockSpec((1, D_HID), lambda j: (0, 0)),      # b1     (resident, f32)
            pl.BlockSpec((D_HID, TN), lambda j: (0, j)),     # W2 column tile (bf16)
            pl.BlockSpec((1, TN), lambda j: (0, j)),         # b2 column tile (f32)
        ],
        out_specs=pl.BlockSpec((B, TN), lambda j: (0, j)),
        cost_estimate=pl.CostEstimate(
            flops=n_tiles * 2 * B * D_IN * D_HID + 2 * B * D_HID * D_OUT,
            transcendentals=0,
            bytes_accessed=(
                B * D_IN * 2
                + D_IN * D_HID * 2
                + D_HID * 4
                + D_HID * D_OUT * 2
                + D_OUT * 4
                + B * D_OUT * 4
            ),
        ),
        compiler_params=pltpu.CompilerParams(
            dimension_semantics=("parallel",),   # independent column tiles
            vmem_limit_bytes=32 << 20,
        ),
    )(x_bf16, w1, b1, w2, b2)

    return y


decoder_forward_jit = jax.jit(decoder_forward)


def init_params(key):
    # Deterministic synthetic params (PyTorch-Linear init ranges), weights
    # stored transposed ([in, out]) and cast to bf16 for streaming; biases f32.
    k1, k2, k3, k4 = jax.random.split(key, 4)
    s1 = 1.0 / (D_IN ** 0.5)
    s2 = 1.0 / (D_HID ** 0.5)
    w1 = jax.random.uniform(k1, (D_IN, D_HID), jnp.float32, -s1, s1).astype(jnp.bfloat16)
    b1 = jax.random.uniform(k2, (1, D_HID), jnp.float32, -s1, s1)
    w2 = jax.random.uniform(k3, (D_HID, D_OUT), jnp.float32, -s2, s2).astype(jnp.bfloat16)
    b2 = jax.random.uniform(k4, (1, D_OUT), jnp.float32, -s2, s2)
    return w1, b1, w2, b2


if __name__ == "__main__":
    key = jax.random.PRNGKey(0)
    kx, kp = jax.random.split(key)

    B = 8
    x = jax.random.normal(kx, (B, D_IN), jnp.float32)
    w1, b1, w2, b2 = init_params(kp)

    out = decoder_forward_jit(x, w1, b1, w2, b2)
    out = jax.block_until_ready(out)

    # Reference check in f32 using the same (bf16-quantized) weights, so only
    # the in-kernel bf16 x / hidden-activation rounding differs -> relaxed tol.
    w1f = w1.astype(jnp.float32)
    w2f = w2.astype(jnp.float32)
    ref = jnp.maximum(x @ w1f + b1, 0.0) @ w2f + b2

    assert out.shape == (B, D_OUT)
    assert jnp.allclose(out, ref, atol=2e-2, rtol=2e-2), "mismatch vs reference"

    print("KERNEL_OK")
</pallas_src>

<mosaic_0001>
module attributes {stable_mosaic.version = 11 : i64} {
  func.func @decoder_kernel(%arg0: i32, %arg1: memref<8x1024xbf16, #tpu.memory_space<vmem>>, %arg2: memref<1024x1280xbf16, #tpu.memory_space<vmem>>, %arg3: memref<1x1280xf32, #tpu.memory_space<vmem>>, %arg4: memref<1280x768xbf16, #tpu.memory_space<vmem>>, %arg5: memref<1x768xf32, #tpu.memory_space<vmem>>, %arg6: memref<8x768xf32, #tpu.memory_space<vmem>>) attributes {dimension_semantics = [#tpu.dimension_semantics<parallel>], iteration_bounds = array<i64: 4>, scalar_prefetch = 0 : i64, scratch_operands = 0 : i64, tpu.core_type = #tpu.core_type<tc>, window_params = [{pipeline_mode = #tpu.pipeline_mode<synchronous>, transform_indices = @transform_0, window_bounds = array<i64: 8, 1024>}, {pipeline_mode = #tpu.pipeline_mode<synchronous>, transform_indices = @transform_1, window_bounds = array<i64: 1024, 1280>}, {pipeline_mode = #tpu.pipeline_mode<synchronous>, transform_indices = @transform_2, window_bounds = array<i64: 1, 1280>}, {transform_indices = @transform_3, window_bounds = array<i64: 1280, 768>}, {transform_indices = @transform_4, window_bounds = array<i64: 1, 768>}, {transform_indices = @transform_5, window_bounds = array<i64: 8, 768>}]} {
    %c0 = arith.constant 0 : index
    %c0_0 = arith.constant 0 : index
    %0 = vector.load %arg1[%c0, %c0_0] : memref<8x1024xbf16, #tpu.memory_space<vmem>>, vector<8x1024xbf16>
    %c0_1 = arith.constant 0 : index
    %c0_2 = arith.constant 0 : index
    %1 = vector.load %arg2[%c0_1, %c0_2] : memref<1024x1280xbf16, #tpu.memory_space<vmem>>, vector<1024x1280xbf16>
    %cst = arith.constant dense<0.000000e+00> : vector<8x1280xf32>
    %2 = tpu.matmul %0, %1, %cst {dimension_numbers = #tpu.dot_dimension_numbers<[1], [0], [0], [1], [0, 0, 1, 1], [], []>} : vector<8x1024xbf16>, vector<1024x1280xbf16>, vector<8x1280xf32> -> vector<8x1280xf32>
    %c0_3 = arith.constant 0 : index
    %c0_4 = arith.constant 0 : index
    %3 = vector.load %arg3[%c0_3, %c0_4] : memref<1x1280xf32, #tpu.memory_space<vmem>>, vector<1x1280xf32>
    %4 = vector.broadcast %3 : vector<1x1280xf32> to vector<8x1280xf32>
    %5 = arith.addf %2, %4 : vector<8x1280xf32>
    %cst_5 = arith.constant 0.000000e+00 : f32
    %6 = vector.broadcast %cst_5 : f32 to vector<8x1280xf32>
    %7 = arith.maximumf %5, %6 : vector<8x1280xf32>
    %8 = arith.truncf %7 : vector<8x1280xf32> to vector<8x1280xbf16>
    %c0_6 = arith.constant 0 : index
    %c0_7 = arith.constant 0 : index
    %9 = vector.load %arg4[%c0_6, %c0_7] : memref<1280x768xbf16, #tpu.memory_space<vmem>>, vector<1280x768xbf16>
    %cst_8 = arith.constant dense<0.000000e+00> : vector<8x768xf32>
    %10 = tpu.matmul %8, %9, %cst_8 {dimension_numbers = #tpu.dot_dimension_numbers<[1], [0], [0], [1], [0, 0, 1, 1], [], []>} : vector<8x1280xbf16>, vector<1280x768xbf16>, vector<8x768xf32> -> vector<8x768xf32>
    %c0_9 = arith.constant 0 : index
    %c0_10 = arith.constant 0 : index
    %11 = vector.load %arg5[%c0_9, %c0_10] : memref<1x768xf32, #tpu.memory_space<vmem>>, vector<1x768xf32>
    %12 = vector.broadcast %11 : vector<1x768xf32> to vector<8x768xf32>
    %13 = arith.addf %10, %12 : vector<8x768xf32>
    %c0_11 = arith.constant 0 : index
    %c0_12 = arith.constant 0 : index
    %14 = vector.load %arg6[%c0_11, %c0_12] : memref<8x768xf32, #tpu.memory_space<vmem>>, vector<8x768xf32>
    tpu.vector_store %arg6[%c0_11, %c0_12], %13 {strides = array<i32>} : memref<8x768xf32, #tpu.memory_space<vmem>>, vector<8x768xf32>,
    return
  }
  func.func @transform_0(%arg0: i32) -> (i32, i32) {
    %c0_i32 = arith.constant 0 : i32
    %c0_i32_0 = arith.constant 0 : i32
    %c0_i32_1 = arith.constant 0 : i32
    return %c0_i32, %c0_i32_0 : i32, i32
  }
  func.func @transform_1(%arg0: i32) -> (i32, i32) {
    %c0_i32 = arith.constant 0 : i32
    %c0_i32_0 = arith.constant 0 : i32
    %c0_i32_1 = arith.constant 0 : i32
    return %c0_i32, %c0_i32_0 : i32, i32
  }
  func.func @transform_2(%arg0: i32) -> (i32, i32) {
    %c0_i32 = arith.constant 0 : i32
    %c0_i32_0 = arith.constant 0 : i32
    %c0_i32_1 = arith.constant 0 : i32
    return %c0_i32, %c0_i32_0 : i32, i32
  }
  func.func @transform_3(%arg0: i32) -> (i32, i32) {
    %c0_i32 = arith.constant 0 : i32
    %c0_i32_0 = arith.constant 0 : i32
    return %c0_i32, %arg0 : i32, i32
  }
  func.func @transform_4(%arg0: i32) -> (i32, i32) {
    %c0_i32 = arith.constant 0 : i32
    %c0_i32_0 = arith.constant 0 : i32
    return %c0_i32, %arg0 : i32, i32
  }
  func.func @transform_5(%arg0: i32) -> (i32, i32) {
    %c0_i32 = arith.constant 0 : i32
    %c0_i32_0 = arith.constant 0 : i32
    return %c0_i32, %arg0 : i32, i32
  }
}

</mosaic_0001>

<bundles_post_ra>
// kernel: decoder_forward.1
= control target key start
LH: loop header
LB: loop body
LE: loop exit
PB: predicated region body
PF: predicated region fallthrough
CT: control target
= control target key end

     0   :  { %s16551_s0 = inlined_call_operand.vmem [shape: bf16[8,1024], index: 0, kind: input, shape index: {}]   ;;  %s16552_s1 = inlined_call_operand.hbm [shape: bf16[1024,1280], index: 1, kind: input, shape index: {}]   ;;  %s16553_s2 = inlined_call_operand.hbm [shape: f32[1,1280], index: 2, kind: input, shape index: {}]   ;;  %s16554_s3 = inlined_call_operand.hbm [shape: bf16[1280,3072], index: 3, kind: input, shape index: {}]   ;;  %s16555_s4 = inlined_call_operand.hbm [shape: f32[1,3072], index: 4, kind: input, shape index: {}]   ;;  %s16556_s5 = inlined_call_operand.hbm [shape: f32[8,3072], index: 5, kind: output, shape index: {}]  }
   0x1   :  { %16562 = sst [smem:[#allocation18_spill]] %s16552_s1 }
   0x2   :  { %16563 = sst [smem:[#allocation19_spill]] %s16554_s3 }
   0x3   :  { %10 = vsyncpa [#allocation3], 0 }
   0x4   :  { %11 = vsyncpa [#allocation6], 0 }
   0x5   :  { %12 = vsyncpa [#allocation4], 0 }
   0x6   :  { %14 = vsyncpa [#allocation4 + $0x1], 0  ;;  %s15009_s18 = smov 0   ;;  %s15011_s19 = smov 0  }
   0x7   :  { %s15013_s20 = smov 0   ;;  %s15015_s21 = smov 0  }
   0x8 LB: > { %16564 = sst [smem:[#allocation14_spill]] %s14958_s18  ;;  %s15030_s22 = sadd.s32 4294967295, %s14970_s21   ;;  %s14970_s21 = sphi %s15015_s21, %s16583_s21   ;;  %s14966_s20 = sphi %s15013_s20, %s16587_s20   ;;  %s14962_s19 = sphi %s15011_s19, %s16586_s19   ;;  %s14958_s18 = sphi %s15009_s18, %s16585_s18  }
   0x9   : > { %s9075_s23 = sadd.s32 4294967294, %s14970_s21   ;;  %s15034_s24 = sadd.s32 1, %s14970_s21  }
   0xa   : > { %16565 = sst [smem:[#allocation15_spill]] %s15034_s24  ;;  %s90_s25 = sadd.s32 1, %s14966_s20 }
   0xb   : > { %s87_s26 = ssub.s32 %s14970_s21, %s15034_s24  ;;  %p97_p0 = scmp.ne.s32.totalorder %s14966_s20, %s14962_s19 }
   0xc   : > { %p88_p1 = scmp.eq.s32.totalorder %s87_s26, 0  ;;  %p98_p2 = scmp.eq.s32.totalorder %s14970_s21, 0 }
   0xd   : > { %p103_p3 = scmp.ne.s32.totalorder %s14962_s19, %s14958_s18  ;;  %p16559_p4 = scmp.eq.s32.totalorder %s15030_s22, 0 }
   0xe   : > { %s15046_s27 = scalar_select %p88_p1, %s14966_s20, %s90_s25  }
   0xf   : > { %p15048_p5 = por %p98_p2, %p97_p0  ;;  %p15054_p6 = por %p16559_p4, %p103_p3 }
  0x10   : > { %16566 = sst [smem:[#allocation16_spill]] %s15046_s27  ;;  %p153_p7 = scmp.eq.s32.totalorder %s15030_s22, 3 }
  0x11   : > { %p159_p8 = scmp.eq.s32.totalorder %s9075_s23, 3  ;;  %p9076_p9 = scmp.ge.s32.totalorder %s14970_s21, 1 }
  0x12   : > { %p166_p10 = scmp.lt.s32.totalorder %s14970_s21, 5  ;;  %p15061_p11 = por %p153_p7, %p97_p0 }
  0x13   : > { %p15065_p12 = por %p159_p8, %p103_p3  ;;  %s16573_s1 = sld [smem:[#allocation18_spill]] }
  0x14   : > { %p15069_p13 = pnand %p9076_p9, %p166_p10  ;;  %s14972_s11 = smov [#allocation2]  }
  0x15   : > { %s16570_s6 = scalar_select %p15065_p12, 1, 0 }
  0x16   : > { %p14708_p0 = pneg %p15069_p13  ;;  %s182_s12 = sshll.u32 %s14972_s11, 4  ;;  %s183_s12 = int_to_ptr.vmem [resolvable:$true] %s182_s12 }
  0x17   : > { %16571 = sst [smem:[#allocation17_spill]] %s16570_s6  ;;  %p14728_p2 = scmp.lt.s32.totalorder %s14970_s21, 4 }
  0x18   : > { %p15080_p1 = pnand %p14708_p0, %p16559_p4  ;;  %s14973_s14 = smov 640  }
  0x19   : > { %s180_s10 = sshll.u32 %s16573_s1, 4  ;;  %s14974_s15 = smov 40   ;;  %s181_s10 = int_to_ptr.hbm [resolvable:$true] %s180_s10 }
  0x1a   : > { %14711 = dma.hbm_to_vmem [thread:$0]  (!%p15080_p1), %s181_s10, 81920, %s183_s12, [#allocation3], %s14973_s14, %s14973_s14, %s14974_s15  }
  0x1b   : > { %p15089_p3 = pnand %p14728_p2, %p15048_p5  ;;  %s208_s17 = sand.u32 1, %s14970_s21  }
  0x1c   : > { %s210_s23 = sand.u32 1, %s14966_s20   ;;  %s13567_s26 = smul.u32 24, %s14970_s21 }
  0x1d   : > { %s14689_s25 = smul.u32 3840, %s210_s23  ;;  %s16576_s3 = sld [smem:[#allocation19_spill]] }
  0x1e   : > { %s15101_s28 = scalar_lea.sflag [#allocation3], %s208_s17  ;;  %p14810_p7 = pneg %p15089_p3 }
  0x1f   : > { %s212_s1 = scalar_lea.vmem [#allocation7], %s14689_s25 }
  0x20   : > { %s220_s27 = sshll.u32 %s212_s1, 4  ;;  %s221_s27 = int_to_ptr.vmem [resolvable:$true] %s220_s27 }
  0x23   : > { %s217_s11 = scalar_lea.hbm %s16576_s3, %s13567_s26  ;;  %s14813_s25 = scalar_lea.hbm %s16576_s3, 15360 }
  0x24   : > { %s218_s24 = sshll.u32 %s217_s11, 4  ;;  %s219_s24 = int_to_ptr.hbm [resolvable:$true] %s218_s24 }
  0x25   : > { %s14806_s10 = sshra.s32 %s219_s24, 4  ;;  %s14807_s10 = int_to_ptr.hbm [resolvable:$true] %s14806_s10 }
  0x26   : > { %s14808_s12 = scalar_lea.hbm %s14807_s10, 3840  ;;  %p14814_p10 = scmp.lt.s32.totalorder %s14807_s10, %s16576_s3 }
  0x27   : > { %p14809_p5 = scmp.ne.s32.totalorder %s14807_s10, %s14808_s12  ;;  %p14815_p0 = scmp.lt.s32.totalorder %s14813_s25, %s14808_s12 }
  0x29   : > { %p14811_p8 = pnand %p14810_p7, %p14809_p5  ;;  %p14816_p2 = por %p14815_p0, %p14814_p10 }
  0x2b   : > { %p14812_p9 = pneg %p14811_p8 }
  0x2d   : > { %p14817_p4 = pnand %p14816_p2, %p14812_p9 }
  0x2f   : > { %14820 = shalt.err (!%p14817_p4)
}
  0x30   : > { %s14975_s17 = smov 1536   ;;  %s14976_s8 = smov 384  }
  0x31   : > { %s14977_s9 = smov 24   ;;  %s195_s15 = sshll.u32 %s16553_s2, 4  ;;  %s196_s15 = int_to_ptr.hbm [resolvable:$true] %s195_s15 }
  0x32   : > { %14718 = dma.hbm_to_vmem [thread:$0]  (!%p15089_p3), %s219_s24, 61440, %s221_s27, %s15101_s28, %s14975_s17, %s14976_s8, %s14977_s9  }
  0x33   : > { %s14978_s10 = smov [#allocation5]   ;;  %s14690_s25 = smul.u32 6, %s210_s23 }
  0x34   : > { %s197_s12 = sshll.u32 %s14978_s10, 4  ;;  %s235_s1 = smul.u32 6, %s14970_s21  ;;  %s198_s12 = int_to_ptr.vmem [resolvable:$true] %s197_s12 }
  0x35   : > { %14714 = dma.hbm_to_vmem [thread:$0]  (!%p15080_p1), %s196_s15, 160, %s198_s12, [#allocation6]  }
  0x36   : > { %s234_s26 = scalar_lea.vmem [#allocation8], %s14690_s25  ;;  %s238_s24 = scalar_lea.hbm %s16555_s4, %s235_s1 }
  0x37   : > { %s242_s3 = sshll.u32 %s234_s26, 4  ;;  %s240_s27 = sshll.u32 %s238_s24, 4  ;;  %s243_s3 = int_to_ptr.vmem [resolvable:$true] %s242_s3  ;;  %s241_s27 = int_to_ptr.hbm [resolvable:$true] %s240_s27 }
  0x38   : > { %s14866_s17 = sshra.s32 %s241_s27, 4  ;;  %s14873_s9 = scalar_lea.hbm %s16555_s4, 24  ;;  %s14867_s17 = int_to_ptr.hbm [resolvable:$true] %s14866_s17 }
  0x39   : > { %s14868_s8 = scalar_lea.hbm %s14867_s17, 6  ;;  %p14874_p1 = scmp.lt.s32.totalorder %s14867_s17, %s16555_s4 }
  0x3a   : > { %p14869_p4 = scmp.ne.s32.totalorder %s14867_s17, %s14868_s8  ;;  %p14875_p9 = scmp.lt.s32.totalorder %s14873_s9, %s14868_s8 }
  0x3c   : > { %p14871_p5 = pnand %p14869_p4, %p14810_p7  ;;  %p14876_p10 = por %p14875_p9, %p14874_p1 }
  0x3e   : > { %p14872_p8 = pneg %p14871_p5 }
  0x40   : > { %p14877_p0 = pnand %p14876_p10, %p14872_p8 }
  0x42   : > { %14880 = shalt.err (!%p14877_p0)
}
  0x43   : > { %14721 = dma.hbm_to_vmem [thread:$0]  (!%p15089_p3), %s241_s27, 96, %s243_s3, %s15101_s28  }
  0x44   : > { %251 = sbr.rel (%p15069_p13) target bundleno = 1361 (0x551), region = 40  ;;  %p16577_p7 = scmp.eq.s32.totalorder (!%p15069_p13), %s15030_s22, 0 }
  0x49   : > { %14941 = dma.done.wait (%p16577_p7), [#allocation3], 81920   ;;  %p16578_p2 = pmov %p16577_p7 }
  0x4b   : > { %14943 = vsyncadd (%p16578_p2), [#allocation3], 4294885376  ;;  %p16579_p4 = pmov %p16578_p2 }
  0x4c   : > { %p16580_p5 = pmov %p16578_p2 }
  0x4d   : > { %14945 = dma.done.wait (%p16579_p4), [#allocation6], 160  }
  0x4e   : > { %14947 = vsyncadd (%p16580_p5), [#allocation6], 4294967136  ;;  %s263_s18 = sand.u32 1, %s15030_s22   ;;  %s15152_s3 = sand.u32 1, %s14962_s19  }
  0x4f   : > { %s14691_s6 = smul.u32 3840, %s15152_s3  ;;  %s264_s7 = scalar_lea.sflag [#allocation3], %s263_s18 }
  0x51   : > { %s15155_s16 = scalar_lea.vmem [#allocation7], %s14691_s6 }
  0x52   : > { %14949 = dma.done.wait (%p15054_p6), %s264_s7, 61536  }
  0x53   : > { %14951 = vsyncadd (%p15054_p6), %s264_s7, 4294905760  ;;  %v9366_v0 = vld [vmem:[#allocation2 + $0x230] sm:$0xf]  ;;  %v13643_v1 = vld [vmem:[#allocation2 + $0x254] sm:$0xf0]  ;;  %s14692_s24 = smul.u32 6, %s15152_s3 }
  0x54   : > { %v9686_v2 = vld [vmem:[#allocation2 + $0x4b0] sm:$0xf]  ;;  %v9367_v3 = vor.u32 %v13643_v1, %v9366_v0  ;;  %v13723_v4 = vld [vmem:[#allocation2 + $0x4d4] sm:$0xf0]  ;;  %v9326_v11 = vld [vmem:[#allocation2 + $0x1e0] sm:$0xf] }
  0x55   : > { %v10006_v5 = vld [vmem:[#allocation2 + $0x730] sm:$0xf]  ;;  %v13803_v6 = vld [vmem:[#allocation2 + $0x754] sm:$0xf0]  ;;  %v9687_v7 = vor.u32 %v13723_v4, %v9686_v2  ;;  %v13633_v13 = vld [vmem:[#allocation2 + $0x204] sm:$0xf0] }
  0x56   : > { %v10007_v8 = vor.u32 %v13803_v6, %v10006_v5  ;;  %v10326_v9 = vld [vmem:[#allocation2 + $0x9b0] sm:$0xf]  ;;  %v13883_v10 = vld [vmem:[#allocation2 + $0x9d4] sm:$0xf0]  ;;  %4209 = vmatpush.bf16.msra.mxu0 %v9367_v3  ;;  %v9646_v14 = vld [vmem:[#allocation2 + $0x460] sm:$0xf]  ;;  %v9327_v16 = vor.u32 %v13633_v13, %v9326_v11 }
  0x57   : > { %v10327_v12 = vor.u32 %v13883_v10, %v10326_v9  ;;  %v13713_v15 = vld [vmem:[#allocation2 + $0x484] sm:$0xf0]  ;;  %4222 = vmatpush.bf16.msra.mxu1 %v9687_v7  ;;  %v9966_v18 = vld [vmem:[#allocation2 + $0x6e0] sm:$0xf]  ;;  %v9286_v23 = vld [vmem:[#allocation2 + $0x190] sm:$0xf] }
  0x58   : > { %4235 = vmatpush.bf16.msra.mxu2 %v10007_v8  ;;  %v9647_v17 = vor.u32 %v13713_v15, %v9646_v14  ;;  %v13793_v19 = vld [vmem:[#allocation2 + $0x704] sm:$0xf0]  ;;  %v10286_v20 = vld [vmem:[#allocation2 + $0x960] sm:$0xf]  ;;  %v13623_v24 = vld [vmem:[#allocation2 + $0x1b4] sm:$0xf0] }
  0x59   : > { %4248 = vmatpush.bf16.msra.mxu3 %v10327_v12  ;;  %v9967_v21 = vor.u32 %v13793_v19, %v9966_v18  ;;  %v13873_v22 = vld [vmem:[#allocation2 + $0x984] sm:$0xf0]  ;;  %v9606_v26 = vld [vmem:[#allocation2 + $0x410] sm:$0xf]  ;;  %v13703_v27 = vld [vmem:[#allocation2 + $0x434] sm:$0xf0]  ;;  %v9287_v29 = vor.u32 %v13623_v24, %v9286_v23 }
  0x5a   : > { %v10287_v25 = vor.u32 %v13873_v22, %v10286_v20  ;;  %v9926_v28 = vld [vmem:[#allocation2 + $0x690] sm:$0xf]  ;;  %4210 = vmatpush.bf16.msra.mxu0 %v9327_v16  ;;  %v13783_v30 = vld [vmem:[#allocation2 + $0x6b4] sm:$0xf0]  ;;  %v9607_v33 = vor.u32 %v13703_v27, %v9606_v26  ;;  %v9246_v35 = vld [vmem:[#allocation2 + $0x140] sm:$0xf] }
  0x5b   : > { %v10246_v31 = vld [vmem:[#allocation2 + $0x910] sm:$0xf]  ;;  %v13863_v32 = vld [vmem:[#allocation2 + $0x934] sm:$0xf0]  ;;  %4223 = vmatpush.bf16.msra.mxu1 %v9647_v17  ;;  %v9927_v34 = vor.u32 %v13783_v30, %v9926_v28  ;;  %v13613_v36 = vld [vmem:[#allocation2 + $0x164] sm:$0xf0] }
  0x5c   : > { %4236 = vmatpush.bf16.msra.mxu2 %v9967_v21  ;;  %v9566_v37 = vld [vmem:[#allocation2 + $0x3c0] sm:$0xf]  ;;  %v10247_v38 = vor.u32 %v13863_v32, %v10246_v31  ;;  %v13693_v39 = vld [vmem:[#allocation2 + $0x3e4] sm:$0xf0]  ;;  %v9247_v44 = vor.u32 %v13613_v36, %v9246_v35  ;;  %v9206_v47 = vld [vmem:[#allocation2 + $0xf0] sm:$0xf] }
  0x5d   : > { %4249 = vmatpush.bf16.msra.mxu3 %v10287_v25  ;;  %v9886_v40 = vld [vmem:[#allocation2 + $0x640] sm:$0xf]  ;;  %v13773_v41 = vld [vmem:[#allocation2 + $0x664] sm:$0xf0]  ;;  %v9567_v45 = vor.u32 %v13693_v39, %v9566_v37  ;;  %v13603_v48 = vld [vmem:[#allocation2 + $0x114] sm:$0xf0] }
  0x5e   : > { %v10206_v42 = vld [vmem:[#allocation2 + $0x8c0] sm:$0xf]  ;;  %v13853_v43 = vld [vmem:[#allocation2 + $0x8e4] sm:$0xf0]  ;;  %4211 = vmatpush.bf16.msra.mxu0 %v9287_v29  ;;  %v9887_v46 = vor.u32 %v13773_v41, %v9886_v40  ;;  %v9526_v49 = vld [vmem:[#allocation2 + $0x370] sm:$0xf]  ;;  %v9207_v56 = vor.u32 %v13603_v48, %v9206_v47 }
  0x5f   : > { %4224 = vmatpush.bf16.msra.mxu1 %v9607_v33  ;;  %v10207_v50 = vor.u32 %v13853_v43, %v10206_v42  ;;  %v13683_v51 = vld [vmem:[#allocation2 + $0x394] sm:$0xf0]  ;;  %v9846_v52 = vld [vmem:[#allocation2 + $0x5f0] sm:$0xf]  ;;  %v9166_v59 = vld [vmem:[#allocation2 + $0xa0] sm:$0xf] }
  0x60   : > { %4237 = vmatpush.bf16.msra.mxu2 %v9927_v34  ;;  %v13763_v53 = vld [vmem:[#allocation2 + $0x614] sm:$0xf0]  ;;  %v10166_v54 = vld [vmem:[#allocation2 + $0x870] sm:$0xf]  ;;  %v9527_v57 = vor.u32 %v13683_v51, %v9526_v49  ;;  %v13593_v60 = vld [vmem:[#allocation2 + $0xc4] sm:$0xf0] }
  0x61   : > { %4250 = vmatpush.bf16.msra.mxu3 %v10247_v38  ;;  %v13843_v55 = vld [vmem:[#allocation2 + $0x894] sm:$0xf0]  ;;  %v9847_v58 = vor.u32 %v13763_v53, %v9846_v52  ;;  %v9486_v61 = vld [vmem:[#allocation2 + $0x320] sm:$0xf]  ;;  %v13673_v63 = vld [vmem:[#allocation2 + $0x344] sm:$0xf0]  ;;  %v9167_v4 = vor.u32 %v13593_v60, %v9166_v59 }
  0x62   : > { %4212 = vmatpush.bf16.msra.mxu0 %v9247_v44  ;;  %v10167_v62 = vor.u32 %v13843_v55, %v10166_v54  ;;  %v9806_v0 = vld [vmem:[#allocation2 + $0x5a0] sm:$0xf]  ;;  %v13753_v1 = vld [vmem:[#allocation2 + $0x5c4] sm:$0xf0]  ;;  %v9487_v5 = vor.u32 %v13673_v63, %v9486_v61  ;;  %v9126_v7 = vld [vmem:[#allocation2 + $0x50] sm:$0xf] }
  0x63   : > { %4225 = vmatpush.bf16.msra.mxu1 %v9567_v45  ;;  %v10126_v2 = vld [vmem:[#allocation2 + $0x820] sm:$0xf]  ;;  %v13833_v3 = vld [vmem:[#allocation2 + $0x844] sm:$0xf0]  ;;  %v9807_v6 = vor.u32 %v13753_v1, %v9806_v0  ;;  %v13583_v8 = vld [vmem:[#allocation2 + $0x74] sm:$0xf0] }
  0x64   : > { %4238 = vmatpush.bf16.msra.mxu2 %v9887_v46  ;;  %v9446_v9 = vld [vmem:[#allocation2 + $0x2d0] sm:$0xf]  ;;  %v10127_v10 = vor.u32 %v13833_v3, %v10126_v2  ;;  %v13663_v11 = vld [vmem:[#allocation2 + $0x2f4] sm:$0xf0]  ;;  %v9127_v16 = vor.u32 %v13583_v8, %v9126_v7  ;;  %v9086_v17 = vld [vmem:[#allocation2] sm:$0xf] }
  0x65   : > { %4251 = vmatpush.bf16.msra.mxu3 %v10207_v50  ;;  %v9766_v12 = vld [vmem:[#allocation2 + $0x550] sm:$0xf]  ;;  %v13743_v13 = vld [vmem:[#allocation2 + $0x574] sm:$0xf0]  ;;  %v13573_v18 = vld [vmem:[#allocation2 + $0x24] sm:$0xf0]  ;;  %v9447_v19 = vor.u32 %v13663_v11, %v9446_v9 }
  0x66   : > { %4213 = vmatpush.bf16.msra.mxu0 %v9207_v56  ;;  %v10086_v14 = vld [vmem:[#allocation2 + $0x7d0] sm:$0xf]  ;;  %v13823_v15 = vld [vmem:[#allocation2 + $0x7f4] sm:$0xf0]  ;;  %v9767_v20 = vor.u32 %v13743_v13, %v9766_v12  ;;  %v9406_v21 = vld [vmem:[#allocation2 + $0x280] sm:$0xf]  ;;  %v9087_v31 = vor.u32 %v13573_v18, %v9086_v17 }
  0x67   : > { %4226 = vmatpush.bf16.msra.mxu1 %v9527_v57  ;;  %v13653_v22 = vld [vmem:[#allocation2 + $0x2a4] sm:$0xf0]  ;;  %v9726_v23 = vld [vmem:[#allocation2 + $0x500] sm:$0xf]  ;;  %v10087_v24 = vor.u32 %v13823_v15, %v10086_v14  ;;  %v10646_v28 = vld [vmem:[#allocation2 + $0xc30] sm:$0xf] }
  0x68   : > { %4239 = vmatpush.bf16.msra.mxu2 %v9847_v58  ;;  %v13733_v25 = vld [vmem:[#allocation2 + $0x524] sm:$0xf0]  ;;  %v10046_v26 = vld [vmem:[#allocation2 + $0x780] sm:$0xf]  ;;  %v13963_v29 = vld [vmem:[#allocation2 + $0xc54] sm:$0xf0]  ;;  %v9407_v35 = vor.u32 %v13653_v22, %v9406_v21 }
  0x69   : > { %4252 = vmatpush.bf16.msra.mxu3 %v10167_v62  ;;  %v13813_v27 = vld [vmem:[#allocation2 + $0x7a4] sm:$0xf0]  ;;  %v10966_v30 = vld [vmem:[#allocation2 + $0xeb0] sm:$0xf]  ;;  %v14043_v32 = vld [vmem:[#allocation2 + $0xed4] sm:$0xf0]  ;;  %v9727_v36 = vor.u32 %v13733_v25, %v9726_v23  ;;  %v10647_v40 = vor.u32 %v13963_v29, %v10646_v28 }
  0x6a   : > { %4214 = vmatpush.bf16.msra.mxu0 %v9167_v4  ;;  %v11286_v33 = vld [vmem:[#allocation2 + $0x1130] sm:$0xf]  ;;  %v14123_v34 = vld [vmem:[#allocation2 + $0x1154] sm:$0xf0]  ;;  %v10047_v39 = vor.u32 %v13813_v27, %v10046_v26  ;;  %v10967_v41 = vor.u32 %v14043_v32, %v10966_v30  ;;  %v10606_v43 = vld [vmem:[#allocation2 + $0xbe0] sm:$0xf] }
  0x6b   : > { %4227 = vmatpush.bf16.msra.mxu1 %v9487_v5  ;;  %v11606_v37 = vld [vmem:[#allocation2 + $0x13b0] sm:$0xf]  ;;  %v14203_v38 = vld [vmem:[#allocation2 + $0x13d4] sm:$0xf0]  ;;  %v11287_v42 = vor.u32 %v14123_v34, %v11286_v33  ;;  %v13953_v44 = vld [vmem:[#allocation2 + $0xc04] sm:$0xf0] }
  0x6c   : > { %4240 = vmatpush.bf16.msra.mxu2 %v9807_v6  ;;  %v10926_v45 = vld [vmem:[#allocation2 + $0xe60] sm:$0xf]  ;;  %v11607_v46 = vor.u32 %v14203_v38, %v11606_v37  ;;  %v14033_v47 = vld [vmem:[#allocation2 + $0xe84] sm:$0xf0]  ;;  %v10607_v52 = vor.u32 %v13953_v44, %v10606_v43  ;;  %v10566_v53 = vld [vmem:[#allocation2 + $0xb90] sm:$0xf] }
  0x6d   : > { %4253 = vmatpush.bf16.msra.mxu3 %v10127_v10  ;;  %v11246_v48 = vld [vmem:[#allocation2 + $0x10e0] sm:$0xf]  ;;  %v14113_v49 = vld [vmem:[#allocation2 + $0x1104] sm:$0xf0]  ;;  %v10927_v54 = vor.u32 %v14033_v47, %v10926_v45  ;;  %v13943_v56 = vld [vmem:[#allocation2 + $0xbb4] sm:$0xf0] }
  0x6e   : > { %4215 = vmatpush.bf16.msra.mxu0 %v9127_v16  ;;  %v11566_v50 = vld [vmem:[#allocation2 + $0x1360] sm:$0xf]  ;;  %v14193_v51 = vld [vmem:[#allocation2 + $0x1384] sm:$0xf0]  ;;  %v11247_v55 = vor.u32 %v14113_v49, %v11246_v48  ;;  %v10886_v57 = vld [vmem:[#allocation2 + $0xe10] sm:$0xf]  ;;  %v10567_v0 = vor.u32 %v13943_v56, %v10566_v53 }
  0x6f   : > { %4228 = vmatpush.bf16.msra.mxu1 %v9447_v19  ;;  %v14023_v58 = vld [vmem:[#allocation2 + $0xe34] sm:$0xf0]  ;;  %v11567_v59 = vor.u32 %v14193_v51, %v11566_v50  ;;  %v11206_v60 = vld [vmem:[#allocation2 + $0x1090] sm:$0xf]  ;;  %v314_v2 = vld [vmem:[%s16551_s0 + $0x8] sm:$0xff]  ;;  %s15735_s27 = scalar_lea.vmem [#allocation8], %s14692_s24 }
  0x70   : > { %4241 = vmatpush.bf16.msra.mxu2 %v9767_v20  ;;  %v14103_v61 = vld [vmem:[#allocation2 + $0x10b4] sm:$0xf0]  ;;  %v11526_v62 = vld [vmem:[#allocation2 + $0x1310] sm:$0xf]  ;;  %v10887_v1 = vor.u32 %v14023_v58, %v10886_v57  ;;  %v313_v3 = vld [vmem:[%s16551_s0] sm:$0xff]  ;;  %v987_v8 = vunpack.c.l.b16 %v314_v2  ;;  %v988_v10 = vunpack.c.h.b16 %v314_v2  ;;  %s14693_s17 = smul.u32 48, %s15152_s3 }
  0x71   : > { %4254 = vmatpush.bf16.msra.mxu3 %v10087_v24  ;;  %v14183_v63 = vld [vmem:[#allocation2 + $0x1334] sm:$0xf0]  ;;  %v11207_v4 = vor.u32 %v14103_v61, %v11206_v60  ;;  %v10526_v5 = vld [vmem:[#allocation2 + $0xb40] sm:$0xf]  ;;  %v13933_v6 = vld [vmem:[#allocation2 + $0xb64] sm:$0xf0]  ;;  %v985_v9 = vunpack.c.l.b16 %v313_v3  ;;  %v986_v15 = vunpack.c.h.b16 %v313_v3 }
  0x72   : > { %4216 = vmatpush.bf16.msra.mxu0 %v9087_v31  ;;  %v10846_v7 = vld [vmem:[#allocation2 + $0xdc0] sm:$0xf]  ;;  %v11527_v11 = vor.u32 %v14183_v63, %v11526_v62  ;;  %v14013_v12 = vld [vmem:[#allocation2 + $0xde4] sm:$0xf0]  ;;  %v15167_v18 = vpack.c.b16 %v987_v8, %v987_v8  ;;  %v15171_v20 = vpack.c.b16 %v988_v10, %v988_v10  ;;  %v10527_v21 = vor.u32 %v13933_v6, %v10526_v5  ;;  %v10486_v25 = vld [vmem:[#allocation2 + $0xaf0] sm:$0xf] }
  0x73   : > { %4229 = vmatpush.bf16.msra.mxu1 %v9407_v35  ;;  %v11166_v13 = vld [vmem:[#allocation2 + $0x1040] sm:$0xf]  ;;  %v14093_v14 = vld [vmem:[#allocation2 + $0x1064] sm:$0xf0]  ;;  %v15169_v19 = vpack.c.b16 %v985_v9, %v985_v9  ;;  %v15173_v22 = vpack.c.b16 %v986_v15, %v986_v15  ;;  %v10847_v23 = vor.u32 %v14013_v12, %v10846_v7  ;;  %v13923_v26 = vld [vmem:[#allocation2 + $0xb14] sm:$0xf0] }
  0x74   : > { %4242 = vmatpush.bf16.msra.mxu2 %v9727_v36  ;;  %v11486_v16 = vld [vmem:[#allocation2 + $0x12c0] sm:$0xf]  ;;  %v14173_v17 = vld [vmem:[#allocation2 + $0x12e4] sm:$0xf0]  ;;  %v11167_v24 = vor.u32 %v14093_v14, %v11166_v13  ;;  %v10806_v27 = vld [vmem:[#allocation2 + $0xd70] sm:$0xf]  ;;  %v10487_v34 = vor.u32 %v13923_v26, %v10486_v25 }
  0x75   : > { %4255 = vmatpush.bf16.msra.mxu3 %v10047_v39  ;;  %v11487_v28 = vor.u32 %v14173_v17, %v11486_v16  ;;  %v14003_v29 = vld [vmem:[#allocation2 + $0xd94] sm:$0xf0]  ;;  %v11126_v30 = vld [vmem:[#allocation2 + $0xff0] sm:$0xf]  ;;  %4217 = vmatmul.bf16.vlgmr.msra.gmra.mxu0 %v15169_v19  ;;  %v10446_v37 = vld [vmem:[#allocation2 + $0xaa0] sm:$0xf] }
  0x76   : > { %4261 = vmatpush.bf16.msrb.mxu0 %v10647_v40  ;;  %v14083_v31 = vld [vmem:[#allocation2 + $0x1014] sm:$0xf0]  ;;  %v11446_v32 = vld [vmem:[#allocation2 + $0x1270] sm:$0xf]  ;;  %4230 = vmatmul.bf16.vlgmr.msra.gmra.mxu1 %v15173_v22  ;;  %v10807_v35 = vor.u32 %v14003_v29, %v10806_v27  ;;  %v13913_v38 = vld [vmem:[#allocation2 + $0xac4] sm:$0xf0] }
  0x77   : > { %4274 = vmatpush.bf16.msrb.mxu1 %v10967_v41  ;;  %4243 = vmatmul.bf16.vlgmr.msra.gmra.mxu2 %v15167_v18  ;;  %v14163_v33 = vld [vmem:[#allocation2 + $0x1294] sm:$0xf0]  ;;  %v11127_v36 = vor.u32 %v14083_v31, %v11126_v30  ;;  %v10766_v39 = vld [vmem:[#allocation2 + $0xd20] sm:$0xf]  ;;  %v13993_v41 = vld [vmem:[#allocation2 + $0xd44] sm:$0xf0] }
  0x78   : > { %4287 = vmatpush.bf16.msrb.mxu2 %v11287_v42  ;;  %4256 = vmatmul.bf16.vlgmr.msra.gmra.mxu3 %v15171_v20  ;;  %v11447_v40 = vor.u32 %v14163_v33, %v11446_v32  ;;  %v11086_v42 = vld [vmem:[#allocation2 + $0xfa0] sm:$0xf]  ;;  %v14073_v43 = vld [vmem:[#allocation2 + $0xfc4] sm:$0xf0]  ;;  %v10767_v47 = vor.u32 %v13993_v41, %v10766_v39  ;;  %v10406_v49 = vld [vmem:[#allocation2 + $0xa50] sm:$0xf] }
  0x79   : > { %4300 = vmatpush.bf16.msrb.mxu3 %v11607_v46  ;;  %v11406_v44 = vld [vmem:[#allocation2 + $0x1220] sm:$0xf]  ;;  %v14153_v45 = vld [vmem:[#allocation2 + $0x1244] sm:$0xf0]  ;;  %v10447_v46 = vor.u32 %v13913_v38, %v10446_v37  ;;  %v11087_v48 = vor.u32 %v14073_v43, %v11086_v42  ;;  %v13903_v50 = vld [vmem:[#allocation2 + $0xa74] sm:$0xf0] }
  0x7a   : > { %4262 = vmatpush.bf16.msrb.mxu0 %v10607_v52  ;;  %v10726_v51 = vld [vmem:[#allocation2 + $0xcd0] sm:$0xf]  ;;  %v11407_v52 = vor.u32 %v14153_v45, %v11406_v44  ;;  %v13983_v53 = vld [vmem:[#allocation2 + $0xcf4] sm:$0xf0]  ;;  %v10366_v58 = vld [vmem:[#allocation2 + $0xa00] sm:$0xf] }
  0x7b   : > { %4275 = vmatpush.bf16.msrb.mxu1 %v10927_v54  ;;  %v11046_v54 = vld [vmem:[#allocation2 + $0xf50] sm:$0xf]  ;;  %v14143_v57 = vld [vmem:[#allocation2 + $0x11f4] sm:$0xf0]  ;;  %v13893_v60 = vld [vmem:[#allocation2 + $0xa24] sm:$0xf0]  ;;  %v10727_v63 = vor.u32 %v13983_v53, %v10726_v51 }
  0x7c   : > { %4288 = vmatpush.bf16.msrb.mxu2 %v11247_v55  ;;  %v14063_v55 = vld [vmem:[#allocation2 + $0xf74] sm:$0xf0]  ;;  %v11366_v56 = vld [vmem:[#allocation2 + $0x11d0] sm:$0xf]  ;;  %v10686_v61 = vld [vmem:[#allocation2 + $0xc80] sm:$0xf] }
  0x7d   : > { %4301 = vmatpush.bf16.msrb.mxu3 %v11567_v59  ;;  %v10407_v59 = vor.u32 %v13903_v50, %v10406_v49  ;;  %v13973_v62 = vld [vmem:[#allocation2 + $0xca4] sm:$0xf0]  ;;  %v316_v3 = vld [vmem:[%s16551_s0 + $0x18] sm:$0xff]  ;;  %v11326_v5 = vld [vmem:[#allocation2 + $0x1180] sm:$0xf]  ;;  %s16037_s8 = scalar_lea.vmem [#allocation9], %s14693_s17 }
  0x7e   : > { %4263 = vmatpush.bf16.msrb.mxu0 %v10567_v0  ;;  %v11047_v0 = vor.u32 %v14063_v55, %v11046_v54  ;;  %v14053_v2 = vld [vmem:[#allocation2 + $0xf24] sm:$0xf0]  ;;  %v315_v7 = vld [vmem:[%s16551_s0 + $0x10] sm:$0xff]  ;;  %v9368_v9 = vld [vmem:[#allocation2 + $0x258] sm:$0xf0]  ;;  %v991_v15 = vunpack.c.l.b16 %v316_v3  ;;  %v10687_v16 = vor.u32 %v13973_v62, %v10686_v61  ;;  %v992_v25 = vunpack.c.h.b16 %v316_v3  ;;  %s14688_s13 = smul.u32 48, %s15030_s22 }
  0x7f   : > { %4276 = vmatpush.bf16.msrb.mxu1 %v10887_v1  ;;  %v11006_v1 = vld [vmem:[#allocation2 + $0xf00] sm:$0xf]  ;;  %v14133_v6 = vld [vmem:[#allocation2 + $0x11a4] sm:$0xf0]  ;;  %v13638_v8 = vld [vmem:[#allocation2 + $0x234] sm:$0xf] }
  0x80   : > { %4289 = vmatpush.bf16.msrb.mxu2 %v11207_v4  ;;  %v11367_v4 = vor.u32 %v14143_v57, %v11366_v56  ;;  %v13718_v10 = vld [vmem:[#allocation2 + $0x4b4] sm:$0xf]  ;;  %v9688_v12 = vld [vmem:[#allocation2 + $0x4d8] sm:$0xf0]  ;;  %v11007_v17 = vor.u32 %v14053_v2, %v11006_v1  ;;  %v11327_v26 = vor.u32 %v14133_v6, %v11326_v5  ;;  %v9371_v27 = vor.u32 %v13638_v8, %v9368_v9  ;;  %v13628_v31 = vld [vmem:[#allocation2 + $0x1e4] sm:$0xf]  ;;  %s8961_s11 = scalar_lea.hbm %s16556_s5, %s14688_s13 }
  0x81   : > { %4302 = vmatpush.bf16.msrb.mxu3 %v11527_v11  ;;  %v10367_v11 = vor.u32 %v13893_v60, %v10366_v58  ;;  %v13798_v13 = vld [vmem:[#allocation2 + $0x734] sm:$0xf]  ;;  %v10008_v14 = vld [vmem:[#allocation2 + $0x758] sm:$0xf0]  ;;  %v9691_v29 = vor.u32 %v13718_v10, %v9688_v12  ;;  %v9328_v32 = vld [vmem:[#allocation2 + $0x208] sm:$0xf0]  ;;  %v15185_v38 = vpack.c.b16 %v991_v15, %v991_v15  ;;  %v15189_v42 = vpack.c.b16 %v992_v25, %v992_v25 }
  0x82   : > { %4264 = vmatpush.bf16.msrb.mxu0 %v10527_v21  ;;  %v13878_v21 = vld [vmem:[#allocation2 + $0x9b4] sm:$0xf]  ;;  %v10011_v30 = vor.u32 %v13798_v13, %v10008_v14  ;;  %v13708_v33 = vld [vmem:[#allocation2 + $0x464] sm:$0xf]  ;;  %v9968_v37 = vld [vmem:[#allocation2 + $0x708] sm:$0xf0]  ;;  %v9331_v43 = vor.u32 %v13628_v31, %v9328_v32 }
  0x83   : > { %4277 = vmatpush.bf16.msrb.mxu1 %v10847_v23  ;;  %v10328_v23 = vld [vmem:[#allocation2 + $0x9d8] sm:$0xf0]  ;;  %v13868_v39 = vld [vmem:[#allocation2 + $0x964] sm:$0xf]  ;;  %v13698_v49 = vld [vmem:[#allocation2 + $0x414] sm:$0xf] }
  0x84   : > { %4290 = vmatpush.bf16.msrb.mxu2 %v11167_v24  ;;  %v989_v24 = vunpack.c.l.b16 %v315_v7  ;;  %v9608_v51 = vld [vmem:[#allocation2 + $0x438] sm:$0xf0]  ;;  %v13858_v54 = vld [vmem:[#allocation2 + $0x914] sm:$0xf]  ;;  %v9248_v60 = vld [vmem:[#allocation2 + $0x168] sm:$0xf0] }
  0x85   : > { %4303 = vmatpush.bf16.msrb.mxu3 %v11487_v28  ;;  %v990_v28 = vunpack.c.h.b16 %v315_v7  ;;  %v9928_v53 = vld [vmem:[#allocation2 + $0x6b8] sm:$0xf0]  ;;  %v9611_v57 = vor.u32 %v13698_v49, %v9608_v51  ;;  %v13688_v61 = vld [vmem:[#allocation2 + $0x3c4] sm:$0xf]  ;;  %v9888_v1 = vld [vmem:[#allocation2 + $0x668] sm:$0xf0] }
  0x86   : > { %4265 = vmatpush.bf16.msrb.mxu0 %v10487_v34  ;;  %v10331_v34 = vor.u32 %v13878_v21, %v10328_v23  ;;  %v15187_v41 = vpack.c.b16 %v989_v24, %v989_v24  ;;  %v10248_v55 = vld [vmem:[#allocation2 + $0x938] sm:$0xf0]  ;;  %v13848_v2 = vld [vmem:[#allocation2 + $0x8c4] sm:$0xf]  ;;  %v10208_v3 = vld [vmem:[#allocation2 + $0x8e8] sm:$0xf0] }
  0x87   : > { %4278 = vmatpush.bf16.msrb.mxu1 %v10807_v35  ;;  %v9648_v35 = vld [vmem:[#allocation2 + $0x488] sm:$0xf0]  ;;  %v15191_v44 = vpack.c.b16 %v990_v28, %v990_v28  ;;  %v10251_v62 = vor.u32 %v13858_v54, %v10248_v55  ;;  %v13598_v7 = vld [vmem:[#allocation2 + $0xf4] sm:$0xf]  ;;  %v9208_v8 = vld [vmem:[#allocation2 + $0x118] sm:$0xf0]  ;;  %v10211_v10 = vor.u32 %v13848_v2, %v10208_v3 }
  0x88   : > { %4291 = vmatpush.bf16.msrb.mxu2 %v11127_v36  ;;  %v13788_v36 = vld [vmem:[#allocation2 + $0x6e4] sm:$0xf]  ;;  %v9651_v45 = vor.u32 %v13708_v33, %v9648_v35  ;;  %v13678_v9 = vld [vmem:[#allocation2 + $0x374] sm:$0xf]  ;;  %v9848_v13 = vld [vmem:[#allocation2 + $0x618] sm:$0xf0] }
  0x89   : > { %4304 = vmatpush.bf16.msrb.mxu3 %v11447_v40  ;;  %v10288_v40 = vld [vmem:[#allocation2 + $0x988] sm:$0xf0]  ;;  %v13758_v12 = vld [vmem:[#allocation2 + $0x5f4] sm:$0xf]  ;;  %v10168_v15 = vld [vmem:[#allocation2 + $0x898] sm:$0xf0] }
  0x8a   : > { %4266 = vmatpush.bf16.msrb.mxu0 %v10447_v46  ;;  %v9971_v46 = vor.u32 %v13788_v36, %v9968_v37  ;;  %v10291_v50 = vor.u32 %v13868_v39, %v10288_v40  ;;  %v13838_v14 = vld [vmem:[#allocation2 + $0x874] sm:$0xf]  ;;  %v9851_v21 = vor.u32 %v13758_v12, %v9848_v13  ;;  %v13588_v23 = vld [vmem:[#allocation2 + $0xa4] sm:$0xf]  ;;  %v9168_v24 = vld [vmem:[#allocation2 + $0xc8] sm:$0xf0] }
  0x8b   : > { %4279 = vmatpush.bf16.msrb.mxu1 %v10767_v47  ;;  %v13618_v47 = vld [vmem:[#allocation2 + $0x194] sm:$0xf]  ;;  %v13668_v25 = vld [vmem:[#allocation2 + $0x324] sm:$0xf]  ;;  %v10128_v31 = vld [vmem:[#allocation2 + $0x848] sm:$0xf0]  ;;  %v9171_v32 = vor.u32 %v13588_v23, %v9168_v24 }
  0x8c   : > { %4292 = vmatpush.bf16.msrb.mxu2 %v11087_v48  ;;  %v9288_v48 = vld [vmem:[#allocation2 + $0x1b8] sm:$0xf0]  ;;  %v13748_v28 = vld [vmem:[#allocation2 + $0x5a4] sm:$0xf]  ;;  %v13578_v35 = vld [vmem:[#allocation2 + $0x54] sm:$0xf] }
  0x8d   : > { %4305 = vmatpush.bf16.msrb.mxu3 %v11407_v52  ;;  %v13778_v52 = vld [vmem:[#allocation2 + $0x694] sm:$0xf]  ;;  %v9291_v56 = vor.u32 %v13618_v47, %v9288_v48  ;;  %v9128_v36 = vld [vmem:[#allocation2 + $0x78] sm:$0xf0]  ;;  %v13568_v49 = vld [vmem:[#allocation2 + $0x4] sm:$0xf] }
  0x8e   : > { %4267 = vmatpush.bf16.msrb.mxu0 %v10407_v59  ;;  %v9931_v58 = vor.u32 %v13778_v52, %v9928_v53  ;;  %v13608_v59 = vld [vmem:[#allocation2 + $0x144] sm:$0xf]  ;;  %v13658_v37 = vld [vmem:[#allocation2 + $0x2d4] sm:$0xf]  ;;  %v9448_v40 = vld [vmem:[#allocation2 + $0x2f8] sm:$0xf0]  ;;  %v9131_v48 = vor.u32 %v13578_v35, %v9128_v36 }
  0x8f   : > { %4280 = vmatpush.bf16.msrb.mxu1 %v10727_v63  ;;  %v9568_v63 = vld [vmem:[#allocation2 + $0x3e8] sm:$0xf0]  ;;  %v10088_v47 = vld [vmem:[#allocation2 + $0x7f8] sm:$0xf0]  ;;  %v9451_v51 = vor.u32 %v13658_v37, %v9448_v40  ;;  %v13648_v53 = vld [vmem:[#allocation2 + $0x284] sm:$0xf] }
  0x90   : > { %4293 = vmatpush.bf16.msrb.mxu2 %v11047_v0  ;;  %v13768_v0 = vld [vmem:[#allocation2 + $0x644] sm:$0xf]  ;;  %v9571_v5 = vor.u32 %v13688_v61, %v9568_v63  ;;  %v9408_v54 = vld [vmem:[#allocation2 + $0x2a8] sm:$0xf0]  ;;  %v10648_v61 = vld [vmem:[#allocation2 + $0xc58] sm:$0xf0] }
  0x91   : > { %4306 = vmatpush.bf16.msrb.mxu3 %v11367_v4  ;;  %v9251_v4 = vor.u32 %v13608_v59, %v9248_v60  ;;  %v9891_v6 = vor.u32 %v13768_v0, %v9888_v1  ;;  %v13728_v55 = vld [vmem:[#allocation2 + $0x504] sm:$0xf]  ;;  %v10048_v59 = vld [vmem:[#allocation2 + $0x7a8] sm:$0xf0]  ;;  %v13958_v60 = vld [vmem:[#allocation2 + $0xc34] sm:$0xf]  ;;  %v9411_v3 = vor.u32 %v13648_v53, %v9408_v54 }
  0x92   : > { %4268 = vmatpush.bf16.msrb.mxu0 %v10367_v11  ;;  %v9528_v11 = vld [vmem:[#allocation2 + $0x398] sm:$0xf0]  ;;  %v14118_v1 = vld [vmem:[#allocation2 + $0x1134] sm:$0xf]  ;;  %v10608_v12 = vld [vmem:[#allocation2 + $0xc08] sm:$0xf0] }
  0x93   : > { %4281 = vmatpush.bf16.msrb.mxu1 %v10687_v16  ;;  %v9211_v16 = vor.u32 %v13598_v7, %v9208_v8  ;;  %v10968_v0 = vld [vmem:[#allocation2 + $0xed8] sm:$0xf0]  ;;  %v10651_v8 = vor.u32 %v13958_v60, %v10648_v61  ;;  %v14028_v13 = vld [vmem:[#allocation2 + $0xe64] sm:$0xf]  ;;  %v11568_v23 = vld [vmem:[#allocation2 + $0x1388] sm:$0xf0] }
  0x94   : > { %4294 = vmatpush.bf16.msrb.mxu2 %v11007_v17  ;;  %v9531_v17 = vor.u32 %v13678_v9, %v9528_v11  ;;  %v11288_v2 = vld [vmem:[#allocation2 + $0x1158] sm:$0xf0]  ;;  %v13948_v11 = vld [vmem:[#allocation2 + $0xbe4] sm:$0xf]  ;;  %v14078_v60 = vld [vmem:[#allocation2 + $0xff4] sm:$0xf] }
  0x95   : > { %4307 = vmatpush.bf16.msrb.mxu3 %v11327_v26  ;;  %4269 = vmatmul.bf16.vlgmr.msrb.gmra.mxu0 %v15187_v41  ;;  %v10171_v26 = vor.u32 %v13838_v14, %v10168_v15  ;;  %v10928_v15 = vld [vmem:[#allocation2 + $0xe88] sm:$0xf0]  ;;  %v10611_v24 = vor.u32 %v13948_v11, %v10608_v12  ;;  %v11528_v35 = vld [vmem:[#allocation2 + $0x1338] sm:$0xf0]  ;;  %v13928_v40 = vld [vmem:[#allocation2 + $0xb44] sm:$0xf] }
  0x96   : > { %4313 = vmatpush.bf16.msra.mxu0 %v9371_v27  ;;  %4282 = vmatmul.bf16.vlgmr.msrb.gmra.mxu1 %v15191_v44  ;;  %v9488_v27 = vld [vmem:[#allocation2 + $0x348] sm:$0xf0]  ;;  %v11128_v61 = vld [vmem:[#allocation2 + $0x1018] sm:$0xf0]  ;;  %s8963_s14 = sshll.u32 %s16037_s8, 4  ;;  %s8965_s18 = sshll.u32 %s8961_s11, 4  ;;  %s8964_s14 = int_to_ptr.vmem [resolvable:$true] %s8963_s14  ;;  %s8966_s18 = int_to_ptr.hbm [resolvable:$true] %s8965_s18 }
  0x97   : > { %4326 = vmatpush.bf16.msra.mxu1 %v9691_v29  ;;  %4295 = vmatmul.bf16.vlgmr.msrb.gmra.mxu2 %v15185_v38  ;;  %v9808_v29 = vld [vmem:[#allocation2 + $0x5c8] sm:$0xf0]  ;;  %v9491_v33 = vor.u32 %v13668_v25, %v9488_v27  ;;  %v10931_v25 = vor.u32 %v14028_v13, %v10928_v15  ;;  %v13938_v27 = vld [vmem:[#allocation2 + $0xb94] sm:$0xf]  ;;  %s8950_s6 = scalar_lea.sflag [#allocation4], %s15152_s3  ;;  %s14910_s7 = sshra.s32 %s8966_s18, 4  ;;  %s14911_s7 = int_to_ptr.hbm [resolvable:$true] %s14910_s7 }
  0x98   : > { %4339 = vmatpush.bf16.msra.mxu2 %v10011_v30  ;;  %4308 = vmatmul.bf16.vlgmr.msrb.gmra.mxu3 %v15189_v42  ;;  %v13828_v30 = vld [vmem:[#allocation2 + $0x824] sm:$0xf]  ;;  %v11408_v11 = vld [vmem:[#allocation2 + $0x1248] sm:$0xf0]  ;;  %v13898_v15 = vld [vmem:[#allocation2 + $0xa54] sm:$0xf]  ;;  %p14917_p8 = scmp.lt.s32.totalorder %s14911_s7, %s16556_s5 }
  0x99   : > { %4352 = vmatpush.bf16.msra.mxu3 %v10331_v34  ;;  %v9811_v34 = vor.u32 %v13748_v28, %v9808_v29  ;;  %v10131_v39 = vor.u32 %v13828_v30, %v10128_v31  ;;  %v10568_v28 = vld [vmem:[#allocation2 + $0xbb8] sm:$0xf0]  ;;  %v14018_v29 = vld [vmem:[#allocation2 + $0xe14] sm:$0xf]  ;;  %s14912_s22 = scalar_lea.hbm %s14911_s7, 48  ;;  %s14916_s28 = scalar_lea.hbm %s16556_s5, 192 }
  0x9a   : > { %4314 = vmatpush.bf16.msra.mxu0 %v9331_v43  ;;  %v13738_v43 = vld [vmem:[#allocation2 + $0x554] sm:$0xf]  ;;  %v10888_v31 = vld [vmem:[#allocation2 + $0xe38] sm:$0xf0]  ;;  %v10571_v36 = vor.u32 %v13938_v27, %v10568_v28  ;;  %p14913_p6 = scmp.ne.s32.totalorder %s14911_s7, %s14912_s22  ;;  %p14918_p1 = scmp.lt.s32.totalorder %s14916_s28, %s14912_s22 }
  0x9b   : > { %4327 = vmatpush.bf16.msra.mxu1 %v9651_v45  ;;  %v9768_v45 = vld [vmem:[#allocation2 + $0x578] sm:$0xf0]  ;;  %v10891_v37 = vor.u32 %v14018_v29, %v10888_v31  ;;  %v13888_v29 = vld [vmem:[#allocation2 + $0xa04] sm:$0xf] }
  0x9c   : > { %4340 = vmatpush.bf16.msra.mxu2 %v9971_v46  ;;  %v13818_v46 = vld [vmem:[#allocation2 + $0x7d4] sm:$0xf]  ;;  %v9771_v52 = vor.u32 %v13738_v43, %v9768_v45  ;;  %v10528_v43 = vld [vmem:[#allocation2 + $0xb68] sm:$0xf0]  ;;  %v14008_v45 = vld [vmem:[#allocation2 + $0xdc4] sm:$0xf]  ;;  %p14914_p13 = pnand %p14913_p6, %p15061_p11  ;;  %p14919_p9 = por %p14918_p1, %p14917_p8 }
  0x9d   : > { %4353 = vmatpush.bf16.msra.mxu3 %v10291_v50  ;;  %v9088_v50 = vld [vmem:[#allocation2 + $0x28] sm:$0xf0]  ;;  %v11368_v27 = vld [vmem:[#allocation2 + $0x11f8] sm:$0xf0] }
  0x9e   : > { %4315 = vmatpush.bf16.msra.mxu0 %v9291_v56  ;;  %v10091_v56 = vor.u32 %v13818_v46, %v10088_v47  ;;  %v9091_v63 = vor.u32 %v13568_v49, %v9088_v50  ;;  %v10848_v47 = vld [vmem:[#allocation2 + $0xde8] sm:$0xf0]  ;;  %v14168_v50 = vld [vmem:[#allocation2 + $0x12c4] sm:$0xf]  ;;  %p14915_p3 = pneg %p14914_p13 }
  0x9f   : > { %4328 = vmatpush.bf16.msra.mxu1 %v9611_v57  ;;  %v9728_v57 = vld [vmem:[#allocation2 + $0x528] sm:$0xf0]  ;;  %v10851_v53 = vor.u32 %v14008_v45, %v10848_v47  ;;  %v13644_v45 = vld [vmem:[#allocation2 + $0x25c] sm:$0xf0] }
  0xa0   : > { %4341 = vmatpush.bf16.msra.mxu2 %v9931_v58  ;;  %v13808_v58 = vld [vmem:[#allocation2 + $0x784] sm:$0xf]  ;;  %v11168_v49 = vld [vmem:[#allocation2 + $0x1068] sm:$0xf0]  ;;  %p14920_p10 = pnand %p14919_p9, %p14915_p3 }
  0xa1   : > { %4354 = vmatpush.bf16.msra.mxu3 %v10251_v62  ;;  %v14038_v62 = vld [vmem:[#allocation2 + $0xeb4] sm:$0xf]  ;;  %v10051_v7 = vor.u32 %v13808_v58, %v10048_v59  ;;  %v10808_v59 = vld [vmem:[#allocation2 + $0xd98] sm:$0xf0] }
  0xa2   : > { %4316 = vmatpush.bf16.msra.mxu0 %v9251_v4  ;;  %v9731_v4 = vor.u32 %v13728_v55, %v9728_v57  ;;  %v10971_v9 = vor.u32 %v14038_v62, %v10968_v0  ;;  %v13918_v55 = vld [vmem:[#allocation2 + $0xaf4] sm:$0xf] }
  0xa3   : > { %4329 = vmatpush.bf16.msra.mxu1 %v9571_v5  ;;  %v14198_v5 = vld [vmem:[#allocation2 + $0x13b4] sm:$0xf] }
  0xa4   : > { %4342 = vmatpush.bf16.msra.mxu2 %v9891_v6  ;;  %v11608_v6 = vld [vmem:[#allocation2 + $0x13d8] sm:$0xf0]  ;;  %v13998_v57 = vld [vmem:[#allocation2 + $0xd74] sm:$0xf] }
  0xa5   : > { %4355 = vmatpush.bf16.msra.mxu3 %v10211_v10  ;;  %v11291_v10 = vor.u32 %v14118_v1, %v11288_v2  ;;  %v11611_v14 = vor.u32 %v14198_v5, %v11608_v6  ;;  %v14158_v62 = vld [vmem:[#allocation2 + $0x1274] sm:$0xf]  ;;  %v10811_v1 = vor.u32 %v13998_v57, %v10808_v59  ;;  %v11131_v2 = vor.u32 %v14078_v60, %v11128_v61  ;;  %v13988_v5 = vld [vmem:[#allocation2 + $0xd24] sm:$0xf]  ;;  %v9334_v59 = vld [vmem:[#allocation2 + $0x1e8] sm:$0xf] }
  0xa6   : > { %4317 = vmatpush.bf16.msra.mxu0 %v9211_v16  ;;  %v14108_v16 = vld [vmem:[#allocation2 + $0x10e4] sm:$0xf]  ;;  %v13634_v60 = vld [vmem:[#allocation2 + $0x20c] sm:$0xf0]  ;;  %v9654_v61 = vld [vmem:[#allocation2 + $0x468] sm:$0xf] }
  0xa7   : > { %4330 = vmatpush.bf16.msra.mxu1 %v9531_v17  ;;  %v11248_v17 = vld [vmem:[#allocation2 + $0x1108] sm:$0xf0] }
  0xa8   : > { %4343 = vmatpush.bf16.msra.mxu2 %v9851_v21  ;;  %v14188_v21 = vld [vmem:[#allocation2 + $0x1364] sm:$0xf] }
  0xa9   : > { %4356 = vmatpush.bf16.msra.mxu3 %v10171_v26  ;;  %v11251_v26 = vor.u32 %v14108_v16, %v11248_v17  ;;  %v11571_v30 = vor.u32 %v14188_v21, %v11568_v23  ;;  %v10408_v16 = vld [vmem:[#allocation2 + $0xa78] sm:$0xf0]  ;;  %v13978_v17 = vld [vmem:[#allocation2 + $0xcd4] sm:$0xf] }
  0xaa   : > { %4318 = vmatpush.bf16.msra.mxu0 %v9171_v32  ;;  %v14098_v32 = vld [vmem:[#allocation2 + $0x1094] sm:$0xf]  ;;  %v10728_v23 = vld [vmem:[#allocation2 + $0xcf8] sm:$0xf0]  ;;  %v10411_v28 = vor.u32 %v13898_v15, %v10408_v16  ;;  %v13864_v15 = vld [vmem:[#allocation2 + $0x93c] sm:$0xf0] }
  0xab   : > { %4331 = vmatpush.bf16.msra.mxu1 %v9491_v33  ;;  %v11208_v33 = vld [vmem:[#allocation2 + $0x10b8] sm:$0xf0]  ;;  %v10731_v31 = vor.u32 %v13978_v17, %v10728_v23  ;;  %v9254_v23 = vld [vmem:[#allocation2 + $0x148] sm:$0xf] }
  0xac   : > { %4344 = vmatpush.bf16.msra.mxu2 %v9811_v34  ;;  %v14178_v34 = vld [vmem:[#allocation2 + $0x1314] sm:$0xf] }
  0xad   : > { %4357 = vmatpush.bf16.msra.mxu3 %v10131_v39  ;;  %v11211_v39 = vor.u32 %v14098_v32, %v11208_v33  ;;  %v11531_v46 = vor.u32 %v14178_v34, %v11528_v35  ;;  %v13968_v33 = vld [vmem:[#allocation2 + $0xc84] sm:$0xf]  ;;  %v10688_v34 = vld [vmem:[#allocation2 + $0xca8] sm:$0xf0] }
  0xae   : > { %4319 = vmatpush.bf16.msra.mxu0 %v9131_v48  ;;  %v14088_v48 = vld [vmem:[#allocation2 + $0x1044] sm:$0xf] }
  0xaf   : > { %4332 = vmatpush.bf16.msra.mxu1 %v9451_v51  ;;  %v11488_v51 = vld [vmem:[#allocation2 + $0x12e8] sm:$0xf0]  ;;  %v11171_v54 = vor.u32 %v14088_v48, %v11168_v49  ;;  %v14048_v35 = vld [vmem:[#allocation2 + $0xf04] sm:$0xf]  ;;  %v13724_v48 = vld [vmem:[#allocation2 + $0x4dc] sm:$0xf0] }
  0xb0   : > { %4345 = vmatpush.bf16.msra.mxu2 %v9771_v52  ;;  %v10531_v52 = vor.u32 %v13928_v40, %v10528_v43  ;;  %v11491_v58 = vor.u32 %v14168_v50, %v11488_v51  ;;  %v11328_v40 = vld [vmem:[#allocation2 + $0x11a8] sm:$0xf0]  ;;  %v9374_v43 = vld [vmem:[#allocation2 + $0x238] sm:$0xf]  ;;  %v13804_v50 = vld [vmem:[#allocation2 + $0x75c] sm:$0xf0]  ;;  %v10691_v51 = vor.u32 %v13968_v33, %v10688_v34 }
  0xb1   : > { %4358 = vmatpush.bf16.msra.mxu3 %v10091_v56  ;;  %v10488_v56 = vld [vmem:[#allocation2 + $0xb18] sm:$0xf0]  ;;  %v10014_v49 = vld [vmem:[#allocation2 + $0x738] sm:$0xf] }
  0xb2   : > { %4320 = vmatpush.bf16.msra.mxu0 %v9091_v63  ;;  %v11448_v63 = vld [vmem:[#allocation2 + $0x1298] sm:$0xf0]  ;;  %v10491_v0 = vor.u32 %v13918_v55, %v10488_v56  ;;  %v9375_v56 = vor.u32 %v13644_v45, %v9374_v43  ;;  %v9854_v43 = vld [vmem:[#allocation2 + $0x5f8] sm:$0xf]  ;;  %v13764_v45 = vld [vmem:[#allocation2 + $0x61c] sm:$0xf0] }
  0xb3   : > { %4333 = vmatpush.bf16.msra.mxu1 %v9411_v3  ;;  %v13908_v3 = vld [vmem:[#allocation2 + $0xaa4] sm:$0xf]  ;;  %v11451_v6 = vor.u32 %v14158_v62, %v11448_v63  ;;  %v13714_v63 = vld [vmem:[#allocation2 + $0x48c] sm:$0xf0] }
  0xb4   : > { %4346 = vmatpush.bf16.msra.mxu2 %v9731_v4  ;;  %v10448_v4 = vld [vmem:[#allocation2 + $0xac8] sm:$0xf0] }
  0xb5   : > { %4359 = vmatpush.bf16.msra.mxu3 %v10051_v7  ;;  %4321 = vmatmul.bf16.vlgmr.msra.gmra.mxu0 %v15169_v19  ;;  %v10768_v7 = vld [vmem:[#allocation2 + $0xd48] sm:$0xf0]  ;;  %v10451_v12 = vor.u32 %v13908_v3, %v10448_v4  ;;  %v13874_v3 = vld [vmem:[#allocation2 + $0x98c] sm:$0xf0]  ;;  %v9335_v4 = vor.u32 %v13634_v60, %v9334_v59 }
  0xb6   : > { %4365 = vmatpush.bf16.msrb.mxu0 %v10651_v8  ;;  %4334 = vmatmul.bf16.vlgmr.msra.gmra.mxu1 %v15173_v22  ;;  %v14068_v8 = vld [vmem:[#allocation2 + $0xfa4] sm:$0xf]  ;;  %v10771_v13 = vor.u32 %v13988_v5, %v10768_v7  ;;  %v9655_v5 = vor.u32 %v13714_v63, %v9654_v61  ;;  %v9294_v7 = vld [vmem:[#allocation2 + $0x198] sm:$0xf]  ;;  %v13834_v59 = vld [vmem:[#allocation2 + $0x84c] sm:$0xf0] }
  0xb7   : > { %4378 = vmatpush.bf16.msrb.mxu1 %v10971_v9  ;;  %4347 = vmatmul.bf16.vlgmr.msra.gmra.mxu2 %v15167_v18  ;;  %v11088_v9 = vld [vmem:[#allocation2 + $0xfc8] sm:$0xf0]  ;;  %v9134_v63 = vld [vmem:[#allocation2 + $0x58] sm:$0xf] }
  0xb8   : > { %4391 = vmatpush.bf16.msrb.mxu2 %v11291_v10  ;;  %4360 = vmatmul.bf16.vlgmr.msra.gmra.mxu3 %v15171_v20  ;;  %v14148_v10 = vld [vmem:[#allocation2 + $0x1224] sm:$0xf] }
  0xb9   : > { %4404 = vmatpush.bf16.msrb.mxu3 %v11611_v14  ;;  %v11091_v14 = vor.u32 %v14068_v8, %v11088_v9  ;;  %v11411_v21 = vor.u32 %v14148_v10, %v11408_v11  ;;  %v13624_v8 = vld [vmem:[#allocation2 + $0x1bc] sm:$0xf0]  ;;  %v9614_v9 = vld [vmem:[#allocation2 + $0x418] sm:$0xf] }
  0xba   : > { %4366 = vmatpush.bf16.msrb.mxu0 %v10611_v24  ;;  %v14058_v24 = vld [vmem:[#allocation2 + $0xf54] sm:$0xf]  ;;  %v13704_v11 = vld [vmem:[#allocation2 + $0x43c] sm:$0xf0]  ;;  %v9295_v16 = vor.u32 %v13624_v8, %v9294_v7 }
  0xbb   : > { %4379 = vmatpush.bf16.msrb.mxu1 %v10931_v25  ;;  %v11048_v25 = vld [vmem:[#allocation2 + $0xf78] sm:$0xf0]  ;;  %v9615_v17 = vor.u32 %v13704_v11, %v9614_v9  ;;  %v13824_v7 = vld [vmem:[#allocation2 + $0x7fc] sm:$0xf0]  ;;  %v9094_v9 = vld [vmem:[#allocation2 + $0x8] sm:$0xf] }
  0xbc   : > { %4392 = vmatpush.bf16.msrb.mxu2 %v11251_v26  ;;  %v14138_v26 = vld [vmem:[#allocation2 + $0x11d4] sm:$0xf]  ;;  %v11051_v32 = vor.u32 %v14058_v24, %v11048_v25  ;;  %v13614_v24 = vld [vmem:[#allocation2 + $0x16c] sm:$0xf0]  ;;  %v9574_v25 = vld [vmem:[#allocation2 + $0x3c8] sm:$0xf] }
  0xbd   : > { %4405 = vmatpush.bf16.msrb.mxu3 %v11571_v30  ;;  %v10368_v30 = vld [vmem:[#allocation2 + $0xa28] sm:$0xf0] }
  0xbe   : > { %4367 = vmatpush.bf16.msrb.mxu0 %v10571_v36  ;;  %v11371_v36 = vor.u32 %v14138_v26, %v11368_v27  ;;  %v10371_v47 = vor.u32 %v13888_v29, %v10368_v30  ;;  %v13694_v27 = vld [vmem:[#allocation2 + $0x3ec] sm:$0xf0]  ;;  %v10214_v30 = vld [vmem:[#allocation2 + $0x8c8] sm:$0xf] }
  0xbf   : > { %4380 = vmatpush.bf16.msrb.mxu1 %v10891_v37  ;;  %v11008_v37 = vld [vmem:[#allocation2 + $0xf28] sm:$0xf0]  ;;  %v13774_v29 = vld [vmem:[#allocation2 + $0x66c] sm:$0xf0]  ;;  %v9575_v33 = vor.u32 %v13694_v27, %v9574_v25  ;;  %v13964_v25 = vld [vmem:[#allocation2 + $0xc5c] sm:$0xf0] }
  0xc0   : > { %4393 = vmatpush.bf16.msrb.mxu2 %v11211_v39  ;;  %v14128_v39 = vld [vmem:[#allocation2 + $0x1184] sm:$0xf] }
  0xc1   : > { %4406 = vmatpush.bf16.msrb.mxu3 %v11531_v46  ;;  %v9694_v46 = vld [vmem:[#allocation2 + $0x4b8] sm:$0xf]  ;;  %v11331_v55 = vor.u32 %v14128_v39, %v11328_v40  ;;  %v13684_v40 = vld [vmem:[#allocation2 + $0x39c] sm:$0xf0] }
  0xc2   : > { %4368 = vmatpush.bf16.msrb.mxu0 %v10531_v52  ;;  %v11011_v52 = vor.u32 %v14048_v35, %v11008_v37  ;;  %v9695_v57 = vor.u32 %v13724_v48, %v9694_v46  ;;  %v9214_v35 = vld [vmem:[#allocation2 + $0xf8] sm:$0xf] }
  0xc3   : > { %4381 = vmatpush.bf16.msrb.mxu1 %v10851_v53  ;;  %v10334_v53 = vld [vmem:[#allocation2 + $0x9b8] sm:$0xf] }
  0xc4   : > { %4394 = vmatpush.bf16.msrb.mxu2 %v11171_v54  ;;  %v13884_v54 = vld [vmem:[#allocation2 + $0x9dc] sm:$0xf0]  ;;  %v9534_v37 = vld [vmem:[#allocation2 + $0x378] sm:$0xf] }
  0xc5   : > { %4407 = vmatpush.bf16.msrb.mxu3 %v11491_v58  ;;  %v10015_v58 = vor.u32 %v13804_v50, %v10014_v49  ;;  %v10335_v62 = vor.u32 %v13884_v54, %v10334_v53  ;;  %v10174_v46 = vld [vmem:[#allocation2 + $0x878] sm:$0xf]  ;;  %v9535_v49 = vor.u32 %v13684_v40, %v9534_v37  ;;  %v9855_v50 = vor.u32 %v13764_v45, %v9854_v43  ;;  %v9494_v53 = vld [vmem:[#allocation2 + $0x328] sm:$0xf]  ;;  %v13954_v43 = vld [vmem:[#allocation2 + $0xc0c] sm:$0xf0] }
  0xc6   : > { %4369 = vmatpush.bf16.msrb.mxu0 %v10491_v0  ;;  %v9974_v0 = vld [vmem:[#allocation2 + $0x6e8] sm:$0xf] }
  0xc7   : > { %4382 = vmatpush.bf16.msrb.mxu1 %v10811_v1  ;;  %v13794_v1 = vld [vmem:[#allocation2 + $0x70c] sm:$0xf0]  ;;  %v10614_v40 = vld [vmem:[#allocation2 + $0xbe8] sm:$0xf] }
  0xc8   : > { %4395 = vmatpush.bf16.msrb.mxu2 %v11131_v2  ;;  %v10294_v2 = vld [vmem:[#allocation2 + $0x968] sm:$0xf] }
  0xc9   : > { %4408 = vmatpush.bf16.msrb.mxu3 %v11451_v6  ;;  %v9975_v6 = vor.u32 %v13794_v1, %v9974_v0  ;;  %v10295_v10 = vor.u32 %v13874_v3, %v10294_v2  ;;  %v13584_v0 = vld [vmem:[#allocation2 + $0x7c] sm:$0xf0]  ;;  %v9454_v1 = vld [vmem:[#allocation2 + $0x2d8] sm:$0xf]  ;;  %v10934_v45 = vld [vmem:[#allocation2 + $0xe68] sm:$0xf] }
  0xca   : > { %4370 = vmatpush.bf16.msrb.mxu0 %v10451_v12  ;;  %v9934_v12 = vld [vmem:[#allocation2 + $0x698] sm:$0xf]  ;;  %v13664_v3 = vld [vmem:[#allocation2 + $0x2fc] sm:$0xf0]  ;;  %v9135_v8 = vor.u32 %v13584_v0, %v9134_v63 }
  0xcb   : > { %4383 = vmatpush.bf16.msrb.mxu1 %v10771_v13  ;;  %v13784_v13 = vld [vmem:[#allocation2 + $0x6bc] sm:$0xf0]  ;;  %v9455_v11 = vor.u32 %v13664_v3, %v9454_v1  ;;  %v10534_v3 = vld [vmem:[#allocation2 + $0xb48] sm:$0xf] }
  0xcc   : > { %4396 = vmatpush.bf16.msrb.mxu2 %v11091_v14  ;;  %v10254_v14 = vld [vmem:[#allocation2 + $0x918] sm:$0xf]  ;;  %v14184_v63 = vld [vmem:[#allocation2 + $0x133c] sm:$0xf0] }
  0xcd   : > { %4409 = vmatpush.bf16.msrb.mxu3 %v11411_v21  ;;  %v9935_v21 = vor.u32 %v13784_v13, %v9934_v12  ;;  %v10255_v26 = vor.u32 %v13864_v15, %v10254_v14  ;;  %v9414_v13 = vld [vmem:[#allocation2 + $0x288] sm:$0xf]  ;;  %v13654_v14 = vld [vmem:[#allocation2 + $0x2ac] sm:$0xf0] }
  0xce   : > { %4371 = vmatpush.bf16.msrb.mxu0 %v10411_v28  ;;  %v9894_v28 = vld [vmem:[#allocation2 + $0x648] sm:$0xf] }
  0xcf   : > { %4384 = vmatpush.bf16.msrb.mxu1 %v10731_v31  ;;  %v13854_v31 = vld [vmem:[#allocation2 + $0x8ec] sm:$0xf0]  ;;  %v9895_v34 = vor.u32 %v13774_v29, %v9894_v28  ;;  %v9734_v15 = vld [vmem:[#allocation2 + $0x508] sm:$0xf]  ;;  %v14044_v28 = vld [vmem:[#allocation2 + $0xedc] sm:$0xf0] }
  0xd0   : > { %4397 = vmatpush.bf16.msrb.mxu2 %v11051_v32  ;;  %v9255_v32 = vor.u32 %v13614_v24, %v9254_v23  ;;  %v10215_v39 = vor.u32 %v13854_v31, %v10214_v30  ;;  %v13814_v23 = vld [vmem:[#allocation2 + $0x7ac] sm:$0xf0]  ;;  %v10654_v24 = vld [vmem:[#allocation2 + $0xc38] sm:$0xf]  ;;  %v14124_v30 = vld [vmem:[#allocation2 + $0x115c] sm:$0xf0]  ;;  %v9415_v31 = vor.u32 %v13654_v14, %v9414_v13 }
  0xd1   : > { %4410 = vmatpush.bf16.msrb.mxu3 %v11371_v36  ;;  %v13604_v36 = vld [vmem:[#allocation2 + $0x11c] sm:$0xf0]  ;;  %v11294_v29 = vld [vmem:[#allocation2 + $0x1138] sm:$0xf] }
  0xd2   : > { %4372 = vmatpush.bf16.msrb.mxu0 %v10371_v47  ;;  %v13844_v47 = vld [vmem:[#allocation2 + $0x89c] sm:$0xf0]  ;;  %v9215_v48 = vor.u32 %v13604_v36, %v9214_v35  ;;  %v10655_v36 = vor.u32 %v13964_v25, %v10654_v24  ;;  %v10494_v13 = vld [vmem:[#allocation2 + $0xaf8] sm:$0xf] }
  0xd3   : > { %4385 = vmatpush.bf16.msrb.mxu1 %v10691_v51  ;;  %v9174_v51 = vld [vmem:[#allocation2 + $0xa8] sm:$0xf]  ;;  %v10175_v54 = vor.u32 %v13844_v47, %v10174_v46  ;;  %v14034_v47 = vld [vmem:[#allocation2 + $0xe8c] sm:$0xf0]  ;;  %v11134_v24 = vld [vmem:[#allocation2 + $0xff8] sm:$0xf] }
  0xd4   : > { %4398 = vmatpush.bf16.msrb.mxu2 %v11011_v52  ;;  %v13594_v52 = vld [vmem:[#allocation2 + $0xcc] sm:$0xf0]  ;;  %v14084_v25 = vld [vmem:[#allocation2 + $0x101c] sm:$0xf0] }
  0xd5   : > { %4411 = vmatpush.bf16.msrb.mxu3 %v11331_v55  ;;  %4373 = vmatmul.bf16.vlgmr.msrb.gmra.mxu0 %v15187_v41  ;;  %v13674_v55 = vld [vmem:[#allocation2 + $0x34c] sm:$0xf0]  ;;  %v9175_v60 = vor.u32 %v13594_v52, %v9174_v51  ;;  %v10615_v52 = vor.u32 %v13954_v43, %v10614_v40  ;;  %v11414_v43 = vld [vmem:[#allocation2 + $0x1228] sm:$0xf] }
  0xd6   : > { %4417 = vmatpush.bf16.msra.mxu0 %v9375_v56  ;;  %4386 = vmatmul.bf16.vlgmr.msrb.gmra.mxu1 %v15191_v44  ;;  %v9814_v56 = vld [vmem:[#allocation2 + $0x5a8] sm:$0xf]  ;;  %v9495_v61 = vor.u32 %v13674_v55, %v9494_v53  ;;  %v14194_v51 = vld [vmem:[#allocation2 + $0x138c] sm:$0xf0]  ;;  %v10935_v53 = vor.u32 %v14034_v47, %v10934_v45  ;;  %v10574_v55 = vld [vmem:[#allocation2 + $0xb98] sm:$0xf] }
  0xd7   : > { %4430 = vmatpush.bf16.msra.mxu1 %v9695_v57  ;;  %4399 = vmatmul.bf16.vlgmr.msrb.gmra.mxu2 %v15185_v38  ;;  %v13754_v57 = vld [vmem:[#allocation2 + $0x5cc] sm:$0xf0] }
  0xd8   : > { %4443 = vmatpush.bf16.msra.mxu2 %v10015_v58  ;;  %4412 = vmatmul.bf16.vlgmr.msrb.gmra.mxu3 %v15189_v42  ;;  %v10134_v58 = vld [vmem:[#allocation2 + $0x828] sm:$0xf]  ;;  %v14074_v40 = vld [vmem:[#allocation2 + $0xfcc] sm:$0xf0] }
  0xd9   : > { %4456 = vmatpush.bf16.msra.mxu3 %v10335_v62  ;;  %v9815_v62 = vor.u32 %v13754_v57, %v9814_v56  ;;  %v10135_v2 = vor.u32 %v13834_v59, %v10134_v58  ;;  %v13944_v56 = vld [vmem:[#allocation2 + $0xbbc] sm:$0xf0]  ;;  %v10894_v57 = vld [vmem:[#allocation2 + $0xe18] sm:$0xf]  ;;  %v14154_v45 = vld [vmem:[#allocation2 + $0x124c] sm:$0xf0] }
  0xda   : > { %4418 = vmatpush.bf16.msra.mxu0 %v9335_v4  ;;  %v9774_v4 = vld [vmem:[#allocation2 + $0x558] sm:$0xf]  ;;  %v14024_v59 = vld [vmem:[#allocation2 + $0xe3c] sm:$0xf0]  ;;  %v10575_v0 = vor.u32 %v13944_v56, %v10574_v55  ;;  %v11415_v55 = vor.u32 %v14154_v45, %v11414_v43  ;;  %v9656_v43 = vld [vmem:[#allocation2 + $0x490] sm:$0xf0] }
  0xdb   : > { %4431 = vmatpush.bf16.msra.mxu1 %v9655_v5  ;;  %v13744_v5 = vld [vmem:[#allocation2 + $0x57c] sm:$0xf0]  ;;  %v10895_v1 = vor.u32 %v14024_v59, %v10894_v57  ;;  %v11054_v57 = vld [vmem:[#allocation2 + $0xf58] sm:$0xf]  ;;  %v13789_v45 = vld [vmem:[#allocation2 + $0x6ec] sm:$0xf] }
  0xdc   : > { %4444 = vmatpush.bf16.msra.mxu2 %v9975_v6  ;;  %v10094_v6 = vld [vmem:[#allocation2 + $0x7d8] sm:$0xf]  ;;  %v9775_v12 = vor.u32 %v13744_v5, %v9774_v4  ;;  %v13934_v4 = vld [vmem:[#allocation2 + $0xb6c] sm:$0xf0]  ;;  %v10854_v5 = vld [vmem:[#allocation2 + $0xdc8] sm:$0xf] }
  0xdd   : > { %4457 = vmatpush.bf16.msra.mxu3 %v10295_v10  ;;  %v13574_v10 = vld [vmem:[#allocation2 + $0x2c] sm:$0xf0]  ;;  %v13984_v56 = vld [vmem:[#allocation2 + $0xcfc] sm:$0xf0]  ;;  %v11374_v59 = vld [vmem:[#allocation2 + $0x11d8] sm:$0xf] }
  0xde   : > { %4419 = vmatpush.bf16.msra.mxu0 %v9295_v16  ;;  %v10095_v16 = vor.u32 %v13824_v7, %v10094_v6  ;;  %v9095_v27 = vor.u32 %v13574_v10, %v9094_v9  ;;  %v14014_v7 = vld [vmem:[#allocation2 + $0xdec] sm:$0xf0]  ;;  %v11494_v10 = vld [vmem:[#allocation2 + $0x12c8] sm:$0xf] }
  0xdf   : > { %4432 = vmatpush.bf16.msra.mxu1 %v9615_v17  ;;  %v13734_v17 = vld [vmem:[#allocation2 + $0x52c] sm:$0xf0]  ;;  %v10855_v14 = vor.u32 %v14014_v7, %v10854_v5  ;;  %v11014_v5 = vld [vmem:[#allocation2 + $0xf08] sm:$0xf] }
  0xe0   : > { %4445 = vmatpush.bf16.msra.mxu2 %v9935_v21  ;;  %v10054_v21 = vld [vmem:[#allocation2 + $0x788] sm:$0xf]  ;;  %v14094_v9 = vld [vmem:[#allocation2 + $0x106c] sm:$0xf0] }
  0xe1   : > { %4458 = vmatpush.bf16.msra.mxu3 %v10255_v26  ;;  %v10974_v26 = vld [vmem:[#allocation2 + $0xeb8] sm:$0xf]  ;;  %v10055_v35 = vor.u32 %v13814_v23, %v10054_v21  ;;  %v14004_v21 = vld [vmem:[#allocation2 + $0xd9c] sm:$0xf0] }
  0xe2   : > { %4420 = vmatpush.bf16.msra.mxu0 %v9255_v32  ;;  %v9735_v32 = vor.u32 %v13734_v17, %v9734_v15  ;;  %v10975_v37 = vor.u32 %v14044_v28, %v10974_v26  ;;  %v10814_v17 = vld [vmem:[#allocation2 + $0xd78] sm:$0xf]  ;;  %v15209_v26 = vld [vmem:[#allocation5] sm:$0xff] }
  0xe3   : > { %4433 = vmatpush.bf16.msra.mxu1 %v9575_v33  ;;  %v11614_v33 = vld [vmem:[#allocation2 + $0x13b8] sm:$0xf]  ;;  %v14164_v28 = vld [vmem:[#allocation2 + $0x129c] sm:$0xf0] }
  0xe4   : > { %4446 = vmatpush.bf16.msra.mxu2 %v9895_v34  ;;  %v14204_v34 = vld [vmem:[#allocation2 + $0x13dc] sm:$0xf0] }
  0xe5   : > { %4459 = vmatpush.bf16.msra.mxu3 %v10215_v39  ;;  %v11295_v39 = vor.u32 %v14124_v30, %v11294_v29  ;;  %v11615_v46 = vor.u32 %v14204_v34, %v11614_v33  ;;  %v10454_v30 = vld [vmem:[#allocation2 + $0xaa8] sm:$0xf]  ;;  %v13914_v33 = vld [vmem:[#allocation2 + $0xacc] sm:$0xf0] }
  0xe6   : > { %4421 = vmatpush.bf16.msra.mxu0 %v9215_v48  ;;  %v11254_v48 = vld [vmem:[#allocation2 + $0x10e8] sm:$0xf] }
  0xe7   : > { %4434 = vmatpush.bf16.msra.mxu1 %v9535_v49  ;;  %v14114_v49 = vld [vmem:[#allocation2 + $0x110c] sm:$0xf0]  ;;  %v10774_v34 = vld [vmem:[#allocation2 + $0xd28] sm:$0xf] }
  0xe8   : > { %4447 = vmatpush.bf16.msra.mxu2 %v9855_v50  ;;  %v11574_v50 = vld [vmem:[#allocation2 + $0x1368] sm:$0xf] }
  0xe9   : > { %4460 = vmatpush.bf16.msra.mxu3 %v10175_v54  ;;  %v11255_v54 = vor.u32 %v14114_v49, %v11254_v48  ;;  %v11575_v58 = vor.u32 %v14194_v51, %v11574_v50  ;;  %v10414_v50 = vld [vmem:[#allocation2 + $0xa58] sm:$0xf]  ;;  %v13904_v51 = vld [vmem:[#allocation2 + $0xa7c] sm:$0xf0] }
  0xea   : > { %4422 = vmatpush.bf16.msra.mxu0 %v9175_v60  ;;  %v11214_v60 = vld [vmem:[#allocation2 + $0x1098] sm:$0xf] }
  0xeb   : > { %4435 = vmatpush.bf16.msra.mxu1 %v9495_v61  ;;  %v14104_v61 = vld [vmem:[#allocation2 + $0x10bc] sm:$0xf0] }
  0xec   : > { %4448 = vmatpush.bf16.msra.mxu2 %v9815_v62  ;;  %v11534_v62 = vld [vmem:[#allocation2 + $0x1318] sm:$0xf] }
  0xed   : > { %4461 = vmatpush.bf16.msra.mxu3 %v10135_v2  ;;  %v11215_v2 = vor.u32 %v14104_v61, %v11214_v60  ;;  %v11535_v6 = vor.u32 %v14184_v63, %v11534_v62  ;;  %v14144_v60 = vld [vmem:[#allocation2 + $0x11fc] sm:$0xf0]  ;;  %v10415_v62 = vor.u32 %v13904_v51, %v10414_v50  ;;  %v10374_v63 = vld [vmem:[#allocation2 + $0xa08] sm:$0xf] }
  0xee   : > { %4423 = vmatpush.bf16.msra.mxu0 %v9135_v8  ;;  %v11174_v8 = vld [vmem:[#allocation2 + $0x1048] sm:$0xf]  ;;  %v11375_v7 = vor.u32 %v14144_v60, %v11374_v59  ;;  %v13779_v59 = vld [vmem:[#allocation2 + $0x69c] sm:$0xf]  ;;  %v9936_v60 = vld [vmem:[#allocation2 + $0x6c0] sm:$0xf0] }
  0xef   : > { %4436 = vmatpush.bf16.msra.mxu1 %v9455_v11  ;;  %v14174_v11 = vld [vmem:[#allocation2 + $0x12ec] sm:$0xf0]  ;;  %v11175_v15 = vor.u32 %v14094_v9, %v11174_v8  ;;  %v11334_v9 = vld [vmem:[#allocation2 + $0x1188] sm:$0xf] }
  0xf0   : > { %4449 = vmatpush.bf16.msra.mxu2 %v9775_v12  ;;  %v10535_v12 = vor.u32 %v13934_v4, %v10534_v3  ;;  %v11495_v23 = vor.u32 %v14174_v11, %v11494_v10  ;;  %v10694_v3 = vld [vmem:[#allocation2 + $0xc88] sm:$0xf]  ;;  %v13974_v4 = vld [vmem:[#allocation2 + $0xcac] sm:$0xf0] }
  0xf1   : > { %4462 = vmatpush.bf16.msra.mxu3 %v10095_v16  ;;  %v13924_v16 = vld [vmem:[#allocation2 + $0xb1c] sm:$0xf0]  ;;  %v14054_v8 = vld [vmem:[#allocation2 + $0xf2c] sm:$0xf0] }
  0xf2   : > { %4424 = vmatpush.bf16.msra.mxu0 %v9095_v27  ;;  %v11454_v27 = vld [vmem:[#allocation2 + $0x1278] sm:$0xf]  ;;  %v10495_v29 = vor.u32 %v13924_v16, %v10494_v13  ;;  %v4218_v47 = vpop.f32.mrf.mxu0  ;;  %v14134_v10 = vld [vmem:[#allocation2 + $0x11ac] sm:$0xf0]  ;;  %v13639_v13 = vld [vmem:[#allocation2 + $0x23c] sm:$0xf] }
  0xf3   : > { %4437 = vmatpush.bf16.msra.mxu1 %v9415_v31  ;;  %v10815_v31 = vor.u32 %v14004_v21, %v10814_v17  ;;  %v9696_v17 = vld [vmem:[#allocation2 + $0x4e0] sm:$0xf0]  ;;  %v13799_v21 = vld [vmem:[#allocation2 + $0x73c] sm:$0xf] }
  0xf4   : > { %4450 = vmatpush.bf16.msra.mxu2 %v9735_v32  ;;  %v11135_v32 = vor.u32 %v14084_v25, %v11134_v24 }
  0xf5   : > { %4463 = vmatpush.bf16.msra.mxu3 %v10055_v35  ;;  %4425 = vmatmul.bf16.vlgmr.msra.gmra.mxu0 %v15169_v19  ;;  %v961_v35 = vperm.slane %v15209_v26, 0 }
  0xf6   : > { %4469 = vmatpush.bf16.msrb.mxu0 %v10655_v36  ;;  %4438 = vmatmul.bf16.vlgmr.msra.gmra.mxu1 %v15173_v22  ;;  %v11455_v36 = vor.u32 %v14164_v28, %v11454_v27  ;;  %v10695_v27 = vor.u32 %v13974_v4, %v10694_v3  ;;  %v11015_v28 = vor.u32 %v14054_v8, %v11014_v5  ;;  %v9256_v3 = vld [vmem:[#allocation2 + $0x170] sm:$0xf0]  ;;  %v13689_v4 = vld [vmem:[#allocation2 + $0x3cc] sm:$0xf] }
  0xf7   : > { %4482 = vmatpush.bf16.msrb.mxu1 %v10975_v37  ;;  %4451 = vmatmul.bf16.vlgmr.msra.gmra.mxu2 %v15167_v18  ;;  %v13994_v37 = vld [vmem:[#allocation2 + $0xd4c] sm:$0xf0]  ;;  %v9896_v8 = vld [vmem:[#allocation2 + $0x670] sm:$0xf0] }
  0xf8   : > { %4495 = vmatpush.bf16.msrb.mxu2 %v11295_v39  ;;  %4464 = vmatmul.bf16.vlgmr.msra.gmra.mxu3 %v15171_v20  ;;  %v11094_v39 = vld [vmem:[#allocation2 + $0xfa8] sm:$0xf]  ;;  %v10775_v48 = vor.u32 %v13994_v37, %v10774_v34  ;;  %v9336_v37 = vld [vmem:[#allocation2 + $0x210] sm:$0xf0] }
  0xf9   : > { %4508 = vmatpush.bf16.msrb.mxu3 %v11615_v46  ;;  %v10455_v46 = vor.u32 %v13914_v33, %v10454_v30  ;;  %v11095_v49 = vor.u32 %v14074_v40, %v11094_v39  ;;  %v10336_v30 = vld [vmem:[#allocation2 + $0x9e0] sm:$0xf0]  ;;  %v13709_v39 = vld [vmem:[#allocation2 + $0x46c] sm:$0xf] }
  0xfa   : > { %4470 = vmatpush.bf16.msrb.mxu0 %v10615_v52  ;;  %v10734_v52 = vld [vmem:[#allocation2 + $0xcd8] sm:$0xf]  ;;  %v4220_v25 = vpop.f32.mrf.mxu0 }
  0xfb   : > { %4483 = vmatpush.bf16.msrb.mxu1 %v10935_v53  ;;  %v4219_v53 = vadd.f32 %v4218_v47, %v961_v35  ;;  %v13869_v47 = vld [vmem:[#allocation2 + $0x96c] sm:$0xf] }
  0xfc   : > { %4496 = vmatpush.bf16.msrb.mxu2 %v11255_v54  ;;  %v4231_v54 = vpop.f32.mrf.mxu1 }
  0xfd   : > { %4509 = vmatpush.bf16.msrb.mxu3 %v11575_v58  ;;  %v14064_v58 = vld [vmem:[#allocation2 + $0xf7c] sm:$0xf0]  ;;  %v4232_v61 = vadd.f32 %v4231_v54, %v4219_v53  ;;  %v13619_v54 = vld [vmem:[#allocation2 + $0x19c] sm:$0xf] }
  0xfe   : > { %4471 = vmatpush.bf16.msrb.mxu0 %v10575_v0  ;;  %v13894_v0 = vld [vmem:[#allocation2 + $0xa2c] sm:$0xf0] }
  0xff   : > { %4484 = vmatpush.bf16.msrb.mxu1 %v10895_v1  ;;  %v10735_v1 = vor.u32 %v13984_v56, %v10734_v52  ;;  %v10375_v16 = vor.u32 %v13894_v0, %v10374_v63  ;;  %v9659_v52 = vor.u32 %v13709_v39, %v9656_v43  ;;  %v13699_v56 = vld [vmem:[#allocation2 + $0x41c] sm:$0xf]  ;;  %v13669_v39 = vld [vmem:[#allocation2 + $0x32c] sm:$0xf]  ;;  %v9496_v43 = vld [vmem:[#allocation2 + $0x350] sm:$0xf0] }
 0x100   : > { %4497 = vmatpush.bf16.msrb.mxu2 %v11215_v2  ;;  %v11055_v2 = vor.u32 %v14064_v58, %v11054_v57  ;;  %v9616_v58 = vld [vmem:[#allocation2 + $0x440] sm:$0xf0] }
 0x101   : > { %4510 = vmatpush.bf16.msrb.mxu3 %v11535_v6  ;;  %v4244_v6 = vpop.f32.mrf.mxu2  ;;  %v9619_v0 = vor.u32 %v13699_v56, %v9616_v58  ;;  %v13579_v56 = vld [vmem:[#allocation2 + $0x5c] sm:$0xf] }
 0x102   : > { %4472 = vmatpush.bf16.msrb.mxu0 %v10535_v12  ;;  %v4245_v11 = vadd.f32 %v4244_v6, %v4232_v61  ;;  %v4257_v12 = vpop.f32.mrf.mxu3  ;;  %v13859_v61 = vld [vmem:[#allocation2 + $0x91c] sm:$0xf]  ;;  %v9576_v6 = vld [vmem:[#allocation2 + $0x3f0] sm:$0xf0] }
 0x103   : > { %4485 = vmatpush.bf16.msrb.mxu1 %v10855_v14  ;;  %v9376_v14 = vld [vmem:[#allocation2 + $0x260] sm:$0xf0]  ;;  %v13659_v58 = vld [vmem:[#allocation2 + $0x2dc] sm:$0xf] }
 0x104   : > { %4498 = vmatpush.bf16.msrb.mxu2 %v11175_v15  ;;  %v13719_v15 = vld [vmem:[#allocation2 + $0x4bc] sm:$0xf]  ;;  %v15212_v24 = vadd.f32 %v4257_v12, %v4245_v11  ;;  %v9379_v33 = vor.u32 %v13639_v13, %v9376_v14  ;;  %v9579_v13 = vor.u32 %v13689_v4, %v9576_v6  ;;  %v9096_v4 = vld [vmem:[#allocation2 + $0x30] sm:$0xf0] }
 0x105   : > { %4511 = vmatpush.bf16.msrb.mxu3 %v11495_v23  ;;  %v10016_v23 = vld [vmem:[#allocation2 + $0x760] sm:$0xf0]  ;;  %v9699_v34 = vor.u32 %v13719_v15, %v9696_v17  ;;  %v13599_v15 = vld [vmem:[#allocation2 + $0xfc] sm:$0xf] }
 0x106   : > { %4473 = vmatpush.bf16.msrb.mxu0 %v10495_v29  ;;  %v13879_v29 = vld [vmem:[#allocation2 + $0x9bc] sm:$0xf]  ;;  %v10019_v35 = vor.u32 %v13799_v21, %v10016_v23 }
 0x107   : > { %4486 = vmatpush.bf16.msrb.mxu1 %v10815_v31  ;;  %v4233_v31 = vpop.f32.mrf.mxu1  ;;  %v10339_v40 = vor.u32 %v13879_v29, %v10336_v30  ;;  %v13679_v17 = vld [vmem:[#allocation2 + $0x37c] sm:$0xf]  ;;  %v9856_v29 = vld [vmem:[#allocation2 + $0x620] sm:$0xf0] }
 0x108   : > { %4499 = vmatpush.bf16.msrb.mxu2 %v11135_v32  ;;  %v11335_v32 = vor.u32 %v14134_v10, %v11334_v9  ;;  %v13849_v9 = vld [vmem:[#allocation2 + $0x8cc] sm:$0xf]  ;;  %v10216_v10 = vld [vmem:[#allocation2 + $0x8f0] sm:$0xf0]  ;;  %v13839_v30 = vld [vmem:[#allocation2 + $0x87c] sm:$0xf] }
 0x109   : > { %4512 = vmatpush.bf16.msrb.mxu3 %v11455_v36  ;;  %v13629_v36 = vld [vmem:[#allocation2 + $0x1ec] sm:$0xf]  ;;  %v10219_v25 = vor.u32 %v13849_v9, %v10216_v10  ;;  %v10176_v31 = vld [vmem:[#allocation2 + $0x8a0] sm:$0xf0] }
 0x10a   : > { %4474 = vmatpush.bf16.msrb.mxu0 %v10455_v46  ;;  %v9976_v46 = vld [vmem:[#allocation2 + $0x710] sm:$0xf0]  ;;  %v9339_v50 = vor.u32 %v13629_v36, %v9336_v37  ;;  %v4259_v51 = vpop.f32.mrf.mxu3  ;;  %v13589_v36 = vld [vmem:[#allocation2 + $0xac] sm:$0xf] }
 0x10b   : > { %4487 = vmatpush.bf16.msrb.mxu1 %v10775_v48  ;;  %v10296_v48 = vld [vmem:[#allocation2 + $0x990] sm:$0xf0]  ;;  %v9979_v53 = vor.u32 %v13789_v45, %v9976_v46  ;;  %v13749_v45 = vld [vmem:[#allocation2 + $0x5ac] sm:$0xf] }
 0x10c   : > { %4500 = vmatpush.bf16.msrb.mxu2 %v11095_v49  ;;  %v4246_v49 = vpop.f32.mrf.mxu2  ;;  %v10299_v57 = vor.u32 %v13869_v47, %v10296_v48  ;;  %v9176_v37 = vld [vmem:[#allocation2 + $0xd0] sm:$0xf0]  ;;  %v13729_v9 = vld [vmem:[#allocation2 + $0x50c] sm:$0xf] }
 0x10d   : > { %4513 = vmatpush.bf16.msrb.mxu3 %v11415_v55  ;;  %v9296_v55 = vld [vmem:[#allocation2 + $0x1c0] sm:$0xf0]  ;;  %v9816_v46 = vld [vmem:[#allocation2 + $0x5d0] sm:$0xf0]  ;;  %v13829_v49 = vld [vmem:[#allocation2 + $0x82c] sm:$0xf]  ;;  %v9179_v51 = vor.u32 %v13589_v36, %v9176_v37 }
 0x10e   : > { %4475 = vmatpush.bf16.msrb.mxu0 %v10415_v62  ;;  %v10256_v62 = vld [vmem:[#allocation2 + $0x940] sm:$0xf0]  ;;  %v9299_v63 = vor.u32 %v13619_v54, %v9296_v55  ;;  %v9499_v54 = vor.u32 %v13669_v39, %v9496_v43  ;;  %v9819_v55 = vor.u32 %v13749_v45, %v9816_v46  ;;  %v13949_v37 = vld [vmem:[#allocation2 + $0xbec] sm:$0xf]  ;;  %v10616_v39 = vld [vmem:[#allocation2 + $0xc10] sm:$0xf0] }
 0x10f   : > { %4488 = vmatpush.bf16.msrb.mxu1 %v10735_v1  ;;  %v9939_v1 = vor.u32 %v13779_v59, %v9936_v60  ;;  %v10259_v5 = vor.u32 %v13859_v61, %v10256_v62  ;;  %v9456_v61 = vld [vmem:[#allocation2 + $0x300] sm:$0xf0]  ;;  %v13739_v62 = vld [vmem:[#allocation2 + $0x55c] sm:$0xf]  ;;  %v10936_v43 = vld [vmem:[#allocation2 + $0xe90] sm:$0xf0] }
 0x110   : > { %4501 = vmatpush.bf16.msrb.mxu2 %v11055_v2  ;;  %v13609_v2 = vld [vmem:[#allocation2 + $0x14c] sm:$0xf]  ;;  %v11256_v46 = vld [vmem:[#allocation2 + $0x1110] sm:$0xf0] }
 0x111   : > { %4514 = vmatpush.bf16.msrb.mxu3 %v11375_v7  ;;  %v13769_v7 = vld [vmem:[#allocation2 + $0x64c] sm:$0xf]  ;;  %v9259_v11 = vor.u32 %v13609_v2, %v9256_v3 }
 0x112   : > { %4476 = vmatpush.bf16.msrb.mxu0 %v10375_v16  ;;  %v4270_v12 = vpop.f32.mrf.mxu0  ;;  %v9899_v14 = vor.u32 %v13769_v7, %v9896_v8  ;;  %v9216_v16 = vld [vmem:[#allocation2 + $0x120] sm:$0xf0]  ;;  %v13569_v3 = vld [vmem:[#allocation2 + $0xc] sm:$0xf]  ;;  %v9416_v8 = vld [vmem:[#allocation2 + $0x2b0] sm:$0xf0] }
 0x113   : > { %4489 = vmatpush.bf16.msrb.mxu1 %v10695_v27  ;;  %v4271_v21 = vadd.f32 %v4270_v12, %v15212_v24  ;;  %v4283_v23 = vpop.f32.mrf.mxu1  ;;  %v9536_v27 = vld [vmem:[#allocation2 + $0x3a0] sm:$0xf0]  ;;  %v10179_v24 = vor.u32 %v13839_v30, %v10176_v31  ;;  %v13649_v7 = vld [vmem:[#allocation2 + $0x28c] sm:$0xf]  ;;  %v9736_v12 = vld [vmem:[#allocation2 + $0x530] sm:$0xf0] }
 0x114   : > { %4502 = vmatpush.bf16.msrb.mxu2 %v11015_v28  ;;  %v13759_v28 = vld [vmem:[#allocation2 + $0x5fc] sm:$0xf]  ;;  %v9739_v30 = vor.u32 %v13729_v9, %v9736_v12  ;;  %v14109_v45 = vld [vmem:[#allocation2 + $0x10ec] sm:$0xf] }
 0x115   : > { %4515 = vmatpush.bf16.msrb.mxu3 %v11335_v32  ;;  %4477 = vmatmul.bf16.vlgmr.msrb.gmra.mxu0 %v15187_v41  ;;  %v4284_v32 = vadd.f32 %v4283_v23, %v4271_v21  ;;  %v14039_v21 = vld [vmem:[#allocation2 + $0xebc] sm:$0xf]  ;;  %v9099_v23 = vor.u32 %v13569_v3, %v9096_v4  ;;  %v14009_v3 = vld [vmem:[#allocation2 + $0xdcc] sm:$0xf]  ;;  %v962_v4 = vperm.slane %v15209_v26, 1 }
 0x116   : > { %4521 = vmatpush.bf16.msra.mxu0 %v9379_v33  ;;  %4490 = vmatmul.bf16.vlgmr.msrb.gmra.mxu1 %v15191_v44  ;;  %v9219_v33 = vor.u32 %v13599_v15, %v9216_v16  ;;  %v13959_v16 = vld [vmem:[#allocation2 + $0xc3c] sm:$0xf]  ;;  %v14169_v9 = vld [vmem:[#allocation2 + $0x12cc] sm:$0xf] }
 0x117   : > { %4534 = vmatpush.bf16.msra.mxu1 %v9699_v34  ;;  %4503 = vmatmul.bf16.vlgmr.msrb.gmra.mxu2 %v15185_v38  ;;  %v9539_v34 = vor.u32 %v13679_v17, %v9536_v27  ;;  %v10656_v17 = vld [vmem:[#allocation2 + $0xc60] sm:$0xf0]  ;;  %v14119_v27 = vld [vmem:[#allocation2 + $0x113c] sm:$0xf] }
 0x118   : > { %4547 = vmatpush.bf16.msra.mxu2 %v10019_v35  ;;  %4516 = vmatmul.bf16.vlgmr.msrb.gmra.mxu3 %v15189_v42  ;;  %v9859_v35 = vor.u32 %v13759_v28, %v9856_v29  ;;  %v11296_v28 = vld [vmem:[#allocation2 + $0x1160] sm:$0xf0]  ;;  %v9419_v29 = vor.u32 %v13649_v7, %v9416_v8  ;;  %v14199_v31 = vld [vmem:[#allocation2 + $0x13bc] sm:$0xf]  ;;  %v14089_v7 = vld [vmem:[#allocation2 + $0x104c] sm:$0xf] }
 0x119   : > { %4560 = vmatpush.bf16.msra.mxu3 %v10339_v40  ;;  %v11299_v36 = vor.u32 %v14119_v27, %v11296_v28  ;;  %v11176_v8 = vld [vmem:[#allocation2 + $0x1070] sm:$0xf0]  ;;  %v14079_v27 = vld [vmem:[#allocation2 + $0xffc] sm:$0xf]  ;;  %v11136_v28 = vld [vmem:[#allocation2 + $0x1020] sm:$0xf0] }
 0x11a   : > { %4522 = vmatpush.bf16.msra.mxu0 %v9339_v50  ;;  %v4296_v40 = vpop.f32.mrf.mxu2  ;;  %v10136_v50 = vld [vmem:[#allocation2 + $0x850] sm:$0xf0] }
 0x11b   : > { %4535 = vmatpush.bf16.msra.mxu1 %v9659_v52  ;;  %v4297_v47 = vadd.f32 %v4296_v40, %v4284_v32  ;;  %v4309_v48 = vpop.f32.mrf.mxu3  ;;  %v4285_v59 = vpop.f32.mrf.mxu1  ;;  %v10139_v60 = vor.u32 %v13829_v49, %v10136_v50  ;;  %v11616_v32 = vld [vmem:[#allocation2 + $0x13e0] sm:$0xf0]  ;;  %v14029_v40 = vld [vmem:[#allocation2 + $0xe6c] sm:$0xf]  ;;  %v10619_v49 = vor.u32 %v13949_v37, %v10616_v39 }
 0x11c   : > { %4548 = vmatpush.bf16.msra.mxu2 %v9979_v53  ;;  %v4272_v53 = vpop.f32.mrf.mxu0  ;;  %v10939_v50 = vor.u32 %v14029_v40, %v10936_v43  ;;  %v11216_v59 = vld [vmem:[#allocation2 + $0x10c0] sm:$0xf0]  ;;  %v13989_v37 = vld [vmem:[#allocation2 + $0xd2c] sm:$0xf] }
 0x11d   : > { %4561 = vmatpush.bf16.msra.mxu3 %v10299_v57  ;;  %v15219_v52 = vadd.f32 %v4309_v48, %v4297_v47  ;;  %v9136_v57 = vld [vmem:[#allocation2 + $0x80] sm:$0xf0]  ;;  %v14189_v47 = vld [vmem:[#allocation2 + $0x136c] sm:$0xf]  ;;  %v11576_v48 = vld [vmem:[#allocation2 + $0x1390] sm:$0xf0] }
 0x11e   : > { %4523 = vmatpush.bf16.msra.mxu0 %v9299_v63  ;;  %v9776_v63 = vld [vmem:[#allocation2 + $0x580] sm:$0xf0]  ;;  %v9139_v2 = vor.u32 %v13579_v56, %v9136_v57  ;;  %v13939_v53 = vld [vmem:[#allocation2 + $0xb9c] sm:$0xf]  ;;  %v11579_v56 = vor.u32 %v14189_v47, %v11576_v48  ;;  %v14069_v43 = vld [vmem:[#allocation2 + $0xfac] sm:$0xf] }
 0x11f   : > { %4536 = vmatpush.bf16.msra.mxu1 %v9619_v0  ;;  %v13819_v0 = vld [vmem:[#allocation2 + $0x7dc] sm:$0xf]  ;;  %v9779_v6 = vor.u32 %v13739_v62, %v9776_v63  ;;  %v10896_v57 = vld [vmem:[#allocation2 + $0xe40] sm:$0xf0]  ;;  %v13929_v63 = vld [vmem:[#allocation2 + $0xb4c] sm:$0xf] }
 0x120   : > { %4549 = vmatpush.bf16.msra.mxu2 %v9939_v1  ;;  %v10096_v1 = vld [vmem:[#allocation2 + $0x800] sm:$0xf0]  ;;  %v14149_v48 = vld [vmem:[#allocation2 + $0x122c] sm:$0xf] }
 0x121   : > { %4562 = vmatpush.bf16.msra.mxu3 %v10259_v5  ;;  %v9459_v5 = vor.u32 %v13659_v58, %v9456_v61  ;;  %v14099_v58 = vld [vmem:[#allocation2 + $0x109c] sm:$0xf]  ;;  %v11536_v61 = vld [vmem:[#allocation2 + $0x1340] sm:$0xf0] }
 0x122   : > { %4524 = vmatpush.bf16.msra.mxu0 %v9259_v11  ;;  %v4298_v10 = vpop.f32.mrf.mxu2  ;;  %v10099_v11 = vor.u32 %v13819_v0, %v10096_v1  ;;  %v11219_v1 = vor.u32 %v14099_v58, %v11216_v59  ;;  %v13979_v58 = vld [vmem:[#allocation2 + $0xcdc] sm:$0xf] }
 0x123   : > { %4537 = vmatpush.bf16.msra.mxu1 %v9579_v13  ;;  %v13809_v13 = vld [vmem:[#allocation2 + $0x78c] sm:$0xf]  ;;  %v4311_v15 = vpop.f32.mrf.mxu3  ;;  %v11496_v10 = vld [vmem:[#allocation2 + $0x12f0] sm:$0xf0] }
 0x124   : > { %4550 = vmatpush.bf16.msra.mxu2 %v9899_v14  ;;  %v10056_v14 = vld [vmem:[#allocation2 + $0x7b0] sm:$0xf0]  ;;  %v13919_v15 = vld [vmem:[#allocation2 + $0xafc] sm:$0xf]  ;;  %v11499_v26 = vor.u32 %v14169_v9, %v11496_v10  ;;  %v14049_v9 = vld [vmem:[#allocation2 + $0xf0c] sm:$0xf] }
 0x125   : > { %4563 = vmatpush.bf16.msra.mxu3 %v10219_v25  ;;  %v10976_v25 = vld [vmem:[#allocation2 + $0xee0] sm:$0xf0] }
 0x126   : > { %4525 = vmatpush.bf16.msra.mxu0 %v9219_v33  ;;  %v10059_v33 = vor.u32 %v13809_v13, %v10056_v14  ;;  %v11179_v14 = vor.u32 %v14089_v7, %v11176_v8  ;;  %v13969_v7 = vld [vmem:[#allocation2 + $0xc8c] sm:$0xf]  ;;  %v10696_v8 = vld [vmem:[#allocation2 + $0xcb0] sm:$0xf0] }
 0x127   : > { %4538 = vmatpush.bf16.msra.mxu1 %v9539_v34  ;;  %v10659_v34 = vor.u32 %v13959_v16, %v10656_v17  ;;  %v10496_v16 = vld [vmem:[#allocation2 + $0xb20] sm:$0xf0]  ;;  %v13999_v17 = vld [vmem:[#allocation2 + $0xd7c] sm:$0xf] }
 0x128   : > { %4551 = vmatpush.bf16.msra.mxu2 %v9859_v35  ;;  %v10979_v35 = vor.u32 %v14039_v21, %v10976_v25  ;;  %v10816_v25 = vld [vmem:[#allocation2 + $0xda0] sm:$0xf0] }
 0x129   : > { %4564 = vmatpush.bf16.msra.mxu3 %v10179_v24  ;;  %v11619_v24 = vor.u32 %v14199_v31, %v11616_v32  ;;  %v10499_v32 = vor.u32 %v13919_v15, %v10496_v16  ;;  %v9382_v16 = vld [vmem:[#allocation2 + $0x240] sm:$0xf] }
 0x12a   : > { %4526 = vmatpush.bf16.msra.mxu0 %v9179_v51  ;;  %v11259_v51 = vor.u32 %v14109_v45, %v11256_v46  ;;  %v11096_v45 = vld [vmem:[#allocation2 + $0xfd0] sm:$0xf0] }
 0x12b   : > { %4539 = vmatpush.bf16.msra.mxu1 %v9499_v54  ;;  %v10576_v54 = vld [vmem:[#allocation2 + $0xbc0] sm:$0xf0] }
 0x12c   : > { %4552 = vmatpush.bf16.msra.mxu2 %v9819_v55  ;;  %v14019_v55 = vld [vmem:[#allocation2 + $0xe1c] sm:$0xf]  ;;  %v10579_v62 = vor.u32 %v13939_v53, %v10576_v54 }
 0x12d   : > { %4565 = vmatpush.bf16.msra.mxu3 %v10139_v60  ;;  %v14179_v60 = vld [vmem:[#allocation2 + $0x131c] sm:$0xf]  ;;  %v10899_v0 = vor.u32 %v14019_v55, %v10896_v57  ;;  %v11099_v55 = vor.u32 %v14069_v43, %v11096_v45  ;;  %v10416_v57 = vld [vmem:[#allocation2 + $0xa80] sm:$0xf0]  ;;  %v9982_v43 = vld [vmem:[#allocation2 + $0x6f0] sm:$0xf] }
 0x12e   : > { %4527 = vmatpush.bf16.msra.mxu0 %v9139_v2  ;;  %v10536_v2 = vld [vmem:[#allocation2 + $0xb70] sm:$0xf0]  ;;  %v13795_v45 = vld [vmem:[#allocation2 + $0x714] sm:$0xf0] }
 0x12f   : > { %4540 = vmatpush.bf16.msra.mxu1 %v9459_v5  ;;  %v11539_v5 = vor.u32 %v14179_v60, %v11536_v61  ;;  %v10736_v61 = vld [vmem:[#allocation2 + $0xd00] sm:$0xf0] }
 0x130   : > { %4553 = vmatpush.bf16.msra.mxu2 %v9779_v6  ;;  %v10856_v6 = vld [vmem:[#allocation2 + $0xdf0] sm:$0xf0] }
 0x131   : > { %4566 = vmatpush.bf16.msra.mxu3 %v10099_v11  ;;  %v10539_v11 = vor.u32 %v13929_v63, %v10536_v2  ;;  %v10859_v13 = vor.u32 %v14009_v3, %v10856_v6  ;;  %v11056_v63 = vld [vmem:[#allocation2 + $0xf80] sm:$0xf0]  ;;  %v13889_v3 = vld [vmem:[#allocation2 + $0xa0c] sm:$0xf] }
 0x132   : > { %4528 = vmatpush.bf16.msra.mxu0 %v9099_v23  ;;  %v4322_v12 = vpop.f32.mrf.mxu0 }
 0x133   : > { %4541 = vmatpush.bf16.msra.mxu1 %v9419_v29  ;;  %v4323_v21 = vadd.f32 %v4322_v12, %v962_v4  ;;  %v4335_v23 = vpop.f32.mrf.mxu1  ;;  %v14159_v29 = vld [vmem:[#allocation2 + $0x127c] sm:$0xf]  ;;  %v10376_v4 = vld [vmem:[#allocation2 + $0xa30] sm:$0xf0] }
 0x134   : > { %4554 = vmatpush.bf16.msra.mxu2 %v9739_v30  ;;  %v11456_v30 = vld [vmem:[#allocation2 + $0x12a0] sm:$0xf0]  ;;  %v11016_v12 = vld [vmem:[#allocation2 + $0xf30] sm:$0xf0] }
 0x135   : > { %4567 = vmatpush.bf16.msra.mxu3 %v10059_v33  ;;  %4529 = vmatmul.bf16.vlgmr.msra.gmra.mxu0 %v15169_v19  ;;  %v4336_v31 = vadd.f32 %v4335_v23, %v4323_v21  ;;  %v10819_v33 = vor.u32 %v13999_v17, %v10816_v25  ;;  %v11459_v40 = vor.u32 %v14159_v29, %v11456_v30  ;;  %v13645_v17 = vld [vmem:[#allocation2 + $0x264] sm:$0xf0]  ;;  %v9702_v21 = vld [vmem:[#allocation2 + $0x4c0] sm:$0xf] }
 0x136   : > { %4573 = vmatpush.bf16.msrb.mxu0 %v10659_v34  ;;  %4542 = vmatmul.bf16.vlgmr.msra.gmra.mxu1 %v15173_v22  ;;  %v11139_v34 = vor.u32 %v14079_v27, %v11136_v28  ;;  %v10379_v23 = vor.u32 %v13889_v3, %v10376_v4  ;;  %v10022_v25 = vld [vmem:[#allocation2 + $0x740] sm:$0xf]  ;;  %v13805_v27 = vld [vmem:[#allocation2 + $0x764] sm:$0xf0]  ;;  %v10699_v28 = vor.u32 %v13969_v7, %v10696_v8  ;;  %v9582_v3 = vld [vmem:[#allocation2 + $0x3d0] sm:$0xf] }
 0x137   : > { %4586 = vmatpush.bf16.msrb.mxu1 %v10979_v35  ;;  %4555 = vmatmul.bf16.vlgmr.msra.gmra.mxu2 %v15167_v18  ;;  %v13909_v35 = vld [vmem:[#allocation2 + $0xaac] sm:$0xf]  ;;  %v11019_v29 = vor.u32 %v14049_v9, %v11016_v12  ;;  %v10342_v30 = vld [vmem:[#allocation2 + $0x9c0] sm:$0xf]  ;;  %v13775_v7 = vld [vmem:[#allocation2 + $0x674] sm:$0xf0] }
 0x138   : > { %4599 = vmatpush.bf16.msrb.mxu2 %v11299_v36  ;;  %4568 = vmatmul.bf16.vlgmr.msra.gmra.mxu3 %v15171_v20  ;;  %v10456_v36 = vld [vmem:[#allocation2 + $0xad0] sm:$0xf0]  ;;  %v10222_v8 = vld [vmem:[#allocation2 + $0x8d0] sm:$0xf]  ;;  %v13855_v9 = vld [vmem:[#allocation2 + $0x8f4] sm:$0xf0] }
 0x139   : > { %4612 = vmatpush.bf16.msrb.mxu3 %v11619_v24  ;;  %v10776_v24 = vld [vmem:[#allocation2 + $0xd50] sm:$0xf0] }
 0x13a   : > { %4574 = vmatpush.bf16.msrb.mxu0 %v10619_v49  ;;  %v4348_v39 = vpop.f32.mrf.mxu2  ;;  %v11416_v49 = vld [vmem:[#allocation2 + $0x1250] sm:$0xf0]  ;;  %v4324_v53 = vpop.f32.mrf.mxu0  ;;  %v10779_v54 = vor.u32 %v13989_v37, %v10776_v24  ;;  %v13635_v37 = vld [vmem:[#allocation2 + $0x214] sm:$0xf0] }
 0x13b   : > { %4587 = vmatpush.bf16.msrb.mxu1 %v10939_v50  ;;  %v4349_v46 = vadd.f32 %v4348_v39, %v4336_v31  ;;  %v4361_v47 = vpop.f32.mrf.mxu3  ;;  %v10459_v50 = vor.u32 %v13909_v35, %v10456_v36  ;;  %v4337_v59 = vpop.f32.mrf.mxu1  ;;  %v11419_v60 = vor.u32 %v14149_v48, %v11416_v49  ;;  %v13885_v31 = vld [vmem:[#allocation2 + $0x9e4] sm:$0xf0]  ;;  %v10023_v35 = vor.u32 %v13805_v27, %v10022_v25  ;;  %v9342_v36 = vld [vmem:[#allocation2 + $0x1f0] sm:$0xf]  ;;  %v13715_v24 = vld [vmem:[#allocation2 + $0x494] sm:$0xf0] }
 0x13c   : > { %4600 = vmatpush.bf16.msrb.mxu2 %v11259_v51  ;;  %v9662_v39 = vld [vmem:[#allocation2 + $0x470] sm:$0xf]  ;;  %v9343_v48 = vor.u32 %v13635_v37, %v9342_v36  ;;  %v9302_v53 = vld [vmem:[#allocation2 + $0x1a0] sm:$0xf]  ;;  %v13785_v59 = vld [vmem:[#allocation2 + $0x6c4] sm:$0xf0] }
 0x13d   : > { %4613 = vmatpush.bf16.msrb.mxu3 %v11579_v56  ;;  %v15226_v51 = vadd.f32 %v4361_v47, %v4349_v46  ;;  %v13899_v56 = vld [vmem:[#allocation2 + $0xa5c] sm:$0xf]  ;;  %v10302_v46 = vld [vmem:[#allocation2 + $0x970] sm:$0xf]  ;;  %v13875_v47 = vld [vmem:[#allocation2 + $0x994] sm:$0xf0]  ;;  %v9663_v49 = vor.u32 %v13715_v24, %v9662_v39 }
 0x13e   : > { %4575 = vmatpush.bf16.msrb.mxu0 %v10579_v62  ;;  %v14059_v62 = vld [vmem:[#allocation2 + $0xf5c] sm:$0xf]  ;;  %v10419_v2 = vor.u32 %v13899_v56, %v10416_v57  ;;  %v10303_v56 = vor.u32 %v13875_v47, %v10302_v46  ;;  %v13705_v57 = vld [vmem:[#allocation2 + $0x444] sm:$0xf0]  ;;  %v9862_v25 = vld [vmem:[#allocation2 + $0x600] sm:$0xf] }
 0x13f   : > { %4588 = vmatpush.bf16.msrb.mxu1 %v10899_v0  ;;  %v14139_v0 = vld [vmem:[#allocation2 + $0x11dc] sm:$0xf]  ;;  %v11059_v6 = vor.u32 %v14059_v62, %v11056_v63  ;;  %v13765_v27 = vld [vmem:[#allocation2 + $0x624] sm:$0xf0]  ;;  %v9502_v36 = vld [vmem:[#allocation2 + $0x330] sm:$0xf] }
 0x140   : > { %4601 = vmatpush.bf16.msrb.mxu2 %v11219_v1  ;;  %v11376_v1 = vld [vmem:[#allocation2 + $0x1200] sm:$0xf0]  ;;  %v13675_v39 = vld [vmem:[#allocation2 + $0x354] sm:$0xf0]  ;;  %v10142_v46 = vld [vmem:[#allocation2 + $0x830] sm:$0xf] }
 0x141   : > { %4614 = vmatpush.bf16.msrb.mxu3 %v11539_v5  ;;  %v10739_v5 = vor.u32 %v13979_v58, %v10736_v61  ;;  %v9942_v58 = vld [vmem:[#allocation2 + $0x6a0] sm:$0xf]  ;;  %v13865_v61 = vld [vmem:[#allocation2 + $0x944] sm:$0xf0]  ;;  %v13755_v24 = vld [vmem:[#allocation2 + $0x5d4] sm:$0xf0] }
 0x142   : > { %4576 = vmatpush.bf16.msrb.mxu0 %v10539_v11  ;;  %v4350_v10 = vpop.f32.mrf.mxu2  ;;  %v11379_v11 = vor.u32 %v14139_v0, %v11376_v1  ;;  %v9943_v0 = vor.u32 %v13785_v59, %v9942_v58  ;;  %v9262_v1 = vld [vmem:[#allocation2 + $0x150] sm:$0xf]  ;;  %v13835_v47 = vld [vmem:[#allocation2 + $0x854] sm:$0xf0] }
 0x143   : > { %4589 = vmatpush.bf16.msrb.mxu1 %v10859_v13  ;;  %v14129_v13 = vld [vmem:[#allocation2 + $0x118c] sm:$0xf]  ;;  %v4363_v15 = vpop.f32.mrf.mxu3  ;;  %v10143_v59 = vor.u32 %v13835_v47, %v10142_v46 }
 0x144   : > { %4602 = vmatpush.bf16.msrb.mxu2 %v11179_v14  ;;  %v11336_v14 = vld [vmem:[#allocation2 + $0x11b0] sm:$0xf0]  ;;  %v13605_v15 = vld [vmem:[#allocation2 + $0x124] sm:$0xf0] }
 0x145   : > { %4615 = vmatpush.bf16.msrb.mxu3 %v11499_v26  ;;  %v13725_v26 = vld [vmem:[#allocation2 + $0x4e4] sm:$0xf0] }
 0x146   : > { %4577 = vmatpush.bf16.msrb.mxu0 %v10499_v32  ;;  %v11339_v32 = vor.u32 %v14129_v13, %v11336_v14  ;;  %v9222_v14 = vld [vmem:[#allocation2 + $0x100] sm:$0xf] }
 0x147   : > { %4590 = vmatpush.bf16.msrb.mxu1 %v10819_v33  ;;  %v9383_v33 = vor.u32 %v13645_v17, %v9382_v16  ;;  %v9542_v16 = vld [vmem:[#allocation2 + $0x380] sm:$0xf] }
 0x148   : > { %4603 = vmatpush.bf16.msrb.mxu2 %v11139_v34  ;;  %v9703_v34 = vor.u32 %v13725_v26, %v9702_v21  ;;  %v13685_v26 = vld [vmem:[#allocation2 + $0x3a4] sm:$0xf0] }
 0x149   : > { %4616 = vmatpush.bf16.msrb.mxu3 %v11459_v40  ;;  %v10343_v40 = vor.u32 %v13885_v31, %v10342_v30  ;;  %v9223_v31 = vor.u32 %v13605_v15, %v9222_v14  ;;  %v10662_v15 = vld [vmem:[#allocation2 + $0xc40] sm:$0xf] }
 0x14a   : > { %4578 = vmatpush.bf16.msrb.mxu0 %v10459_v50  ;;  %v9983_v50 = vor.u32 %v13795_v45, %v9982_v43 }
 0x14b   : > { %4591 = vmatpush.bf16.msrb.mxu1 %v10779_v54  ;;  %v13625_v54 = vld [vmem:[#allocation2 + $0x1c4] sm:$0xf0] }
 0x14c   : > { %4604 = vmatpush.bf16.msrb.mxu2 %v11099_v55  ;;  %v9622_v55 = vld [vmem:[#allocation2 + $0x420] sm:$0xf]  ;;  %v9303_v62 = vor.u32 %v13625_v54, %v9302_v53  ;;  %v9503_v53 = vor.u32 %v13675_v39, %v9502_v36  ;;  %v13955_v36 = vld [vmem:[#allocation2 + $0xc14] sm:$0xf0] }
 0x14d   : > { %4617 = vmatpush.bf16.msrb.mxu3 %v11419_v60  ;;  %v10262_v60 = vld [vmem:[#allocation2 + $0x920] sm:$0xf]  ;;  %v9623_v63 = vor.u32 %v13705_v57, %v9622_v55  ;;  %v14035_v39 = vld [vmem:[#allocation2 + $0xe94] sm:$0xf0] }
 0x14e   : > { %4579 = vmatpush.bf16.msrb.mxu0 %v10419_v2  ;;  %v13615_v2 = vld [vmem:[#allocation2 + $0x174] sm:$0xf0]  ;;  %v10263_v4 = vor.u32 %v13865_v61, %v10262_v60  ;;  %v9142_v55 = vld [vmem:[#allocation2 + $0x60] sm:$0xf]  ;;  %v13665_v60 = vld [vmem:[#allocation2 + $0x304] sm:$0xf0] }
 0x14f   : > { %4592 = vmatpush.bf16.msrb.mxu1 %v10739_v5  ;;  %v13695_v5 = vld [vmem:[#allocation2 + $0x3f4] sm:$0xf0]  ;;  %v9263_v10 = vor.u32 %v13615_v2, %v9262_v1  ;;  %v9462_v57 = vld [vmem:[#allocation2 + $0x2e0] sm:$0xf]  ;;  %v9102_v2 = vld [vmem:[#allocation2 + $0x10] sm:$0xf] }
 0x150   : > { %4605 = vmatpush.bf16.msrb.mxu2 %v11059_v6  ;;  %v9902_v6 = vld [vmem:[#allocation2 + $0x650] sm:$0xf]  ;;  %v9583_v12 = vor.u32 %v13695_v5, %v9582_v3  ;;  %v9782_v61 = vld [vmem:[#allocation2 + $0x560] sm:$0xf]  ;;  %v13575_v3 = vld [vmem:[#allocation2 + $0x34] sm:$0xf0] }
 0x151   : > { %4618 = vmatpush.bf16.msrb.mxu3 %v11379_v11  ;;  %v9903_v13 = vor.u32 %v13775_v7, %v9902_v6  ;;  %v9422_v6 = vld [vmem:[#allocation2 + $0x290] sm:$0xf]  ;;  %v13655_v7 = vld [vmem:[#allocation2 + $0x2b4] sm:$0xf0] }
 0x152   : > { %4580 = vmatpush.bf16.msrb.mxu0 %v10379_v23  ;;  %v4374_v11 = vpop.f32.mrf.mxu0  ;;  %v10223_v23 = vor.u32 %v13855_v9, %v10222_v8  ;;  %v9742_v8 = vld [vmem:[#allocation2 + $0x510] sm:$0xf] }
 0x153   : > { %4593 = vmatpush.bf16.msrb.mxu1 %v10699_v28  ;;  %v4375_v17 = vadd.f32 %v4374_v11, %v15226_v51  ;;  %v4387_v21 = vpop.f32.mrf.mxu1  ;;  %v10182_v28 = vld [vmem:[#allocation2 + $0x880] sm:$0xf]  ;;  %v13735_v11 = vld [vmem:[#allocation2 + $0x534] sm:$0xf0] }
 0x154   : > { %4606 = vmatpush.bf16.msrb.mxu2 %v11019_v29  ;;  %v13845_v29 = vld [vmem:[#allocation2 + $0x8a4] sm:$0xf0] }
 0x155   : > { %4619 = vmatpush.bf16.msrb.mxu3 %v11339_v32  ;;  %4581 = vmatmul.bf16.vlgmr.msrb.gmra.mxu0 %v15187_v41  ;;  %v4388_v30 = vadd.f32 %v4387_v21, %v4375_v17  ;;  %v9543_v32 = vor.u32 %v13685_v26, %v9542_v16  ;;  %v10183_v51 = vor.u32 %v13845_v29, %v10182_v28  ;;  %v13965_v16 = vld [vmem:[#allocation2 + $0xc64] sm:$0xf0]  ;;  %v10982_v17 = vld [vmem:[#allocation2 + $0xec0] sm:$0xf] }
 0x156   : > { %4625 = vmatpush.bf16.msra.mxu0 %v9383_v33  ;;  %4594 = vmatmul.bf16.vlgmr.msrb.gmra.mxu1 %v15191_v44  ;;  %v9863_v33 = vor.u32 %v13765_v27, %v9862_v25  ;;  %v9103_v21 = vor.u32 %v13575_v3, %v9102_v2  ;;  %v11302_v26 = vld [vmem:[#allocation2 + $0x1140] sm:$0xf]  ;;  %v14125_v25 = vld [vmem:[#allocation2 + $0x1164] sm:$0xf0]  ;;  %v9423_v27 = vor.u32 %v13655_v7, %v9422_v6  ;;  %v10862_v2 = vld [vmem:[#allocation2 + $0xdd0] sm:$0xf] }
 0x157   : > { %4638 = vmatpush.bf16.msra.mxu1 %v9703_v34  ;;  %4607 = vmatmul.bf16.vlgmr.msrb.gmra.mxu2 %v15185_v38  ;;  %v9182_v34 = vld [vmem:[#allocation2 + $0xb0] sm:$0xf]  ;;  %v9743_v28 = vor.u32 %v13735_v11, %v9742_v8  ;;  %v11622_v29 = vld [vmem:[#allocation2 + $0x13c0] sm:$0xf]  ;;  %v14015_v6 = vld [vmem:[#allocation2 + $0xdf4] sm:$0xf0] }
 0x158   : > { %4651 = vmatpush.bf16.msra.mxu2 %v10023_v35  ;;  %4620 = vmatmul.bf16.vlgmr.msrb.gmra.mxu3 %v15189_v42  ;;  %v13595_v35 = vld [vmem:[#allocation2 + $0xd4] sm:$0xf0]  ;;  %v15239_v3 = vld [vmem:[#allocation5] sm:$0xff]  ;;  %v11182_v7 = vld [vmem:[#allocation2 + $0x1050] sm:$0xf] }
 0x159   : > { %4664 = vmatpush.bf16.msra.mxu3 %v10343_v40  ;;  %v9822_v40 = vld [vmem:[#allocation2 + $0x5b0] sm:$0xf]  ;;  %v14095_v8 = vld [vmem:[#allocation2 + $0x1074] sm:$0xf0] }
 0x15a   : > { %4626 = vmatpush.bf16.msra.mxu0 %v9343_v48  ;;  %v4400_v37 = vpop.f32.mrf.mxu2  ;;  %v9183_v48 = vor.u32 %v13595_v35, %v9182_v34  ;;  %v9823_v54 = vor.u32 %v13755_v24, %v9822_v40  ;;  %v11303_v34 = vor.u32 %v14125_v25, %v11302_v26  ;;  %v10622_v35 = vld [vmem:[#allocation2 + $0xbf0] sm:$0xf]  ;;  %v14115_v24 = vld [vmem:[#allocation2 + $0x1114] sm:$0xf0]  ;;  %v14005_v25 = vld [vmem:[#allocation2 + $0xda4] sm:$0xf0] }
 0x15b   : > { %4639 = vmatpush.bf16.msra.mxu1 %v9663_v49  ;;  %v4401_v43 = vadd.f32 %v4400_v37, %v4388_v30  ;;  %v4413_v45 = vpop.f32.mrf.mxu3  ;;  %v4389_v58 = vpop.f32.mrf.mxu1  ;;  %v14205_v30 = vld [vmem:[#allocation2 + $0x13e4] sm:$0xf0]  ;;  %v10942_v37 = vld [vmem:[#allocation2 + $0xe70] sm:$0xf]  ;;  %v10623_v46 = vor.u32 %v13955_v36, %v10622_v35  ;;  %v13915_v36 = vld [vmem:[#allocation2 + $0xad4] sm:$0xf0] }
 0x15c   : > { %4652 = vmatpush.bf16.msra.mxu2 %v9983_v50  ;;  %v4376_v50 = vpop.f32.mrf.mxu0  ;;  %v11262_v40 = vld [vmem:[#allocation2 + $0x10f0] sm:$0xf]  ;;  %v10943_v47 = vor.u32 %v14035_v39, %v10942_v37  ;;  %v14105_v58 = vld [vmem:[#allocation2 + $0x10c4] sm:$0xf0] }
 0x15d   : > { %4665 = vmatpush.bf16.msra.mxu3 %v10303_v56  ;;  %v15233_v49 = vadd.f32 %v4413_v45, %v4401_v43  ;;  %v13585_v56 = vld [vmem:[#allocation2 + $0x84] sm:$0xf0]  ;;  %v11582_v43 = vld [vmem:[#allocation2 + $0x1370] sm:$0xf]  ;;  %v14195_v45 = vld [vmem:[#allocation2 + $0x1394] sm:$0xf0] }
 0x15e   : > { %4627 = vmatpush.bf16.msra.mxu0 %v9303_v62  ;;  %v13745_v62 = vld [vmem:[#allocation2 + $0x584] sm:$0xf0]  ;;  %v9143_v1 = vor.u32 %v13585_v56, %v9142_v55  ;;  %v10582_v50 = vld [vmem:[#allocation2 + $0xba0] sm:$0xf]  ;;  %v11583_v55 = vor.u32 %v14195_v45, %v11582_v43  ;;  %v10462_v35 = vld [vmem:[#allocation2 + $0xab0] sm:$0xf] }
 0x15f   : > { %4640 = vmatpush.bf16.msra.mxu1 %v9623_v63  ;;  %v10102_v63 = vld [vmem:[#allocation2 + $0x7e0] sm:$0xf]  ;;  %v9783_v5 = vor.u32 %v13745_v62, %v9782_v61  ;;  %v14025_v56 = vld [vmem:[#allocation2 + $0xe44] sm:$0xf0]  ;;  %v10542_v62 = vld [vmem:[#allocation2 + $0xb50] sm:$0xf] }
 0x160   : > { %4653 = vmatpush.bf16.msra.mxu2 %v9943_v0  ;;  %v13825_v0 = vld [vmem:[#allocation2 + $0x804] sm:$0xf0]  ;;  %v10782_v37 = vld [vmem:[#allocation2 + $0xd30] sm:$0xf]  ;;  %v14075_v43 = vld [vmem:[#allocation2 + $0xfd4] sm:$0xf0] }
 0x161   : > { %4666 = vmatpush.bf16.msra.mxu3 %v10263_v4  ;;  %v9463_v4 = vor.u32 %v13665_v60, %v9462_v57  ;;  %v11222_v57 = vld [vmem:[#allocation2 + $0x10a0] sm:$0xf]  ;;  %v14185_v60 = vld [vmem:[#allocation2 + $0x1344] sm:$0xf0] }
 0x162   : > { %4628 = vmatpush.bf16.msra.mxu0 %v9263_v10  ;;  %v4402_v9 = vpop.f32.mrf.mxu2  ;;  %v10103_v10 = vor.u32 %v13825_v0, %v10102_v63  ;;  %v11223_v0 = vor.u32 %v14105_v58, %v11222_v57  ;;  %v10422_v57 = vld [vmem:[#allocation2 + $0xa60] sm:$0xf]  ;;  %v13905_v58 = vld [vmem:[#allocation2 + $0xa84] sm:$0xf0] }
 0x163   : > { %4641 = vmatpush.bf16.msra.mxu1 %v9583_v12  ;;  %v10062_v12 = vld [vmem:[#allocation2 + $0x790] sm:$0xf]  ;;  %v4415_v14 = vpop.f32.mrf.mxu3 }
 0x164   : > { %4654 = vmatpush.bf16.msra.mxu2 %v9903_v13  ;;  %v13815_v13 = vld [vmem:[#allocation2 + $0x7b4] sm:$0xf0]  ;;  %v11502_v9 = vld [vmem:[#allocation2 + $0x12d0] sm:$0xf]  ;;  %v11183_v14 = vor.u32 %v14095_v8, %v11182_v7 }
 0x165   : > { %4667 = vmatpush.bf16.msra.mxu3 %v10223_v23  ;;  %v14045_v23 = vld [vmem:[#allocation2 + $0xee4] sm:$0xf0] }
 0x166   : > { %4629 = vmatpush.bf16.msra.mxu0 %v9223_v31  ;;  %v10063_v31 = vor.u32 %v13815_v13, %v10062_v12  ;;  %v10863_v13 = vor.u32 %v14015_v6, %v10862_v2  ;;  %v14145_v2 = vld [vmem:[#allocation2 + $0x1204] sm:$0xf0]  ;;  %v13895_v6 = vld [vmem:[#allocation2 + $0xa34] sm:$0xf0] }
 0x167   : > { %4642 = vmatpush.bf16.msra.mxu1 %v9543_v32  ;;  %v10663_v32 = vor.u32 %v13965_v16, %v10662_v15  ;;  %v10502_v15 = vld [vmem:[#allocation2 + $0xb00] sm:$0xf]  ;;  %v13925_v16 = vld [vmem:[#allocation2 + $0xb24] sm:$0xf0] }
 0x168   : > { %4655 = vmatpush.bf16.msra.mxu2 %v9863_v33  ;;  %v10983_v33 = vor.u32 %v14045_v23, %v10982_v17  ;;  %v10822_v17 = vld [vmem:[#allocation2 + $0xd80] sm:$0xf] }
 0x169   : > { %4668 = vmatpush.bf16.msra.mxu3 %v10183_v51  ;;  %v11623_v51 = vor.u32 %v14205_v30, %v11622_v29  ;;  %v11462_v29 = vld [vmem:[#allocation2 + $0x1280] sm:$0xf]  ;;  %v14165_v30 = vld [vmem:[#allocation2 + $0x12a4] sm:$0xf0] }
 0x16a   : > { %4630 = vmatpush.bf16.msra.mxu0 %v9183_v48  ;;  %v11263_v48 = vor.u32 %v14115_v24, %v11262_v40  ;;  %v11463_v39 = vor.u32 %v14165_v30, %v11462_v29  ;;  %v13995_v40 = vld [vmem:[#allocation2 + $0xd54] sm:$0xf0]  ;;  %v11102_v24 = vld [vmem:[#allocation2 + $0xfb0] sm:$0xf]  ;;  %v10024_v29 = vld [vmem:[#allocation2 + $0x768] sm:$0xf0] }
 0x16b   : > { %4643 = vmatpush.bf16.msra.mxu1 %v9503_v53  ;;  %v13945_v53 = vld [vmem:[#allocation2 + $0xbc4] sm:$0xf0] }
 0x16c   : > { %4656 = vmatpush.bf16.msra.mxu2 %v9823_v54  ;;  %v10902_v54 = vld [vmem:[#allocation2 + $0xe20] sm:$0xf]  ;;  %v10583_v61 = vor.u32 %v13945_v53, %v10582_v50  ;;  %v10463_v50 = vor.u32 %v13915_v36, %v10462_v35 }
 0x16d   : > { %4669 = vmatpush.bf16.msra.mxu3 %v10143_v59  ;;  %v11542_v59 = vld [vmem:[#allocation2 + $0x1320] sm:$0xf]  ;;  %v10903_v63 = vor.u32 %v14025_v56, %v10902_v54  ;;  %v11103_v56 = vor.u32 %v14075_v43, %v11102_v24  ;;  %v9664_v43 = vld [vmem:[#allocation2 + $0x498] sm:$0xf0] }
 0x16e   : > { %4631 = vmatpush.bf16.msra.mxu0 %v9143_v1  ;;  %v13935_v1 = vld [vmem:[#allocation2 + $0xb74] sm:$0xf0] }
 0x16f   : > { %4644 = vmatpush.bf16.msra.mxu1 %v9463_v4  ;;  %v963_v4 = vperm.slane %v15239_v3, 2  ;;  %v10543_v11 = vor.u32 %v13935_v1, %v10542_v62  ;;  %v13985_v62 = vld [vmem:[#allocation2 + $0xd04] sm:$0xf0]  ;;  %v11382_v1 = vld [vmem:[#allocation2 + $0x11e0] sm:$0xf] }
 0x170   : > { %4657 = vmatpush.bf16.msra.mxu2 %v9783_v5  ;;  %v11543_v5 = vor.u32 %v14185_v60, %v11542_v59  ;;  %v10742_v59 = vld [vmem:[#allocation2 + $0xce0] sm:$0xf] }
 0x171   : > { %4670 = vmatpush.bf16.msra.mxu3 %v10103_v10  ;;  %v14175_v10 = vld [vmem:[#allocation2 + $0x12f4] sm:$0xf0]  ;;  %v10743_v7 = vor.u32 %v13985_v62, %v10742_v59  ;;  %v9944_v62 = vld [vmem:[#allocation2 + $0x6c8] sm:$0xf0] }
 0x172   : > { %4632 = vmatpush.bf16.msra.mxu0 %v9103_v21  ;;  %v4426_v12 = vpop.f32.mrf.mxu0  ;;  %v11503_v26 = vor.u32 %v14175_v10, %v11502_v9  ;;  %v10702_v9 = vld [vmem:[#allocation2 + $0xc90] sm:$0xf]  ;;  %v13975_v10 = vld [vmem:[#allocation2 + $0xcb4] sm:$0xf0] }
 0x173   : > { %4645 = vmatpush.bf16.msra.mxu1 %v9423_v27  ;;  %v4427_v21 = vadd.f32 %v4426_v12, %v963_v4  ;;  %v4439_v23 = vpop.f32.mrf.mxu1  ;;  %v11142_v27 = vld [vmem:[#allocation2 + $0x1000] sm:$0xf]  ;;  %v10423_v4 = vor.u32 %v13905_v58, %v10422_v57  ;;  %v10703_v30 = vor.u32 %v13975_v10, %v10702_v9  ;;  %v9304_v57 = vld [vmem:[#allocation2 + $0x1c8] sm:$0xf0]  ;;  %v13700_v58 = vld [vmem:[#allocation2 + $0x424] sm:$0xf] }
 0x174   : > { %4658 = vmatpush.bf16.msra.mxu2 %v9743_v28  ;;  %v14085_v28 = vld [vmem:[#allocation2 + $0x1024] sm:$0xf0]  ;;  %v9584_v9 = vld [vmem:[#allocation2 + $0x3f8] sm:$0xf0]  ;;  %v13770_v10 = vld [vmem:[#allocation2 + $0x654] sm:$0xf] }
 0x175   : > { %4671 = vmatpush.bf16.msra.mxu3 %v10063_v31  ;;  %4633 = vmatmul.bf16.vlgmr.msra.gmra.mxu0 %v15169_v19  ;;  %v4440_v31 = vadd.f32 %v4439_v23, %v4427_v21  ;;  %v13640_v21 = vld [vmem:[#allocation2 + $0x244] sm:$0xf]  ;;  %v9384_v23 = vld [vmem:[#allocation2 + $0x268] sm:$0xf0] }
 0x176   : > { %4677 = vmatpush.bf16.msrb.mxu0 %v10663_v32  ;;  %4646 = vmatmul.bf16.vlgmr.msra.gmra.mxu1 %v15173_v22  ;;  %v10503_v32 = vor.u32 %v13925_v16, %v10502_v15  ;;  %v11342_v15 = vld [vmem:[#allocation2 + $0x1190] sm:$0xf]  ;;  %v14135_v16 = vld [vmem:[#allocation2 + $0x11b4] sm:$0xf0]  ;;  %v9387_v35 = vor.u32 %v13640_v21, %v9384_v23  ;;  %v13600_v21 = vld [vmem:[#allocation2 + $0x104] sm:$0xf] }
 0x177   : > { %4690 = vmatpush.bf16.msrb.mxu1 %v10983_v33  ;;  %4659 = vmatmul.bf16.vlgmr.msra.gmra.mxu2 %v15167_v18  ;;  %v10823_v33 = vor.u32 %v14005_v25, %v10822_v17  ;;  %v9224_v23 = vld [vmem:[#allocation2 + $0x128] sm:$0xf0] }
 0x178   : > { %4703 = vmatpush.bf16.msrb.mxu2 %v11303_v34  ;;  %4672 = vmatmul.bf16.vlgmr.msra.gmra.mxu3 %v15171_v20  ;;  %v11143_v34 = vor.u32 %v14085_v28, %v11142_v27  ;;  %v9704_v27 = vld [vmem:[#allocation2 + $0x4e8] sm:$0xf0]  ;;  %v13800_v28 = vld [vmem:[#allocation2 + $0x744] sm:$0xf] }
 0x179   : > { %4716 = vmatpush.bf16.msrb.mxu3 %v11623_v51 }
 0x17a   : > { %4678 = vmatpush.bf16.msrb.mxu0 %v10623_v46  ;;  %v4452_v51 = vpop.f32.mrf.mxu2  ;;  %v4428_v54 = vpop.f32.mrf.mxu0 }
 0x17b   : > { %4691 = vmatpush.bf16.msrb.mxu1 %v10943_v47  ;;  %v4453_v45 = vadd.f32 %v4452_v51, %v4440_v31  ;;  %v4465_v46 = vpop.f32.mrf.mxu3  ;;  %v11422_v47 = vld [vmem:[#allocation2 + $0x1230] sm:$0xf]  ;;  %v4441_v60 = vpop.f32.mrf.mxu1  ;;  %v13630_v51 = vld [vmem:[#allocation2 + $0x1f4] sm:$0xf] }
 0x17c   : > { %4704 = vmatpush.bf16.msrb.mxu2 %v11263_v48  ;;  %v14155_v48 = vld [vmem:[#allocation2 + $0x1254] sm:$0xf0]  ;;  %v9624_v60 = vld [vmem:[#allocation2 + $0x448] sm:$0xf0] }
 0x17d   : > { %4717 = vmatpush.bf16.msrb.mxu3 %v11583_v55  ;;  %v15242_v53 = vadd.f32 %v4465_v46, %v4453_v45  ;;  %v10783_v55 = vor.u32 %v13995_v40, %v10782_v37  ;;  %v10027_v37 = vor.u32 %v13800_v28, %v10024_v29  ;;  %v13710_v40 = vld [vmem:[#allocation2 + $0x474] sm:$0xf]  ;;  %v9984_v46 = vld [vmem:[#allocation2 + $0x718] sm:$0xf0]  ;;  %v9544_v29 = vld [vmem:[#allocation2 + $0x3a8] sm:$0xf0] }
 0x17e   : > { %4679 = vmatpush.bf16.msrb.mxu0 %v10583_v61  ;;  %v11423_v61 = vor.u32 %v14155_v48, %v11422_v47  ;;  %v13790_v45 = vld [vmem:[#allocation2 + $0x6f4] sm:$0xf]  ;;  %v10304_v48 = vld [vmem:[#allocation2 + $0x998] sm:$0xf0]  ;;  %v9667_v54 = vor.u32 %v13710_v40, %v9664_v43 }
 0x17f   : > { %4692 = vmatpush.bf16.msrb.mxu1 %v10903_v63  ;;  %v11062_v63 = vld [vmem:[#allocation2 + $0xf60] sm:$0xf]  ;;  %v13870_v47 = vld [vmem:[#allocation2 + $0x974] sm:$0xf]  ;;  %v9504_v43 = vld [vmem:[#allocation2 + $0x358] sm:$0xf0] }
 0x180   : > { %4705 = vmatpush.bf16.msrb.mxu2 %v11223_v0  ;;  %v14065_v0 = vld [vmem:[#allocation2 + $0xf84] sm:$0xf0]  ;;  %v10307_v59 = vor.u32 %v13870_v47, %v10304_v48  ;;  %v13670_v40 = vld [vmem:[#allocation2 + $0x334] sm:$0xf] }
 0x181   : > { %4718 = vmatpush.bf16.msrb.mxu3 %v11543_v5  ;;  %v10382_v5 = vld [vmem:[#allocation2 + $0xa10] sm:$0xf]  ;;  %v11063_v8 = vor.u32 %v14065_v0, %v11062_v63  ;;  %v13860_v63 = vld [vmem:[#allocation2 + $0x924] sm:$0xf]  ;;  %v10264_v0 = vld [vmem:[#allocation2 + $0x948] sm:$0xf0] }
 0x182   : > { %4680 = vmatpush.bf16.msrb.mxu0 %v10543_v11  ;;  %v11022_v11 = vld [vmem:[#allocation2 + $0xf10] sm:$0xf]  ;;  %v4454_v12 = vpop.f32.mrf.mxu2  ;;  %v10383_v25 = vor.u32 %v13895_v6, %v10382_v5  ;;  %v13610_v5 = vld [vmem:[#allocation2 + $0x154] sm:$0xf]  ;;  %v9264_v6 = vld [vmem:[#allocation2 + $0x178] sm:$0xf0] }
 0x183   : > { %4693 = vmatpush.bf16.msrb.mxu1 %v10863_v13  ;;  %v11383_v13 = vor.u32 %v14145_v2, %v11382_v1  ;;  %v4467_v17 = vpop.f32.mrf.mxu3  ;;  %v9627_v2 = vor.u32 %v13700_v58, %v9624_v60  ;;  %v13850_v12 = vld [vmem:[#allocation2 + $0x8d4] sm:$0xf]  ;;  %v9507_v58 = vor.u32 %v13670_v40, %v9504_v43  ;;  %v13580_v60 = vld [vmem:[#allocation2 + $0x64] sm:$0xf] }
 0x184   : > { %4706 = vmatpush.bf16.msrb.mxu2 %v11183_v14  ;;  %v14055_v14 = vld [vmem:[#allocation2 + $0xf34] sm:$0xf0]  ;;  %v14030_v43 = vld [vmem:[#allocation2 + $0xe74] sm:$0xf] }
 0x185   : > { %4719 = vmatpush.bf16.msrb.mxu3 %v11503_v26  ;;  %v13720_v26 = vld [vmem:[#allocation2 + $0x4c4] sm:$0xf]  ;;  %v11023_v31 = vor.u32 %v14055_v14, %v11022_v11  ;;  %v9904_v11 = vld [vmem:[#allocation2 + $0x678] sm:$0xf0]  ;;  %v9267_v14 = vor.u32 %v13610_v5, %v9264_v6  ;;  %v10104_v6 = vld [vmem:[#allocation2 + $0x808] sm:$0xf0] }
 0x186   : > { %4681 = vmatpush.bf16.msrb.mxu0 %v10503_v32  ;;  %v13880_v32 = vld [vmem:[#allocation2 + $0x9c4] sm:$0xf]  ;;  %v9707_v36 = vor.u32 %v13720_v26, %v9704_v27  ;;  %v9907_v17 = vor.u32 %v13770_v10, %v9904_v11 }
 0x187   : > { %4694 = vmatpush.bf16.msrb.mxu1 %v10823_v33  ;;  %v10344_v33 = vld [vmem:[#allocation2 + $0x9e8] sm:$0xf0]  ;;  %v13680_v26 = vld [vmem:[#allocation2 + $0x384] sm:$0xf] }
 0x188   : > { %4707 = vmatpush.bf16.msrb.mxu2 %v11143_v34  ;;  %v11343_v34 = vor.u32 %v14135_v16, %v11342_v15  ;;  %v10347_v24 = vor.u32 %v13880_v32, %v10344_v33  ;;  %v13840_v32 = vld [vmem:[#allocation2 + $0x884] sm:$0xf]  ;;  %v10184_v33 = vld [vmem:[#allocation2 + $0x8a8] sm:$0xf0] }
 0x189   : > { %4720 = vmatpush.bf16.msrb.mxu3 %v11463_v39  ;;  %v9344_v39 = vld [vmem:[#allocation2 + $0x218] sm:$0xf0]  ;;  %v13820_v5 = vld [vmem:[#allocation2 + $0x7e4] sm:$0xf] }
 0x18a   : > { %4682 = vmatpush.bf16.msrb.mxu0 %v10463_v50  ;;  %v9347_v50 = vor.u32 %v13630_v51, %v9344_v39  ;;  %v13590_v51 = vld [vmem:[#allocation2 + $0xb4] sm:$0xf]  ;;  %v9184_v39 = vld [vmem:[#allocation2 + $0xd8] sm:$0xf0] }
 0x18b   : > { %4695 = vmatpush.bf16.msrb.mxu1 %v10783_v55  ;;  %v9987_v55 = vor.u32 %v13790_v45, %v9984_v46  ;;  %v13750_v45 = vld [vmem:[#allocation2 + $0x5b4] sm:$0xf]  ;;  %v9824_v46 = vld [vmem:[#allocation2 + $0x5d8] sm:$0xf0] }
 0x18c   : > { %4708 = vmatpush.bf16.msrb.mxu2 %v11103_v56  ;;  %v13620_v56 = vld [vmem:[#allocation2 + $0x1a4] sm:$0xf] }
 0x18d   : > { %4721 = vmatpush.bf16.msrb.mxu3 %v11423_v61  ;;  %v13780_v61 = vld [vmem:[#allocation2 + $0x6a4] sm:$0xf]  ;;  %v9307_v1 = vor.u32 %v13620_v56, %v9304_v57 }
 0x18e   : > { %4683 = vmatpush.bf16.msrb.mxu0 %v10423_v4  ;;  %v9947_v4 = vor.u32 %v13780_v61, %v9944_v62  ;;  %v9144_v61 = vld [vmem:[#allocation2 + $0x88] sm:$0xf0]  ;;  %v13660_v62 = vld [vmem:[#allocation2 + $0x2e4] sm:$0xf] }
 0x18f   : > { %4696 = vmatpush.bf16.msrb.mxu1 %v10743_v7  ;;  %v13690_v7 = vld [vmem:[#allocation2 + $0x3d4] sm:$0xf] }
 0x190   : > { %4709 = vmatpush.bf16.msrb.mxu2 %v11063_v8  ;;  %v10267_v8 = vor.u32 %v13860_v63, %v10264_v0  ;;  %v9587_v16 = vor.u32 %v13690_v7, %v9584_v9  ;;  %v9147_v7 = vor.u32 %v13580_v60, %v9144_v61  ;;  %v9104_v9 = vld [vmem:[#allocation2 + $0x38] sm:$0xf0]  ;;  %v10584_v60 = vld [vmem:[#allocation2 + $0xbc8] sm:$0xf0]  ;;  %v14020_v61 = vld [vmem:[#allocation2 + $0xe24] sm:$0xf] }
 0x191   : > { %4722 = vmatpush.bf16.msrb.mxu3 %v11383_v13  ;;  %v10224_v13 = vld [vmem:[#allocation2 + $0x8f8] sm:$0xf0] }
 0x192   : > { %4684 = vmatpush.bf16.msrb.mxu0 %v10383_v25  ;;  %v4478_v15 = vpop.f32.mrf.mxu0  ;;  %v10227_v28 = vor.u32 %v13850_v12, %v10224_v13  ;;  %v13650_v12 = vld [vmem:[#allocation2 + $0x294] sm:$0xf]  ;;  %v9424_v13 = vld [vmem:[#allocation2 + $0x2b8] sm:$0xf0] }
 0x193   : > { %4697 = vmatpush.bf16.msrb.mxu1 %v10703_v30  ;;  %v4479_v25 = vadd.f32 %v4478_v15, %v15242_v53  ;;  %v4491_v27 = vpop.f32.mrf.mxu1  ;;  %v13760_v30 = vld [vmem:[#allocation2 + $0x604] sm:$0xf]  ;;  %v10187_v53 = vor.u32 %v13840_v32, %v10184_v33  ;;  %v11304_v32 = vld [vmem:[#allocation2 + $0x1168] sm:$0xf0]  ;;  %v9427_v33 = vor.u32 %v13650_v12, %v9424_v13  ;;  %v10864_v13 = vld [vmem:[#allocation2 + $0xdf8] sm:$0xf0] }
 0x194   : > { %4710 = vmatpush.bf16.msrb.mxu2 %v11023_v31  ;;  %v9864_v31 = vld [vmem:[#allocation2 + $0x628] sm:$0xf0] }
 0x195   : > { %4723 = vmatpush.bf16.msrb.mxu3 %v11343_v34  ;;  %4685 = vmatmul.bf16.vlgmr.msrb.gmra.mxu0 %v15187_v41  ;;  %v4492_v34 = vadd.f32 %v4491_v27, %v4479_v25  ;;  %v13960_v25 = vld [vmem:[#allocation2 + $0xc44] sm:$0xf]  ;;  %v10664_v27 = vld [vmem:[#allocation2 + $0xc68] sm:$0xf0] }
 0x196   : > { %4729 = vmatpush.bf16.msra.mxu0 %v9387_v35  ;;  %4698 = vmatmul.bf16.vlgmr.msrb.gmra.mxu1 %v15191_v44  ;;  %v9227_v35 = vor.u32 %v13600_v21, %v9224_v23  ;;  %v13810_v21 = vld [vmem:[#allocation2 + $0x794] sm:$0xf]  ;;  %v10064_v23 = vld [vmem:[#allocation2 + $0x7b8] sm:$0xf0] }
 0x197   : > { %4742 = vmatpush.bf16.msra.mxu1 %v9707_v36  ;;  %4711 = vmatmul.bf16.vlgmr.msrb.gmra.mxu2 %v15185_v38  ;;  %v9547_v36 = vor.u32 %v13680_v26, %v9544_v29 }
 0x198   : > { %4755 = vmatpush.bf16.msra.mxu2 %v10027_v37  ;;  %4724 = vmatmul.bf16.vlgmr.msrb.gmra.mxu3 %v15189_v42  ;;  %v9867_v37 = vor.u32 %v13760_v30, %v9864_v31  ;;  %v10984_v30 = vld [vmem:[#allocation2 + $0xee8] sm:$0xf0]  ;;  %v14120_v31 = vld [vmem:[#allocation2 + $0x1144] sm:$0xf] }
 0x199   : > { %4768 = vmatpush.bf16.msra.mxu3 %v10347_v24  ;;  %v11307_v40 = vor.u32 %v14120_v31, %v11304_v32  ;;  %v10824_v32 = vld [vmem:[#allocation2 + $0xda8] sm:$0xf0] }
 0x19a   : > { %4730 = vmatpush.bf16.msra.mxu0 %v9347_v50  ;;  %v4504_v24 = vpop.f32.mrf.mxu2  ;;  %v13830_v50 = vld [vmem:[#allocation2 + $0x834] sm:$0xf]  ;;  %v4480_v57 = vpop.f32.mrf.mxu0 }
 0x19b   : > { %4743 = vmatpush.bf16.msra.mxu1 %v9667_v54  ;;  %v4505_v47 = vadd.f32 %v4504_v24, %v4492_v34  ;;  %v4517_v48 = vpop.f32.mrf.mxu3  ;;  %v10144_v54 = vld [vmem:[#allocation2 + $0x858] sm:$0xf0]  ;;  %v4493_v63 = vpop.f32.mrf.mxu1  ;;  %v13950_v24 = vld [vmem:[#allocation2 + $0xbf4] sm:$0xf] }
 0x19c   : > { %4756 = vmatpush.bf16.msra.mxu2 %v9987_v55  ;;  %v9187_v55 = vor.u32 %v13590_v51, %v9184_v39  ;;  %v10147_v0 = vor.u32 %v13830_v50, %v10144_v54  ;;  %v10667_v51 = vor.u32 %v13960_v25, %v10664_v27  ;;  %v14190_v50 = vld [vmem:[#allocation2 + $0x1374] sm:$0xf]  ;;  %v11584_v54 = vld [vmem:[#allocation2 + $0x1398] sm:$0xf0]  ;;  %v10904_v63 = vld [vmem:[#allocation2 + $0xe48] sm:$0xf0] }
 0x19d   : > { %4769 = vmatpush.bf16.msra.mxu3 %v10307_v59  ;;  %v15249_v56 = vadd.f32 %v4517_v48, %v4505_v47  ;;  %v9827_v59 = vor.u32 %v13750_v45, %v9824_v46  ;;  %v10944_v46 = vld [vmem:[#allocation2 + $0xe98] sm:$0xf0]  ;;  %v14110_v47 = vld [vmem:[#allocation2 + $0x10f4] sm:$0xf]  ;;  %v13920_v27 = vld [vmem:[#allocation2 + $0xb04] sm:$0xf] }
 0x19e   : > { %4731 = vmatpush.bf16.msra.mxu0 %v9307_v1  ;;  %v9464_v1 = vld [vmem:[#allocation2 + $0x308] sm:$0xf0]  ;;  %v11264_v48 = vld [vmem:[#allocation2 + $0x1118] sm:$0xf0]  ;;  %v10947_v57 = vor.u32 %v14030_v43, %v10944_v46  ;;  %v13990_v43 = vld [vmem:[#allocation2 + $0xd34] sm:$0xf] }
 0x19f   : > { %4744 = vmatpush.bf16.msra.mxu1 %v9627_v2  ;;  %v13740_v2 = vld [vmem:[#allocation2 + $0x564] sm:$0xf]  ;;  %v9467_v10 = vor.u32 %v13660_v62, %v9464_v1  ;;  %v11587_v62 = vor.u32 %v14190_v50, %v11584_v54  ;;  %v11224_v1 = vld [vmem:[#allocation2 + $0x10c8] sm:$0xf0]  ;;  %v11104_v50 = vld [vmem:[#allocation2 + $0xfd8] sm:$0xf0] }
 0x1a0   : > { %4757 = vmatpush.bf16.msra.mxu2 %v9947_v4  ;;  %v9784_v4 = vld [vmem:[#allocation2 + $0x588] sm:$0xf0] }
 0x1a1   : > { %4770 = vmatpush.bf16.msra.mxu3 %v10267_v8  ;;  %v13570_v8 = vld [vmem:[#allocation2 + $0x14] sm:$0xf]  ;;  %v9787_v11 = vor.u32 %v13740_v2, %v9784_v4  ;;  %v14180_v2 = vld [vmem:[#allocation2 + $0x1324] sm:$0xf]  ;;  %v11544_v4 = vld [vmem:[#allocation2 + $0x1348] sm:$0xf0] }
 0x1a2   : > { %4732 = vmatpush.bf16.msra.mxu0 %v9267_v14  ;;  %v13730_v14 = vld [vmem:[#allocation2 + $0x514] sm:$0xf]  ;;  %v4506_v15 = vpop.f32.mrf.mxu2  ;;  %v9107_v29 = vor.u32 %v13570_v8, %v9104_v9  ;;  %v10544_v9 = vld [vmem:[#allocation2 + $0xb78] sm:$0xf0]  ;;  %v11547_v12 = vor.u32 %v14180_v2, %v11544_v4  ;;  %v13980_v2 = vld [vmem:[#allocation2 + $0xce4] sm:$0xf] }
 0x1a3   : > { %4745 = vmatpush.bf16.msra.mxu1 %v9587_v16  ;;  %v10107_v16 = vor.u32 %v13820_v5, %v10104_v6  ;;  %v4519_v26 = vpop.f32.mrf.mxu3  ;;  %v13930_v6 = vld [vmem:[#allocation2 + $0xb54] sm:$0xf]  ;;  %v11184_v15 = vld [vmem:[#allocation2 + $0x1078] sm:$0xf0] }
 0x1a4   : > { %4758 = vmatpush.bf16.msra.mxu2 %v9907_v17  ;;  %v9744_v17 = vld [vmem:[#allocation2 + $0x538] sm:$0xf0] }
 0x1a5   : > { %4771 = vmatpush.bf16.msra.mxu3 %v10227_v28  ;;  %v14040_v28 = vld [vmem:[#allocation2 + $0xec4] sm:$0xf]  ;;  %v9747_v34 = vor.u32 %v13730_v14, %v9744_v17  ;;  %v14090_v14 = vld [vmem:[#allocation2 + $0x1054] sm:$0xf]  ;;  %v11504_v17 = vld [vmem:[#allocation2 + $0x12f8] sm:$0xf0] }
 0x1a6   : > { %4733 = vmatpush.bf16.msra.mxu0 %v9227_v35  ;;  %v14200_v35 = vld [vmem:[#allocation2 + $0x13c4] sm:$0xf]  ;;  %v10987_v39 = vor.u32 %v14040_v28, %v10984_v30  ;;  %v11187_v25 = vor.u32 %v14090_v14, %v11184_v15  ;;  %v10504_v28 = vld [vmem:[#allocation2 + $0xb28] sm:$0xf0] }
 0x1a7   : > { %4746 = vmatpush.bf16.msra.mxu1 %v9547_v36  ;;  %v11624_v36 = vld [vmem:[#allocation2 + $0x13e8] sm:$0xf0] }
 0x1a8   : > { %4759 = vmatpush.bf16.msra.mxu2 %v9867_v37  ;;  %v10067_v37 = vor.u32 %v13810_v21, %v10064_v23  ;;  %v11627_v45 = vor.u32 %v14200_v35, %v11624_v36  ;;  %v10547_v21 = vor.u32 %v13930_v6, %v10544_v9  ;;  %v14160_v35 = vld [vmem:[#allocation2 + $0x1284] sm:$0xf]  ;;  %v11464_v36 = vld [vmem:[#allocation2 + $0x12a8] sm:$0xf0] }
 0x1a9   : > { %4772 = vmatpush.bf16.msra.mxu3 %v10187_v53  ;;  %v10624_v53 = vld [vmem:[#allocation2 + $0xc18] sm:$0xf0]  ;;  %v11467_v46 = vor.u32 %v14160_v35, %v11464_v36  ;;  %v10744_v6 = vld [vmem:[#allocation2 + $0xd08] sm:$0xf0]  ;;  %v14140_v9 = vld [vmem:[#allocation2 + $0x11e4] sm:$0xf] }
 0x1aa   : > { %4734 = vmatpush.bf16.msra.mxu0 %v9187_v55  ;;  %v10627_v55 = vor.u32 %v13950_v24, %v10624_v53  ;;  %v13910_v24 = vld [vmem:[#allocation2 + $0xab4] sm:$0xf]  ;;  %v10464_v53 = vld [vmem:[#allocation2 + $0xad8] sm:$0xf0]  ;;  %v10747_v14 = vor.u32 %v13980_v2, %v10744_v6  ;;  %v13806_v35 = vld [vmem:[#allocation2 + $0x76c] sm:$0xf0] }
 0x1ab   : > { %4747 = vmatpush.bf16.msra.mxu1 %v9507_v58  ;;  %v11267_v58 = vor.u32 %v14110_v47, %v11264_v48  ;;  %v10784_v47 = vld [vmem:[#allocation2 + $0xd58] sm:$0xf0]  ;;  %v14070_v48 = vld [vmem:[#allocation2 + $0xfb4] sm:$0xf]  ;;  %v13786_v6 = vld [vmem:[#allocation2 + $0x6cc] sm:$0xf0] }
 0x1ac   : > { %4760 = vmatpush.bf16.msra.mxu2 %v9827_v59  ;;  %v13940_v59 = vld [vmem:[#allocation2 + $0xba4] sm:$0xf] }
 0x1ad   : > { %4773 = vmatpush.bf16.msra.mxu3 %v10147_v0  ;;  %v14100_v0 = vld [vmem:[#allocation2 + $0x10a4] sm:$0xf]  ;;  %v10587_v5 = vor.u32 %v13940_v59, %v10584_v60  ;;  %v10467_v59 = vor.u32 %v13910_v24, %v10464_v53 }
 0x1ae   : > { %4735 = vmatpush.bf16.msra.mxu0 %v9147_v7  ;;  %v10907_v7 = vor.u32 %v14020_v61, %v10904_v63  ;;  %v11227_v8 = vor.u32 %v14100_v0, %v11224_v1  ;;  %v11107_v63 = vor.u32 %v14070_v48, %v11104_v50  ;;  %v13900_v0 = vld [vmem:[#allocation2 + $0xa64] sm:$0xf]  ;;  %v10424_v1 = vld [vmem:[#allocation2 + $0xa88] sm:$0xf0]  ;;  %v13716_v50 = vld [vmem:[#allocation2 + $0x49c] sm:$0xf0] }
 0x1af   : > { %4748 = vmatpush.bf16.msra.mxu1 %v9467_v10  ;;  %v14010_v10 = vld [vmem:[#allocation2 + $0xdd4] sm:$0xf] }
 0x1b0   : > { %4761 = vmatpush.bf16.msra.mxu2 %v9787_v11  ;;  %v964_v11 = vperm.slane %v15239_v3, 3  ;;  %v10867_v26 = vor.u32 %v14010_v10, %v10864_v13  ;;  %v11384_v10 = vld [vmem:[#allocation2 + $0x1208] sm:$0xf0]  ;;  %v10384_v13 = vld [vmem:[#allocation2 + $0xa38] sm:$0xf0] }
 0x1b1   : > { %4774 = vmatpush.bf16.msra.mxu3 %v10107_v16  ;;  %v14170_v16 = vld [vmem:[#allocation2 + $0x12d4] sm:$0xf] }
 0x1b2   : > { %4736 = vmatpush.bf16.msra.mxu0 %v9107_v29  ;;  %v4530_v23 = vpop.f32.mrf.mxu0  ;;  %v14000_v29 = vld [vmem:[#allocation2 + $0xd84] sm:$0xf]  ;;  %v11507_v3 = vor.u32 %v14170_v16, %v11504_v17  ;;  %v13970_v16 = vld [vmem:[#allocation2 + $0xc94] sm:$0xf]  ;;  %v10704_v17 = vld [vmem:[#allocation2 + $0xcb8] sm:$0xf0] }
 0x1b3   : > { %4749 = vmatpush.bf16.msra.mxu1 %v9427_v33  ;;  %v4531_v30 = vadd.f32 %v4530_v23, %v964_v11  ;;  %v4543_v31 = vpop.f32.mrf.mxu1  ;;  %v14080_v33 = vld [vmem:[#allocation2 + $0x1004] sm:$0xf]  ;;  %v10427_v11 = vor.u32 %v13900_v0, %v10424_v1  ;;  %v10707_v36 = vor.u32 %v13970_v16, %v10704_v17  ;;  %v13626_v0 = vld [vmem:[#allocation2 + $0x1cc] sm:$0xf0]  ;;  %v9630_v1 = vld [vmem:[#allocation2 + $0x428] sm:$0xf] }
 0x1b4   : > { %4762 = vmatpush.bf16.msra.mxu2 %v9747_v34  ;;  %v11144_v34 = vld [vmem:[#allocation2 + $0x1028] sm:$0xf0]  ;;  %v13696_v16 = vld [vmem:[#allocation2 + $0x3fc] sm:$0xf0]  ;;  %v9910_v17 = vld [vmem:[#allocation2 + $0x658] sm:$0xf] }
 0x1b5   : > { %4775 = vmatpush.bf16.msra.mxu3 %v10067_v37  ;;  %4737 = vmatmul.bf16.vlgmr.msra.gmra.mxu0 %v15169_v19  ;;  %v4544_v37 = vadd.f32 %v4543_v31, %v4531_v30  ;;  %v9390_v30 = vld [vmem:[#allocation2 + $0x248] sm:$0xf]  ;;  %v13646_v31 = vld [vmem:[#allocation2 + $0x26c] sm:$0xf0] }
 0x1b6   : > { %4781 = vmatpush.bf16.msrb.mxu0 %v10667_v51  ;;  %4750 = vmatmul.bf16.vlgmr.msra.gmra.mxu1 %v15173_v22  ;;  %v10507_v51 = vor.u32 %v13920_v27, %v10504_v28  ;;  %v14130_v27 = vld [vmem:[#allocation2 + $0x1194] sm:$0xf]  ;;  %v11344_v28 = vld [vmem:[#allocation2 + $0x11b8] sm:$0xf0]  ;;  %v9391_v24 = vor.u32 %v13646_v31, %v9390_v30  ;;  %v9230_v30 = vld [vmem:[#allocation2 + $0x108] sm:$0xf] }
 0x1b7   : > { %4794 = vmatpush.bf16.msrb.mxu1 %v10987_v39  ;;  %4763 = vmatmul.bf16.vlgmr.msra.gmra.mxu2 %v15167_v18  ;;  %v10827_v39 = vor.u32 %v14000_v29, %v10824_v32  ;;  %v13606_v31 = vld [vmem:[#allocation2 + $0x12c] sm:$0xf0] }
 0x1b8   : > { %4807 = vmatpush.bf16.msrb.mxu2 %v11307_v40  ;;  %4776 = vmatmul.bf16.vlgmr.msra.gmra.mxu3 %v15171_v20  ;;  %v11147_v40 = vor.u32 %v14080_v33, %v11144_v34  ;;  %v13726_v33 = vld [vmem:[#allocation2 + $0x4ec] sm:$0xf0]  ;;  %v10030_v34 = vld [vmem:[#allocation2 + $0x748] sm:$0xf] }
 0x1b9   : > { %4820 = vmatpush.bf16.msrb.mxu3 %v11627_v45 }
 0x1ba   : > { %4782 = vmatpush.bf16.msrb.mxu0 %v10627_v55  ;;  %v4556_v45 = vpop.f32.mrf.mxu2  ;;  %v4532_v61 = vpop.f32.mrf.mxu0 }
 0x1bb   : > { %4795 = vmatpush.bf16.msrb.mxu1 %v10947_v57  ;;  %v4557_v54 = vadd.f32 %v4556_v45, %v4544_v37  ;;  %v4569_v55 = vpop.f32.mrf.mxu3  ;;  %v14150_v57 = vld [vmem:[#allocation2 + $0x1234] sm:$0xf]  ;;  %v4545_v4 = vpop.f32.mrf.mxu1  ;;  %v9350_v45 = vld [vmem:[#allocation2 + $0x1f8] sm:$0xf] }
 0x1bc   : > { %4808 = vmatpush.bf16.msrb.mxu2 %v11267_v58  ;;  %v11424_v58 = vld [vmem:[#allocation2 + $0x1258] sm:$0xf0]  ;;  %v13706_v4 = vld [vmem:[#allocation2 + $0x44c] sm:$0xf0] }
 0x1bd   : > { %4821 = vmatpush.bf16.msrb.mxu3 %v11587_v62  ;;  %v15256_v60 = vadd.f32 %v4569_v55, %v4557_v54  ;;  %v10787_v62 = vor.u32 %v13990_v43, %v10784_v47  ;;  %v10031_v43 = vor.u32 %v13806_v35, %v10030_v34  ;;  %v9670_v47 = vld [vmem:[#allocation2 + $0x478] sm:$0xf]  ;;  %v13796_v55 = vld [vmem:[#allocation2 + $0x71c] sm:$0xf0]  ;;  %v13686_v35 = vld [vmem:[#allocation2 + $0x3ac] sm:$0xf0] }
 0x1be   : > { %4783 = vmatpush.bf16.msrb.mxu0 %v10587_v5  ;;  %v11427_v5 = vor.u32 %v14150_v57, %v11424_v58  ;;  %v9990_v54 = vld [vmem:[#allocation2 + $0x6f8] sm:$0xf]  ;;  %v13876_v58 = vld [vmem:[#allocation2 + $0x99c] sm:$0xf0]  ;;  %v9671_v61 = vor.u32 %v13716_v50, %v9670_v47 }
 0x1bf   : > { %4796 = vmatpush.bf16.msrb.mxu1 %v10907_v7  ;;  %v14060_v7 = vld [vmem:[#allocation2 + $0xf64] sm:$0xf]  ;;  %v10310_v57 = vld [vmem:[#allocation2 + $0x978] sm:$0xf]  ;;  %v13676_v50 = vld [vmem:[#allocation2 + $0x35c] sm:$0xf0] }
 0x1c0   : > { %4809 = vmatpush.bf16.msrb.mxu2 %v11227_v8  ;;  %v11064_v8 = vld [vmem:[#allocation2 + $0xf88] sm:$0xf0]  ;;  %v10311_v2 = vor.u32 %v13876_v58, %v10310_v57  ;;  %v9510_v47 = vld [vmem:[#allocation2 + $0x338] sm:$0xf] }
 0x1c1   : > { %4822 = vmatpush.bf16.msrb.mxu3 %v11547_v12  ;;  %v13890_v12 = vld [vmem:[#allocation2 + $0xa14] sm:$0xf]  ;;  %v11067_v15 = vor.u32 %v14060_v7, %v11064_v8  ;;  %v10270_v7 = vld [vmem:[#allocation2 + $0x928] sm:$0xf]  ;;  %v13866_v8 = vld [vmem:[#allocation2 + $0x94c] sm:$0xf0] }
 0x1c2   : > { %4784 = vmatpush.bf16.msrb.mxu0 %v10547_v21  ;;  %v14050_v21 = vld [vmem:[#allocation2 + $0xf14] sm:$0xf]  ;;  %v4558_v23 = vpop.f32.mrf.mxu2  ;;  %v10387_v32 = vor.u32 %v13890_v12, %v10384_v13  ;;  %v9270_v12 = vld [vmem:[#allocation2 + $0x158] sm:$0xf]  ;;  %v13616_v13 = vld [vmem:[#allocation2 + $0x17c] sm:$0xf0] }
 0x1c3   : > { %4797 = vmatpush.bf16.msrb.mxu1 %v10867_v26  ;;  %v11387_v26 = vor.u32 %v14140_v9, %v11384_v10  ;;  %v4571_v29 = vpop.f32.mrf.mxu3  ;;  %v9631_v10 = vor.u32 %v13706_v4, %v9630_v1  ;;  %v10230_v23 = vld [vmem:[#allocation2 + $0x8d8] sm:$0xf]  ;;  %v9511_v1 = vor.u32 %v13676_v50, %v9510_v47  ;;  %v9150_v4 = vld [vmem:[#allocation2 + $0x68] sm:$0xf] }
 0x1c4   : > { %4810 = vmatpush.bf16.msrb.mxu2 %v11187_v25  ;;  %v11024_v25 = vld [vmem:[#allocation2 + $0xf38] sm:$0xf0]  ;;  %v10950_v50 = vld [vmem:[#allocation2 + $0xe78] sm:$0xf] }
 0x1c5   : > { %4823 = vmatpush.bf16.msrb.mxu3 %v11507_v3  ;;  %v9710_v3 = vld [vmem:[#allocation2 + $0x4c8] sm:$0xf]  ;;  %v11027_v37 = vor.u32 %v14050_v21, %v11024_v25  ;;  %v13776_v21 = vld [vmem:[#allocation2 + $0x67c] sm:$0xf0]  ;;  %v9271_v25 = vor.u32 %v13616_v13, %v9270_v12  ;;  %v13826_v13 = vld [vmem:[#allocation2 + $0x80c] sm:$0xf0] }
 0x1c6   : > { %4785 = vmatpush.bf16.msrb.mxu0 %v10507_v51  ;;  %v10350_v51 = vld [vmem:[#allocation2 + $0x9c8] sm:$0xf]  ;;  %v9711_v53 = vor.u32 %v13726_v33, %v9710_v3  ;;  %v9911_v29 = vor.u32 %v13776_v21, %v9910_v17 }
 0x1c7   : > { %4798 = vmatpush.bf16.msrb.mxu1 %v10827_v39  ;;  %v13886_v39 = vld [vmem:[#allocation2 + $0x9ec] sm:$0xf0]  ;;  %v9550_v3 = vld [vmem:[#allocation2 + $0x388] sm:$0xf] }
 0x1c8   : > { %4811 = vmatpush.bf16.msrb.mxu2 %v11147_v40  ;;  %v11347_v40 = vor.u32 %v14130_v27, %v11344_v28  ;;  %v10351_v48 = vor.u32 %v13886_v39, %v10350_v51  ;;  %v10190_v51 = vld [vmem:[#allocation2 + $0x888] sm:$0xf]  ;;  %v13846_v39 = vld [vmem:[#allocation2 + $0x8ac] sm:$0xf0] }
 0x1c9   : > { %4824 = vmatpush.bf16.msrb.mxu3 %v11467_v46  ;;  %v13636_v46 = vld [vmem:[#allocation2 + $0x21c] sm:$0xf0]  ;;  %v10110_v12 = vld [vmem:[#allocation2 + $0x7e8] sm:$0xf] }
 0x1ca   : > { %4786 = vmatpush.bf16.msrb.mxu0 %v10467_v59  ;;  %v9351_v59 = vor.u32 %v13636_v46, %v9350_v45  ;;  %v9190_v45 = vld [vmem:[#allocation2 + $0xb8] sm:$0xf]  ;;  %v13596_v46 = vld [vmem:[#allocation2 + $0xdc] sm:$0xf0] }
 0x1cb   : > { %4799 = vmatpush.bf16.msrb.mxu1 %v10787_v62  ;;  %v9991_v62 = vor.u32 %v13796_v55, %v9990_v54  ;;  %v9830_v54 = vld [vmem:[#allocation2 + $0x5b8] sm:$0xf]  ;;  %v13756_v55 = vld [vmem:[#allocation2 + $0x5dc] sm:$0xf0] }
 0x1cc   : > { %4812 = vmatpush.bf16.msrb.mxu2 %v11107_v63  ;;  %v9310_v63 = vld [vmem:[#allocation2 + $0x1a8] sm:$0xf] }
 0x1cd   : > { %4825 = vmatpush.bf16.msrb.mxu3 %v11427_v5  ;;  %v9950_v5 = vld [vmem:[#allocation2 + $0x6a8] sm:$0xf]  ;;  %v9311_v9 = vor.u32 %v13626_v0, %v9310_v63 }
 0x1ce   : > { %4787 = vmatpush.bf16.msrb.mxu0 %v10427_v11  ;;  %v9951_v11 = vor.u32 %v13786_v6, %v9950_v5  ;;  %v13586_v5 = vld [vmem:[#allocation2 + $0x8c] sm:$0xf0]  ;;  %v9470_v6 = vld [vmem:[#allocation2 + $0x2e8] sm:$0xf] }
 0x1cf   : > { %4800 = vmatpush.bf16.msrb.mxu1 %v10747_v14  ;;  %v9590_v14 = vld [vmem:[#allocation2 + $0x3d8] sm:$0xf] }
 0x1d0   : > { %4813 = vmatpush.bf16.msrb.mxu2 %v11067_v15  ;;  %v10271_v15 = vor.u32 %v13866_v8, %v10270_v7  ;;  %v9591_v28 = vor.u32 %v13696_v16, %v9590_v14  ;;  %v9151_v14 = vor.u32 %v13586_v5, %v9150_v4  ;;  %v13576_v16 = vld [vmem:[#allocation2 + $0x3c] sm:$0xf0]  ;;  %v13946_v4 = vld [vmem:[#allocation2 + $0xbcc] sm:$0xf0]  ;;  %v10910_v5 = vld [vmem:[#allocation2 + $0xe28] sm:$0xf] }
 0x1d1   : > { %4826 = vmatpush.bf16.msrb.mxu3 %v11387_v26  ;;  %v13856_v26 = vld [vmem:[#allocation2 + $0x8fc] sm:$0xf0] }
 0x1d2   : > { %4788 = vmatpush.bf16.msrb.mxu0 %v10387_v32  ;;  %v4582_v27 = vpop.f32.mrf.mxu0  ;;  %v10231_v34 = vor.u32 %v13856_v26, %v10230_v23  ;;  %v9430_v23 = vld [vmem:[#allocation2 + $0x298] sm:$0xf]  ;;  %v13656_v26 = vld [vmem:[#allocation2 + $0x2bc] sm:$0xf0] }
 0x1d3   : > { %4801 = vmatpush.bf16.msrb.mxu1 %v10707_v36  ;;  %v4583_v32 = vadd.f32 %v4582_v27, %v15256_v60  ;;  %v4595_v33 = vpop.f32.mrf.mxu1  ;;  %v9870_v36 = vld [vmem:[#allocation2 + $0x608] sm:$0xf]  ;;  %v10191_v60 = vor.u32 %v13846_v39, %v10190_v51  ;;  %v14126_v51 = vld [vmem:[#allocation2 + $0x116c] sm:$0xf0]  ;;  %v9431_v39 = vor.u32 %v13656_v26, %v9430_v23 }
 0x1d4   : > { %4814 = vmatpush.bf16.msrb.mxu2 %v11027_v37  ;;  %v13766_v37 = vld [vmem:[#allocation2 + $0x62c] sm:$0xf0] }
 0x1d5   : > { %4827 = vmatpush.bf16.msrb.mxu3 %v11347_v40  ;;  %4789 = vmatmul.bf16.vlgmr.msrb.gmra.mxu0 %v15187_v41  ;;  %v4596_v40 = vadd.f32 %v4595_v33, %v4583_v32  ;;  %v10670_v32 = vld [vmem:[#allocation2 + $0xc48] sm:$0xf]  ;;  %v13966_v33 = vld [vmem:[#allocation2 + $0xc6c] sm:$0xf0] }
 0x1d6   : > { %4833 = vmatpush.bf16.msra.mxu0 %v9391_v24  ;;  %4802 = vmatmul.bf16.vlgmr.msrb.gmra.mxu1 %v15191_v44  ;;  %v9231_v24 = vor.u32 %v13606_v31, %v9230_v30  ;;  %v10070_v30 = vld [vmem:[#allocation2 + $0x798] sm:$0xf]  ;;  %v13816_v31 = vld [vmem:[#allocation2 + $0x7bc] sm:$0xf0] }
 0x1d7   : > { %4846 = vmatpush.bf16.msra.mxu1 %v9711_v53  ;;  %4815 = vmatmul.bf16.vlgmr.msrb.gmra.mxu2 %v15185_v38  ;;  %v9551_v53 = vor.u32 %v13686_v35, %v9550_v3 }
 0x1d8   : > { %4859 = vmatpush.bf16.msra.mxu2 %v10031_v43  ;;  %4828 = vmatmul.bf16.vlgmr.msrb.gmra.mxu3 %v15189_v42  ;;  %v9871_v43 = vor.u32 %v13766_v37, %v9870_v36  ;;  %v14046_v36 = vld [vmem:[#allocation2 + $0xeec] sm:$0xf0]  ;;  %v11310_v37 = vld [vmem:[#allocation2 + $0x1148] sm:$0xf] }
 0x1d9   : > { %4872 = vmatpush.bf16.msra.mxu3 %v10351_v48  ;;  %v11311_v47 = vor.u32 %v14126_v51, %v11310_v37 }
 0x1da   : > { %4834 = vmatpush.bf16.msra.mxu0 %v9351_v59  ;;  %v4608_v48 = vpop.f32.mrf.mxu2  ;;  %v10150_v59 = vld [vmem:[#allocation2 + $0x838] sm:$0xf]  ;;  %v4584_v0 = vpop.f32.mrf.mxu0 }
 0x1db   : > { %4847 = vmatpush.bf16.msra.mxu1 %v9671_v61  ;;  %v4609_v57 = vadd.f32 %v4608_v48, %v4596_v40  ;;  %v4621_v58 = vpop.f32.mrf.mxu3  ;;  %v13836_v61 = vld [vmem:[#allocation2 + $0x85c] sm:$0xf0]  ;;  %v4597_v7 = vpop.f32.mrf.mxu1  ;;  %v10630_v48 = vld [vmem:[#allocation2 + $0xbf8] sm:$0xf] }
 0x1dc   : > { %4860 = vmatpush.bf16.msra.mxu2 %v9991_v62  ;;  %v9191_v62 = vor.u32 %v13596_v46, %v9190_v45  ;;  %v10151_v8 = vor.u32 %v13836_v61, %v10150_v59  ;;  %v10671_v45 = vor.u32 %v13966_v33, %v10670_v32  ;;  %v11590_v59 = vld [vmem:[#allocation2 + $0x1378] sm:$0xf]  ;;  %v14196_v61 = vld [vmem:[#allocation2 + $0x139c] sm:$0xf0]  ;;  %v14026_v7 = vld [vmem:[#allocation2 + $0xe4c] sm:$0xf0] }
 0x1dd   : > { %4873 = vmatpush.bf16.msra.mxu3 %v10311_v2  ;;  %v15263_v63 = vadd.f32 %v4621_v58, %v4609_v57  ;;  %v9831_v2 = vor.u32 %v13756_v55, %v9830_v54  ;;  %v14036_v55 = vld [vmem:[#allocation2 + $0xe9c] sm:$0xf0]  ;;  %v11270_v57 = vld [vmem:[#allocation2 + $0x10f8] sm:$0xf] }
 0x1de   : > { %4835 = vmatpush.bf16.msra.mxu0 %v9311_v9  ;;  %v13666_v9 = vld [vmem:[#allocation2 + $0x30c] sm:$0xf0]  ;;  %v14116_v58 = vld [vmem:[#allocation2 + $0x111c] sm:$0xf0]  ;;  %v10951_v0 = vor.u32 %v14036_v55, %v10950_v50  ;;  %v10470_v50 = vld [vmem:[#allocation2 + $0xab8] sm:$0xf] }
 0x1df   : > { %4848 = vmatpush.bf16.msra.mxu1 %v9631_v10  ;;  %v9790_v10 = vld [vmem:[#allocation2 + $0x568] sm:$0xf]  ;;  %v9471_v17 = vor.u32 %v13666_v9, %v9470_v6  ;;  %v11591_v6 = vor.u32 %v14196_v61, %v11590_v59  ;;  %v14106_v9 = vld [vmem:[#allocation2 + $0x10cc] sm:$0xf0]  ;;  %v10790_v55 = vld [vmem:[#allocation2 + $0xd38] sm:$0xf] }
 0x1e0   : > { %4861 = vmatpush.bf16.msra.mxu2 %v9951_v11  ;;  %v13746_v11 = vld [vmem:[#allocation2 + $0x58c] sm:$0xf0]  ;;  %v13996_v59 = vld [vmem:[#allocation2 + $0xd5c] sm:$0xf0]  ;;  %v11110_v61 = vld [vmem:[#allocation2 + $0xfb8] sm:$0xf] }
 0x1e1   : > { %4874 = vmatpush.bf16.msra.mxu3 %v10271_v15  ;;  %v9110_v15 = vld [vmem:[#allocation2 + $0x18] sm:$0xf]  ;;  %v9791_v21 = vor.u32 %v13746_v11, %v9790_v10  ;;  %v11550_v10 = vld [vmem:[#allocation2 + $0x1328] sm:$0xf]  ;;  %v14186_v11 = vld [vmem:[#allocation2 + $0x134c] sm:$0xf0] }
 0x1e2   : > { %4836 = vmatpush.bf16.msra.mxu0 %v9271_v25  ;;  %v9750_v25 = vld [vmem:[#allocation2 + $0x518] sm:$0xf]  ;;  %v4610_v27 = vpop.f32.mrf.mxu2  ;;  %v9111_v35 = vor.u32 %v13576_v16, %v9110_v15  ;;  %v13936_v16 = vld [vmem:[#allocation2 + $0xb7c] sm:$0xf0]  ;;  %v11551_v26 = vor.u32 %v14186_v11, %v11550_v10  ;;  %v10430_v10 = vld [vmem:[#allocation2 + $0xa68] sm:$0xf] }
 0x1e3   : > { %4849 = vmatpush.bf16.msra.mxu1 %v9591_v28  ;;  %v10111_v28 = vor.u32 %v13826_v13, %v10110_v12  ;;  %v4623_v3 = vpop.f32.mrf.mxu3  ;;  %v10550_v13 = vld [vmem:[#allocation2 + $0xb58] sm:$0xf]  ;;  %v13906_v11 = vld [vmem:[#allocation2 + $0xa8c] sm:$0xf0] }
 0x1e4   : > { %4862 = vmatpush.bf16.msra.mxu2 %v9911_v29  ;;  %v13736_v29 = vld [vmem:[#allocation2 + $0x53c] sm:$0xf0]  ;;  %v11190_v27 = vld [vmem:[#allocation2 + $0x1058] sm:$0xf] }
 0x1e5   : > { %4875 = vmatpush.bf16.msra.mxu3 %v10231_v34  ;;  %v10990_v34 = vld [vmem:[#allocation2 + $0xec8] sm:$0xf]  ;;  %v9751_v40 = vor.u32 %v13736_v29, %v9750_v25  ;;  %v14016_v25 = vld [vmem:[#allocation2 + $0xdfc] sm:$0xf0]  ;;  %v11510_v29 = vld [vmem:[#allocation2 + $0x12d8] sm:$0xf] }
 0x1e6   : > { %4837 = vmatpush.bf16.msra.mxu0 %v9231_v24  ;;  %v11630_v24 = vld [vmem:[#allocation2 + $0x13c8] sm:$0xf]  ;;  %v10991_v46 = vor.u32 %v14046_v36, %v10990_v34 }
 0x1e7   : > { %4850 = vmatpush.bf16.msra.mxu1 %v9551_v53  ;;  %v14206_v53 = vld [vmem:[#allocation2 + $0x13ec] sm:$0xf0]  ;;  %v10510_v34 = vld [vmem:[#allocation2 + $0xb08] sm:$0xf] }
 0x1e8   : > { %4863 = vmatpush.bf16.msra.mxu2 %v9871_v43  ;;  %v10071_v43 = vor.u32 %v13816_v31, %v10070_v30  ;;  %v11631_v54 = vor.u32 %v14206_v53, %v11630_v24  ;;  %v14176_v30 = vld [vmem:[#allocation2 + $0x12fc] sm:$0xf0]  ;;  %v10551_v31 = vor.u32 %v13936_v16, %v10550_v13  ;;  %v10830_v36 = vld [vmem:[#allocation2 + $0xd88] sm:$0xf]  ;;  %v14086_v53 = vld [vmem:[#allocation2 + $0x102c] sm:$0xf0] }
 0x1e9   : > { %4876 = vmatpush.bf16.msra.mxu3 %v10191_v60  ;;  %v13956_v60 = vld [vmem:[#allocation2 + $0xc1c] sm:$0xf0]  ;;  %v11150_v24 = vld [vmem:[#allocation2 + $0x1008] sm:$0xf] }
 0x1ea   : > { %4838 = vmatpush.bf16.msra.mxu0 %v9191_v62  ;;  %v10631_v62 = vor.u32 %v13956_v60, %v10630_v48  ;;  %v11151_v60 = vor.u32 %v14086_v53, %v11150_v24  ;;  %v11070_v16 = vld [vmem:[#allocation2 + $0xf68] sm:$0xf]  ;;  %v13721_v24 = vld [vmem:[#allocation2 + $0x4cc] sm:$0xf] }
 0x1eb   : > { %4851 = vmatpush.bf16.msra.mxu1 %v9511_v1  ;;  %v11271_v1 = vor.u32 %v14116_v58, %v11270_v57 }
 0x1ec   : > { %4864 = vmatpush.bf16.msra.mxu2 %v9831_v2  ;;  %v10590_v2 = vld [vmem:[#allocation2 + $0xba8] sm:$0xf] }
 0x1ed   : > { %4877 = vmatpush.bf16.msra.mxu3 %v10151_v8  ;;  %v11230_v8 = vld [vmem:[#allocation2 + $0x10a8] sm:$0xf]  ;;  %v10591_v12 = vor.u32 %v13946_v4, %v10590_v2  ;;  %v11430_v2 = vld [vmem:[#allocation2 + $0x1238] sm:$0xf]  ;;  %v14156_v4 = vld [vmem:[#allocation2 + $0x125c] sm:$0xf0] }
 0x1ee   : > { %4839 = vmatpush.bf16.msra.mxu0 %v9151_v14  ;;  %v10911_v14 = vor.u32 %v14026_v7, %v10910_v5  ;;  %v11231_v15 = vor.u32 %v14106_v9, %v11230_v8  ;;  %v10791_v8 = vor.u32 %v13996_v59, %v10790_v55  ;;  %v13631_v59 = vld [vmem:[#allocation2 + $0x1fc] sm:$0xf] }
 0x1ef   : > { %4852 = vmatpush.bf16.msra.mxu1 %v9471_v17  ;;  %v10870_v17 = vld [vmem:[#allocation2 + $0xdd8] sm:$0xf] }
 0x1f0   : > { %4865 = vmatpush.bf16.msra.mxu2 %v9791_v21  ;;  %v15269_v21 = vld [vmem:[#allocation5] sm:$0xff]  ;;  %v10871_v32 = vor.u32 %v14016_v25, %v10870_v17  ;;  %v14066_v17 = vld [vmem:[#allocation2 + $0xf8c] sm:$0xf0]  ;;  %v10431_v25 = vor.u32 %v13906_v11, %v10430_v10  ;;  %v13621_v11 = vld [vmem:[#allocation2 + $0x1ac] sm:$0xf] }
 0x1f1   : > { %4878 = vmatpush.bf16.msra.mxu3 %v10111_v28  ;;  %v965_v23 = vperm.slane %v15269_v21, 4  ;;  %v14096_v28 = vld [vmem:[#allocation2 + $0x107c] sm:$0xf0] }
 0x1f2   : > { %4840 = vmatpush.bf16.msra.mxu0 %v9111_v35  ;;  %v4634_v3 = vpop.f32.mrf.mxu0  ;;  %v11191_v33 = vor.u32 %v14096_v28, %v11190_v27  ;;  %v13926_v35 = vld [vmem:[#allocation2 + $0xb2c] sm:$0xf0]  ;;  %v10390_v27 = vld [vmem:[#allocation2 + $0xa18] sm:$0xf]  ;;  %v13896_v28 = vld [vmem:[#allocation2 + $0xa3c] sm:$0xf0] }
 0x1f3   : > { %4853 = vmatpush.bf16.msra.mxu1 %v9431_v39  ;;  %v4635_v37 = vadd.f32 %v4634_v3, %v965_v23  ;;  %v4647_v51 = vpop.f32.mrf.mxu1  ;;  %v11511_v39 = vor.u32 %v14176_v30, %v11510_v29  ;;  %v11390_v23 = vld [vmem:[#allocation2 + $0x11e8] sm:$0xf]  ;;  %v11071_v30 = vor.u32 %v14066_v17, %v11070_v16  ;;  %v13976_v3 = vld [vmem:[#allocation2 + $0xcbc] sm:$0xf0]  ;;  %v10391_v53 = vor.u32 %v13896_v28, %v10390_v27  ;;  %v13781_v16 = vld [vmem:[#allocation2 + $0x6ac] sm:$0xf] }
 0x1f4   : > { %4866 = vmatpush.bf16.msra.mxu2 %v9751_v40  ;;  %v14006_v40 = vld [vmem:[#allocation2 + $0xdac] sm:$0xf0]  ;;  %v9952_v17 = vld [vmem:[#allocation2 + $0x6d0] sm:$0xf0] }
 0x1f5   : > { %4879 = vmatpush.bf16.msra.mxu3 %v10071_v43  ;;  %4841 = vmatmul.bf16.vlgmr.msra.gmra.mxu0 %v15169_v19  ;;  %v11470_v43 = vld [vmem:[#allocation2 + $0x1288] sm:$0xf]  ;;  %v10831_v48 = vor.u32 %v14006_v40, %v10830_v36  ;;  %v11350_v36 = vld [vmem:[#allocation2 + $0x1198] sm:$0xf]  ;;  %v9392_v40 = vld [vmem:[#allocation2 + $0x270] sm:$0xf0]  ;;  %v9955_v28 = vor.u32 %v13781_v16, %v9952_v17 }
 0x1f6   : > { %4885 = vmatpush.bf16.msrb.mxu0 %v10671_v45  ;;  %4854 = vmatmul.bf16.vlgmr.msra.gmra.mxu1 %v15173_v22  ;;  %v14166_v45 = vld [vmem:[#allocation2 + $0x12ac] sm:$0xf0]  ;;  %v13581_v17 = vld [vmem:[#allocation2 + $0x6c] sm:$0xf] }
 0x1f7   : > { %4898 = vmatpush.bf16.msrb.mxu1 %v10991_v46  ;;  %4867 = vmatmul.bf16.vlgmr.msra.gmra.mxu2 %v15167_v18  ;;  %v4648_v46 = vadd.f32 %v4647_v51, %v4635_v37  ;;  %v11471_v58 = vor.u32 %v14166_v45, %v11470_v43  ;;  %v14136_v37 = vld [vmem:[#allocation2 + $0x11bc] sm:$0xf0]  ;;  %v9712_v43 = vld [vmem:[#allocation2 + $0x4f0] sm:$0xf0]  ;;  %v13801_v45 = vld [vmem:[#allocation2 + $0x74c] sm:$0xf] }
 0x1f8   : > { %4911 = vmatpush.bf16.msrb.mxu2 %v11311_v47  ;;  %4880 = vmatmul.bf16.vlgmr.msra.gmra.mxu3 %v15171_v20  ;;  %v10511_v47 = vor.u32 %v13926_v35, %v10510_v34  ;;  %v14056_v35 = vld [vmem:[#allocation2 + $0xf3c] sm:$0xf0] }
 0x1f9   : > { %4924 = vmatpush.bf16.msrb.mxu3 %v11631_v54  ;;  %v13916_v54 = vld [vmem:[#allocation2 + $0xadc] sm:$0xf0] }
 0x1fa   : > { %4886 = vmatpush.bf16.msrb.mxu0 %v10631_v62  ;;  %v4660_v57 = vpop.f32.mrf.mxu2  ;;  %v14076_v62 = vld [vmem:[#allocation2 + $0xfdc] sm:$0xf0]  ;;  %v10471_v5 = vor.u32 %v13916_v54, %v10470_v50  ;;  %v4636_v7 = vpop.f32.mrf.mxu0  ;;  %v10352_v50 = vld [vmem:[#allocation2 + $0x9f0] sm:$0xf0]  ;;  %v11351_v54 = vor.u32 %v14136_v37, %v11350_v36  ;;  %v10232_v36 = vld [vmem:[#allocation2 + $0x900] sm:$0xf0] }
 0x1fb   : > { %4899 = vmatpush.bf16.msrb.mxu1 %v10951_v0  ;;  %v4661_v0 = vadd.f32 %v4660_v57, %v4648_v46  ;;  %v11111_v9 = vor.u32 %v14076_v62, %v11110_v61  ;;  %v4649_v13 = vpop.f32.mrf.mxu1  ;;  %v10032_v46 = vld [vmem:[#allocation2 + $0x770] sm:$0xf0]  ;;  %v9715_v57 = vor.u32 %v13721_v24, %v9712_v43  ;;  %v9352_v61 = vld [vmem:[#allocation2 + $0x220] sm:$0xf0]  ;;  %v13711_v62 = vld [vmem:[#allocation2 + $0x47c] sm:$0xf] }
 0x1fc   : > { %4912 = vmatpush.bf16.msrb.mxu2 %v11271_v1  ;;  %v4673_v1 = vpop.f32.mrf.mxu3  ;;  %v10312_v7 = vld [vmem:[#allocation2 + $0x9a0] sm:$0xf0]  ;;  %v13701_v13 = vld [vmem:[#allocation2 + $0x42c] sm:$0xf] }
 0x1fd   : > { %4925 = vmatpush.bf16.msrb.mxu3 %v11591_v6  ;;  %v15272_v6 = vadd.f32 %v4673_v1, %v4661_v0  ;;  %v9672_v1 = vld [vmem:[#allocation2 + $0x4a0] sm:$0xf0]  ;;  %v13601_v24 = vld [vmem:[#allocation2 + $0x10c] sm:$0xf] }
 0x1fe   : > { %4887 = vmatpush.bf16.msrb.mxu0 %v10591_v12  ;;  %v10750_v12 = vld [vmem:[#allocation2 + $0xce8] sm:$0xf]  ;;  %v13681_v43 = vld [vmem:[#allocation2 + $0x38c] sm:$0xf] }
 0x1ff   : > { %4900 = vmatpush.bf16.msrb.mxu1 %v10911_v14  ;;  %v11431_v14 = vor.u32 %v14156_v4, %v11430_v2  ;;  %v13791_v2 = vld [vmem:[#allocation2 + $0x6fc] sm:$0xf]  ;;  %v9992_v4 = vld [vmem:[#allocation2 + $0x720] sm:$0xf0] }
 0x200   : > { %4913 = vmatpush.bf16.msrb.mxu2 %v11231_v15  ;;  %v13986_v15 = vld [vmem:[#allocation2 + $0xd0c] sm:$0xf0]  ;;  %v9995_v10 = vor.u32 %v13791_v2, %v9992_v4  ;;  %v9512_v4 = vld [vmem:[#allocation2 + $0x360] sm:$0xf0] }
 0x201   : > { %4926 = vmatpush.bf16.msrb.mxu3 %v11551_v26  ;;  %v14146_v26 = vld [vmem:[#allocation2 + $0x120c] sm:$0xf0]  ;;  %v10751_v29 = vor.u32 %v13986_v15, %v10750_v12  ;;  %v9312_v12 = vld [vmem:[#allocation2 + $0x1d0] sm:$0xf0] }
 0x202   : > { %4888 = vmatpush.bf16.msrb.mxu0 %v10551_v31  ;;  %v10710_v31 = vld [vmem:[#allocation2 + $0xc98] sm:$0xf]  ;;  %v11391_v34 = vor.u32 %v14146_v26, %v11390_v23  ;;  %v9632_v15 = vld [vmem:[#allocation2 + $0x450] sm:$0xf0]  ;;  %v13861_v23 = vld [vmem:[#allocation2 + $0x92c] sm:$0xf] }
 0x203   : > { %4901 = vmatpush.bf16.msrb.mxu1 %v10871_v32  ;;  %v11030_v32 = vld [vmem:[#allocation2 + $0xf18] sm:$0xf]  ;;  %v10272_v26 = vld [vmem:[#allocation2 + $0x950] sm:$0xf0]  ;;  %v9635_v27 = vor.u32 %v13701_v13, %v9632_v15 }
 0x204   : > { %4914 = vmatpush.bf16.msrb.mxu2 %v11191_v33  ;;  %v4662_v33 = vpop.f32.mrf.mxu2  ;;  %v4675_v51 = vpop.f32.mrf.mxu3 }
 0x205   : > { %4927 = vmatpush.bf16.msrb.mxu3 %v11511_v39  ;;  %v13641_v39 = vld [vmem:[#allocation2 + $0x24c] sm:$0xf]  ;;  %v13771_v33 = vld [vmem:[#allocation2 + $0x65c] sm:$0xf] }
 0x206   : > { %4889 = vmatpush.bf16.msrb.mxu0 %v10511_v47  ;;  %v10711_v47 = vor.u32 %v13976_v3, %v10710_v31  ;;  %v9395_v55 = vor.u32 %v13641_v39, %v9392_v40  ;;  %v13691_v31 = vld [vmem:[#allocation2 + $0x3dc] sm:$0xf]  ;;  %v10275_v3 = vor.u32 %v13861_v23, %v10272_v26  ;;  %v9152_v23 = vld [vmem:[#allocation2 + $0x90] sm:$0xf0]  ;;  %v13661_v26 = vld [vmem:[#allocation2 + $0x2ec] sm:$0xf] }
 0x207   : > { %4902 = vmatpush.bf16.msrb.mxu1 %v10831_v48  ;;  %v11031_v48 = vor.u32 %v14056_v35, %v11030_v32  ;;  %v9592_v32 = vld [vmem:[#allocation2 + $0x400] sm:$0xf0]  ;;  %v13851_v35 = vld [vmem:[#allocation2 + $0x8dc] sm:$0xf] }
 0x208   : > { %4915 = vmatpush.bf16.msrb.mxu2 %v11151_v60  ;;  %v13881_v60 = vld [vmem:[#allocation2 + $0x9cc] sm:$0xf]  ;;  %v9595_v39 = vor.u32 %v13691_v31, %v9592_v32  ;;  %v9155_v32 = vor.u32 %v13581_v17, %v9152_v23 }
 0x209   : > { %4928 = vmatpush.bf16.msrb.mxu3 %v11471_v58  ;;  %v10035_v58 = vor.u32 %v13801_v45, %v10032_v46  ;;  %v10355_v0 = vor.u32 %v13881_v60, %v10352_v50  ;;  %v13761_v60 = vld [vmem:[#allocation2 + $0x60c] sm:$0xf]  ;;  %v9872_v50 = vld [vmem:[#allocation2 + $0x630] sm:$0xf0] }
 0x20a   : > { %4890 = vmatpush.bf16.msrb.mxu0 %v10471_v5  ;;  %v13871_v5 = vld [vmem:[#allocation2 + $0x97c] sm:$0xf]  ;;  %v13821_v31 = vld [vmem:[#allocation2 + $0x7ec] sm:$0xf] }
 0x20b   : > { %4903 = vmatpush.bf16.msrb.mxu1 %v10791_v8  ;;  %v9355_v8 = vor.u32 %v13631_v59, %v9352_v61  ;;  %v9875_v61 = vor.u32 %v13761_v60, %v9872_v50  ;;  %v14041_v60 = vld [vmem:[#allocation2 + $0xecc] sm:$0xf] }
 0x20c   : > { %4916 = vmatpush.bf16.msrb.mxu2 %v11111_v9  ;;  %v9675_v9 = vor.u32 %v13711_v62, %v9672_v1  ;;  %v13591_v62 = vld [vmem:[#allocation2 + $0xbc] sm:$0xf]  ;;  %v13941_v23 = vld [vmem:[#allocation2 + $0xbac] sm:$0xf] }
 0x20d   : > { %4929 = vmatpush.bf16.msrb.mxu3 %v11431_v14  ;;  %v10315_v14 = vor.u32 %v13871_v5, %v10312_v7  ;;  %v13671_v1 = vld [vmem:[#allocation2 + $0x33c] sm:$0xf]  ;;  %v9832_v7 = vld [vmem:[#allocation2 + $0x5e0] sm:$0xf0] }
 0x20e   : > { %4891 = vmatpush.bf16.msrb.mxu0 %v10431_v25  ;;  %v9315_v25 = vor.u32 %v13621_v11, %v9312_v12  ;;  %v13751_v5 = vld [vmem:[#allocation2 + $0x5bc] sm:$0xf]  ;;  %v10152_v11 = vld [vmem:[#allocation2 + $0x860] sm:$0xf0]  ;;  %v9515_v15 = vor.u32 %v13671_v1, %v9512_v4 }
 0x20f   : > { %4904 = vmatpush.bf16.msrb.mxu1 %v10751_v29  ;;  %v13611_v29 = vld [vmem:[#allocation2 + $0x15c] sm:$0xf]  ;;  %v9835_v16 = vor.u32 %v13751_v5, %v9832_v7  ;;  %v10632_v5 = vld [vmem:[#allocation2 + $0xc20] sm:$0xf0] }
 0x210   : > { %4917 = vmatpush.bf16.msrb.mxu2 %v11071_v30  ;;  %v9272_v30 = vld [vmem:[#allocation2 + $0x180] sm:$0xf0]  ;;  %v13951_v4 = vld [vmem:[#allocation2 + $0xbfc] sm:$0xf] }
 0x211   : > { %4930 = vmatpush.bf16.msrb.mxu3 %v11391_v34  ;;  %v9912_v34 = vld [vmem:[#allocation2 + $0x680] sm:$0xf0]  ;;  %v9275_v37 = vor.u32 %v13611_v29, %v9272_v30  ;;  %v13741_v29 = vld [vmem:[#allocation2 + $0x56c] sm:$0xf]  ;;  %v9792_v30 = vld [vmem:[#allocation2 + $0x590] sm:$0xf0] }
 0x212   : > { %4892 = vmatpush.bf16.msrb.mxu0 %v10391_v53  ;;  %v4686_v51 = vpop.f32.mrf.mxu0  ;;  %v9915_v40 = vor.u32 %v13771_v33, %v9912_v34  ;;  %v9232_v53 = vld [vmem:[#allocation2 + $0x130] sm:$0xf0]  ;;  %v13571_v33 = vld [vmem:[#allocation2 + $0x1c] sm:$0xf]  ;;  %v9112_v34 = vld [vmem:[#allocation2 + $0x40] sm:$0xf0] }
 0x213   : > { %4905 = vmatpush.bf16.msrb.mxu1 %v10711_v47  ;;  %v4687_v45 = vadd.f32 %v4686_v51, %v15272_v6  ;;  %v4699_v46 = vpop.f32.mrf.mxu1  ;;  %v10235_v47 = vor.u32 %v13851_v35, %v10232_v36  ;;  %v9795_v36 = vor.u32 %v13741_v29, %v9792_v30  ;;  %v9432_v51 = vld [vmem:[#allocation2 + $0x2c0] sm:$0xf0]  ;;  %v9115_v50 = vor.u32 %v13571_v33, %v9112_v34  ;;  %v14031_v7 = vld [vmem:[#allocation2 + $0xe7c] sm:$0xf]  ;;  %v14101_v29 = vld [vmem:[#allocation2 + $0x10ac] sm:$0xf] }
 0x214   : > { %4918 = vmatpush.bf16.msrb.mxu2 %v11031_v48  ;;  %v9552_v48 = vld [vmem:[#allocation2 + $0x3b0] sm:$0xf0]  ;;  %v13931_v33 = vld [vmem:[#allocation2 + $0xb5c] sm:$0xf] }
 0x215   : > { %4931 = vmatpush.bf16.msrb.mxu3 %v11351_v54  ;;  %4893 = vmatmul.bf16.vlgmr.msrb.gmra.mxu0 %v15187_v41  ;;  %v13841_v54 = vld [vmem:[#allocation2 + $0x88c] sm:$0xf]  ;;  %v9555_v59 = vor.u32 %v13681_v43, %v9552_v48  ;;  %v13811_v43 = vld [vmem:[#allocation2 + $0x79c] sm:$0xf]  ;;  %v10672_v48 = vld [vmem:[#allocation2 + $0xc70] sm:$0xf0] }
 0x216   : > { %4937 = vmatpush.bf16.msra.mxu0 %v9395_v55  ;;  %4906 = vmatmul.bf16.vlgmr.msrb.gmra.mxu1 %v15191_v44  ;;  %v10192_v55 = vld [vmem:[#allocation2 + $0x8b0] sm:$0xf0] }
 0x217   : > { %4950 = vmatpush.bf16.msra.mxu1 %v9715_v57  ;;  %4919 = vmatmul.bf16.vlgmr.msrb.gmra.mxu2 %v15185_v38  ;;  %v4700_v57 = vadd.f32 %v4699_v46, %v4687_v45  ;;  %v10195_v6 = vor.u32 %v13841_v54, %v10192_v55  ;;  %v10072_v45 = vld [vmem:[#allocation2 + $0x7c0] sm:$0xf0]  ;;  %v10992_v54 = vld [vmem:[#allocation2 + $0xef0] sm:$0xf0]  ;;  %v14121_v55 = vld [vmem:[#allocation2 + $0x114c] sm:$0xf] }
 0x218   : > { %4963 = vmatpush.bf16.msra.mxu2 %v10035_v58  ;;  %4932 = vmatmul.bf16.vlgmr.msrb.gmra.mxu3 %v15189_v42  ;;  %v9235_v58 = vor.u32 %v13601_v24, %v9232_v53  ;;  %v9752_v53 = vld [vmem:[#allocation2 + $0x540] sm:$0xf0]  ;;  %v11232_v30 = vld [vmem:[#allocation2 + $0x10d0] sm:$0xf0] }
 0x219   : > { %4976 = vmatpush.bf16.msra.mxu3 %v10355_v0  ;;  %v9192_v0 = vld [vmem:[#allocation2 + $0xe0] sm:$0xf0] }
 0x21a   : > { %4938 = vmatpush.bf16.msra.mxu0 %v9355_v8  ;;  %v4712_v2 = vpop.f32.mrf.mxu2  ;;  %v9195_v12 = vor.u32 %v13591_v62, %v9192_v0  ;;  %v11632_v62 = vld [vmem:[#allocation2 + $0x13f0] sm:$0xf0]  ;;  %v10075_v0 = vor.u32 %v13811_v43, %v10072_v45  ;;  %v14171_v43 = vld [vmem:[#allocation2 + $0x12dc] sm:$0xf]  ;;  %v11512_v45 = vld [vmem:[#allocation2 + $0x1300] sm:$0xf0] }
 0x21b   : > { %4951 = vmatpush.bf16.msra.mxu1 %v9675_v9  ;;  %v4713_v8 = vadd.f32 %v4712_v2, %v4700_v57  ;;  %v4725_v9 = vpop.f32.mrf.mxu3  ;;  %v11312_v57 = vld [vmem:[#allocation2 + $0x1170] sm:$0xf0]  ;;  %v10995_v2 = vor.u32 %v14041_v60, %v10992_v54 }
 0x21c   : > { %4964 = vmatpush.bf16.msra.mxu2 %v9995_v10  ;;  %v13831_v10 = vld [vmem:[#allocation2 + $0x83c] sm:$0xf]  ;;  %v10512_v54 = vld [vmem:[#allocation2 + $0xb30] sm:$0xf0] }
 0x21d   : > { %4977 = vmatpush.bf16.msra.mxu3 %v10315_v14  ;;  %v15279_v13 = vadd.f32 %v4725_v9, %v4713_v8  ;;  %v4688_v14 = vpop.f32.mrf.mxu0  ;;  %v10952_v9 = vld [vmem:[#allocation2 + $0xea0] sm:$0xf0] }
 0x21e   : > { %4939 = vmatpush.bf16.msra.mxu0 %v9315_v25  ;;  %v4701_v25 = vpop.f32.mrf.mxu1  ;;  %v11592_v14 = vld [vmem:[#allocation2 + $0x13a0] sm:$0xf0] }
 0x21f   : > { %4952 = vmatpush.bf16.msra.mxu1 %v9635_v27  ;;  %v10155_v27 = vor.u32 %v13831_v10, %v10152_v11  ;;  %v14111_v10 = vld [vmem:[#allocation2 + $0x10fc] sm:$0xf]  ;;  %v11272_v11 = vld [vmem:[#allocation2 + $0x1120] sm:$0xf0]  ;;  %v14021_v25 = vld [vmem:[#allocation2 + $0xe2c] sm:$0xf] }
 0x220   : > { %4965 = vmatpush.bf16.msra.mxu2 %v9955_v28  ;;  %v9472_v28 = vld [vmem:[#allocation2 + $0x310] sm:$0xf0]  ;;  %v11275_v17 = vor.u32 %v14111_v10, %v11272_v11 }
 0x221   : > { %4978 = vmatpush.bf16.msra.mxu3 %v10275_v3  ;;  %v10112_v3 = vld [vmem:[#allocation2 + $0x810] sm:$0xf0]  ;;  %v9475_v35 = vor.u32 %v13661_v26, %v9472_v28 }
 0x222   : > { %4940 = vmatpush.bf16.msra.mxu0 %v9275_v37  ;;  %v13651_v37 = vld [vmem:[#allocation2 + $0x29c] sm:$0xf]  ;;  %v10115_v24 = vor.u32 %v13821_v31, %v10112_v3  ;;  %v10592_v26 = vld [vmem:[#allocation2 + $0xbd0] sm:$0xf0]  ;;  %v14181_v31 = vld [vmem:[#allocation2 + $0x132c] sm:$0xf] }
 0x223   : > { %4953 = vmatpush.bf16.msra.mxu1 %v9595_v39  ;;  %v13731_v39 = vld [vmem:[#allocation2 + $0x51c] sm:$0xf]  ;;  %v4727_v46 = vpop.f32.mrf.mxu3  ;;  %v10912_v28 = vld [vmem:[#allocation2 + $0xe50] sm:$0xf0] }
 0x224   : > { %4966 = vmatpush.bf16.msra.mxu2 %v9915_v40  ;;  %v4714_v40 = vpop.f32.mrf.mxu2  ;;  %v11552_v3 = vld [vmem:[#allocation2 + $0x1350] sm:$0xf0]  ;;  %v10915_v34 = vor.u32 %v14021_v25, %v10912_v28 }
 0x225   : > { %4979 = vmatpush.bf16.msra.mxu3 %v10235_v47  ;;  %v13961_v47 = vld [vmem:[#allocation2 + $0xc4c] sm:$0xf]  ;;  %v10872_v40 = vld [vmem:[#allocation2 + $0xe00] sm:$0xf0] }
 0x226   : > { %4941 = vmatpush.bf16.msra.mxu0 %v9235_v58  ;;  %v9435_v58 = vor.u32 %v13651_v37, %v9432_v51  ;;  %v10675_v1 = vor.u32 %v13961_v47, %v10672_v48  ;;  %v14011_v37 = vld [vmem:[#allocation2 + $0xddc] sm:$0xf]  ;;  %v966_v51 = vperm.slane %v15269_v21, 5  ;;  %v11515_v21 = vor.u32 %v14171_v43, %v11512_v45 }
 0x227   : > { %4954 = vmatpush.bf16.msra.mxu1 %v9555_v59  ;;  %v9755_v59 = vor.u32 %v13731_v39, %v9752_v53  ;;  %v11555_v39 = vor.u32 %v14181_v31, %v11552_v3  ;;  %v11192_v53 = vld [vmem:[#allocation2 + $0x1080] sm:$0xf0]  ;;  %v10875_v48 = vor.u32 %v14011_v37, %v10872_v40  ;;  %v13901_v31 = vld [vmem:[#allocation2 + $0xa6c] sm:$0xf]  ;;  %v10432_v3 = vld [vmem:[#allocation2 + $0xa90] sm:$0xf0] }
 0x228   : > { %4967 = vmatpush.bf16.msra.mxu2 %v9875_v61  ;;  %v14201_v61 = vld [vmem:[#allocation2 + $0x13cc] sm:$0xf]  ;;  %v11072_v37 = vld [vmem:[#allocation2 + $0xf90] sm:$0xf0]  ;;  %v10435_v40 = vor.u32 %v13901_v31, %v10432_v3  ;;  %v9318_v3 = vld [vmem:[#allocation2 + $0x1b0] sm:$0xf] }
 0x229   : > { %4980 = vmatpush.bf16.msra.mxu3 %v10195_v6  ;;  %v11315_v6 = vor.u32 %v14121_v55, %v11312_v57  ;;  %v11635_v8 = vor.u32 %v14201_v61, %v11632_v62  ;;  %v14001_v55 = vld [vmem:[#allocation2 + $0xd8c] sm:$0xf]  ;;  %v11152_v62 = vld [vmem:[#allocation2 + $0x1030] sm:$0xf0] }
 0x22a   : > { %4942 = vmatpush.bf16.msra.mxu0 %v9195_v12  ;;  %v14191_v12 = vld [vmem:[#allocation2 + $0x137c] sm:$0xf]  ;;  %v14081_v61 = vld [vmem:[#allocation2 + $0x100c] sm:$0xf] }
 0x22b   : > { %4955 = vmatpush.bf16.msra.mxu1 %v9515_v15  ;;  %v10635_v15 = vor.u32 %v13951_v4, %v10632_v5  ;;  %v11155_v5 = vor.u32 %v14081_v61, %v11152_v62  ;;  %v9718_v61 = vld [vmem:[#allocation2 + $0x4d0] sm:$0xf] }
 0x22c   : > { %4968 = vmatpush.bf16.msra.mxu2 %v9835_v16  ;;  %v10955_v16 = vor.u32 %v14031_v7, %v10952_v9  ;;  %v13911_v7 = vld [vmem:[#allocation2 + $0xabc] sm:$0xf] }
 0x22d   : > { %4981 = vmatpush.bf16.msra.mxu3 %v10155_v27  ;;  %v11595_v27 = vor.u32 %v14191_v12, %v11592_v14  ;;  %v13991_v9 = vld [vmem:[#allocation2 + $0xd3c] sm:$0xf]  ;;  %v10792_v12 = vld [vmem:[#allocation2 + $0xd60] sm:$0xf0] }
 0x22e   : > { %4943 = vmatpush.bf16.msra.mxu0 %v9155_v32  ;;  %v10595_v32 = vor.u32 %v13941_v23, %v10592_v26  ;;  %v14071_v14 = vld [vmem:[#allocation2 + $0xfbc] sm:$0xf]  ;;  %v11432_v26 = vld [vmem:[#allocation2 + $0x1260] sm:$0xf0] }
 0x22f   : > { %4956 = vmatpush.bf16.msra.mxu1 %v9475_v35  ;;  %v11235_v35 = vor.u32 %v14101_v29, %v11232_v30  ;;  %v14151_v23 = vld [vmem:[#allocation2 + $0x123c] sm:$0xf]  ;;  %v10795_v29 = vor.u32 %v13991_v9, %v10792_v12  ;;  %v9358_v12 = vld [vmem:[#allocation2 + $0x200] sm:$0xf] }
 0x230   : > { %4969 = vmatpush.bf16.msra.mxu2 %v9795_v36  ;;  %v10552_v36 = vld [vmem:[#allocation2 + $0xb80] sm:$0xf0] }
 0x231   : > { %4982 = vmatpush.bf16.msra.mxu3 %v10115_v24  ;;  %v14091_v24 = vld [vmem:[#allocation2 + $0x105c] sm:$0xf]  ;;  %v10555_v46 = vor.u32 %v13931_v33, %v10552_v36  ;;  %v14061_v36 = vld [vmem:[#allocation2 + $0xf6c] sm:$0xf] }
 0x232   : > { %4944 = vmatpush.bf16.msra.mxu0 %v9115_v50  ;;  %v4738_v47 = vpop.f32.mrf.mxu0  ;;  %v11195_v60 = vor.u32 %v14091_v24, %v11192_v53  ;;  %v13921_v50 = vld [vmem:[#allocation2 + $0xb0c] sm:$0xf]  ;;  %v13891_v24 = vld [vmem:[#allocation2 + $0xa1c] sm:$0xf]  ;;  %v10392_v53 = vld [vmem:[#allocation2 + $0xa40] sm:$0xf0]  ;;  %v11075_v45 = vor.u32 %v14061_v36, %v11072_v37 }
 0x233   : > { %4957 = vmatpush.bf16.msra.mxu1 %v9435_v58  ;;  %v4739_v57 = vadd.f32 %v4738_v47, %v966_v51  ;;  %v4751_v58 = vpop.f32.mrf.mxu1  ;;  %v14141_v51 = vld [vmem:[#allocation2 + $0x11ec] sm:$0xf]  ;;  %v10712_v47 = vld [vmem:[#allocation2 + $0xcc0] sm:$0xf0]  ;;  %v10395_v62 = vor.u32 %v13891_v24, %v10392_v53  ;;  %v9958_v36 = vld [vmem:[#allocation2 + $0x6b0] sm:$0xf] }
 0x234   : > { %4970 = vmatpush.bf16.msra.mxu2 %v9755_v59  ;;  %v10832_v59 = vld [vmem:[#allocation2 + $0xdb0] sm:$0xf0]  ;;  %v13787_v37 = vld [vmem:[#allocation2 + $0x6d4] sm:$0xf0] }
 0x235   : > { %4983 = vmatpush.bf16.msra.mxu3 %v10075_v0  ;;  %4945 = vmatmul.bf16.vlgmr.msra.gmra.mxu0 %v15169_v19  ;;  %v14161_v0 = vld [vmem:[#allocation2 + $0x128c] sm:$0xf]  ;;  %v10835_v4 = vor.u32 %v14001_v55, %v10832_v59  ;;  %v14131_v55 = vld [vmem:[#allocation2 + $0x119c] sm:$0xf]  ;;  %v13647_v59 = vld [vmem:[#allocation2 + $0x274] sm:$0xf0]  ;;  %v9959_v53 = vor.u32 %v13787_v37, %v9958_v36 }
 0x236   : > { %4989 = vmatpush.bf16.msrb.mxu0 %v10675_v1  ;;  %4958 = vmatmul.bf16.vlgmr.msra.gmra.mxu1 %v15173_v22  ;;  %v11472_v1 = vld [vmem:[#allocation2 + $0x12b0] sm:$0xf0]  ;;  %v9158_v37 = vld [vmem:[#allocation2 + $0x70] sm:$0xf] }
 0x237   : > { %5002 = vmatpush.bf16.msrb.mxu1 %v10995_v2  ;;  %4971 = vmatmul.bf16.vlgmr.msra.gmra.mxu2 %v15167_v18  ;;  %v4752_v2 = vadd.f32 %v4751_v58, %v4739_v57  ;;  %v11475_v11 = vor.u32 %v14161_v0, %v11472_v1  ;;  %v11352_v57 = vld [vmem:[#allocation2 + $0x11c0] sm:$0xf0]  ;;  %v13727_v0 = vld [vmem:[#allocation2 + $0x4f4] sm:$0xf0]  ;;  %v10038_v1 = vld [vmem:[#allocation2 + $0x750] sm:$0xf] }
 0x238   : > { %5015 = vmatpush.bf16.msrb.mxu2 %v11315_v6  ;;  %4984 = vmatmul.bf16.vlgmr.msra.gmra.mxu3 %v15171_v20  ;;  %v10515_v6 = vor.u32 %v13921_v50, %v10512_v54  ;;  %v11032_v54 = vld [vmem:[#allocation2 + $0xf40] sm:$0xf0] }
 0x239   : > { %5028 = vmatpush.bf16.msrb.mxu3 %v11635_v8  ;;  %v10472_v8 = vld [vmem:[#allocation2 + $0xae0] sm:$0xf0] }
 0x23a   : > { %4990 = vmatpush.bf16.msrb.mxu0 %v10635_v15  ;;  %v4764_v10 = vpop.f32.mrf.mxu2  ;;  %v11112_v15 = vld [vmem:[#allocation2 + $0xfe0] sm:$0xf0]  ;;  %v10475_v25 = vor.u32 %v13911_v7, %v10472_v8  ;;  %v4740_v28 = vpop.f32.mrf.mxu0  ;;  %v13887_v7 = vld [vmem:[#allocation2 + $0x9f4] sm:$0xf0]  ;;  %v11355_v8 = vor.u32 %v14131_v55, %v11352_v57  ;;  %v13857_v55 = vld [vmem:[#allocation2 + $0x904] sm:$0xf0] }
 0x23b   : > { %5003 = vmatpush.bf16.msrb.mxu1 %v10955_v16  ;;  %v4765_v16 = vadd.f32 %v4764_v10, %v4752_v2  ;;  %v11115_v30 = vor.u32 %v14071_v14, %v11112_v15  ;;  %v4753_v33 = vpop.f32.mrf.mxu1  ;;  %v13807_v2 = vld [vmem:[#allocation2 + $0x774] sm:$0xf0]  ;;  %v9719_v10 = vor.u32 %v13727_v0, %v9718_v61  ;;  %v13637_v14 = vld [vmem:[#allocation2 + $0x224] sm:$0xf0]  ;;  %v9678_v15 = vld [vmem:[#allocation2 + $0x480] sm:$0xf] }
 0x23c   : > { %5016 = vmatpush.bf16.msrb.mxu2 %v11275_v17  ;;  %v4777_v17 = vpop.f32.mrf.mxu3  ;;  %v13877_v28 = vld [vmem:[#allocation2 + $0x9a4] sm:$0xf0]  ;;  %v9638_v33 = vld [vmem:[#allocation2 + $0x430] sm:$0xf] }
 0x23d   : > { %5029 = vmatpush.bf16.msrb.mxu3 %v11595_v27  ;;  %v15286_v27 = vadd.f32 %v4777_v17, %v4765_v16  ;;  %v13717_v17 = vld [vmem:[#allocation2 + $0x4a4] sm:$0xf0]  ;;  %v9238_v61 = vld [vmem:[#allocation2 + $0x110] sm:$0xf] }
 0x23e   : > { %4991 = vmatpush.bf16.msrb.mxu0 %v10595_v32  ;;  %v13981_v32 = vld [vmem:[#allocation2 + $0xcec] sm:$0xf]  ;;  %v9558_v0 = vld [vmem:[#allocation2 + $0x390] sm:$0xf] }
 0x23f   : > { %5004 = vmatpush.bf16.msrb.mxu1 %v10915_v34  ;;  %v11435_v34 = vor.u32 %v14151_v23, %v11432_v26  ;;  %v9998_v23 = vld [vmem:[#allocation2 + $0x700] sm:$0xf]  ;;  %v13797_v26 = vld [vmem:[#allocation2 + $0x724] sm:$0xf0] }
 0x240   : > { %5017 = vmatpush.bf16.msrb.mxu2 %v11235_v35  ;;  %v10752_v35 = vld [vmem:[#allocation2 + $0xd10] sm:$0xf0]  ;;  %v9999_v31 = vor.u32 %v13797_v26, %v9998_v23  ;;  %v13677_v26 = vld [vmem:[#allocation2 + $0x364] sm:$0xf0] }
 0x241   : > { %5030 = vmatpush.bf16.msrb.mxu3 %v11555_v39  ;;  %v11392_v39 = vld [vmem:[#allocation2 + $0x1210] sm:$0xf0]  ;;  %v10755_v43 = vor.u32 %v13981_v32, %v10752_v35  ;;  %v13627_v32 = vld [vmem:[#allocation2 + $0x1d4] sm:$0xf0] }
 0x242   : > { %4992 = vmatpush.bf16.msrb.mxu0 %v10555_v46  ;;  %v13971_v46 = vld [vmem:[#allocation2 + $0xc9c] sm:$0xf]  ;;  %v11395_v50 = vor.u32 %v14141_v51, %v11392_v39  ;;  %v13707_v35 = vld [vmem:[#allocation2 + $0x454] sm:$0xf0]  ;;  %v10278_v51 = vld [vmem:[#allocation2 + $0x930] sm:$0xf] }
 0x243   : > { %5005 = vmatpush.bf16.msrb.mxu1 %v10875_v48  ;;  %v14051_v48 = vld [vmem:[#allocation2 + $0xf1c] sm:$0xf]  ;;  %v13867_v39 = vld [vmem:[#allocation2 + $0x954] sm:$0xf0]  ;;  %v9639_v24 = vor.u32 %v13707_v35, %v9638_v33 }
 0x244   : > { %5018 = vmatpush.bf16.msrb.mxu2 %v11195_v60  ;;  %v4766_v60 = vpop.f32.mrf.mxu2  ;;  %v4779_v58 = vpop.f32.mrf.mxu3 }
 0x245   : > { %5031 = vmatpush.bf16.msrb.mxu3 %v11515_v21  ;;  %v9398_v21 = vld [vmem:[#allocation2 + $0x250] sm:$0xf]  ;;  %v9918_v60 = vld [vmem:[#allocation2 + $0x660] sm:$0xf] }
 0x246   : > { %4993 = vmatpush.bf16.msrb.mxu0 %v10515_v6  ;;  %v10715_v6 = vor.u32 %v13971_v46, %v10712_v47  ;;  %v9399_v9 = vor.u32 %v13647_v59, %v9398_v21  ;;  %v9598_v46 = vld [vmem:[#allocation2 + $0x3e0] sm:$0xf]  ;;  %v10279_v47 = vor.u32 %v13867_v39, %v10278_v51  ;;  %v13587_v51 = vld [vmem:[#allocation2 + $0x94] sm:$0xf0]  ;;  %v9478_v39 = vld [vmem:[#allocation2 + $0x2f0] sm:$0xf] }
 0x247   : > { %5006 = vmatpush.bf16.msrb.mxu1 %v10835_v4  ;;  %v11035_v4 = vor.u32 %v14051_v48, %v11032_v54  ;;  %v13697_v48 = vld [vmem:[#allocation2 + $0x404] sm:$0xf0]  ;;  %v10238_v54 = vld [vmem:[#allocation2 + $0x8e0] sm:$0xf] }
 0x248   : > { %5019 = vmatpush.bf16.msrb.mxu2 %v11155_v5  ;;  %v10358_v5 = vld [vmem:[#allocation2 + $0x9d0] sm:$0xf]  ;;  %v9599_v21 = vor.u32 %v13697_v48, %v9598_v46  ;;  %v9159_v48 = vor.u32 %v13587_v51, %v9158_v37 }
 0x249   : > { %5032 = vmatpush.bf16.msrb.mxu3 %v11475_v11  ;;  %v10039_v11 = vor.u32 %v13807_v2, %v10038_v1  ;;  %v10359_v16 = vor.u32 %v13887_v7, %v10358_v5  ;;  %v9878_v5 = vld [vmem:[#allocation2 + $0x610] sm:$0xf]  ;;  %v13767_v7 = vld [vmem:[#allocation2 + $0x634] sm:$0xf0] }
 0x24a   : > { %4994 = vmatpush.bf16.msrb.mxu0 %v10475_v25  ;;  %v10318_v25 = vld [vmem:[#allocation2 + $0x980] sm:$0xf]  ;;  %v10118_v46 = vld [vmem:[#allocation2 + $0x7f0] sm:$0xf] }
 0x24b   : > { %5007 = vmatpush.bf16.msrb.mxu1 %v10795_v29  ;;  %v9359_v29 = vor.u32 %v13637_v14, %v9358_v12  ;;  %v9879_v14 = vor.u32 %v13767_v7, %v9878_v5  ;;  %v10998_v5 = vld [vmem:[#allocation2 + $0xed0] sm:$0xf] }
 0x24c   : > { %5020 = vmatpush.bf16.msrb.mxu2 %v11115_v30  ;;  %v9679_v30 = vor.u32 %v13717_v17, %v9678_v15  ;;  %v9198_v15 = vld [vmem:[#allocation2 + $0xc0] sm:$0xf]  ;;  %v10598_v51 = vld [vmem:[#allocation2 + $0xbb0] sm:$0xf] }
 0x24d   : > { %5033 = vmatpush.bf16.msrb.mxu3 %v11435_v34  ;;  %v10319_v34 = vor.u32 %v13877_v28, %v10318_v25  ;;  %v9518_v17 = vld [vmem:[#allocation2 + $0x340] sm:$0xf]  ;;  %v13757_v28 = vld [vmem:[#allocation2 + $0x5e4] sm:$0xf0] }
 0x24e   : > { %4995 = vmatpush.bf16.msrb.mxu0 %v10435_v40  ;;  %v9319_v40 = vor.u32 %v13627_v32, %v9318_v3  ;;  %v9838_v25 = vld [vmem:[#allocation2 + $0x5c0] sm:$0xf]  ;;  %v13837_v3 = vld [vmem:[#allocation2 + $0x864] sm:$0xf0]  ;;  %v9519_v35 = vor.u32 %v13677_v26, %v9518_v17 }
 0x24f   : > { %5008 = vmatpush.bf16.msrb.mxu1 %v10755_v43  ;;  %v9278_v43 = vld [vmem:[#allocation2 + $0x160] sm:$0xf]  ;;  %v9839_v36 = vor.u32 %v13757_v28, %v9838_v25  ;;  %v13957_v25 = vld [vmem:[#allocation2 + $0xc24] sm:$0xf0] }
 0x250   : > { %5021 = vmatpush.bf16.msrb.mxu2 %v11075_v45  ;;  %v13617_v45 = vld [vmem:[#allocation2 + $0x184] sm:$0xf0]  ;;  %v10638_v26 = vld [vmem:[#allocation2 + $0xc00] sm:$0xf] }
 0x251   : > { %5034 = vmatpush.bf16.msrb.mxu3 %v11395_v50  ;;  %v13777_v50 = vld [vmem:[#allocation2 + $0x684] sm:$0xf0]  ;;  %v9279_v57 = vor.u32 %v13617_v45, %v9278_v43  ;;  %v9798_v43 = vld [vmem:[#allocation2 + $0x570] sm:$0xf]  ;;  %v13747_v45 = vld [vmem:[#allocation2 + $0x594] sm:$0xf0] }
 0x252   : > { %4996 = vmatpush.bf16.msrb.mxu0 %v10395_v62  ;;  %v4790_v58 = vpop.f32.mrf.mxu0  ;;  %v9919_v59 = vor.u32 %v13777_v50, %v9918_v60  ;;  %v13607_v62 = vld [vmem:[#allocation2 + $0x134] sm:$0xf0]  ;;  %v9118_v60 = vld [vmem:[#allocation2 + $0x20] sm:$0xf]  ;;  %v13577_v50 = vld [vmem:[#allocation2 + $0x44] sm:$0xf0] }
 0x253   : > { %5009 = vmatpush.bf16.msrb.mxu1 %v10715_v6  ;;  %v4791_v1 = vadd.f32 %v4790_v58, %v15286_v27  ;;  %v4803_v2 = vpop.f32.mrf.mxu1  ;;  %v10239_v6 = vor.u32 %v13857_v55, %v10238_v54  ;;  %v9799_v55 = vor.u32 %v13747_v45, %v9798_v43  ;;  %v13657_v58 = vld [vmem:[#allocation2 + $0x2c4] sm:$0xf0]  ;;  %v9119_v7 = vor.u32 %v13577_v50, %v9118_v60  ;;  %v10958_v28 = vld [vmem:[#allocation2 + $0xe80] sm:$0xf]  ;;  %v11238_v43 = vld [vmem:[#allocation2 + $0x10b0] sm:$0xf] }
 0x254   : > { %5022 = vmatpush.bf16.msrb.mxu2 %v11035_v4  ;;  %v13687_v4 = vld [vmem:[#allocation2 + $0x3b4] sm:$0xf0]  ;;  %v10558_v60 = vld [vmem:[#allocation2 + $0xb60] sm:$0xf] }
 0x255   : > { %5035 = vmatpush.bf16.msrb.mxu3 %v11355_v8  ;;  %4997 = vmatmul.bf16.vlgmr.msrb.gmra.mxu0 %v15187_v41  ;;  %v10198_v8 = vld [vmem:[#allocation2 + $0x890] sm:$0xf]  ;;  %v9559_v12 = vor.u32 %v13687_v4, %v9558_v0  ;;  %v10078_v0 = vld [vmem:[#allocation2 + $0x7a0] sm:$0xf]  ;;  %v13967_v4 = vld [vmem:[#allocation2 + $0xc74] sm:$0xf0] }
 0x256   : > { %5041 = vmatpush.bf16.msra.mxu0 %v9399_v9  ;;  %5010 = vmatmul.bf16.vlgmr.msrb.gmra.mxu1 %v15191_v44  ;;  %v13847_v9 = vld [vmem:[#allocation2 + $0x8b4] sm:$0xf0] }
 0x257   : > { %5054 = vmatpush.bf16.msra.mxu1 %v9719_v10  ;;  %5023 = vmatmul.bf16.vlgmr.msrb.gmra.mxu2 %v15185_v38  ;;  %v4804_v10 = vadd.f32 %v4803_v2, %v4791_v1  ;;  %v10199_v27 = vor.u32 %v13847_v9, %v10198_v8  ;;  %v13817_v1 = vld [vmem:[#allocation2 + $0x7c4] sm:$0xf0]  ;;  %v14047_v8 = vld [vmem:[#allocation2 + $0xef4] sm:$0xf0]  ;;  %v11318_v9 = vld [vmem:[#allocation2 + $0x1150] sm:$0xf] }
 0x258   : > { %5067 = vmatpush.bf16.msra.mxu2 %v10039_v11  ;;  %5036 = vmatmul.bf16.vlgmr.msrb.gmra.mxu3 %v15189_v42  ;;  %v9239_v11 = vor.u32 %v13607_v62, %v9238_v61  ;;  %v13737_v62 = vld [vmem:[#allocation2 + $0x544] sm:$0xf0]  ;;  %v14107_v45 = vld [vmem:[#allocation2 + $0x10d4] sm:$0xf0] }
 0x259   : > { %5080 = vmatpush.bf16.msra.mxu3 %v10359_v16  ;;  %v13597_v16 = vld [vmem:[#allocation2 + $0xe4] sm:$0xf0] }
 0x25a   : > { %5042 = vmatpush.bf16.msra.mxu0 %v9359_v29  ;;  %v4816_v23 = vpop.f32.mrf.mxu2  ;;  %v9199_v32 = vor.u32 %v13597_v16, %v9198_v15  ;;  %v14207_v15 = vld [vmem:[#allocation2 + $0x13f4] sm:$0xf0]  ;;  %v10079_v16 = vor.u32 %v13817_v1, %v10078_v0  ;;  %v14097_v0 = vld [vmem:[#allocation2 + $0x1084] sm:$0xf0]  ;;  %v11518_v1 = vld [vmem:[#allocation2 + $0x12e0] sm:$0xf] }
 0x25b   : > { %5055 = vmatpush.bf16.msra.mxu1 %v9679_v30  ;;  %v4817_v29 = vadd.f32 %v4816_v23, %v4804_v10  ;;  %v4829_v30 = vpop.f32.mrf.mxu3  ;;  %v14127_v10 = vld [vmem:[#allocation2 + $0x1174] sm:$0xf0]  ;;  %v10999_v23 = vor.u32 %v14047_v8, %v10998_v5  ;;  %v10518_v8 = vld [vmem:[#allocation2 + $0xb10] sm:$0xf] }
 0x25c   : > { %5068 = vmatpush.bf16.msra.mxu2 %v9999_v31  ;;  %v10158_v31 = vld [vmem:[#allocation2 + $0x840] sm:$0xf] }
 0x25d   : > { %5081 = vmatpush.bf16.msra.mxu3 %v10319_v34  ;;  %v15293_v33 = vadd.f32 %v4829_v30, %v4817_v29  ;;  %v4792_v34 = vpop.f32.mrf.mxu0  ;;  %v14037_v30 = vld [vmem:[#allocation2 + $0xea4] sm:$0xf0] }
 0x25e   : > { %5043 = vmatpush.bf16.msra.mxu0 %v9319_v40  ;;  %v4805_v40 = vpop.f32.mrf.mxu1  ;;  %v14197_v34 = vld [vmem:[#allocation2 + $0x13a4] sm:$0xf0] }
 0x25f   : > { %5056 = vmatpush.bf16.msra.mxu1 %v9639_v24  ;;  %v10159_v24 = vor.u32 %v13837_v3, %v10158_v31  ;;  %v11278_v31 = vld [vmem:[#allocation2 + $0x1100] sm:$0xf]  ;;  %v14117_v3 = vld [vmem:[#allocation2 + $0x1124] sm:$0xf0]  ;;  %v10918_v40 = vld [vmem:[#allocation2 + $0xe30] sm:$0xf] }
 0x260   : > { %5069 = vmatpush.bf16.msra.mxu2 %v9959_v53  ;;  %v13667_v53 = vld [vmem:[#allocation2 + $0x314] sm:$0xf0]  ;;  %v11279_v37 = vor.u32 %v14117_v3, %v11278_v31  ;;  %v13917_v31 = vld [vmem:[#allocation2 + $0xae4] sm:$0xf0]  ;;  %v10798_v3 = vld [vmem:[#allocation2 + $0xd40] sm:$0xf] }
 0x261   : > { %5082 = vmatpush.bf16.msra.mxu3 %v10279_v47  ;;  %v13827_v47 = vld [vmem:[#allocation2 + $0x814] sm:$0xf0]  ;;  %v9479_v54 = vor.u32 %v13667_v53, %v9478_v39 }
 0x262   : > { %5044 = vmatpush.bf16.msra.mxu0 %v9279_v57  ;;  %v9438_v57 = vld [vmem:[#allocation2 + $0x2a0] sm:$0xf]  ;;  %v10119_v61 = vor.u32 %v13827_v47, %v10118_v46  ;;  %v13947_v39 = vld [vmem:[#allocation2 + $0xbd4] sm:$0xf0]  ;;  %v11558_v46 = vld [vmem:[#allocation2 + $0x1330] sm:$0xf] }
 0x263   : > { %5057 = vmatpush.bf16.msra.mxu1 %v9599_v21  ;;  %v9758_v21 = vld [vmem:[#allocation2 + $0x520] sm:$0xf]  ;;  %v4831_v2 = vpop.f32.mrf.mxu3  ;;  %v14027_v53 = vld [vmem:[#allocation2 + $0xe54] sm:$0xf0] }
 0x264   : > { %5070 = vmatpush.bf16.msra.mxu2 %v9919_v59  ;;  %v4818_v59 = vpop.f32.mrf.mxu2  ;;  %v14187_v47 = vld [vmem:[#allocation2 + $0x1354] sm:$0xf0]  ;;  %v10919_v50 = vor.u32 %v14027_v53, %v10918_v40  ;;  %v14177_v2 = vld [vmem:[#allocation2 + $0x1304] sm:$0xf0]  ;;  %v11438_v40 = vld [vmem:[#allocation2 + $0x1240] sm:$0xf] }
 0x265   : > { %5083 = vmatpush.bf16.msra.mxu3 %v10239_v6  ;;  %v10678_v6 = vld [vmem:[#allocation2 + $0xc50] sm:$0xf]  ;;  %v11559_v59 = vor.u32 %v14187_v47, %v11558_v46 }
 0x266   : > { %5045 = vmatpush.bf16.msra.mxu0 %v9239_v11  ;;  %v9439_v11 = vor.u32 %v13657_v58, %v9438_v57  ;;  %v10679_v17 = vor.u32 %v13967_v4, %v10678_v6  ;;  %v10878_v57 = vld [vmem:[#allocation2 + $0xde0] sm:$0xf] }
 0x267   : > { %5058 = vmatpush.bf16.msra.mxu1 %v9559_v12  ;;  %v9759_v12 = vor.u32 %v13737_v62, %v9758_v21  ;;  %v15299_v58 = vld [vmem:[#allocation5] sm:$0xff] }
 0x268   : > { %5071 = vmatpush.bf16.msra.mxu2 %v9879_v14  ;;  %v11638_v14 = vld [vmem:[#allocation2 + $0x13d0] sm:$0xf]  ;;  %v967_v21 = vperm.slane %v15299_v58, 6  ;;  %v11198_v62 = vld [vmem:[#allocation2 + $0x1060] sm:$0xf] }
 0x269   : > { %5084 = vmatpush.bf16.msra.mxu3 %v10199_v27  ;;  %v11319_v27 = vor.u32 %v14127_v10, %v11318_v9  ;;  %v11639_v29 = vor.u32 %v14207_v15, %v11638_v14  ;;  %v13927_v9 = vld [vmem:[#allocation2 + $0xb34] sm:$0xf0]  ;;  %v10838_v10 = vld [vmem:[#allocation2 + $0xd90] sm:$0xf]  ;;  %v11519_v14 = vor.u32 %v14177_v2, %v11518_v1  ;;  %v10398_v1 = vld [vmem:[#allocation2 + $0xa20] sm:$0xf] }
 0x26a   : > { %5046 = vmatpush.bf16.msra.mxu0 %v9199_v32  ;;  %v11598_v32 = vld [vmem:[#allocation2 + $0x1380] sm:$0xf]  ;;  %v14007_v15 = vld [vmem:[#allocation2 + $0xdb4] sm:$0xf0]  ;;  %v13897_v2 = vld [vmem:[#allocation2 + $0xa44] sm:$0xf0] }
 0x26b   : > { %5059 = vmatpush.bf16.msra.mxu1 %v9519_v35  ;;  %v10639_v35 = vor.u32 %v13957_v25, %v10638_v26  ;;  %v10519_v25 = vor.u32 %v13927_v9, %v10518_v8  ;;  %v11038_v8 = vld [vmem:[#allocation2 + $0xf20] sm:$0xf] }
 0x26c   : > { %5072 = vmatpush.bf16.msra.mxu2 %v9839_v36  ;;  %v10959_v36 = vor.u32 %v14037_v30, %v10958_v28  ;;  %v10839_v28 = vor.u32 %v14007_v15, %v10838_v10  ;;  %v10478_v30 = vld [vmem:[#allocation2 + $0xac0] sm:$0xf] }
 0x26d   : > { %5085 = vmatpush.bf16.msra.mxu3 %v10159_v24  ;;  %v11599_v24 = vor.u32 %v14197_v34, %v11598_v32  ;;  %v10479_v53 = vor.u32 %v13917_v31, %v10478_v30  ;;  %v13882_v31 = vld [vmem:[#allocation2 + $0x9d4] sm:$0xf] }
 0x26e   : > { %5047 = vmatpush.bf16.msra.mxu0 %v9159_v48  ;;  %v10599_v48 = vor.u32 %v13947_v39, %v10598_v51 }
 0x26f   : > { %5060 = vmatpush.bf16.msra.mxu1 %v9479_v54  ;;  %v11239_v54 = vor.u32 %v14107_v45, %v11238_v43 }
 0x270   : > { %5073 = vmatpush.bf16.msra.mxu2 %v9799_v55  ;;  %v13937_v55 = vld [vmem:[#allocation2 + $0xb84] sm:$0xf0] }
 0x271   : > { %5086 = vmatpush.bf16.msra.mxu3 %v10119_v61  ;;  %v14017_v61 = vld [vmem:[#allocation2 + $0xe04] sm:$0xf0]  ;;  %v10559_v6 = vor.u32 %v13937_v55, %v10558_v60  ;;  %v13907_v60 = vld [vmem:[#allocation2 + $0xa94] sm:$0xf0] }
 0x272   : > { %5048 = vmatpush.bf16.msra.mxu0 %v9119_v7  ;;  %v4842_v4 = vpop.f32.mrf.mxu0  ;;  %v10879_v5 = vor.u32 %v14017_v61, %v10878_v57  ;;  %v11199_v7 = vor.u32 %v14097_v0, %v11198_v62  ;;  %v13987_v57 = vld [vmem:[#allocation2 + $0xd14] sm:$0xf0]  ;;  %v11398_v61 = vld [vmem:[#allocation2 + $0x11f0] sm:$0xf] }
 0x273   : > { %5061 = vmatpush.bf16.msra.mxu1 %v9439_v11  ;;  %v4843_v11 = vadd.f32 %v4842_v4, %v967_v21  ;;  %v11078_v21 = vld [vmem:[#allocation2 + $0xf70] sm:$0xf]  ;;  %v14147_v62 = vld [vmem:[#allocation2 + $0x1214] sm:$0xf0] }
 0x274   : > { %5074 = vmatpush.bf16.msra.mxu2 %v9759_v12  ;;  %v4855_v12 = vpop.f32.mrf.mxu1  ;;  %v11399_v10 = vor.u32 %v14147_v62, %v11398_v61  ;;  %v13782_v61 = vld [vmem:[#allocation2 + $0x6b4] sm:$0xf]  ;;  %v9960_v62 = vld [vmem:[#allocation2 + $0x6d8] sm:$0xf0] }
 0x275   : > { %5087 = vmatpush.bf16.msra.mxu3 %v10079_v16  ;;  %5049 = vmatmul.bf16.vlgmr.msra.gmra.mxu0 %v15169_v19  ;;  %v11158_v16 = vld [vmem:[#allocation2 + $0x1010] sm:$0xf]  ;;  %v4856_v26 = vadd.f32 %v4855_v12, %v4843_v11  ;;  %v14057_v11 = vld [vmem:[#allocation2 + $0xf44] sm:$0xf0]  ;;  %v11358_v12 = vld [vmem:[#allocation2 + $0x11a0] sm:$0xf] }
 0x276   : > { %5093 = vmatpush.bf16.msrb.mxu0 %v10679_v17  ;;  %5062 = vmatmul.bf16.vlgmr.msra.gmra.mxu1 %v15173_v22  ;;  %v14087_v17 = vld [vmem:[#allocation2 + $0x1034] sm:$0xf0]  ;;  %v11039_v30 = vor.u32 %v14057_v11, %v11038_v8  ;;  %v13692_v8 = vld [vmem:[#allocation2 + $0x3e4] sm:$0xf] }
 0x277   : > { %5106 = vmatpush.bf16.msrb.mxu1 %v10999_v23  ;;  %5075 = vmatmul.bf16.vlgmr.msra.gmra.mxu2 %v15167_v18  ;;  %v11478_v23 = vld [vmem:[#allocation2 + $0x1290] sm:$0xf]  ;;  %v13772_v11 = vld [vmem:[#allocation2 + $0x664] sm:$0xf] }
 0x278   : > { %5119 = vmatpush.bf16.msrb.mxu2 %v11319_v27  ;;  %5088 = vmatmul.bf16.vlgmr.msra.gmra.mxu3 %v15171_v20  ;;  %v14167_v27 = vld [vmem:[#allocation2 + $0x12b4] sm:$0xf0] }
 0x279   : > { %5132 = vmatpush.bf16.msrb.mxu3 %v11639_v29  ;;  %v11159_v29 = vor.u32 %v14087_v17, %v11158_v16  ;;  %v11479_v34 = vor.u32 %v14167_v27, %v11478_v23  ;;  %v13642_v16 = vld [vmem:[#allocation2 + $0x254] sm:$0xf]  ;;  %v9400_v17 = vld [vmem:[#allocation2 + $0x278] sm:$0xf0]  ;;  %v10399_v27 = vor.u32 %v13897_v2, %v10398_v1 }
 0x27a   : > { %5094 = vmatpush.bf16.msrb.mxu0 %v10639_v35  ;;  %v4868_v32 = vpop.f32.mrf.mxu2  ;;  %v13997_v35 = vld [vmem:[#allocation2 + $0xd64] sm:$0xf0]  ;;  %v4844_v45 = vpop.f32.mrf.mxu0  ;;  %v13722_v23 = vld [vmem:[#allocation2 + $0x4d4] sm:$0xf]  ;;  %v10280_v1 = vld [vmem:[#allocation2 + $0x958] sm:$0xf0] }
 0x27b   : > { %5107 = vmatpush.bf16.msrb.mxu1 %v10959_v36  ;;  %v11118_v36 = vld [vmem:[#allocation2 + $0xfc0] sm:$0xf]  ;;  %v4869_v51 = vadd.f32 %v4868_v32, %v4856_v26  ;;  %v4881_v39 = vpop.f32.mrf.mxu3  ;;  %v10799_v46 = vor.u32 %v13997_v35, %v10798_v3  ;;  %v9720_v26 = vld [vmem:[#allocation2 + $0x4f8] sm:$0xf0]  ;;  %v10000_v45 = vld [vmem:[#allocation2 + $0x728] sm:$0xf0] }
 0x27c   : > { %5120 = vmatpush.bf16.msrb.mxu2 %v11279_v37  ;;  %v14077_v37 = vld [vmem:[#allocation2 + $0xfe4] sm:$0xf0]  ;;  %v10360_v3 = vld [vmem:[#allocation2 + $0x9f8] sm:$0xf0]  ;;  %v9723_v35 = vor.u32 %v13722_v23, %v9720_v26  ;;  %v13602_v26 = vld [vmem:[#allocation2 + $0x114] sm:$0xf] }
 0x27d   : > { %5133 = vmatpush.bf16.msrb.mxu3 %v11599_v24  ;;  %v14157_v24 = vld [vmem:[#allocation2 + $0x1264] sm:$0xf0]  ;;  %v15302_v43 = vadd.f32 %v4881_v39, %v4869_v51  ;;  %v11119_v47 = vor.u32 %v14077_v37, %v11118_v36  ;;  %v13632_v37 = vld [vmem:[#allocation2 + $0x204] sm:$0xf]  ;;  %v9360_v51 = vld [vmem:[#allocation2 + $0x228] sm:$0xf0] }
 0x27e   : > { %5095 = vmatpush.bf16.msrb.mxu0 %v10599_v48  ;;  %v10438_v48 = vld [vmem:[#allocation2 + $0xa70] sm:$0xf]  ;;  %v11439_v55 = vor.u32 %v14157_v24, %v11438_v40  ;;  %v13712_v39 = vld [vmem:[#allocation2 + $0x484] sm:$0xf]  ;;  %v10363_v40 = vor.u32 %v13882_v31, %v10360_v3  ;;  %v9680_v24 = vld [vmem:[#allocation2 + $0x4a8] sm:$0xf0] }
 0x27f   : > { %5108 = vmatpush.bf16.msrb.mxu1 %v10919_v50  ;;  %v10758_v50 = vld [vmem:[#allocation2 + $0xcf0] sm:$0xf]  ;;  %v10439_v0 = vor.u32 %v13907_v60, %v10438_v48  ;;  %v9363_v48 = vor.u32 %v13632_v37, %v9360_v51  ;;  %v9683_v60 = vor.u32 %v13712_v39, %v9680_v24  ;;  %v9560_v3 = vld [vmem:[#allocation2 + $0x3b8] sm:$0xf0]  ;;  %v13592_v24 = vld [vmem:[#allocation2 + $0xc4] sm:$0xf] }
 0x280   : > { %5121 = vmatpush.bf16.msrb.mxu2 %v11239_v54  ;;  %v4857_v54 = vpop.f32.mrf.mxu1 }
 0x281   : > { %5134 = vmatpush.bf16.msrb.mxu3 %v11559_v59  ;;  %v14067_v59 = vld [vmem:[#allocation2 + $0xf94] sm:$0xf0]  ;;  %v13622_v54 = vld [vmem:[#allocation2 + $0x1b4] sm:$0xf] }
 0x282   : > { %5096 = vmatpush.bf16.msrb.mxu0 %v10559_v6  ;;  %v10759_v6 = vor.u32 %v13987_v57, %v10758_v50  ;;  %v11079_v4 = vor.u32 %v14067_v59, %v11078_v21  ;;  %v4870_v9 = vpop.f32.mrf.mxu2  ;;  %v13702_v57 = vld [vmem:[#allocation2 + $0x434] sm:$0xf]  ;;  %v9640_v59 = vld [vmem:[#allocation2 + $0x458] sm:$0xf0] }
 0x283   : > { %5109 = vmatpush.bf16.msrb.mxu1 %v10879_v5  ;;  %v10718_v5 = vld [vmem:[#allocation2 + $0xca0] sm:$0xf]  ;;  %v4883_v15 = vpop.f32.mrf.mxu3 }
 0x284   : > { %5122 = vmatpush.bf16.msrb.mxu2 %v11199_v7  ;;  %v13977_v7 = vld [vmem:[#allocation2 + $0xcc4] sm:$0xf0]  ;;  %v10240_v15 = vld [vmem:[#allocation2 + $0x908] sm:$0xf0] }
 0x285   : > { %5135 = vmatpush.bf16.msrb.mxu3 %v11519_v14  ;;  %v14137_v14 = vld [vmem:[#allocation2 + $0x11c4] sm:$0xf0] }
 0x286   : > { %5097 = vmatpush.bf16.msrb.mxu0 %v10519_v25  ;;  %v13802_v25 = vld [vmem:[#allocation2 + $0x754] sm:$0xf]  ;;  %v11359_v32 = vor.u32 %v14137_v14, %v11358_v12  ;;  %v9920_v12 = vld [vmem:[#allocation2 + $0x688] sm:$0xf0]  ;;  %v13852_v14 = vld [vmem:[#allocation2 + $0x8e4] sm:$0xf] }
 0x287   : > { %5110 = vmatpush.bf16.msrb.mxu1 %v10839_v28  ;;  %v10040_v28 = vld [vmem:[#allocation2 + $0x778] sm:$0xf0]  ;;  %v10243_v31 = vor.u32 %v13852_v14, %v10240_v15  ;;  %v13572_v14 = vld [vmem:[#allocation2 + $0x24] sm:$0xf]  ;;  %v9120_v15 = vld [vmem:[#allocation2 + $0x48] sm:$0xf0] }
 0x288   : > { %5123 = vmatpush.bf16.msrb.mxu2 %v11159_v29  ;;  %v10719_v29 = vor.u32 %v13977_v7, %v10718_v5  ;;  %v10043_v36 = vor.u32 %v13802_v25, %v10040_v28  ;;  %v13612_v5 = vld [vmem:[#allocation2 + $0x164] sm:$0xf]  ;;  %v9280_v7 = vld [vmem:[#allocation2 + $0x188] sm:$0xf0]  ;;  %v9240_v25 = vld [vmem:[#allocation2 + $0x138] sm:$0xf0] }
 0x289   : > { %5136 = vmatpush.bf16.msrb.mxu3 %v11479_v34  ;;  %v9403_v34 = vor.u32 %v13642_v16, %v9400_v17  ;;  %v9283_v16 = vor.u32 %v13612_v5, %v9280_v7  ;;  %v13682_v28 = vld [vmem:[#allocation2 + $0x394] sm:$0xf]  ;;  %v9243_v51 = vor.u32 %v13602_v26, %v9240_v25  ;;  %v9480_v7 = vld [vmem:[#allocation2 + $0x318] sm:$0xf0]  ;;  %v13732_v26 = vld [vmem:[#allocation2 + $0x524] sm:$0xf] }
 0x28a   : > { %5098 = vmatpush.bf16.msrb.mxu0 %v10479_v53  ;;  %v13792_v53 = vld [vmem:[#allocation2 + $0x704] sm:$0xf]  ;;  %v9563_v39 = vor.u32 %v13682_v28, %v9560_v3 }
 0x28b   : > { %5111 = vmatpush.bf16.msrb.mxu1 %v10799_v46  ;;  %v13872_v46 = vld [vmem:[#allocation2 + $0x984] sm:$0xf]  ;;  %v10003_v50 = vor.u32 %v13792_v53, %v10000_v45  ;;  %v9200_v53 = vld [vmem:[#allocation2 + $0xe8] sm:$0xf0] }
 0x28c   : > { %5124 = vmatpush.bf16.msrb.mxu2 %v11119_v47  ;;  %v10320_v47 = vld [vmem:[#allocation2 + $0x9a8] sm:$0xf0]  ;;  %v13672_v45 = vld [vmem:[#allocation2 + $0x344] sm:$0xf] }
 0x28d   : > { %5137 = vmatpush.bf16.msrb.mxu3 %v11439_v55  ;;  %v9320_v55 = vld [vmem:[#allocation2 + $0x1d8] sm:$0xf0]  ;;  %v10323_v21 = vor.u32 %v13872_v46, %v10320_v47  ;;  %v9520_v47 = vld [vmem:[#allocation2 + $0x368] sm:$0xf0] }
 0x28e   : > { %5099 = vmatpush.bf16.msrb.mxu0 %v10439_v0  ;;  %v13862_v0 = vld [vmem:[#allocation2 + $0x934] sm:$0xf]  ;;  %v9323_v2 = vor.u32 %v13622_v54, %v9320_v55  ;;  %v13832_v55 = vld [vmem:[#allocation2 + $0x844] sm:$0xf] }
 0x28f   : > { %5112 = vmatpush.bf16.msrb.mxu1 %v10759_v6  ;;  %v9643_v6 = vor.u32 %v13702_v57, %v9640_v59  ;;  %v10283_v9 = vor.u32 %v13862_v0, %v10280_v1  ;;  %v10160_v57 = vld [vmem:[#allocation2 + $0x868] sm:$0xf0]  ;;  %v13582_v1 = vld [vmem:[#allocation2 + $0x74] sm:$0xf] }
 0x290   : > { %5125 = vmatpush.bf16.msrb.mxu2 %v11079_v4  ;;  %v9963_v4 = vor.u32 %v13782_v61, %v9960_v62  ;;  %v9523_v62 = vor.u32 %v13672_v45, %v9520_v47  ;;  %v10163_v5 = vor.u32 %v13832_v55, %v10160_v57  ;;  %v11640_v45 = vld [vmem:[#allocation2 + $0x13f8] sm:$0xf0]  ;;  %v10960_v57 = vld [vmem:[#allocation2 + $0xea8] sm:$0xf0] }
 0x291   : > { %5138 = vmatpush.bf16.msrb.mxu3 %v11399_v10  ;;  %v9600_v10 = vld [vmem:[#allocation2 + $0x408] sm:$0xf0] }
 0x292   : > { %5100 = vmatpush.bf16.msrb.mxu0 %v10399_v27  ;;  %v4894_v17 = vpop.f32.mrf.mxu0  ;;  %v9603_v23 = vor.u32 %v13692_v8, %v9600_v10  ;;  %v9923_v27 = vor.u32 %v13772_v11, %v9920_v12  ;;  %v13742_v8 = vld [vmem:[#allocation2 + $0x574] sm:$0xf]  ;;  %v10120_v11 = vld [vmem:[#allocation2 + $0x818] sm:$0xf0] }
 0x293   : > { %5113 = vmatpush.bf16.msrb.mxu1 %v10719_v29  ;;  %v4895_v29 = vadd.f32 %v4894_v17, %v15302_v43  ;;  %v13822_v10 = vld [vmem:[#allocation2 + $0x7f4] sm:$0xf] }
 0x294   : > { %5126 = vmatpush.bf16.msrb.mxu2 %v11039_v30  ;;  %v4907_v30 = vpop.f32.mrf.mxu1  ;;  %v10123_v28 = vor.u32 %v13822_v10, %v10120_v11  ;;  %v14102_v10 = vld [vmem:[#allocation2 + $0x10b4] sm:$0xf]  ;;  %v11240_v11 = vld [vmem:[#allocation2 + $0x10d8] sm:$0xf0] }
 0x295   : > { %5139 = vmatpush.bf16.msrb.mxu3 %v11359_v32  ;;  %5101 = vmatmul.bf16.vlgmr.msrb.gmra.mxu0 %v15187_v41  ;;  %v13762_v32 = vld [vmem:[#allocation2 + $0x614] sm:$0xf]  ;;  %v4908_v37 = vadd.f32 %v4907_v30, %v4895_v29  ;;  %v9760_v29 = vld [vmem:[#allocation2 + $0x548] sm:$0xf0]  ;;  %v13812_v30 = vld [vmem:[#allocation2 + $0x7a4] sm:$0xf] }
 0x296   : > { %5145 = vmatpush.bf16.msra.mxu0 %v9403_v34  ;;  %5114 = vmatmul.bf16.vlgmr.msrb.gmra.mxu1 %v15191_v44  ;;  %v9880_v34 = vld [vmem:[#allocation2 + $0x638] sm:$0xf0] }
 0x297   : > { %5158 = vmatpush.bf16.msra.mxu1 %v9723_v35  ;;  %5127 = vmatmul.bf16.vlgmr.msrb.gmra.mxu2 %v15185_v38  ;;  %v13842_v35 = vld [vmem:[#allocation2 + $0x894] sm:$0xf] }
 0x298   : > { %5171 = vmatpush.bf16.msra.mxu2 %v10043_v36  ;;  %5140 = vmatmul.bf16.vlgmr.msrb.gmra.mxu3 %v15189_v42  ;;  %v10200_v36 = vld [vmem:[#allocation2 + $0x8b8] sm:$0xf0] }
 0x299   : > { %5184 = vmatpush.bf16.msra.mxu3 %v10363_v40  ;;  %v9883_v40 = vor.u32 %v13762_v32, %v9880_v34  ;;  %v10203_v43 = vor.u32 %v13842_v35, %v10200_v36  ;;  %v13962_v32 = vld [vmem:[#allocation2 + $0xc54] sm:$0xf]  ;;  %v10680_v34 = vld [vmem:[#allocation2 + $0xc78] sm:$0xf0]  ;;  %v9123_v36 = vor.u32 %v13572_v14, %v9120_v15 }
 0x29a   : > { %5146 = vmatpush.bf16.msra.mxu0 %v9363_v48  ;;  %v4920_v46 = vpop.f32.mrf.mxu2  ;;  %v13752_v48 = vld [vmem:[#allocation2 + $0x5c4] sm:$0xf]  ;;  %v4896_v61 = vpop.f32.mrf.mxu0  ;;  %v14042_v35 = vld [vmem:[#allocation2 + $0xed4] sm:$0xf]  ;;  %v11560_v14 = vld [vmem:[#allocation2 + $0x1358] sm:$0xf0] }
 0x29b   : > { %5159 = vmatpush.bf16.msra.mxu1 %v9683_v60  ;;  %v9840_v60 = vld [vmem:[#allocation2 + $0x5e8] sm:$0xf0]  ;;  %v4933_v54 = vpop.f32.mrf.mxu3 }
 0x29c   : > { %5172 = vmatpush.bf16.msra.mxu2 %v10003_v50  ;;  %v4921_v50 = vadd.f32 %v4920_v46, %v4908_v37  ;;  %v9843_v0 = vor.u32 %v13752_v48, %v9840_v60  ;;  %v11000_v37 = vld [vmem:[#allocation2 + $0xef8] sm:$0xf0]  ;;  %v13952_v60 = vld [vmem:[#allocation2 + $0xc04] sm:$0xf]  ;;  %v11280_v61 = vld [vmem:[#allocation2 + $0x1128] sm:$0xf0] }
 0x29d   : > { %5185 = vmatpush.bf16.msra.mxu3 %v10323_v21  ;;  %v9203_v21 = vor.u32 %v13592_v24, %v9200_v53  ;;  %v9763_v24 = vor.u32 %v13732_v26, %v9760_v29  ;;  %v14202_v53 = vld [vmem:[#allocation2 + $0x13d4] sm:$0xf]  ;;  %v11003_v47 = vor.u32 %v14042_v35, %v11000_v37  ;;  %v968_v26 = vperm.slane %v15299_v58, 7  ;;  %v14092_v29 = vld [vmem:[#allocation2 + $0x1064] sm:$0xf] }
 0x29e   : > { %5147 = vmatpush.bf16.msra.mxu0 %v9323_v2  ;;  %v15309_v59 = vadd.f32 %v4933_v54, %v4921_v50  ;;  %v9160_v2 = vld [vmem:[#allocation2 + $0x98] sm:$0xf0]  ;;  %v10640_v50 = vld [vmem:[#allocation2 + $0xc28] sm:$0xf0]  ;;  %v14032_v54 = vld [vmem:[#allocation2 + $0xe84] sm:$0xf]  ;;  %v11643_v55 = vor.u32 %v14202_v53, %v11640_v45 }
 0x29f   : > { %5160 = vmatpush.bf16.msra.mxu1 %v9643_v6  ;;  %v13662_v6 = vld [vmem:[#allocation2 + $0x2f4] sm:$0xf]  ;;  %v9163_v12 = vor.u32 %v13582_v1, %v9160_v2  ;;  %v10643_v1 = vor.u32 %v13952_v60, %v10640_v50  ;;  %v10963_v2 = vor.u32 %v14032_v54, %v10960_v57  ;;  %v10520_v35 = vld [vmem:[#allocation2 + $0xb38] sm:$0xf0]  ;;  %v13912_v60 = vld [vmem:[#allocation2 + $0xac4] sm:$0xf] }
 0x2a0   : > { %5173 = vmatpush.bf16.msra.mxu2 %v9963_v4  ;;  %v4909_v4 = vpop.f32.mrf.mxu1  ;;  %v14162_v53 = vld [vmem:[#allocation2 + $0x1294] sm:$0xf]  ;;  %v11480_v45 = vld [vmem:[#allocation2 + $0x12b8] sm:$0xf0]  ;;  %v10480_v50 = vld [vmem:[#allocation2 + $0xae8] sm:$0xf0] }
 0x2a1   : > { %5186 = vmatpush.bf16.msra.mxu3 %v10283_v9  ;;  %v9800_v9 = vld [vmem:[#allocation2 + $0x598] sm:$0xf0]  ;;  %v13942_v4 = vld [vmem:[#allocation2 + $0xbb4] sm:$0xf]  ;;  %v13992_v54 = vld [vmem:[#allocation2 + $0xd44] sm:$0xf]  ;;  %v11483_v57 = vor.u32 %v14162_v53, %v11480_v45 }
 0x2a2   : > { %5148 = vmatpush.bf16.msra.mxu0 %v9283_v16  ;;  %v9483_v16 = vor.u32 %v13662_v6, %v9480_v7  ;;  %v9803_v17 = vor.u32 %v13742_v8, %v9800_v9  ;;  %v4922_v25 = vpop.f32.mrf.mxu2  ;;  %v14022_v7 = vld [vmem:[#allocation2 + $0xe34] sm:$0xf]  ;;  %v10920_v9 = vld [vmem:[#allocation2 + $0xe58] sm:$0xf0] }
 0x2a3   : > { %5161 = vmatpush.bf16.msra.mxu1 %v9603_v23  ;;  %v13652_v23 = vld [vmem:[#allocation2 + $0x2a4] sm:$0xf]  ;;  %v4935_v3 = vpop.f32.mrf.mxu3  ;;  %v14349_v53 = vld [vmem:[%s15155_s16 + $0x464] sm:$0xf0] }
 0x2a4   : > { %5174 = vmatpush.bf16.msra.mxu2 %v9923_v27  ;;  %v9440_v27 = vld [vmem:[#allocation2 + $0x2c8] sm:$0xf0] }
 0x2a5   : > { %5187 = vmatpush.bf16.msra.mxu3 %v10243_v31  ;;  %v10080_v31 = vld [vmem:[#allocation2 + $0x7c8] sm:$0xf0] }
 0x2a6   : > { %5149 = vmatpush.bf16.msra.mxu0 %v9243_v51  ;;  %v14122_v51 = vld [vmem:[#allocation2 + $0x1154] sm:$0xf]  ;;  %v10083_v46 = vor.u32 %v13812_v30, %v10080_v31  ;;  %v14172_v30 = vld [vmem:[#allocation2 + $0x12e4] sm:$0xf] }
 0x2a7   : > { %5162 = vmatpush.bf16.msra.mxu1 %v9563_v39  ;;  %v11320_v39 = vld [vmem:[#allocation2 + $0x1178] sm:$0xf0] }
 0x2a8   : > { %5175 = vmatpush.bf16.msra.mxu2 %v9883_v40  ;;  %v9443_v40 = vor.u32 %v13652_v23, %v9440_v27  ;;  %v11323_v48 = vor.u32 %v14122_v51, %v11320_v39  ;;  %v11243_v23 = vor.u32 %v14102_v10, %v11240_v11  ;;  %v10560_v27 = vld [vmem:[#allocation2 + $0xb88] sm:$0xf0]  ;;  %v10840_v39 = vld [vmem:[#allocation2 + $0xdb8] sm:$0xf0]  ;;  %v13902_v10 = vld [vmem:[#allocation2 + $0xa74] sm:$0xf] }
 0x2a9   : > { %5188 = vmatpush.bf16.msra.mxu3 %v10203_v43  ;;  %v10683_v43 = vor.u32 %v13962_v32, %v10680_v34  ;;  %v13922_v34 = vld [vmem:[#allocation2 + $0xb14] sm:$0xf]  ;;  %v10440_v11 = vld [vmem:[#allocation2 + $0xa98] sm:$0xf0] }
 0x2aa   : > { %5150 = vmatpush.bf16.msra.mxu0 %v9203_v21  ;;  %v14112_v21 = vld [vmem:[#allocation2 + $0x1104] sm:$0xf] }
 0x2ab   : > { %5163 = vmatpush.bf16.msra.mxu1 %v9523_v62  ;;  %v14192_v62 = vld [vmem:[#allocation2 + $0x1384] sm:$0xf]  ;;  %v11283_v6 = vor.u32 %v14112_v21, %v11280_v61  ;;  %v10800_v21 = vld [vmem:[#allocation2 + $0xd68] sm:$0xf0] }
 0x2ac   : > { %5176 = vmatpush.bf16.msra.mxu2 %v9843_v0  ;;  %v11600_v0 = vld [vmem:[#allocation2 + $0x13a8] sm:$0xf0]  ;;  %v14072_v61 = vld [vmem:[#allocation2 + $0xfc4] sm:$0xf] }
 0x2ad   : > { %5189 = vmatpush.bf16.msra.mxu3 %v10163_v5  ;;  %v10600_v5 = vld [vmem:[#allocation2 + $0xbd8] sm:$0xf0]  ;;  %v11603_v8 = vor.u32 %v14192_v62, %v11600_v0  ;;  %v11120_v62 = vld [vmem:[#allocation2 + $0xfe8] sm:$0xf0] }
 0x2ae   : > { %5151 = vmatpush.bf16.msra.mxu0 %v9163_v12  ;;  %v14182_v12 = vld [vmem:[#allocation2 + $0x1334] sm:$0xf]  ;;  %v10603_v15 = vor.u32 %v13942_v4, %v10600_v5  ;;  %v10483_v4 = vor.u32 %v13912_v60, %v10480_v50 }
 0x2af   : > { %5164 = vmatpush.bf16.msra.mxu1 %v9483_v16  ;;  %v13932_v16 = vld [vmem:[#allocation2 + $0xb64] sm:$0xf]  ;;  %v11563_v25 = vor.u32 %v14182_v12, %v11560_v14  ;;  %v13982_v12 = vld [vmem:[#allocation2 + $0xcf4] sm:$0xf] }
 0x2b0   : > { %5177 = vmatpush.bf16.msra.mxu2 %v9803_v17  ;;  %v10923_v17 = vor.u32 %v14022_v7, %v10920_v9  ;;  %v10563_v31 = vor.u32 %v13932_v16, %v10560_v27  ;;  %v11123_v9 = vor.u32 %v14072_v61, %v11120_v62  ;;  %v10760_v16 = vld [vmem:[#allocation2 + $0xd18] sm:$0xf0]  ;;  %v14142_v27 = vld [vmem:[#allocation2 + $0x11f4] sm:$0xf]  ;;  %v14295_v62 = vld [vmem:[%s15155_s16 + $0x2b4] sm:$0xf0] }
 0x2b1   : > { %5190 = vmatpush.bf16.msra.mxu3 %v10123_v28  ;;  %v10880_v28 = vld [vmem:[#allocation2 + $0xe08] sm:$0xf0] }
 0x2b2   : > { %5152 = vmatpush.bf16.msra.mxu0 %v9123_v36  ;;  %v4946_v3 = vpop.f32.mrf.mxu0  ;;  %v14002_v36 = vld [vmem:[#allocation2 + $0xd94] sm:$0xf] }
 0x2b3   : > { %5165 = vmatpush.bf16.msra.mxu1 %v9443_v40  ;;  %v4947_v37 = vadd.f32 %v4946_v3, %v968_v26  ;;  %v4959_v51 = vpop.f32.mrf.mxu1  ;;  %v14082_v40 = vld [vmem:[#allocation2 + $0x1014] sm:$0xf]  ;;  %v10443_v26 = vor.u32 %v13902_v10, %v10440_v11  ;;  %v11958_v11 = vld [vmem:[%s15155_s16 + $0x270] sm:$0xf] }
 0x2b4   : > { %5178 = vmatpush.bf16.msra.mxu2 %v9763_v24  ;;  %v11160_v24 = vld [vmem:[#allocation2 + $0x1038] sm:$0xf0]  ;;  %v14241_v10 = vld [vmem:[%s15155_s16 + $0x104] sm:$0xf0] }
 0x2b5   : > { %5191 = vmatpush.bf16.msra.mxu3 %v10083_v46  ;;  %5153 = vmatmul.bf16.vlgmr.msra.gmra.mxu0 %v15169_v19  ;;  %v11200_v19 = vld [vmem:[#allocation2 + $0x1088] sm:$0xf0]  ;;  %v4960_v46 = vadd.f32 %v4959_v51, %v4947_v37  ;;  %v11814_v37 = vld [vmem:[%s15155_s16 + $0x150] sm:$0xf]  ;;  %v14253_v51 = vld [vmem:[%s15155_s16 + $0x164] sm:$0xf0] }
 0x2b6   : > { %5197 = vmatpush.bf16.msrb.mxu0 %v10683_v43  ;;  %5166 = vmatmul.bf16.vlgmr.msra.gmra.mxu1 %v15173_v22  ;;  %v11203_v32 = vor.u32 %v14092_v29, %v11200_v19  ;;  %v10523_v43 = vor.u32 %v13922_v34, %v10520_v35  ;;  %v10763_v29 = vor.u32 %v13982_v12, %v10760_v16  ;;  %v14132_v34 = vld [vmem:[#allocation2 + $0x11a4] sm:$0xf]  ;;  %v11360_v35 = vld [vmem:[#allocation2 + $0x11c8] sm:$0xf0]  ;;  %v14337_v16 = vld [vmem:[%s15155_s16 + $0x404] sm:$0xf0] }
 0x2b7   : > { %5210 = vmatpush.bf16.msrb.mxu1 %v11003_v47  ;;  %5179 = vmatmul.bf16.vlgmr.msra.gmra.mxu2 %v15167_v18  ;;  %v14012_v18 = vld [vmem:[#allocation2 + $0xde4] sm:$0xf]  ;;  %v10843_v47 = vor.u32 %v14002_v36, %v10840_v39  ;;  %v11815_v60 = vor.u32 %v14253_v51, %v11814_v37  ;;  %v14277_v51 = vld [vmem:[%s15155_s16 + $0x224] sm:$0xf0] }
 0x2b8   : > { %5223 = vmatpush.bf16.msrb.mxu2 %v11323_v48  ;;  %5192 = vmatmul.bf16.vlgmr.msra.gmra.mxu3 %v15171_v20  ;;  %v11520_v20 = vld [vmem:[#allocation2 + $0x1308] sm:$0xf0]  ;;  %v10883_v22 = vor.u32 %v14012_v18, %v10880_v28  ;;  %v11163_v48 = vor.u32 %v14082_v40, %v11160_v24  ;;  %v11400_v18 = vld [vmem:[#allocation2 + $0x1218] sm:$0xf0]  ;;  %v14301_v40 = vld [vmem:[%s15155_s16 + $0x2e4] sm:$0xf0] }
 0x2b9   : > { %5236 = vmatpush.bf16.msrb.mxu3 %v11643_v55  ;;  %v11523_v58 = vor.u32 %v14172_v30, %v11520_v20  ;;  %v10400_v28 = vld [vmem:[#allocation2 + $0xa48] sm:$0xf0]  ;;  %v13972_v30 = vld [vmem:[#allocation2 + $0xca4] sm:$0xf]  ;;  %v12198_v24 = vld [vmem:[%s15155_s16 + $0x450] sm:$0xf] }
 0x2ba   : > { %5198 = vmatpush.bf16.msrb.mxu0 %v10643_v1  ;;  %v4972_v55 = vpop.f32.mrf.mxu2  ;;  %v4948_v7 = vpop.f32.mrf.mxu0  ;;  %v10720_v20 = vld [vmem:[#allocation2 + $0xcc8] sm:$0xf0] }
 0x2bb   : > { %5211 = vmatpush.bf16.msrb.mxu1 %v10963_v2  ;;  %v4973_v0 = vadd.f32 %v4972_v55, %v4960_v46  ;;  %v4985_v1 = vpop.f32.mrf.mxu3  ;;  %v14152_v2 = vld [vmem:[#allocation2 + $0x1244] sm:$0xf]  ;;  %v4961_v14 = vpop.f32.mrf.mxu1  ;;  %v10723_v45 = vor.u32 %v13972_v30, %v10720_v20  ;;  %v11790_v55 = vld [vmem:[%s15155_s16 + $0x120] sm:$0xf] }
 0x2bc   : > { %5224 = vmatpush.bf16.msrb.mxu2 %v11283_v6  ;;  %v11440_v6 = vld [vmem:[#allocation2 + $0x1268] sm:$0xf0]  ;;  %v14289_v14 = vld [vmem:[%s15155_s16 + $0x284] sm:$0xf0]  ;;  %v14379_v30 = vld [vmem:[%s15155_s16 + $0x554] sm:$0xf0] }
 0x2bd   : > { %5237 = vmatpush.bf16.msrb.mxu3 %v11603_v8  ;;  %v15316_v5 = vadd.f32 %v4985_v1, %v4973_v0  ;;  %v10803_v8 = vor.u32 %v13992_v54, %v10800_v21  ;;  %v12199_v54 = vor.u32 %v14349_v53, %v12198_v24  ;;  %v11982_v21 = vld [vmem:[%s15155_s16 + $0x2a0] sm:$0xf]  ;;  %v14343_v1 = vld [vmem:[%s15155_s16 + $0x434] sm:$0xf0]  ;;  %v14373_v24 = vld [vmem:[%s15155_s16 + $0x524] sm:$0xf0] }
 0x2be   : > { %5199 = vmatpush.bf16.msrb.mxu0 %v10603_v15  ;;  %v11443_v15 = vor.u32 %v14152_v2, %v11440_v6  ;;  %v12174_v0 = vld [vmem:[%s15155_s16 + $0x420] sm:$0xf]  ;;  %v14391_v6 = vld [vmem:[%s15155_s16 + $0x5b4] sm:$0xf0]  ;;  %v11983_v7 = vor.u32 %v14295_v62, %v11982_v21 }
 0x2bf   : > { %5212 = vmatpush.bf16.msrb.mxu1 %v10923_v17  ;;  %v14062_v17 = vld [vmem:[#allocation2 + $0xf74] sm:$0xf]  ;;  %v12366_v2 = vld [vmem:[%s15155_s16 + $0x5a0] sm:$0xf]  ;;  %v14367_v62 = vld [vmem:[%s15155_s16 + $0x4f4] sm:$0xf0] }
 0x2c0   : > { %5225 = vmatpush.bf16.msrb.mxu2 %v11243_v23  ;;  %v11080_v23 = vld [vmem:[#allocation2 + $0xf98] sm:$0xf0]  ;;  %v12367_v12 = vor.u32 %v14391_v6, %v12366_v2 }
 0x2c1   : > { %5238 = vmatpush.bf16.msrb.mxu3 %v11563_v25  ;;  %v13892_v25 = vld [vmem:[#allocation2 + $0xa24] sm:$0xf]  ;;  %v11083_v19 = vor.u32 %v14062_v17, %v11080_v23  ;;  %v12342_v17 = vld [vmem:[%s15155_s16 + $0x570] sm:$0xf]  ;;  %v14385_v23 = vld [vmem:[%s15155_s16 + $0x584] sm:$0xf0] }
 0x2c2   : > { %5200 = vmatpush.bf16.msrb.mxu0 %v10563_v31  ;;  %v14052_v31 = vld [vmem:[#allocation2 + $0xf24] sm:$0xf]  ;;  %v4974_v3 = vpop.f32.mrf.mxu2  ;;  %v10403_v39 = vor.u32 %v13892_v25, %v10400_v28 }
 0x2c3   : > { %5213 = vmatpush.bf16.msrb.mxu1 %v10883_v22  ;;  %v11403_v22 = vor.u32 %v14142_v27, %v11400_v18  ;;  %v4987_v36 = vpop.f32.mrf.mxu3  ;;  %v11959_v27 = vor.u32 %v14289_v14, %v11958_v11  ;;  %v14235_v25 = vld [vmem:[%s15155_s16 + $0xd4] sm:$0xf0]  ;;  %v14265_v11 = vld [vmem:[%s15155_s16 + $0x1c4] sm:$0xf0] }
 0x2c4   : > { %5226 = vmatpush.bf16.msrb.mxu2 %v11203_v32  ;;  %v11040_v32 = vld [vmem:[#allocation2 + $0xf48] sm:$0xf0]  ;;  %v14283_v28 = vld [vmem:[%s15155_s16 + $0x254] sm:$0xf0]  ;;  %v14313_v14 = vld [vmem:[%s15155_s16 + $0x344] sm:$0xf0] }
 0x2c5   : > { %5239 = vmatpush.bf16.msrb.mxu3 %v11523_v58  ;;  %v12006_v58 = vld [vmem:[%s15155_s16 + $0x2d0] sm:$0xf]  ;;  %v11043_v46 = vor.u32 %v14052_v31, %v11040_v32 }
 0x2c6   : > { %5201 = vmatpush.bf16.msrb.mxu0 %v10523_v43  ;;  %v12390_v43 = vld [vmem:[%s15155_s16 + $0x5d0] sm:$0xf]  ;;  %v12007_v50 = vor.u32 %v14301_v40, %v12006_v58 }
 0x2c7   : > { %5214 = vmatpush.bf16.msrb.mxu1 %v10843_v47  ;;  %v14397_v47 = vld [vmem:[%s15155_s16 + $0x5e4] sm:$0xf0]  ;;  %v11718_v32 = vld [vmem:[%s15155_s16 + $0x90] sm:$0xf] }
 0x2c8   : > { %5227 = vmatpush.bf16.msrb.mxu2 %v11163_v48  ;;  %v11363_v48 = vor.u32 %v14132_v34, %v11360_v35  ;;  %v12391_v61 = vor.u32 %v14397_v47, %v12390_v43  ;;  %v14229_v34 = vld [vmem:[%s15155_s16 + $0xa4] sm:$0xf0]  ;;  %v11910_v35 = vld [vmem:[%s15155_s16 + $0x210] sm:$0xf]  ;;  %v11694_v43 = vld [vmem:[%s15155_s16 + $0x60] sm:$0xf] }
 0x2c9   : > { %5240 = vmatpush.bf16.msrb.mxu3 %v11483_v57  ;;  %v14247_v57 = vld [vmem:[%s15155_s16 + $0x134] sm:$0xf0]  ;;  %v12102_v58 = vld [vmem:[%s15155_s16 + $0x390] sm:$0xf]  ;;  %v11719_v53 = vor.u32 %v14229_v34, %v11718_v32  ;;  %v14493_v34 = vld [vmem:[%s15155_s16 + $0x8e4] sm:$0xf0] }
 0x2ca   : > { %5202 = vmatpush.bf16.msrb.mxu0 %v10483_v4  ;;  %v11791_v4 = vor.u32 %v14247_v57, %v11790_v55  ;;  %v12294_v40 = vld [vmem:[%s15155_s16 + $0x510] sm:$0xf]  ;;  %v14223_v47 = vld [vmem:[%s15155_s16 + $0x74] sm:$0xf0]  ;;  %v12078_v55 = vld [vmem:[%s15155_s16 + $0x360] sm:$0xf] }
 0x2cb   : > { %5215 = vmatpush.bf16.msrb.mxu1 %v10803_v8  ;;  %v12175_v8 = vor.u32 %v14343_v1, %v12174_v0  ;;  %v14319_v57 = vld [vmem:[%s15155_s16 + $0x374] sm:$0xf0]  ;;  %v11695_v0 = vor.u32 %v14223_v47, %v11694_v43 }
 0x2cc   : > { %5228 = vmatpush.bf16.msrb.mxu2 %v11123_v9  ;;  %v11766_v9 = vld [vmem:[%s15155_s16 + $0xf0] sm:$0xf]  ;;  %v12079_v6 = vor.u32 %v14319_v57, %v12078_v55  ;;  %v14487_v57 = vld [vmem:[%s15155_s16 + $0x8b4] sm:$0xf0] }
 0x2cd   : > { %5241 = vmatpush.bf16.msrb.mxu3 %v11443_v15  ;;  %v12150_v15 = vld [vmem:[%s15155_s16 + $0x3f0] sm:$0xf] }
 0x2ce   : > { %5203 = vmatpush.bf16.msrb.mxu0 %v10443_v26  ;;  %v12151_v18 = vor.u32 %v14337_v16, %v12150_v15  ;;  %v11742_v26 = vld [vmem:[%s15155_s16 + $0xc0] sm:$0xf]  ;;  %v12246_v15 = vld [vmem:[%s15155_s16 + $0x4b0] sm:$0xf]  ;;  %v14361_v16 = vld [vmem:[%s15155_s16 + $0x4c4] sm:$0xf0] }
 0x2cf   : > { %5216 = vmatpush.bf16.msrb.mxu1 %v10763_v29  ;;  %v12126_v29 = vld [vmem:[%s15155_s16 + $0x3c0] sm:$0xf]  ;;  %v11743_v20 = vor.u32 %v14235_v25, %v11742_v26  ;;  %v14259_v25 = vld [vmem:[%s15155_s16 + $0x194] sm:$0xf0] }
 0x2d0   : > { %5229 = vmatpush.bf16.msrb.mxu2 %v11083_v19  ;;  %v14331_v19 = vld [vmem:[%s15155_s16 + $0x3d4] sm:$0xf0]  ;;  %v11838_v26 = vld [vmem:[%s15155_s16 + $0x180] sm:$0xf] }
 0x2d1   : > { %5242 = vmatpush.bf16.msrb.mxu3 %v11403_v22  ;;  %v12127_v22 = vor.u32 %v14331_v19, %v12126_v29  ;;  %v14307_v29 = vld [vmem:[%s15155_s16 + $0x314] sm:$0xf0]  ;;  %v12222_v19 = vld [vmem:[%s15155_s16 + $0x480] sm:$0xf] }
 0x2d2   : > { %5204 = vmatpush.bf16.msrb.mxu0 %v10403_v39  ;;  %v15354_v31 = vpop.f32.mrf.mxu0  ;;  %v14325_v39 = vld [vmem:[%s15155_s16 + $0x3a4] sm:$0xf0] }
 0x2d3   : > { %5217 = vmatpush.bf16.msrb.mxu1 %v10723_v45  ;;  %v15359_v36 = vpop.f32.mrf.mxu1  ;;  %v11911_v45 = vor.u32 %v14277_v51, %v11910_v35  ;;  %v12966_v35 = vld [vmem:[%s15155_s16 + $0xa50] sm:$0xf]  ;;  %v5249_v51 = vmax.f32 %v15219_v52, 0.0 }
 0x2d4   : > { %5230 = vmatpush.bf16.msrb.mxu2 %v11043_v46  ;;  %v12103_v46 = vor.u32 %v14325_v39, %v12102_v58  ;;  %v5250_v58 = vmax.f32 %v15233_v49, 0.0  ;;  %v11839_v39 = vor.u32 %v14259_v25, %v11838_v26  ;;  %v12510_v26 = vld [vmem:[%s15155_s16 + $0x6c0] sm:$0xf]  ;;  %v14427_v25 = vld [vmem:[%s15155_s16 + $0x6d4] sm:$0xf0] }
 0x2d5   : > { %5243 = vmatpush.bf16.msrb.mxu3 %v11363_v48  ;;  %5205 = vmatmul.bf16.vlgmr.msrb.gmra.mxu0 %v15187_v41  ;;  %v11767_v41 = vor.u32 %v14241_v10, %v11766_v9  ;;  %v11886_v48 = vld [vmem:[%s15155_s16 + $0x1e0] sm:$0xf] }
 0x2d6   : > { %8163 = vmatpush.bf16.msra.mxu0 %v11815_v60  ;;  %5218 = vmatmul.bf16.vlgmr.msrb.gmra.mxu1 %v15191_v44  ;;  %v11934_v44 = vld [vmem:[%s15155_s16 + $0x240] sm:$0xf] }
 0x2d7   : > { %8176 = vmatpush.bf16.msra.mxu1 %v12007_v50  ;;  %5231 = vmatmul.bf16.vlgmr.msrb.gmra.mxu2 %v15185_v38  ;;  %v12343_v38 = vor.u32 %v14385_v23, %v12342_v17  ;;  %v11935_v3 = vor.u32 %v14283_v28, %v11934_v44  ;;  %v12295_v50 = vor.u32 %v14373_v24, %v12294_v40  ;;  %v11646_v23 = vld [vmem:[%s15155_s16] sm:$0xf]  ;;  %v13158_v24 = vld [vmem:[%s15155_s16 + $0xbd0] sm:$0xf] }
 0x2d8   : > { %8189 = vmatpush.bf16.msra.mxu2 %v12199_v54  ;;  %5244 = vmatmul.bf16.vlgmr.msrb.gmra.mxu3 %v15189_v42  ;;  %v12318_v42 = vld [vmem:[%s15155_s16 + $0x540] sm:$0xf]  ;;  %v14271_v54 = vld [vmem:[%s15155_s16 + $0x1f4] sm:$0xf0]  ;;  %v12247_v28 = vor.u32 %v14361_v16, %v12246_v15  ;;  %v12918_v15 = vld [vmem:[%s15155_s16 + $0x9f0] sm:$0xf] }
 0x2d9   : > { %8202 = vmatpush.bf16.msra.mxu3 %v12391_v61  ;;  %v12319_v37 = vor.u32 %v14379_v30, %v12318_v42  ;;  %v12270_v61 = vld [vmem:[%s15155_s16 + $0x4e0] sm:$0xf]  ;;  %v11887_v2 = vor.u32 %v14271_v54, %v11886_v48  ;;  %v14355_v42 = vld [vmem:[%s15155_s16 + $0x494] sm:$0xf0]  ;;  %v14529_v16 = vld [vmem:[%s15155_s16 + $0xa04] sm:$0xf0] }
 0x2da   : > { %8164 = vmatpush.bf16.msra.mxu0 %v11791_v4  ;;  %v15369_v60 = vpop.f32.mrf.mxu2  ;;  %v5000_v1 = vpop.f32.mrf.mxu0  ;;  %v11670_v4 = vld [vmem:[%s15155_s16 + $0x30] sm:$0xf]  ;;  %v12271_v10 = vor.u32 %v14367_v62, %v12270_v61  ;;  %v12030_v44 = vld [vmem:[%s15155_s16 + $0x300] sm:$0xf]  ;;  %v12223_v52 = vor.u32 %v14355_v42, %v12222_v19  ;;  %v14535_v62 = vld [vmem:[%s15155_s16 + $0xa34] sm:$0xf0] }
 0x2db   : > { %8177 = vmatpush.bf16.msra.mxu1 %v11983_v7  ;;  %v15374_v21 = vpop.f32.mrf.mxu3  ;;  %v14217_v7 = vld [vmem:[%s15155_s16 + $0x44] sm:$0xf0]  ;;  %v5013_v9 = vpop.f32.mrf.mxu1  ;;  %v12031_v40 = vor.u32 %v14307_v29, %v12030_v44  ;;  %v12558_v48 = vld [vmem:[%s15155_s16 + $0x720] sm:$0xf]  ;;  %v15416_v1 = vpack.c.bf16 %v5250_v58, %v5250_v58  ;;  %v14523_v19 = vld [vmem:[%s15155_s16 + $0x9d4] sm:$0xf0]  ;;  %v4999_v58 = vadd.f32 %v15354_v31, %v15316_v5 }
 0x2dc   : > { %8190 = vmatpush.bf16.msra.mxu2 %v12175_v8  ;;  %v11862_v8 = vld [vmem:[%s15155_s16 + $0x1b0] sm:$0xf]  ;;  %v11671_v17 = vor.u32 %v14217_v7, %v11670_v4  ;;  %v12750_v54 = vld [vmem:[%s15155_s16 + $0x8a0] sm:$0xf]  ;;  %v14433_v9 = vld [vmem:[%s15155_s16 + $0x704] sm:$0xf0] }
 0x2dd   : > { %8203 = vmatpush.bf16.msra.mxu3 %v12367_v12  ;;  %v12054_v12 = vld [vmem:[%s15155_s16 + $0x330] sm:$0xf]  ;;  %v12942_v61 = vld [vmem:[%s15155_s16 + $0xa20] sm:$0xf]  ;;  %v12751_v4 = vor.u32 %v14487_v57, %v12750_v54  ;;  %v14415_v31 = vld [vmem:[%s15155_s16 + $0x674] sm:$0xf0] }
 0x2de   : > { %8165 = vmatpush.bf16.msra.mxu0 %v11767_v41  ;;  %v14211_v41 = vld [vmem:[%s15155_s16 + $0x14] sm:$0xf0]  ;;  %v12943_v7 = vor.u32 %v14535_v62, %v12942_v61  ;;  %v12702_v44 = vld [vmem:[%s15155_s16 + $0x840] sm:$0xf] }
 0x2df   : > { %8178 = vmatpush.bf16.msra.mxu1 %v11959_v27  ;;  %v11863_v27 = vor.u32 %v14265_v11, %v11862_v8  ;;  %v11647_v32 = vor.u32 %v14211_v41, %v11646_v23  ;;  %v12534_v8 = vld [vmem:[%s15155_s16 + $0x6f0] sm:$0xf]  ;;  %v14577_v23 = vld [vmem:[%s15155_s16 + $0xb84] sm:$0xf0]  ;;  %v12894_v29 = vld [vmem:[%s15155_s16 + $0x9c0] sm:$0xf] }
 0x2e0   : > { %8191 = vmatpush.bf16.msra.mxu2 %v12151_v18  ;;  %v12055_v18 = vor.u32 %v14313_v14, %v12054_v12  ;;  %v14481_v14 = vld [vmem:[%s15155_s16 + $0x884] sm:$0xf0]  ;;  %v12535_v41 = vor.u32 %v14433_v9, %v12534_v8  ;;  %v13086_v42 = vld [vmem:[%s15155_s16 + $0xb40] sm:$0xf]  ;;  %v14511_v61 = vld [vmem:[%s15155_s16 + $0x974] sm:$0xf0] }
 0x2e1   : > { %8204 = vmatpush.bf16.msra.mxu3 %v12343_v38  ;;  %v12462_v5 = vld [vmem:[%s15155_s16 + $0x660] sm:$0xf]  ;;  %v12438_v9 = vld [vmem:[%s15155_s16 + $0x630] sm:$0xf] }
 0x2e2   : > { %8166 = vmatpush.bf16.msra.mxu0 %v11743_v20  ;;  %v5026_v38 = vpop.f32.mrf.mxu2  ;;  %v12582_v20 = vld [vmem:[%s15155_s16 + $0x750] sm:$0xf]  ;;  %v12846_v57 = vld [vmem:[%s15155_s16 + $0x960] sm:$0xf] }
 0x2e3   : > { %8179 = vmatpush.bf16.msra.mxu1 %v11935_v3  ;;  %v5039_v30 = vpop.f32.mrf.mxu3  ;;  %v14445_v3 = vld [vmem:[%s15155_s16 + $0x764] sm:$0xf0]  ;;  %v12847_v8 = vor.u32 %v14511_v61, %v12846_v57  ;;  %v14244_v61 = vld [vmem:[%s15155_s16 + $0x124] sm:$0xf] }
 0x2e4   : > { %8192 = vmatpush.bf16.msra.mxu2 %v12127_v22  ;;  %v12774_v22 = vld [vmem:[%s15155_s16 + $0x8d0] sm:$0xf]  ;;  %v12583_v43 = vor.u32 %v14445_v3, %v12582_v20  ;;  %v14571_v30 = vld [vmem:[%s15155_s16 + $0xb54] sm:$0xf0]  ;;  %v12511_v20 = vor.u32 %v14427_v25, %v12510_v26  ;;  %v5253_v25 = vmax.f32 %v15279_v13, 0.0 }
 0x2e5   : > { %8205 = vmatpush.bf16.msra.mxu3 %v12319_v37  ;;  %v14541_v37 = vld [vmem:[%s15155_s16 + $0xa64] sm:$0xf0]  ;;  %v12775_v49 = vor.u32 %v14493_v34, %v12774_v22  ;;  %v12486_v34 = vld [vmem:[%s15155_s16 + $0x690] sm:$0xf] }
 0x2e6   : > { %8167 = vmatpush.bf16.msra.mxu0 %v11719_v53  ;;  %v14589_v53 = vld [vmem:[%s15155_s16 + $0xbe4] sm:$0xf0]  ;;  %v12967_v47 = vor.u32 %v14541_v37, %v12966_v35  ;;  %v12678_v37 = vld [vmem:[%s15155_s16 + $0x810] sm:$0xf] }
 0x2e7   : > { %8180 = vmatpush.bf16.msra.mxu1 %v11911_v45  ;;  %v5251_v45 = vmax.f32 %v15249_v56, 0.0  ;;  %v13159_v55 = vor.u32 %v14589_v53, %v13158_v24  ;;  %v13134_v56 = vld [vmem:[%s15155_s16 + $0xba0] sm:$0xf]  ;;  %v14421_v35 = vld [vmem:[%s15155_s16 + $0x6a4] sm:$0xf0] }
 0x2e8   : > { %8193 = vmatpush.bf16.msra.mxu2 %v12103_v46  ;;  %v5252_v46 = vmax.f32 %v15263_v63, 0.0  ;;  %v14583_v63 = vld [vmem:[%s15155_s16 + $0xbb4] sm:$0xf0]  ;;  %v12870_v24 = vld [vmem:[%s15155_s16 + $0x990] sm:$0xf] }
 0x2e9   : > { %8206 = vmatpush.bf16.msra.mxu3 %v12295_v50  ;;  %v14439_v50 = vld [vmem:[%s15155_s16 + $0x734] sm:$0xf0]  ;;  %v13135_v12 = vor.u32 %v14583_v63, %v13134_v56  ;;  %v14517_v53 = vld [vmem:[%s15155_s16 + $0x9a4] sm:$0xf0]  ;;  %v13038_v56 = vld [vmem:[%s15155_s16 + $0xae0] sm:$0xf] }
 0x2ea   : > { %8168 = vmatpush.bf16.msra.mxu0 %v11695_v0  ;;  %v15414_v0 = vpack.c.bf16 %v5249_v51, %v5249_v51  ;;  %v15423_v11 = vpack.c.bf16 %v5252_v46, %v5252_v46  ;;  %v14565_v46 = vld [vmem:[%s15155_s16 + $0xb24] sm:$0xf0]  ;;  %v14559_v63 = vld [vmem:[%s15155_s16 + $0xaf4] sm:$0xf0] }
 0x2eb   : > { %8181 = vmatpush.bf16.msra.mxu1 %v11887_v2  ;;  %v12559_v2 = vor.u32 %v14439_v50, %v12558_v48  ;;  %v5012_v50 = vadd.f32 %v15359_v36, %v4999_v58  ;;  %v13350_v58 = vld [vmem:[%s15155_s16 + $0xd50] sm:$0xf] }
 0x2ec   : > { %8194 = vmatpush.bf16.msra.mxu2 %v12079_v6  ;;  %v15418_v6 = vpack.c.bf16 %v5251_v45, %v5251_v45  ;;  %v13062_v45 = vld [vmem:[%s15155_s16 + $0xb10] sm:$0xf] }
 0x2ed   : > { %8207 = vmatpush.bf16.msra.mxu3 %v12271_v10  ;;  %v12726_v10 = vld [vmem:[%s15155_s16 + $0x870] sm:$0xf]  ;;  %v13063_v54 = vor.u32 %v14565_v46, %v13062_v45  ;;  %v11816_v45 = vld [vmem:[%s15155_s16 + $0x168] sm:$0xf0]  ;;  %v14298_v46 = vld [vmem:[%s15155_s16 + $0x2d4] sm:$0xf] }
 0x2ee   : > { %8169 = vmatpush.bf16.msra.mxu0 %v11671_v17  ;;  %v13110_v17 = vld [vmem:[%s15155_s16 + $0xb70] sm:$0xf] }
 0x2ef   : > { %8182 = vmatpush.bf16.msra.mxu1 %v11863_v27  ;;  %v12727_v27 = vor.u32 %v14481_v14, %v12726_v10  ;;  %v13111_v38 = vor.u32 %v14577_v23, %v13110_v17  ;;  %v14409_v10 = vld [vmem:[%s15155_s16 + $0x644] sm:$0xf0]  ;;  %v12822_v23 = vld [vmem:[%s15155_s16 + $0x930] sm:$0xf] }
 0x2f0   : > { %8195 = vmatpush.bf16.msra.mxu2 %v12055_v18  ;;  %v12919_v18 = vor.u32 %v14529_v16, %v12918_v15  ;;  %v5025_v15 = vadd.f32 %v15369_v60, %v5012_v50  ;;  %v13039_v16 = vor.u32 %v14559_v63, %v13038_v56  ;;  %v14457_v17 = vld [vmem:[%s15155_s16 + $0x7c4] sm:$0xf0]  ;;  %v12414_v60 = vld [vmem:[%s15155_s16 + $0x600] sm:$0xf]  ;;  %v11792_v63 = vld [vmem:[%s15155_s16 + $0x138] sm:$0xf0] }
 0x2f1   : > { %8208 = vmatpush.bf16.msra.mxu3 %v12247_v28  ;;  %v14475_v28 = vld [vmem:[%s15155_s16 + $0x854] sm:$0xf0]  ;;  %v13326_v50 = vld [vmem:[%s15155_s16 + $0xd20] sm:$0xf]  ;;  %v14685_v56 = vld [vmem:[%s15155_s16 + $0xee4] sm:$0xf0] }
 0x2f2   : > { %8170 = vmatpush.bf16.msra.mxu0 %v11647_v32  ;;  %v15442_v3 = vpop.f32.mrf.mxu0  ;;  %v12703_v22 = vor.u32 %v14475_v28, %v12702_v44  ;;  %v12895_v32 = vor.u32 %v14523_v19, %v12894_v29  ;;  %v12439_v44 = vor.u32 %v14409_v10, %v12438_v9  ;;  %v12606_v19 = vld [vmem:[%s15155_s16 + $0x780] sm:$0xf] }
 0x2f3   : > { %8183 = vmatpush.bf16.msra.mxu1 %v11839_v39  ;;  %v15447_v51 = vpop.f32.mrf.mxu1  ;;  %v13087_v39 = vor.u32 %v14571_v30, %v13086_v42  ;;  %v14451_v42 = vld [vmem:[%s15155_s16 + $0x794] sm:$0xf0]  ;;  %v12798_v30 = vld [vmem:[%s15155_s16 + $0x900] sm:$0xf] }
 0x2f4   : > { %8196 = vmatpush.bf16.msra.mxu2 %v12031_v40  ;;  %v14469_v40 = vld [vmem:[%s15155_s16 + $0x824] sm:$0xf0] }
 0x2f5   : > { %8209 = vmatpush.bf16.msra.mxu3 %v12223_v52  ;;  %8171 = vmatmul.bf16.vlgmr.msra.gmra.mxu0 %v15414_v0  ;;  %v12487_v52 = vor.u32 %v14421_v35, %v12486_v34  ;;  %v12990_v34 = vld [vmem:[%s15155_s16 + $0xa80] sm:$0xf]  ;;  %v14547_v35 = vld [vmem:[%s15155_s16 + $0xa94] sm:$0xf0] }
 0x2f6   : > { %8215 = vmatpush.bf16.msrb.mxu0 %v12583_v43  ;;  %8184 = vmatmul.bf16.vlgmr.msra.gmra.mxu1 %v15416_v1  ;;  %v12679_v43 = vor.u32 %v14469_v40, %v12678_v37  ;;  %v14250_v40 = vld [vmem:[%s15155_s16 + $0x154] sm:$0xf] }
 0x2f7   : > { %8228 = vmatpush.bf16.msrb.mxu1 %v12775_v49  ;;  %8197 = vmatmul.bf16.vlgmr.msra.gmra.mxu2 %v15418_v6  ;;  %v12871_v49 = vor.u32 %v14517_v53, %v12870_v24 }
 0x2f8   : > { %8241 = vmatpush.bf16.msrb.mxu2 %v12967_v47  ;;  %8210 = vmatmul.bf16.vlgmr.msra.gmra.mxu3 %v15423_v11  ;;  %v12654_v47 = vld [vmem:[%s15155_s16 + $0x7e0] sm:$0xf] }
 0x2f9   : > { %8254 = vmatpush.bf16.msrb.mxu3 %v13159_v55  ;;  %v14463_v55 = vld [vmem:[%s15155_s16 + $0x7f4] sm:$0xf0] }
 0x2fa   : > { %8216 = vmatpush.bf16.msrb.mxu0 %v12559_v2  ;;  %v15459_v48 = vpop.f32.mrf.mxu2  ;;  %v12463_v2 = vor.u32 %v14415_v31, %v12462_v5  ;;  %v5052_v36 = vpop.f32.mrf.mxu0  ;;  %v12991_v31 = vor.u32 %v14547_v35, %v12990_v34  ;;  %v11936_v34 = vld [vmem:[%s15155_s16 + $0x258] sm:$0xf0] }
 0x2fb   : > { %8229 = vmatpush.bf16.msrb.mxu1 %v12751_v4  ;;  %v15465_v62 = vpop.f32.mrf.mxu3  ;;  %v15469_v4 = vld [vmem:[#allocation5 + $0x8] sm:$0x3]  ;;  %v5065_v14 = vpop.f32.mrf.mxu1 }
 0x2fc   : > { %8242 = vmatpush.bf16.msrb.mxu2 %v12943_v7  ;;  %v12655_v7 = vor.u32 %v14463_v55, %v12654_v47  ;;  %v969_v26 = vperm.slane %v15469_v4, 0  ;;  %v11819_v55 = vor.u32 %v14250_v40, %v11816_v45  ;;  %v11984_v36 = vld [vmem:[%s15155_s16 + $0x2b8] sm:$0xf0]  ;;  %v14625_v14 = vld [vmem:[%s15155_s16 + $0xd04] sm:$0xf0] }
 0x2fd   : > { %8255 = vmatpush.bf16.msrb.mxu3 %v13135_v12  ;;  %v12630_v12 = vld [vmem:[%s15155_s16 + $0x7b0] sm:$0xf] }
 0x2fe   : > { %8217 = vmatpush.bf16.msrb.mxu0 %v12535_v41  ;;  %v14505_v41 = vld [vmem:[%s15155_s16 + $0x944] sm:$0xf0]  ;;  %v12631_v28 = vor.u32 %v14457_v17, %v12630_v12  ;;  %v5051_v24 = vadd.f32 %v15442_v3, %v969_v26  ;;  %v13302_v12 = vld [vmem:[%s15155_s16 + $0xcf0] sm:$0xf]  ;;  %v11768_v26 = vld [vmem:[%s15155_s16 + $0x108] sm:$0xf0] }
 0x2ff   : > { %8230 = vmatpush.bf16.msrb.mxu1 %v12727_v27  ;;  %v13014_v27 = vld [vmem:[%s15155_s16 + $0xab0] sm:$0xf]  ;;  %v12823_v29 = vor.u32 %v14505_v41, %v12822_v23  ;;  %v14238_v41 = vld [vmem:[%s15155_s16 + $0xf4] sm:$0xf] }
 0x300   : > { %8243 = vmatpush.bf16.msrb.mxu2 %v12919_v18  ;;  %v14553_v18 = vld [vmem:[%s15155_s16 + $0xac4] sm:$0xf0] }
 0x301   : > { %8256 = vmatpush.bf16.msrb.mxu3 %v13111_v38  ;;  %v14403_v38 = vld [vmem:[%s15155_s16 + $0x614] sm:$0xf0] }
 0x302   : > { %8218 = vmatpush.bf16.msrb.mxu0 %v12511_v20  ;;  %v5078_v13 = vpop.f32.mrf.mxu2  ;;  %v5038_v20 = vadd.f32 %v15374_v21, %v5025_v15  ;;  %v12415_v53 = vor.u32 %v14403_v38, %v12414_v60  ;;  %v5254_v21 = vmax.f32 %v15293_v33, 0.0  ;;  %v5064_v33 = vadd.f32 %v15447_v51, %v5051_v24  ;;  %v13278_v60 = vld [vmem:[%s15155_s16 + $0xcc0] sm:$0xf]  ;;  %v14619_v38 = vld [vmem:[%s15155_s16 + $0xcd4] sm:$0xf0] }
 0x303   : > { %8231 = vmatpush.bf16.msrb.mxu1 %v12703_v22  ;;  %v13015_v22 = vor.u32 %v14553_v18, %v13014_v27  ;;  %v5091_v37 = vpop.f32.mrf.mxu3  ;;  %v13518_v27 = vld [vmem:[%s15155_s16 + $0xea0] sm:$0xf]  ;;  %v14679_v18 = vld [vmem:[%s15155_s16 + $0xeb4] sm:$0xf0]  ;;  %v13494_v13 = vld [vmem:[%s15155_s16 + $0xe70] sm:$0xf]  ;;  %v13279_v35 = vor.u32 %v14619_v38, %v13278_v60 }
 0x304   : > { %8244 = vmatpush.bf16.msrb.mxu2 %v12895_v32  ;;  %v14499_v32 = vld [vmem:[%s15155_s16 + $0x914] sm:$0xf0]  ;;  %v5256_v5 = vmax.f32 %v5038_v20, 0.0  ;;  %v5077_v23 = vadd.f32 %v15459_v48, %v5064_v33  ;;  %v13303_v48 = vor.u32 %v14625_v14, %v13302_v12  ;;  %v14673_v20 = vld [vmem:[%s15155_s16 + $0xe84] sm:$0xf0] }
 0x305   : > { %8257 = vmatpush.bf16.msrb.mxu3 %v13087_v39  ;;  %v14637_v39 = vld [vmem:[%s15155_s16 + $0xd64] sm:$0xf0]  ;;  %v12799_v3 = vor.u32 %v14499_v32, %v12798_v30  ;;  %v14232_v30 = vld [vmem:[%s15155_s16 + $0xc4] sm:$0xf]  ;;  %v13254_v37 = vld [vmem:[%s15155_s16 + $0xc90] sm:$0xf] }
 0x306   : > { %8219 = vmatpush.bf16.msrb.mxu0 %v12487_v52  ;;  %v12008_v52 = vld [vmem:[%s15155_s16 + $0x2e8] sm:$0xf0]  ;;  %v13351_v47 = vor.u32 %v14637_v39, %v13350_v58  ;;  %v15515_v51 = vpack.c.bf16 %v5256_v5, %v5256_v5  ;;  %v14280_v32 = vld [vmem:[%s15155_s16 + $0x244] sm:$0xf]  ;;  %v14613_v58 = vld [vmem:[%s15155_s16 + $0xca4] sm:$0xf0] }
 0x307   : > { %8232 = vmatpush.bf16.msrb.mxu1 %v12679_v43  ;;  %v5255_v43 = vmax.f32 %v15309_v59, 0.0  ;;  %v12011_v57 = vor.u32 %v14298_v46, %v12008_v52  ;;  %v13542_v59 = vld [vmem:[%s15155_s16 + $0xed0] sm:$0xf]  ;;  %v11939_v24 = vor.u32 %v14280_v32, %v11936_v34  ;;  %v13470_v52 = vld [vmem:[%s15155_s16 + $0xe40] sm:$0xf] }
 0x308   : > { %8245 = vmatpush.bf16.msrb.mxu2 %v12871_v49  ;;  %v12607_v49 = vor.u32 %v14451_v42, %v12606_v19  ;;  %v13543_v15 = vor.u32 %v14685_v56, %v13542_v59  ;;  %v11771_v19 = vor.u32 %v14238_v41, %v11768_v26  ;;  %v14220_v33 = vld [vmem:[%s15155_s16 + $0x64] sm:$0xf]  ;;  %v13446_v59 = vld [vmem:[%s15155_s16 + $0xe10] sm:$0xf]  ;;  %v14661_v56 = vld [vmem:[%s15155_s16 + $0xe24] sm:$0xf0] }
 0x309   : > { %8258 = vmatpush.bf16.msrb.mxu3 %v13063_v54  ;;  %v14631_v54 = vld [vmem:[%s15155_s16 + $0xd34] sm:$0xf0]  ;;  %v15513_v9 = vpack.c.bf16 %v5255_v43, %v5255_v43  ;;  %v11720_v43 = vld [vmem:[%s15155_s16 + $0xa8] sm:$0xf0]  ;;  %v14262_v60 = vld [vmem:[%s15155_s16 + $0x1b4] sm:$0xf] }
 0x30a   : > { %8220 = vmatpush.bf16.msrb.mxu0 %v12463_v2  ;;  %v14292_v2 = vld [vmem:[%s15155_s16 + $0x2a4] sm:$0xf]  ;;  %v13327_v10 = vor.u32 %v14631_v54, %v13326_v50  ;;  %v14607_v50 = vld [vmem:[%s15155_s16 + $0xc74] sm:$0xf0]  ;;  %v11864_v38 = vld [vmem:[%s15155_s16 + $0x1c8] sm:$0xf0] }
 0x30b   : > { %8233 = vmatpush.bf16.msrb.mxu1 %v12655_v7  ;;  %v15509_v7 = vpack.c.bf16 %v5253_v25, %v5253_v25  ;;  %v11987_v17 = vor.u32 %v14292_v2, %v11984_v36  ;;  %v14286_v25 = vld [vmem:[%s15155_s16 + $0x274] sm:$0xf]  ;;  %v14268_v2 = vld [vmem:[%s15155_s16 + $0x1e4] sm:$0xf]  ;;  %v11888_v36 = vld [vmem:[%s15155_s16 + $0x1f8] sm:$0xf0]  ;;  %v11867_v32 = vor.u32 %v14262_v60, %v11864_v38 }
 0x30c   : > { %8246 = vmatpush.bf16.msrb.mxu2 %v12847_v8  ;;  %v15511_v8 = vpack.c.bf16 %v5254_v21, %v5254_v21  ;;  %v14667_v21 = vld [vmem:[%s15155_s16 + $0xe54] sm:$0xf0]  ;;  %v14256_v34 = vld [vmem:[%s15155_s16 + $0x184] sm:$0xf] }
 0x30d   : > { %8259 = vmatpush.bf16.msrb.mxu3 %v13039_v16  ;;  %v11795_v16 = vor.u32 %v14244_v61, %v11792_v63  ;;  %v13471_v54 = vor.u32 %v14667_v21, %v13470_v52  ;;  %v11696_v63 = vld [vmem:[%s15155_s16 + $0x78] sm:$0xf0]  ;;  %v14490_v21 = vld [vmem:[%s15155_s16 + $0x8d4] sm:$0xf] }
 0x30e   : > { %8221 = vmatpush.bf16.msrb.mxu0 %v12439_v44  ;;  %v11960_v44 = vld [vmem:[%s15155_s16 + $0x288] sm:$0xf0]  ;;  %v11699_v41 = vor.u32 %v14220_v33, %v11696_v63  ;;  %v14484_v63 = vld [vmem:[%s15155_s16 + $0x8a4] sm:$0xf] }
 0x30f   : > { %8234 = vmatpush.bf16.msrb.mxu1 %v12631_v28  ;;  %v13519_v28 = vor.u32 %v14679_v18, %v13518_v27  ;;  %v11963_v42 = vor.u32 %v14286_v25, %v11960_v44  ;;  %v11891_v27 = vor.u32 %v14268_v2, %v11888_v36  ;;  %v14214_v18 = vld [vmem:[%s15155_s16 + $0x34] sm:$0xf]  ;;  %v13422_v25 = vld [vmem:[%s15155_s16 + $0xde0] sm:$0xf]  ;;  %v14655_v44 = vld [vmem:[%s15155_s16 + $0xdf4] sm:$0xf0] }
 0x310   : > { %8247 = vmatpush.bf16.msrb.mxu2 %v12823_v29  ;;  %v5090_v29 = vadd.f32 %v15465_v62, %v5077_v23  ;;  %v13495_v62 = vor.u32 %v14673_v20, %v13494_v13  ;;  %v13447_v23 = vor.u32 %v14661_v56, %v13446_v59  ;;  %v11648_v13 = vld [vmem:[%s15155_s16 + $0x18] sm:$0xf0]  ;;  %v13423_v20 = vor.u32 %v14655_v44, %v13422_v25  ;;  %v14436_v59 = vld [vmem:[%s15155_s16 + $0x724] sm:$0xf]  ;;  %v14394_v36 = vld [vmem:[%s15155_s16 + $0x5d4] sm:$0xf] }
 0x311   : > { %8260 = vmatpush.bf16.msrb.mxu3 %v13015_v22  ;;  %v11744_v22 = vld [vmem:[%s15155_s16 + $0xd8] sm:$0xf0]  ;;  %v12728_v25 = vld [vmem:[%s15155_s16 + $0x888] sm:$0xf0]  ;;  %v14388_v44 = vld [vmem:[%s15155_s16 + $0x5a4] sm:$0xf] }
 0x312   : > { %8222 = vmatpush.bf16.msrb.mxu0 %v12415_v53  ;;  %v5102_v39 = vpop.f32.mrf.mxu0  ;;  %v11747_v40 = vor.u32 %v14232_v30, %v11744_v22  ;;  %v14226_v53 = vld [vmem:[%s15155_s16 + $0x94] sm:$0xf]  ;;  %v14208_v30 = vld [vmem:[%s15155_s16 + $0x4] sm:$0xf]  ;;  %v12560_v56 = vld [vmem:[%s15155_s16 + $0x738] sm:$0xf0] }
 0x313   : > { %8235 = vmatpush.bf16.msrb.mxu1 %v12607_v49  ;;  %v5103_v45 = vadd.f32 %v5102_v39, %v5090_v29  ;;  %v5115_v46 = vpop.f32.mrf.mxu1  ;;  %v14274_v49 = vld [vmem:[%s15155_s16 + $0x214] sm:$0xf]  ;;  %v13182_v29 = vld [vmem:[%s15155_s16 + $0xc00] sm:$0xf]  ;;  %v11840_v39 = vld [vmem:[%s15155_s16 + $0x198] sm:$0xf0] }
 0x314   : > { %8248 = vmatpush.bf16.msrb.mxu2 %v12799_v3  ;;  %v11912_v3 = vld [vmem:[%s15155_s16 + $0x228] sm:$0xf0]  ;;  %v12752_v2 = vld [vmem:[%s15155_s16 + $0x8b8] sm:$0xf0] }
 0x315   : > { %8261 = vmatpush.bf16.msrb.mxu3 %v12991_v31  ;;  %8223 = vmatmul.bf16.vlgmr.msrb.gmra.mxu0 %v15509_v7  ;;  %v5116_v5 = vadd.f32 %v5115_v46, %v5103_v45  ;;  %v13255_v31 = vor.u32 %v14613_v58, %v13254_v37  ;;  %v13398_v37 = vld [vmem:[%s15155_s16 + $0xdb0] sm:$0xf]  ;;  %v14649_v58 = vld [vmem:[%s15155_s16 + $0xdc4] sm:$0xf0]  ;;  %v14442_v45 = vld [vmem:[%s15155_s16 + $0x754] sm:$0xf] }
 0x316   : > { %8267 = vmatpush.bf16.msra.mxu0 %v13351_v47  ;;  %8236 = vmatmul.bf16.vlgmr.msrb.gmra.mxu1 %v15511_v8  ;;  %v13230_v47 = vld [vmem:[%s15155_s16 + $0xc60] sm:$0xf]  ;;  %v12584_v46 = vld [vmem:[%s15155_s16 + $0x768] sm:$0xf0] }
 0x317   : > { %8249 = vmatmul.bf16.vlgmr.msrb.gmra.mxu2 %v15513_v9  ;;  %8280 = vmatpush.bf16.msra.mxu1 %v13543_v15  ;;  %v13231_v14 = vor.u32 %v14607_v50, %v13230_v47  ;;  %v13206_v15 = vld [vmem:[%s15155_s16 + $0xc30] sm:$0xf]  ;;  %v12587_v50 = vor.u32 %v14442_v45, %v12584_v46  ;;  %v14466_v45 = vld [vmem:[%s15155_s16 + $0x814] sm:$0xf] }
 0x318   : > { %8293 = vmatpush.bf16.msra.mxu2 %v11819_v55  ;;  %8262 = vmatmul.bf16.vlgmr.msrb.gmra.mxu3 %v15515_v51  ;;  %v11723_v55 = vor.u32 %v14226_v53, %v11720_v43  ;;  %v12776_v43 = vld [vmem:[%s15155_s16 + $0x8e8] sm:$0xf0] }
 0x319   : > { %8306 = vmatpush.bf16.msra.mxu3 %v12011_v57  ;;  %v11915_v57 = vor.u32 %v14274_v49, %v11912_v3  ;;  %v13399_v49 = vor.u32 %v14649_v58, %v13398_v37  ;;  %v11651_v3 = vor.u32 %v14208_v30, %v11648_v13  ;;  %v12512_v30 = vld [vmem:[%s15155_s16 + $0x6d8] sm:$0xf0]  ;;  %v14472_v13 = vld [vmem:[%s15155_s16 + $0x844] sm:$0xf]  ;;  %v14322_v58 = vld [vmem:[%s15155_s16 + $0x394] sm:$0xf] }
 0x31a   : > { %8268 = vmatpush.bf16.msra.mxu0 %v13327_v10  ;;  %v5128_v61 = vpop.f32.mrf.mxu2 }
 0x31b   : > { %8281 = vmatpush.bf16.msra.mxu1 %v13519_v28  ;;  %v5141_v10 = vpop.f32.mrf.mxu3  ;;  %v5129_v12 = vadd.f32 %v5128_v61, %v5116_v5  ;;  %v5117_v26 = vpop.f32.mrf.mxu1  ;;  %v11843_v5 = vor.u32 %v14256_v34, %v11840_v39  ;;  %v12779_v61 = vor.u32 %v14490_v21, %v12776_v43  ;;  %v12344_v34 = vld [vmem:[%s15155_s16 + $0x588] sm:$0xf0]  ;;  %v14376_v43 = vld [vmem:[%s15155_s16 + $0x544] sm:$0xf] }
 0x31c   : > { %8294 = vmatpush.bf16.msra.mxu2 %v11795_v16  ;;  %v14601_v16 = vld [vmem:[%s15155_s16 + $0xc44] sm:$0xf0]  ;;  %v12104_v39 = vld [vmem:[%s15155_s16 + $0x3a8] sm:$0xf0] }
 0x31d   : > { %8307 = vmatpush.bf16.msra.mxu3 %v11987_v17  ;;  %v5104_v17 = vpop.f32.mrf.mxu0  ;;  %v5142_v28 = vadd.f32 %v5141_v10, %v5129_v12  ;;  %v12392_v10 = vld [vmem:[%s15155_s16 + $0x5e8] sm:$0xf0] }
 0x31e   : > { %8269 = vmatpush.bf16.msra.mxu0 %v13303_v48  ;;  %v11672_v48 = vld [vmem:[%s15155_s16 + $0x48] sm:$0xf0]  ;;  %v12395_v26 = vor.u32 %v14394_v36, %v12392_v10 }
 0x31f   : > { %8282 = vmatpush.bf16.msra.mxu1 %v13495_v62  ;;  %v11675_v22 = vor.u32 %v14214_v18, %v11672_v48  ;;  %v14346_v62 = vld [vmem:[%s15155_s16 + $0x454] sm:$0xf]  ;;  %v5257_v53 = vmax.f32 %v5142_v28, 0.0  ;;  %v12152_v17 = vld [vmem:[%s15155_s16 + $0x408] sm:$0xf0] }
 0x320   : > { %8295 = vmatpush.bf16.msra.mxu2 %v11771_v19  ;;  %v13207_v19 = vor.u32 %v14601_v16, %v13206_v15  ;;  %v12563_v15 = vor.u32 %v14436_v59, %v12560_v56  ;;  %v14334_v16 = vld [vmem:[%s15155_s16 + $0x3f4] sm:$0xf]  ;;  %v12368_v48 = vld [vmem:[%s15155_s16 + $0x5b8] sm:$0xf0]  ;;  %v14328_v28 = vld [vmem:[%s15155_s16 + $0x3c4] sm:$0xf] }
 0x321   : > { %8308 = vmatpush.bf16.msra.mxu3 %v11963_v42  ;;  %v14595_v42 = vld [vmem:[%s15155_s16 + $0xc14] sm:$0xf0]  ;;  %v15581_v33 = vpack.c.bf16 %v5257_v53, %v5257_v53  ;;  %v14478_v18 = vld [vmem:[%s15155_s16 + $0x874] sm:$0xf]  ;;  %v12155_v60 = vor.u32 %v14334_v16, %v12152_v17  ;;  %v12488_v53 = vld [vmem:[%s15155_s16 + $0x6a8] sm:$0xf0] }
 0x322   : > { %8270 = vmatpush.bf16.msra.mxu0 %v13279_v35  ;;  %v5130_v35 = vpop.f32.mrf.mxu2  ;;  %v13183_v52 = vor.u32 %v14595_v42, %v13182_v29  ;;  %v12128_v29 = vld [vmem:[%s15155_s16 + $0x3d8] sm:$0xf0]  ;;  %v14424_v42 = vld [vmem:[%s15155_s16 + $0x6c4] sm:$0xf]  ;;  %v12680_v21 = vld [vmem:[%s15155_s16 + $0x828] sm:$0xf0] }
 0x323   : > { %8283 = vmatpush.bf16.msra.mxu1 %v13471_v54  ;;  %v12176_v54 = vld [vmem:[%s15155_s16 + $0x438] sm:$0xf0]  ;;  %v12131_v35 = vor.u32 %v14328_v28, %v12128_v29  ;;  %v12515_v37 = vor.u32 %v14424_v42, %v12512_v30  ;;  %v12296_v36 = vld [vmem:[%s15155_s16 + $0x528] sm:$0xf0]  ;;  %v14304_v29 = vld [vmem:[%s15155_s16 + $0x304] sm:$0xf] }
 0x324   : > { %8296 = vmatpush.bf16.msra.mxu2 %v11747_v40  ;;  %v12200_v40 = vld [vmem:[%s15155_s16 + $0x468] sm:$0xf0]  ;;  %v12656_v56 = vld [vmem:[%s15155_s16 + $0x7f8] sm:$0xf0]  ;;  %v14400_v42 = vld [vmem:[%s15155_s16 + $0x604] sm:$0xf] }
 0x325   : > { %8309 = vmatpush.bf16.msra.mxu3 %v11939_v24  ;;  %v5143_v24 = vpop.f32.mrf.mxu3  ;;  %v12203_v47 = vor.u32 %v14346_v62, %v12200_v40 }
 0x326   : > { %8271 = vmatpush.bf16.msra.mxu0 %v13255_v31  ;;  %v14340_v31 = vld [vmem:[%s15155_s16 + $0x424] sm:$0xf]  ;;  %v14418_v24 = vld [vmem:[%s15155_s16 + $0x694] sm:$0xf] }
 0x327   : > { %8284 = vmatpush.bf16.msra.mxu1 %v13447_v23  ;;  %v12755_v23 = vor.u32 %v14484_v63, %v12752_v2  ;;  %v14370_v2 = vld [vmem:[%s15155_s16 + $0x514] sm:$0xf] }
 0x328   : > { %8297 = vmatpush.bf16.msra.mxu2 %v11723_v55  ;;  %v13374_v55 = vld [vmem:[%s15155_s16 + $0xd80] sm:$0xf] }
 0x329   : > { %8310 = vmatpush.bf16.msra.mxu3 %v11915_v57  ;;  %v14643_v57 = vld [vmem:[%s15155_s16 + $0xd94] sm:$0xf0] }
 0x32a   : > { %8272 = vmatpush.bf16.msra.mxu0 %v13231_v14  ;;  %v13375_v12 = vor.u32 %v14643_v57, %v13374_v55  ;;  %v12179_v14 = vor.u32 %v14340_v31, %v12176_v54  ;;  %v14316_v31 = vld [vmem:[%s15155_s16 + $0x364] sm:$0xf]  ;;  %v12464_v55 = vld [vmem:[%s15155_s16 + $0x678] sm:$0xf0] }
 0x32b   : > { %8285 = vmatpush.bf16.msra.mxu1 %v13423_v20  ;;  %v12371_v20 = vor.u32 %v14388_v44, %v12368_v48  ;;  %v14412_v54 = vld [vmem:[%s15155_s16 + $0x664] sm:$0xf]  ;;  %v12272_v48 = vld [vmem:[%s15155_s16 + $0x4f8] sm:$0xf0] }
 0x32c   : > { %8298 = vmatpush.bf16.msra.mxu2 %v11699_v41  ;;  %v14430_v41 = vld [vmem:[%s15155_s16 + $0x6f4] sm:$0xf]  ;;  %v14460_v57 = vld [vmem:[%s15155_s16 + $0x7e4] sm:$0xf] }
 0x32d   : > { %8311 = vmatpush.bf16.msra.mxu3 %v11891_v27  ;;  %v12536_v27 = vld [vmem:[%s15155_s16 + $0x708] sm:$0xf0]  ;;  %v12659_v17 = vor.u32 %v14460_v57, %v12656_v56  ;;  %v14364_v44 = vld [vmem:[%s15155_s16 + $0x4e4] sm:$0xf] }
 0x32e   : > { %8273 = vmatpush.bf16.msra.mxu0 %v13207_v19  ;;  %v12539_v38 = vor.u32 %v14430_v41, %v12536_v27  ;;  %v12731_v19 = vor.u32 %v14478_v18, %v12728_v25  ;;  %v12440_v41 = vld [vmem:[%s15155_s16 + $0x648] sm:$0xf0]  ;;  %v14454_v27 = vld [vmem:[%s15155_s16 + $0x7b4] sm:$0xf]  ;;  %v14676_v57 = vld [vmem:[%s15155_s16 + $0xea4] sm:$0xf] }
 0x32f   : > { %8286 = vmatpush.bf16.msra.mxu1 %v13399_v49  ;;  %v12320_v49 = vld [vmem:[%s15155_s16 + $0x558] sm:$0xf0]  ;;  %v12632_v25 = vld [vmem:[%s15155_s16 + $0x7c8] sm:$0xf0] }
 0x330   : > { %8299 = vmatpush.bf16.msra.mxu2 %v11675_v22  ;;  %v12704_v22 = vld [vmem:[%s15155_s16 + $0x858] sm:$0xf0]  ;;  %v12323_v59 = vor.u32 %v14376_v43, %v12320_v49  ;;  %v12635_v30 = vor.u32 %v14454_v27, %v12632_v25  ;;  %v14358_v49 = vld [vmem:[%s15155_s16 + $0x4b4] sm:$0xf] }
 0x331   : > { %8312 = vmatpush.bf16.msra.mxu3 %v11867_v32  ;;  %v14382_v32 = vld [vmem:[%s15155_s16 + $0x574] sm:$0xf]  ;;  %v12707_v40 = vor.u32 %v14472_v13, %v12704_v22  ;;  %v12416_v13 = vld [vmem:[%s15155_s16 + $0x618] sm:$0xf0] }
 0x332   : > { %8274 = vmatpush.bf16.msra.mxu0 %v13183_v52  ;;  %v15610_v62 = vpop.f32.mrf.mxu0  ;;  %v12347_v52 = vor.u32 %v14382_v32, %v12344_v34  ;;  %v12608_v22 = vld [vmem:[%s15155_s16 + $0x798] sm:$0xf0]  ;;  %v14538_v34 = vld [vmem:[%s15155_s16 + $0xa54] sm:$0xf] }
 0x333   : > { %8287 = vmatpush.bf16.msra.mxu1 %v13375_v12  ;;  %v15615_v46 = vpop.f32.mrf.mxu1  ;;  %v12467_v12 = vor.u32 %v14412_v54, %v12464_v55  ;;  %v14628_v54 = vld [vmem:[%s15155_s16 + $0xd24] sm:$0xf]  ;;  %v13328_v55 = vld [vmem:[%s15155_s16 + $0xd38] sm:$0xf0] }
 0x334   : > { %8300 = vmatpush.bf16.msra.mxu2 %v11651_v3  ;;  %v12107_v3 = vor.u32 %v14322_v58, %v12104_v39  ;;  %v13352_v39 = vld [vmem:[%s15155_s16 + $0xd68] sm:$0xf0] }
 0x335   : > { %8313 = vmatpush.bf16.msra.mxu3 %v11843_v5  ;;  %8275 = vmatmul.bf16.vlgmr.msra.gmra.mxu0 %v15581_v33  ;;  %v12491_v5 = vor.u32 %v14418_v24, %v12488_v53  ;;  %v13544_v24 = vld [vmem:[%s15155_s16 + $0xee8] sm:$0xf0] }
 0x336   : > { %8319 = vmatpush.bf16.msrb.mxu0 %v12203_v47  ;;  %v12080_v47 = vld [vmem:[%s15155_s16 + $0x378] sm:$0xf0] }
 0x337   : > { %8301 = vmatmul.bf16.vlgmr.msra.gmra.mxu2 %v15414_v0  ;;  %8332 = vmatpush.bf16.msrb.mxu1 %v12395_v26  ;;  %v12083_v10 = vor.u32 %v14316_v31, %v12080_v47  ;;  %v12299_v26 = vor.u32 %v14370_v2, %v12296_v36  ;;  %v14532_v47 = vld [vmem:[%s15155_s16 + $0xa24] sm:$0xf] }
 0x338   : > { %8345 = vmatpush.bf16.msrb.mxu2 %v12587_v50  ;;  %8314 = vmatmul.bf16.vlgmr.msra.gmra.mxu3 %v15416_v1  ;;  %v12683_v50 = vor.u32 %v14466_v45, %v12680_v21  ;;  %v12419_v45 = vor.u32 %v14400_v42, %v12416_v13  ;;  %v14352_v36 = vld [vmem:[%s15155_s16 + $0x484] sm:$0xf] }
 0x339   : > { %8358 = vmatpush.bf16.msrb.mxu3 %v12779_v61 }
 0x33a   : > { %8320 = vmatpush.bf16.msrb.mxu0 %v12179_v14  ;;  %v15625_v61 = vpop.f32.mrf.mxu2  ;;  %v14310_v14 = vld [vmem:[%s15155_s16 + $0x334] sm:$0xf]  ;;  %v5156_v16 = vpop.f32.mrf.mxu0 }
 0x33b   : > { %8333 = vmatpush.bf16.msrb.mxu1 %v12371_v20  ;;  %v15628_v63 = vpop.f32.mrf.mxu3  ;;  %v5169_v18 = vpop.f32.mrf.mxu1  ;;  %v14448_v20 = vld [vmem:[%s15155_s16 + $0x784] sm:$0xf]  ;;  %v12920_v16 = vld [vmem:[%s15155_s16 + $0xa08] sm:$0xf0] }
 0x33c   : > { %8346 = vmatpush.bf16.msrb.mxu2 %v12563_v15  ;;  %v12056_v15 = vld [vmem:[%s15155_s16 + $0x348] sm:$0xf0]  ;;  %v12611_v21 = vor.u32 %v14448_v20, %v12608_v22 }
 0x33d   : > { %8359 = vmatpush.bf16.msrb.mxu3 %v12755_v23  ;;  %v14406_v23 = vld [vmem:[%s15155_s16 + $0x634] sm:$0xf] }
 0x33e   : > { %8321 = vmatpush.bf16.msrb.mxu0 %v12155_v60  ;;  %v970_v60 = vperm.slane %v15469_v4, 1  ;;  %v12443_v28 = vor.u32 %v14406_v23, %v12440_v41  ;;  %v12275_v4 = vor.u32 %v14364_v44, %v12272_v48  ;;  %v14670_v23 = vld [vmem:[%s15155_s16 + $0xe74] sm:$0xf]  ;;  %v13496_v41 = vld [vmem:[%s15155_s16 + $0xe88] sm:$0xf0] }
 0x33f   : > { %8334 = vmatpush.bf16.msrb.mxu1 %v12347_v52  ;;  %v13499_v44 = vor.u32 %v14670_v23, %v13496_v41  ;;  %v14520_v48 = vld [vmem:[%s15155_s16 + $0x9c4] sm:$0xf]  ;;  %v12800_v41 = vld [vmem:[%s15155_s16 + $0x918] sm:$0xf0] }
 0x340   : > { %8347 = vmatpush.bf16.msrb.mxu2 %v12539_v38  ;;  %v12059_v38 = vor.u32 %v14310_v14, %v12056_v15  ;;  %v5155_v52 = vadd.f32 %v15610_v62, %v970_v60  ;;  %v14526_v15 = vld [vmem:[%s15155_s16 + $0x9f4] sm:$0xf]  ;;  %v12896_v60 = vld [vmem:[%s15155_s16 + $0x9d8] sm:$0xf0]  ;;  %v14496_v23 = vld [vmem:[%s15155_s16 + $0x904] sm:$0xf] }
 0x341   : > { %8360 = vmatpush.bf16.msrb.mxu3 %v12731_v19  ;;  %v12032_v19 = vld [vmem:[%s15155_s16 + $0x318] sm:$0xf0] }
 0x342   : > { %8322 = vmatpush.bf16.msrb.mxu0 %v12131_v35  ;;  %v5182_v32 = vpop.f32.mrf.mxu2  ;;  %v12968_v35 = vld [vmem:[%s15155_s16 + $0xa68] sm:$0xf0]  ;;  %v12035_v53 = vor.u32 %v14304_v29, %v12032_v19  ;;  %v5168_v56 = vadd.f32 %v15615_v46, %v5155_v52  ;;  %v14664_v29 = vld [vmem:[%s15155_s16 + $0xe44] sm:$0xf]  ;;  %v13472_v19 = vld [vmem:[%s15155_s16 + $0xe58] sm:$0xf0] }
 0x343   : > { %8335 = vmatpush.bf16.msrb.mxu1 %v12323_v59  ;;  %v5195_v58 = vpop.f32.mrf.mxu3  ;;  %v12971_v43 = vor.u32 %v14538_v34, %v12968_v35  ;;  %v13520_v59 = vld [vmem:[%s15155_s16 + $0xeb8] sm:$0xf0]  ;;  %v13304_v46 = vld [vmem:[%s15155_s16 + $0xd08] sm:$0xf0]  ;;  %v13475_v22 = vor.u32 %v14664_v29, %v13472_v19  ;;  %v14514_v32 = vld [vmem:[%s15155_s16 + $0x994] sm:$0xf] }
 0x344   : > { %8348 = vmatpush.bf16.msrb.mxu2 %v12515_v37  ;;  %v14634_v37 = vld [vmem:[%s15155_s16 + $0xd54] sm:$0xf]  ;;  %v13523_v14 = vor.u32 %v14676_v57, %v13520_v59  ;;  %v5181_v18 = vadd.f32 %v15625_v61, %v5168_v56  ;;  %v13448_v58 = vld [vmem:[%s15155_s16 + $0xe28] sm:$0xf0]  ;;  %v14604_v52 = vld [vmem:[%s15155_s16 + $0xc64] sm:$0xf] }
 0x345   : > { %8361 = vmatpush.bf16.msrb.mxu3 %v12707_v40  ;;  %v14682_v40 = vld [vmem:[%s15155_s16 + $0xed4] sm:$0xf]  ;;  %v12824_v56 = vld [vmem:[%s15155_s16 + $0x948] sm:$0xf0]  ;;  %v14254_v29 = vld [vmem:[%s15155_s16 + $0x16c] sm:$0xf0] }
 0x346   : > { %8323 = vmatpush.bf16.msrb.mxu0 %v12107_v3  ;;  %v12248_v3 = vld [vmem:[%s15155_s16 + $0x4c8] sm:$0xf0]  ;;  %v13547_v31 = vor.u32 %v14682_v40, %v13544_v24  ;;  %v5194_v61 = vadd.f32 %v15628_v63, %v5181_v18  ;;  %v14610_v34 = vld [vmem:[%s15155_s16 + $0xc94] sm:$0xf] }
 0x347   : > { %8336 = vmatpush.bf16.msrb.mxu1 %v12299_v26  ;;  %v12251_v62 = vor.u32 %v14358_v49, %v12248_v3  ;;  %v12923_v26 = vor.u32 %v14526_v15, %v12920_v16  ;;  %v14658_v63 = vld [vmem:[%s15155_s16 + $0xe14] sm:$0xf]  ;;  %v14652_v49 = vld [vmem:[%s15155_s16 + $0xde4] sm:$0xf]  ;;  %v13424_v3 = vld [vmem:[%s15155_s16 + $0xdf8] sm:$0xf0] }
 0x348   : > { %8349 = vmatpush.bf16.msrb.mxu2 %v12491_v5  ;;  %v13355_v5 = vor.u32 %v14634_v37, %v13352_v39  ;;  %v13256_v37 = vld [vmem:[%s15155_s16 + $0xca8] sm:$0xf0]  ;;  %v13451_v24 = vor.u32 %v14658_v63, %v13448_v58  ;;  %v13427_v59 = vor.u32 %v14652_v49, %v13424_v3  ;;  %v14586_v15 = vld [vmem:[%s15155_s16 + $0xbd4] sm:$0xf]  ;;  %v11798_v58 = vld [vmem:[%s15155_s16 + $0x128] sm:$0xf] }
 0x349   : > { %8362 = vmatpush.bf16.msrb.mxu3 %v12683_v50  ;;  %v12944_v50 = vld [vmem:[%s15155_s16 + $0xa38] sm:$0xf0]  ;;  %v13259_v40 = vor.u32 %v14610_v34, %v13256_v37  ;;  %v13160_v16 = vld [vmem:[%s15155_s16 + $0xbe8] sm:$0xf0] }
 0x34a   : > { %8324 = vmatpush.bf16.msrb.mxu0 %v12083_v10  ;;  %v12947_v2 = vor.u32 %v14532_v47, %v12944_v50  ;;  %v12224_v10 = vld [vmem:[%s15155_s16 + $0x498] sm:$0xf0]  ;;  %v13112_v49 = vld [vmem:[%s15155_s16 + $0xb88] sm:$0xf0] }
 0x34b   : > { %8337 = vmatpush.bf16.msrb.mxu1 %v12275_v4  ;;  %v12227_v27 = vor.u32 %v14352_v36, %v12224_v10  ;;  %v12872_v4 = vld [vmem:[%s15155_s16 + $0x9a8] sm:$0xf0] }
 0x34c   : > { %8350 = vmatpush.bf16.msrb.mxu2 %v12467_v12  ;;  %v13331_v12 = vor.u32 %v14628_v54, %v13328_v55  ;;  %v12875_v39 = vor.u32 %v14514_v32, %v12872_v4  ;;  %v13208_v10 = vld [vmem:[%s15155_s16 + $0xc48] sm:$0xf0]  ;;  %v14580_v32 = vld [vmem:[%s15155_s16 + $0xba4] sm:$0xf]  ;;  %v13136_v4 = vld [vmem:[%s15155_s16 + $0xbb8] sm:$0xf0] }
 0x34d   : > { %8363 = vmatpush.bf16.msrb.mxu3 %v12659_v17  ;;  %v14622_v17 = vld [vmem:[%s15155_s16 + $0xcf4] sm:$0xf] }
 0x34e   : > { %8325 = vmatpush.bf16.msrb.mxu0 %v12059_v38  ;;  %v13307_v25 = vor.u32 %v14622_v17, %v13304_v46  ;;  %v14616_v38 = vld [vmem:[%s15155_s16 + $0xcc4] sm:$0xf] }
 0x34f   : > { %8338 = vmatpush.bf16.msrb.mxu1 %v12251_v62  ;;  %v14502_v62 = vld [vmem:[%s15155_s16 + $0x934] sm:$0xf] }
 0x350   : > { %8351 = vmatpush.bf16.msrb.mxu2 %v12443_v28  ;;  %v13280_v28 = vld [vmem:[%s15155_s16 + $0xcd8] sm:$0xf0]  ;;  %v12827_v46 = vor.u32 %v14502_v62, %v12824_v56  ;;  %v15738_v62 = vld [vmem:[%s15735_s27] sm:$0x3f]  ;;  %v14386_v56 = vld [vmem:[%s15155_s16 + $0x58c] sm:$0xf0] }
 0x351   : > { %8364 = vmatpush.bf16.msrb.mxu3 %v12635_v30  ;;  %v12899_v30 = vor.u32 %v14520_v48, %v12896_v60  ;;  %v13283_v20 = vor.u32 %v14616_v38, %v13280_v28  ;;  %v13163_v60 = vor.u32 %v14586_v15, %v13160_v16  ;;  %v13376_v38 = vld [vmem:[%s15155_s16 + $0xd98] sm:$0xf0]  ;;  %v11822_v28 = vld [vmem:[%s15155_s16 + $0x158] sm:$0xf]  ;;  %v11750_v15 = vld [vmem:[%s15155_s16 + $0xc8] sm:$0xf] }
 0x352   : > { %8326 = vmatpush.bf16.msrb.mxu0 %v12035_v53  ;;  %v5206_v42 = vpop.f32.mrf.mxu0  ;;  %v14508_v53 = vld [vmem:[%s15155_s16 + $0x964] sm:$0xf]  ;;  %v11823_v37 = vor.u32 %v14254_v29, %v11822_v28  ;;  %v14236_v16 = vld [vmem:[%s15155_s16 + $0xdc] sm:$0xf0]  ;;  %v11726_v28 = vld [vmem:[%s15155_s16 + $0x98] sm:$0xf] }
 0x353   : > { %8339 = vmatpush.bf16.msrb.mxu1 %v12227_v27  ;;  %v5219_v13 = vpop.f32.mrf.mxu1  ;;  %v5207_v35 = vadd.f32 %v5206_v42, %v5194_v61  ;;  %v12206_v61 = vld [vmem:[%s15155_s16 + $0x458] sm:$0xf]  ;;  %v14350_v42 = vld [vmem:[%s15155_s16 + $0x46c] sm:$0xf0] }
 0x354   : > { %8352 = vmatpush.bf16.msrb.mxu2 %v12419_v45  ;;  %v12848_v45 = vld [vmem:[%s15155_s16 + $0x978] sm:$0xf0]  ;;  %v12207_v63 = vor.u32 %v14350_v42, %v12206_v61  ;;  %v14230_v29 = vld [vmem:[%s15155_s16 + $0xac] sm:$0xf0] }
 0x355   : > { %8365 = vmatpush.bf16.msrb.mxu3 %v12611_v21  ;;  %8327 = vmatmul.bf16.vlgmr.msrb.gmra.mxu0 %v15418_v6  ;;  %v5220_v21 = vadd.f32 %v5219_v13, %v5207_v35  ;;  %v12851_v54 = vor.u32 %v14508_v53, %v12848_v45  ;;  %v12182_v53 = vld [vmem:[%s15155_s16 + $0x428] sm:$0xf]  ;;  %v14344_v45 = vld [vmem:[%s15155_s16 + $0x43c] sm:$0xf0] }
 0x356   : > { %8371 = vmatpush.bf16.msra.mxu0 %v12971_v43  ;;  %v13232_v43 = vld [vmem:[%s15155_s16 + $0xc78] sm:$0xf0] }
 0x357   : > { %8353 = vmatmul.bf16.vlgmr.msrb.gmra.mxu2 %v15509_v7  ;;  %v13235_v57 = vor.u32 %v14604_v52, %v13232_v43  ;;  %v12374_v52 = vld [vmem:[%s15155_s16 + $0x5a8] sm:$0xf]  ;;  %v14574_v43 = vld [vmem:[%s15155_s16 + $0xb74] sm:$0xf] }
 0x358   : > { %8397 = vmatpush.bf16.msra.mxu2 %v13355_v5  ;;  %8366 = vmatmul.bf16.vlgmr.msrb.gmra.mxu3 %v15511_v8 }
 0x359   : > { %8410 = vmatpush.bf16.msra.mxu3 %v13547_v31 }
 0x35a   : > { %8372 = vmatpush.bf16.msra.mxu0 %v12947_v2  ;;  %v5232_v5 = vpop.f32.mrf.mxu2  ;;  %v5208_v50 = vpop.f32.mrf.mxu0  ;;  %v14598_v2 = vld [vmem:[%s15155_s16 + $0xc34] sm:$0xf] }
 0x35b   : > { %v5233_v31 = vadd.f32 %v5232_v5, %v5220_v21  ;;  %v5245_v47 = vpop.f32.mrf.mxu3  ;;  %v5221_v55 = vpop.f32.mrf.mxu1  ;;  %v13211_v27 = vor.u32 %v14598_v2, %v13208_v10  ;;  %v14392_v21 = vld [vmem:[%s15155_s16 + $0x5bc] sm:$0xf0]  ;;  %v12183_v5 = vor.u32 %v14344_v45, %v12182_v53  ;;  %v12158_v50 = vld [vmem:[%s15155_s16 + $0x3f8] sm:$0xf]  ;;  %v14568_v2 = vld [vmem:[%s15155_s16 + $0xb44] sm:$0xf] }
 0x35c   : > { %8398 = vmatpush.bf16.msra.mxu2 %v13331_v12  ;;  %v14646_v12 = vld [vmem:[%s15155_s16 + $0xdb4] sm:$0xf]  ;;  %v13115_v55 = vor.u32 %v14574_v43, %v13112_v49  ;;  %v12086_v53 = vld [vmem:[%s15155_s16 + $0x368] sm:$0xf]  ;;  %v14320_v45 = vld [vmem:[%s15155_s16 + $0x37c] sm:$0xf0] }
 0x35d   : > { %8411 = vmatpush.bf16.msra.mxu3 %v13523_v14  ;;  %v5246_v36 = vadd.f32 %v5245_v47, %v5233_v31  ;;  %v13400_v14 = vld [vmem:[%s15155_s16 + $0xdc8] sm:$0xf0]  ;;  %v11774_v31 = vld [vmem:[%s15155_s16 + $0xf8] sm:$0xf]  ;;  %v14242_v47 = vld [vmem:[%s15155_s16 + $0x10c] sm:$0xf0] }
 0x35e   : > { %8373 = vmatpush.bf16.msra.mxu0 %v12923_v26  ;;  %v13403_v18 = vor.u32 %v14646_v12, %v13400_v14  ;;  %v14592_v26 = vld [vmem:[%s15155_s16 + $0xc04] sm:$0xf]  ;;  %v11775_v10 = vor.u32 %v14242_v47, %v11774_v31  ;;  %v5751_v14 = vperm.slane %v15738_v62, 0  ;;  %v14550_v43 = vld [vmem:[%s15155_s16 + $0xab4] sm:$0xf] }
 0x35f   : > { %v5258_v17 = vmax.f32 %v5246_v36, 0.0  ;;  %v13088_v36 = vld [vmem:[%s15155_s16 + $0xb58] sm:$0xf0]  ;;  %v13016_v49 = vld [vmem:[%s15155_s16 + $0xac8] sm:$0xf0] }
 0x360   : > { %8399 = vmatpush.bf16.msra.mxu2 %v13307_v25  ;;  %v13184_v25 = vld [vmem:[%s15155_s16 + $0xc18] sm:$0xf0] }
 0x361   : > { %8412 = vmatpush.bf16.msra.mxu3 %v13499_v44  ;;  %v14640_v44 = vld [vmem:[%s15155_s16 + $0xd84] sm:$0xf]  ;;  %v15708_v48 = vpack.c.bf16 %v5258_v17, %v5258_v17  ;;  %v13187_v34 = vor.u32 %v14592_v26, %v13184_v25  ;;  %v14562_v26 = vld [vmem:[%s15155_s16 + $0xb14] sm:$0xf]  ;;  %v13064_v25 = vld [vmem:[%s15155_s16 + $0xb28] sm:$0xf0] }
 0x362   : > { %8374 = vmatpush.bf16.msra.mxu0 %v12899_v30  ;;  %v5234_v19 = vpop.f32.mrf.mxu2  ;;  %v12398_v30 = vld [vmem:[%s15155_s16 + $0x5d8] sm:$0xf]  ;;  %v13379_v35 = vor.u32 %v14640_v44, %v13376_v38 }
 0x363   : > { %v5247_v13 = vpop.f32.mrf.mxu3  ;;  %8288 = vmatmul.bf16.vlgmr.msra.gmra.mxu1 %v15708_v48 }
 0x364   : > { %8400 = vmatpush.bf16.msra.mxu2 %v13283_v20  ;;  %v12803_v20 = vor.u32 %v14496_v23, %v12800_v41  ;;  %8384 = vmatpush.bf16.msra.mxu1 %v13163_v60  ;;  %v12134_v23 = vld [vmem:[%s15155_s16 + $0x3c8] sm:$0xf]  ;;  %v14332_v41 = vld [vmem:[%s15155_s16 + $0x3dc] sm:$0xf0]  ;;  %v11751_v60 = vor.u32 %v14236_v16, %v11750_v15  ;;  %v12110_v13 = vld [vmem:[%s15155_s16 + $0x398] sm:$0xf] }
 0x365   : > { %8413 = vmatpush.bf16.msra.mxu3 %v13475_v22  ;;  %v14398_v22 = vld [vmem:[%s15155_s16 + $0x5ec] sm:$0xf0]  ;;  %v12135_v38 = vor.u32 %v14332_v41, %v12134_v23  ;;  %v14544_v16 = vld [vmem:[%s15155_s16 + $0xa84] sm:$0xf] }
 0x366   : > { %8375 = vmatpush.bf16.msra.mxu0 %v12875_v39  ;;  %v14248_v39 = vld [vmem:[%s15155_s16 + $0x13c] sm:$0xf0]  ;;  %v14362_v15 = vld [vmem:[%s15155_s16 + $0x4cc] sm:$0xf0] }
 0x367   : > { %v11799_v3 = vor.u32 %v14248_v39, %v11798_v58  ;;  %v11702_v58 = vld [vmem:[%s15155_s16 + $0x68] sm:$0xf]  ;;  %v14224_v39 = vld [vmem:[%s15155_s16 + $0x7c] sm:$0xf0]  ;;  %v14302_v23 = vld [vmem:[%s15155_s16 + $0x2ec] sm:$0xf0] }
 0x368   : > { %8401 = vmatpush.bf16.msra.mxu2 %v13259_v40  ;;  %v12399_v40 = vor.u32 %v14398_v22, %v12398_v30  ;;  %v13067_v30 = vor.u32 %v14562_v26, %v13064_v25  ;;  %v12302_v22 = vld [vmem:[%s15155_s16 + $0x518] sm:$0xf]  ;;  %v14212_v26 = vld [vmem:[%s15155_s16 + $0x1c] sm:$0xf0] }
 0x369   : > { %8414 = vmatpush.bf16.msra.mxu3 %v13451_v24  ;;  %v13139_v24 = vor.u32 %v14580_v32, %v13136_v4  ;;  %v14374_v32 = vld [vmem:[%s15155_s16 + $0x52c] sm:$0xf0]  ;;  %v14556_v4 = vld [vmem:[%s15155_s16 + $0xae4] sm:$0xf] }
 0x36a   : > { %8376 = vmatpush.bf16.msra.mxu0 %v12851_v54  ;;  %v12375_v54 = vor.u32 %v14392_v21, %v12374_v52  ;;  %v12278_v52 = vld [vmem:[%s15155_s16 + $0x4e8] sm:$0xf]  ;;  %v14368_v21 = vld [vmem:[%s15155_s16 + $0x4fc] sm:$0xf0] }
 0x36b   : > { %8385 = vmatpush.bf16.msra.mxu1 %v13139_v24 }
 0x36c   : > { %8402 = vmatpush.bf16.msra.mxu2 %v13235_v57  ;;  %v14338_v57 = vld [vmem:[%s15155_s16 + $0x40c] sm:$0xf0] }
 0x36d   : > { %8415 = vmatpush.bf16.msra.mxu3 %v13427_v59  ;;  %v12350_v59 = vld [vmem:[%s15155_s16 + $0x578] sm:$0xf]  ;;  %v12159_v12 = vor.u32 %v14338_v57, %v12158_v50  ;;  %v11703_v50 = vor.u32 %v14224_v39, %v11702_v58  ;;  %v14218_v57 = vld [vmem:[%s15155_s16 + $0x4c] sm:$0xf0] }
 0x36e   : > { %8377 = vmatpush.bf16.msra.mxu0 %v12827_v46  ;;  %v12351_v17 = vor.u32 %v14386_v56, %v12350_v59  ;;  %v13091_v46 = vor.u32 %v14568_v2, %v13088_v36  ;;  %v12279_v56 = vor.u32 %v14368_v21, %v12278_v52  ;;  %v13019_v2 = vor.u32 %v14550_v43, %v13016_v49  ;;  %v12062_v36 = vld [vmem:[%s15155_s16 + $0x338] sm:$0xf]  ;;  %v12950_v21 = vld [vmem:[%s15155_s16 + $0xa28] sm:$0xf]  ;;  %v14536_v43 = vld [vmem:[%s15155_s16 + $0xa3c] sm:$0xf0] }
 0x36f   : > { %8386 = vmatpush.bf16.msra.mxu1 %v13115_v55  ;;  %v11678_v55 = vld [vmem:[%s15155_s16 + $0x38] sm:$0xf]  ;;  %v13142_v49 = vld [vmem:[%s15155_s16 + $0xba8] sm:$0xf] }
 0x370   : > { %8403 = vmatpush.bf16.msra.mxu2 %v13211_v27  ;;  %v12326_v27 = vld [vmem:[%s15155_s16 + $0x548] sm:$0xf]  ;;  %v11679_v41 = vor.u32 %v14218_v57, %v11678_v55  ;;  %v14434_v55 = vld [vmem:[%s15155_s16 + $0x70c] sm:$0xf0] }
 0x371   : > { %8416 = vmatpush.bf16.msra.mxu3 %v13403_v18  ;;  %v14380_v18 = vld [vmem:[%s15155_s16 + $0x55c] sm:$0xf0] }
 0x372   : > { %8378 = vmatpush.bf16.msra.mxu0 %v12803_v20  ;;  %v8172_v44 = vpop.f32.mrf.mxu0  ;;  %v12327_v42 = vor.u32 %v14380_v18, %v12326_v27  ;;  %v14326_v20 = vld [vmem:[%s15155_s16 + $0x3ac] sm:$0xf0]  ;;  %v11654_v18 = vld [vmem:[%s15155_s16 + $0x8] sm:$0xf] }
 0x373   : > { %8387 = vmatpush.bf16.msra.mxu1 %v13091_v46  ;;  %v8173_v19 = vadd.f32 %v8172_v44, %v5751_v14  ;;  %v8185_v61 = vpop.f32.mrf.mxu1  ;;  %v12014_v46 = vld [vmem:[%s15155_s16 + $0x2d8] sm:$0xf] }
 0x374   : > { %8404 = vmatpush.bf16.msra.mxu2 %v13187_v34  ;;  %8340 = vmatmul.bf16.vlgmr.msrb.gmra.mxu1 %v15423_v11  ;;  %v13040_v34 = vld [vmem:[%s15155_s16 + $0xaf8] sm:$0xf0] }
 0x375   : > { %8417 = vmatpush.bf16.msra.mxu3 %v13379_v35  ;;  %8379 = vmatmul.bf16.vlgmr.msra.gmra.mxu0 %v15513_v9  ;;  %v8186_v35 = vadd.f32 %v8185_v61, %v8173_v19  ;;  %v13043_v24 = vor.u32 %v14556_v4, %v13040_v34  ;;  %v14356_v19 = vld [vmem:[%s15155_s16 + $0x49c] sm:$0xf0]  ;;  %v12590_v61 = vld [vmem:[%s15155_s16 + $0x758] sm:$0xf]  ;;  %v11655_v4 = vor.u32 %v14212_v26, %v11654_v18  ;;  %v12902_v18 = vld [vmem:[%s15155_s16 + $0x9c8] sm:$0xf] }
 0x376   : > { %8423 = vmatpush.bf16.msrb.mxu0 %v11823_v37  ;;  %v11727_v37 = vor.u32 %v14230_v29, %v11726_v28  ;;  %v12230_v28 = vld [vmem:[%s15155_s16 + $0x488] sm:$0xf]  ;;  %v12015_v29 = vor.u32 %v14302_v23, %v12014_v46  ;;  %v14428_v23 = vld [vmem:[%s15155_s16 + $0x6dc] sm:$0xf0] }
 0x377   : > { %8405 = vmatmul.bf16.vlgmr.msra.gmra.mxu2 %v15581_v33  ;;  %8388 = vmatpush.bf16.msra.mxu1 %v13067_v30  ;;  %v12231_v58 = vor.u32 %v14356_v19, %v12230_v28  ;;  %v12518_v46 = vld [vmem:[%s15155_s16 + $0x6c8] sm:$0xf]  ;;  %v14524_v26 = vld [vmem:[%s15155_s16 + $0x9dc] sm:$0xf0] }
 0x378   : > { %8449 = vmatpush.bf16.msrb.mxu2 %v12207_v63  ;;  %8418 = vmatmul.bf16.vlgmr.msra.gmra.mxu3 %v15708_v48  ;;  %v12111_v63 = vor.u32 %v14326_v20, %v12110_v13  ;;  %v12974_v13 = vld [vmem:[%s15155_s16 + $0xa58] sm:$0xf]  ;;  %v14542_v20 = vld [vmem:[%s15155_s16 + $0xa6c] sm:$0xf0]  ;;  %v12519_v19 = vor.u32 %v14428_v23, %v12518_v46  ;;  %v11846_v23 = vld [vmem:[%s15155_s16 + $0x188] sm:$0xf] }
 0x379   : > { %8462 = vmatpush.bf16.msrb.mxu3 %v12399_v40  ;;  %v12303_v40 = vor.u32 %v14374_v32, %v12302_v22  ;;  %v13166_v22 = vld [vmem:[%s15155_s16 + $0xbd8] sm:$0xf]  ;;  %v14554_v46 = vld [vmem:[%s15155_s16 + $0xacc] sm:$0xf0] }
 0x37a   : > { %8424 = vmatpush.bf16.msrb.mxu0 %v11799_v3  ;;  %v8198_v3 = vpop.f32.mrf.mxu2  ;;  %v8174_v47 = vpop.f32.mrf.mxu0 }
 0x37b   : > { %v8211_v31 = vpop.f32.mrf.mxu3  ;;  %8389 = vmatpush.bf16.msra.mxu1 %v13043_v24  ;;  %v8187_v59 = vpop.f32.mrf.mxu1  ;;  %v12566_v24 = vld [vmem:[%s15155_s16 + $0x728] sm:$0xf] }
 0x37c   : > { %8450 = vmatpush.bf16.msrb.mxu2 %v12183_v5  ;;  %v8199_v5 = vadd.f32 %v8198_v3, %v8186_v35  ;;  %v14590_v35 = vld [vmem:[%s15155_s16 + $0xbec] sm:$0xf0]  ;;  %v14584_v3 = vld [vmem:[%s15155_s16 + $0xbbc] sm:$0xf0] }
 0x37d   : > { %8463 = vmatpush.bf16.msrb.mxu3 %v12375_v54  ;;  %v12087_v54 = vor.u32 %v14320_v45, %v12086_v53  ;;  %v14440_v53 = vld [vmem:[%s15155_s16 + $0x73c] sm:$0xf0]  ;;  %v13167_v45 = vor.u32 %v14590_v35, %v13166_v22  ;;  %v13143_v57 = vor.u32 %v14584_v3, %v13142_v49  ;;  %v14566_v35 = vld [vmem:[%s15155_s16 + $0xb2c] sm:$0xf0]  ;;  %v11870_v3 = vld [vmem:[%s15155_s16 + $0x1b8] sm:$0xf] }
 0x37e   : > { %8425 = vmatpush.bf16.msrb.mxu0 %v11775_v10  ;;  %v14314_v10 = vld [vmem:[%s15155_s16 + $0x34c] sm:$0xf0]  ;;  %v15777_v14 = vadd.f32 %v8211_v31, %v8199_v5  ;;  %v11966_v5 = vld [vmem:[%s15155_s16 + $0x278] sm:$0xf]  ;;  %v12567_v47 = vor.u32 %v14440_v53, %v12566_v24  ;;  %v14416_v24 = vld [vmem:[%s15155_s16 + $0x67c] sm:$0xf0] }
 0x37f   : > { %v12063_v27 = vor.u32 %v14314_v10, %v12062_v36  ;;  %8390 = vmatpush.bf16.msra.mxu1 %v13019_v2  ;;  %v14290_v31 = vld [vmem:[%s15155_s16 + $0x28c] sm:$0xf0]  ;;  %v13118_v36 = vld [vmem:[%s15155_s16 + $0xb78] sm:$0xf]  ;;  %v14560_v49 = vld [vmem:[%s15155_s16 + $0xafc] sm:$0xf0] }
 0x380   : > { %8451 = vmatpush.bf16.msrb.mxu2 %v12159_v12  ;;  %v12254_v12 = vld [vmem:[%s15155_s16 + $0x4b8] sm:$0xf]  ;;  %v11967_v59 = vor.u32 %v14290_v31, %v11966_v5  ;;  %v14530_v2 = vld [vmem:[%s15155_s16 + $0xa0c] sm:$0xf0] }
 0x381   : > { %8464 = vmatpush.bf16.msrb.mxu3 %v12351_v17  ;;  %v12992_v17 = vld [vmem:[%s15155_s16 + $0xa98] sm:$0xf0]  ;;  %v12255_v25 = vor.u32 %v14362_v15, %v12254_v12  ;;  %v14578_v10 = vld [vmem:[%s15155_s16 + $0xb8c] sm:$0xf0]  ;;  %v11942_v12 = vld [vmem:[%s15155_s16 + $0x248] sm:$0xf] }
 0x382   : > { %8426 = vmatpush.bf16.msrb.mxu0 %v11751_v60  ;;  %v12995_v44 = vor.u32 %v14544_v16, %v12992_v17  ;;  %v12038_v60 = vld [vmem:[%s15155_s16 + $0x308] sm:$0xf]  ;;  %v8200_v30 = vpop.f32.mrf.mxu2  ;;  %v14284_v15 = vld [vmem:[%s15155_s16 + $0x25c] sm:$0xf0]  ;;  %v14266_v5 = vld [vmem:[%s15155_s16 + $0x1cc] sm:$0xf0] }
 0x383   : > { %v8213_v32 = vpop.f32.mrf.mxu3  ;;  %v14422_v30 = vld [vmem:[%s15155_s16 + $0x6ac] sm:$0xf0] }
 0x384   : > { %8452 = vmatpush.bf16.msrb.mxu2 %v12135_v38  ;;  %v14308_v38 = vld [vmem:[%s15155_s16 + $0x31c] sm:$0xf0]  ;;  %8391 = vmatpush.bf16.msra.mxu1 %v12995_v44  ;;  %v12878_v32 = vld [vmem:[%s15155_s16 + $0x998] sm:$0xf] }
 0x385   : > { %8465 = vmatpush.bf16.msrb.mxu3 %v12327_v42  ;;  %v14446_v42 = vld [vmem:[%s15155_s16 + $0x76c] sm:$0xf0]  ;;  %v12039_v34 = vor.u32 %v14308_v38, %v12038_v60  ;;  %v14572_v44 = vld [vmem:[%s15155_s16 + $0xb5c] sm:$0xf0]  ;;  %v11918_v60 = vld [vmem:[%s15155_s16 + $0x218] sm:$0xf] }
 0x386   : > { %8427 = vmatpush.bf16.msrb.mxu0 %v11727_v37  ;;  %v11990_v37 = vld [vmem:[%s15155_s16 + $0x2a8] sm:$0xf]  ;;  %v12591_v39 = vor.u32 %v14446_v42, %v12590_v61  ;;  %v14278_v38 = vld [vmem:[%s15155_s16 + $0x22c] sm:$0xf0]  ;;  %v12903_v61 = vor.u32 %v14524_v26, %v12902_v18  ;;  %v12494_v42 = vld [vmem:[%s15155_s16 + $0x698] sm:$0xf] }
 0x387   : > { %8392 = vmatmul.bf16.vlgmr.msra.gmra.mxu1 %v15515_v51  ;;  %v11919_v22 = vor.u32 %v14278_v38, %v11918_v60  ;;  %v14494_v18 = vld [vmem:[%s15155_s16 + $0x8ec] sm:$0xf0]  ;;  %v14404_v60 = vld [vmem:[%s15155_s16 + $0x61c] sm:$0xf0] }
 0x388   : > { %8453 = vmatpush.bf16.msrb.mxu2 %v12111_v63  ;;  %v14296_v63 = vld [vmem:[%s15155_s16 + $0x2bc] sm:$0xf0]  ;;  %8436 = vmatpush.bf16.msrb.mxu1 %v12015_v29 }
 0x389   : > { %8466 = vmatpush.bf16.msrb.mxu3 %v12303_v40  ;;  %v12975_v40 = vor.u32 %v14542_v20, %v12974_v13  ;;  %v11991_v52 = vor.u32 %v14296_v63, %v11990_v37  ;;  %v11894_v37 = vld [vmem:[%s15155_s16 + $0x1e8] sm:$0xf]  ;;  %v14272_v63 = vld [vmem:[%s15155_s16 + $0x1fc] sm:$0xf0] }
 0x38a   : > { %8428 = vmatpush.bf16.msrb.mxu0 %v11703_v50  ;;  %v12951_v50 = vor.u32 %v14536_v43, %v12950_v21  ;;  %v14512_v21 = vld [vmem:[%s15155_s16 + $0x97c] sm:$0xf0]  ;;  %v13046_v43 = vld [vmem:[%s15155_s16 + $0xae8] sm:$0xf] }
 0x38c   : > { %8454 = vmatpush.bf16.msrb.mxu2 %v12087_v54  ;;  %v12542_v54 = vld [vmem:[%s15155_s16 + $0x6f8] sm:$0xf]  ;;  %8437 = vmatpush.bf16.msrb.mxu1 %v11991_v52  ;;  %v12854_v52 = vld [vmem:[%s15155_s16 + $0x968] sm:$0xf] }
 0x38d   : > { %8467 = vmatpush.bf16.msrb.mxu3 %v12279_v56  ;;  %v12926_v56 = vld [vmem:[%s15155_s16 + $0x9f8] sm:$0xf]  ;;  %v12543_v16 = vor.u32 %v14434_v55, %v12542_v54 }
 0x38e   : > { %8429 = vmatpush.bf16.msrb.mxu0 %v11679_v41  ;;  %v12927_v17 = vor.u32 %v14530_v2, %v12926_v56  ;;  %v13119_v41 = vor.u32 %v14578_v10, %v13118_v36  ;;  %v12446_v56 = vld [vmem:[%s15155_s16 + $0x638] sm:$0xf]  ;;  %v14410_v2 = vld [vmem:[%s15155_s16 + $0x64c] sm:$0xf0]  ;;  %v13047_v36 = vor.u32 %v14560_v49, %v13046_v43  ;;  %v11871_v10 = vor.u32 %v14266_v5, %v11870_v3  ;;  %v14245_v49 = vld [vmem:[%s15155_s16 + $0x12c] sm:$0xf] }
 0x38f   : > { %v12447_v26 = vor.u32 %v14410_v2, %v12446_v56  ;;  %v11800_v3 = vld [vmem:[%s15155_s16 + $0x140] sm:$0xf0]  ;;  %v14293_v5 = vld [vmem:[%s15155_s16 + $0x2ac] sm:$0xf] }
 0x390   : > { %8455 = vmatpush.bf16.msrb.mxu2 %v12063_v27  ;;  %8438 = vmatpush.bf16.msrb.mxu1 %v11967_v59  ;;  %v11943_v27 = vor.u32 %v14284_v15, %v11942_v12  ;;  %v12855_v59 = vor.u32 %v14512_v21, %v12854_v52  ;;  %v12830_v12 = vld [vmem:[%s15155_s16 + $0x938] sm:$0xf]  ;;  %v14506_v15 = vld [vmem:[%s15155_s16 + $0x94c] sm:$0xf0]  ;;  %v14632_v52 = vld [vmem:[%s15155_s16 + $0xd3c] sm:$0xf0] }
 0x391   : > { %8468 = vmatpush.bf16.msrb.mxu3 %v12255_v25  ;;  %v13094_v25 = vld [vmem:[%s15155_s16 + $0xb48] sm:$0xf] }
 0x392   : > { %8430 = vmatpush.bf16.msrb.mxu0 %v11655_v4  ;;  %v8224_v28 = vpop.f32.mrf.mxu0  ;;  %v13095_v20 = vor.u32 %v14572_v44, %v13094_v25  ;;  %v14518_v4 = vld [vmem:[%s15155_s16 + $0x9ac] sm:$0xf0]  ;;  %v12831_v25 = vor.u32 %v14506_v15, %v12830_v12  ;;  %v12422_v44 = vld [vmem:[%s15155_s16 + $0x608] sm:$0xf]  ;;  %v14287_v12 = vld [vmem:[%s15155_s16 + $0x27c] sm:$0xf] }
 0x393   : > { %v8237_v29 = vpop.f32.mrf.mxu1  ;;  %v8225_v13 = vadd.f32 %v8224_v28, %v15777_v14  ;;  %v12470_v14 = vld [vmem:[%s15155_s16 + $0x668] sm:$0xf]  ;;  %v11968_v15 = vld [vmem:[%s15155_s16 + $0x290] sm:$0xf0] }
 0x394   : > { %8456 = vmatpush.bf16.msrb.mxu2 %v12039_v34  ;;  %8439 = vmatpush.bf16.msrb.mxu1 %v11943_v27  ;;  %v13070_v34 = vld [vmem:[%s15155_s16 + $0xb18] sm:$0xf] }
 0x395   : > { %8469 = vmatpush.bf16.msrb.mxu3 %v12231_v58  ;;  %8431 = vmatmul.bf16.vlgmr.msrb.gmra.mxu0 %v15414_v0  ;;  %v8238_v58 = vadd.f32 %v8237_v29, %v8225_v13  ;;  %v13071_v53 = vor.u32 %v14566_v35, %v13070_v34  ;;  %v12782_v27 = vld [vmem:[%s15155_s16 + $0x8d8] sm:$0xf]  ;;  %v12806_v29 = vld [vmem:[%s15155_s16 + $0x908] sm:$0xf]  ;;  %v11824_v34 = vld [vmem:[%s15155_s16 + $0x170] sm:$0xf0] }
 0x396   : > { %8475 = vmatpush.bf16.msra.mxu0 %v12591_v39  ;;  %v12495_v39 = vor.u32 %v14422_v30, %v12494_v42  ;;  %v12783_v42 = vor.u32 %v14494_v18, %v12782_v27  ;;  %v14548_v30 = vld [vmem:[%s15155_s16 + $0xa9c] sm:$0xf0]  ;;  %v13358_v13 = vld [vmem:[%s15155_s16 + $0xd58] sm:$0xf]  ;;  %v14299_v35 = vld [vmem:[%s15155_s16 + $0x2dc] sm:$0xf] }
 0x397   : > { %8457 = vmatmul.bf16.vlgmr.msrb.gmra.mxu2 %v15418_v6  ;;  %v13286_v27 = vld [vmem:[%s15155_s16 + $0xcc8] sm:$0xf]  ;;  %v14620_v18 = vld [vmem:[%s15155_s16 + $0xcdc] sm:$0xf0] }
 0x398   : > { %8501 = vmatpush.bf16.msra.mxu2 %v12975_v40  ;;  %8470 = vmatmul.bf16.vlgmr.msrb.gmra.mxu3 %v15423_v11  ;;  %v12879_v40 = vor.u32 %v14518_v4, %v12878_v32  ;;  %v14251_v4 = vld [vmem:[%s15155_s16 + $0x15c] sm:$0xf] }
 0x399   : > { %8514 = vmatpush.bf16.msra.mxu3 %v13167_v45  ;;  %8440 = vmatpush.bf16.msrb.mxu1 %v11919_v22  ;;  %v11895_v45 = vor.u32 %v14272_v63, %v11894_v37  ;;  %v12423_v37 = vor.u32 %v14404_v60, %v12422_v44  ;;  %v12016_v63 = vld [vmem:[%s15155_s16 + $0x2f0] sm:$0xf0]  ;;  %v14233_v44 = vld [vmem:[%s15155_s16 + $0xcc] sm:$0xf]  ;;  %v11752_v60 = vld [vmem:[%s15155_s16 + $0xe0] sm:$0xf0] }
 0x39a   : > { %8476 = vmatpush.bf16.msra.mxu0 %v12567_v47  ;;  %v8250_v31 = vpop.f32.mrf.mxu2  ;;  %v8226_v54 = vpop.f32.mrf.mxu0  ;;  %v12019_v21 = vor.u32 %v14299_v35, %v12016_v63  ;;  %v14275_v35 = vld [vmem:[%s15155_s16 + $0x21c] sm:$0xf]  ;;  %v12662_v63 = vld [vmem:[%s15155_s16 + $0x7e8] sm:$0xf] }
 0x39b   : > { %v8263_v47 = vpop.f32.mrf.mxu3  ;;  %v8239_v55 = vpop.f32.mrf.mxu1 }
 0x39c   : > { %8502 = vmatpush.bf16.msra.mxu2 %v12951_v50  ;;  %v8251_v50 = vadd.f32 %v8250_v31, %v8238_v58  ;;  %v12758_v58 = vld [vmem:[%s15155_s16 + $0x8a8] sm:$0xf]  ;;  %v11992_v31 = vld [vmem:[%s15155_s16 + $0x2c0] sm:$0xf0]  ;;  %v11803_v55 = vor.u32 %v14245_v49, %v11800_v3  ;;  %v14269_v49 = vld [vmem:[%s15155_s16 + $0x1ec] sm:$0xf] }
 0x39d   : > { %8515 = vmatpush.bf16.msra.mxu3 %v13143_v57  ;;  %v12471_v57 = vor.u32 %v14416_v24, %v12470_v14  ;;  %8441 = vmatpush.bf16.msrb.mxu1 %v11895_v45  ;;  %v13334_v45 = vld [vmem:[%s15155_s16 + $0xd28] sm:$0xf]  ;;  %v11995_v56 = vor.u32 %v14293_v5, %v11992_v31  ;;  %v11896_v5 = vld [vmem:[%s15155_s16 + $0x200] sm:$0xf0]  ;;  %v12638_v31 = vld [vmem:[%s15155_s16 + $0x7b8] sm:$0xf] }
 0x39e   : > { %8477 = vmatpush.bf16.msra.mxu0 %v12543_v16  ;;  %v13022_v16 = vld [vmem:[%s15155_s16 + $0xab8] sm:$0xf]  ;;  %v13335_v54 = vor.u32 %v14632_v52, %v13334_v45 }
 0x39f   : > { %v13023_v38 = vor.u32 %v14554_v46, %v13022_v16  ;;  %v12710_v16 = vld [vmem:[%s15155_s16 + $0x848] sm:$0xf]  ;;  %v14476_v46 = vld [vmem:[%s15155_s16 + $0x85c] sm:$0xf0] }
 0x3a0   : > { %8503 = vmatpush.bf16.msra.mxu2 %v12927_v17  ;;  %v15848_v17 = vadd.f32 %v8263_v47, %v8251_v50  ;;  %v12734_v47 = vld [vmem:[%s15155_s16 + $0x878] sm:$0xf]  ;;  %v14482_v50 = vld [vmem:[%s15155_s16 + $0x88c] sm:$0xf0] }
 0x3a1   : > { %8516 = vmatpush.bf16.msra.mxu3 %v13119_v41  ;;  %v14260_v41 = vld [vmem:[%s15155_s16 + $0x19c] sm:$0xf0]  ;;  %8442 = vmatpush.bf16.msrb.mxu1 %v11871_v10  ;;  %v12735_v2 = vor.u32 %v14482_v50, %v12734_v47  ;;  %v11776_v10 = vld [vmem:[%s15155_s16 + $0x110] sm:$0xf0]  ;;  %v14458_v47 = vld [vmem:[%s15155_s16 + $0x7cc] sm:$0xf0] }
 0x3a2   : > { %8478 = vmatpush.bf16.msra.mxu0 %v12519_v19  ;;  %v11847_v28 = vor.u32 %v14260_v41, %v11846_v23  ;;  %v14500_v19 = vld [vmem:[%s15155_s16 + $0x91c] sm:$0xf0]  ;;  %v8252_v22 = vpop.f32.mrf.mxu2 }
 0x3a3   : > { %v8265_v32 = vpop.f32.mrf.mxu3 }
 0x3a4   : > { %8504 = vmatpush.bf16.msra.mxu2 %v12903_v61  ;;  %v12998_v61 = vld [vmem:[%s15155_s16 + $0xa88] sm:$0xf] }
 0x3a5   : > { %8517 = vmatpush.bf16.msra.mxu3 %v13095_v20  ;;  %v14638_v20 = vld [vmem:[%s15155_s16 + $0xd6c] sm:$0xf0]  ;;  %8443 = vmatpush.bf16.msrb.mxu1 %v11847_v28  ;;  %v12999_v14 = vor.u32 %v14548_v30, %v12998_v61  ;;  %v11944_v28 = vld [vmem:[%s15155_s16 + $0x260] sm:$0xf0]  ;;  %v11755_v30 = vor.u32 %v14233_v44, %v11752_v60  ;;  %v13190_v44 = vld [vmem:[%s15155_s16 + $0xc08] sm:$0xf] }
 0x3a6   : > { %8479 = vmatpush.bf16.msra.mxu0 %v12495_v39  ;;  %v14488_v39 = vld [vmem:[%s15155_s16 + $0x8bc] sm:$0xf0]  ;;  %v13359_v24 = vor.u32 %v14638_v20, %v13358_v13  ;;  %v13262_v13 = vld [vmem:[%s15155_s16 + $0xc98] sm:$0xf]  ;;  %v14614_v20 = vld [vmem:[%s15155_s16 + $0xcac] sm:$0xf0] }
 0x3a7   : > { %v12759_v43 = vor.u32 %v14488_v39, %v12758_v58  ;;  %v14464_v58 = vld [vmem:[%s15155_s16 + $0x7fc] sm:$0xf0]  ;;  %v5752_v39 = vperm.slane %v15738_v62, 1 }
 0x3a8   : > { %8505 = vmatpush.bf16.msra.mxu2 %v12879_v40  ;;  %v12807_v40 = vor.u32 %v14500_v19, %v12806_v29  ;;  %8444 = vmatmul.bf16.vlgmr.msrb.gmra.mxu1 %v15416_v1  ;;  %v12686_v29 = vld [vmem:[%s15155_s16 + $0x818] sm:$0xf]  ;;  %v14470_v19 = vld [vmem:[%s15155_s16 + $0x82c] sm:$0xf0]  ;;  %v12663_v52 = vor.u32 %v14464_v58, %v12662_v63  ;;  %v14596_v60 = vld [vmem:[%s15155_s16 + $0xc1c] sm:$0xf0] }
 0x3a9   : > { %8518 = vmatpush.bf16.msra.mxu3 %v13071_v53  ;;  %8488 = vmatpush.bf16.msra.mxu1 %v12783_v42  ;;  %v11827_v53 = vor.u32 %v14251_v4, %v11824_v34  ;;  %v13287_v42 = vor.u32 %v14620_v18, %v13286_v27  ;;  %v12687_v32 = vor.u32 %v14470_v19, %v12686_v29  ;;  %v14227_v4 = vld [vmem:[%s15155_s16 + $0x9c] sm:$0xf]  ;;  %v11728_v34 = vld [vmem:[%s15155_s16 + $0xb0] sm:$0xf0]  ;;  %v13550_v27 = vld [vmem:[%s15155_s16 + $0xed8] sm:$0xf] }
 0x3aa   : > { %8480 = vmatpush.bf16.msra.mxu0 %v12471_v57  ;;  %v13310_v57 = vld [vmem:[%s15155_s16 + $0xcf8] sm:$0xf]  ;;  %v14686_v18 = vld [vmem:[%s15155_s16 + $0xeec] sm:$0xf0]  ;;  %v14209_v29 = vld [vmem:[%s15155_s16 + $0xc] sm:$0xf]  ;;  %v13191_v63 = vor.u32 %v14596_v60, %v13190_v44 }
 0x3ab   : > { %v11656_v19 = vld [vmem:[%s15155_s16 + $0x20] sm:$0xf0]  ;;  %v12784_v58 = vld [vmem:[%s15155_s16 + $0x8f0] sm:$0xf0]  ;;  %v14425_v60 = vld [vmem:[%s15155_s16 + $0x6cc] sm:$0xf] }
 0x3ac   : > { %8506 = vmatpush.bf16.msra.mxu2 %v12855_v59  ;;  %v14626_v59 = vld [vmem:[%s15155_s16 + $0xd0c] sm:$0xf0] }
 0x3ad   : > { %8519 = vmatpush.bf16.msra.mxu3 %v13047_v36  ;;  %8489 = vmatpush.bf16.msra.mxu1 %v12759_v43  ;;  %v14239_v36 = vld [vmem:[%s15155_s16 + $0xfc] sm:$0xf]  ;;  %v13311_v23 = vor.u32 %v14626_v59, %v13310_v57  ;;  %v11704_v43 = vld [vmem:[%s15155_s16 + $0x80] sm:$0xf0]  ;;  %v13214_v59 = vld [vmem:[%s15155_s16 + $0xc38] sm:$0xf] }
 0x3ae   : > { %8481 = vmatpush.bf16.msra.mxu0 %v12447_v26  ;;  %v11779_v41 = vor.u32 %v14239_v36, %v11776_v10  ;;  %v11971_v26 = vor.u32 %v14287_v12, %v11968_v15  ;;  %v11899_v36 = vor.u32 %v14269_v49, %v11896_v5  ;;  %v12639_v10 = vor.u32 %v14458_v47, %v12638_v31  ;;  %v14215_v12 = vld [vmem:[%s15155_s16 + $0x3c] sm:$0xf]  ;;  %v11680_v15 = vld [vmem:[%s15155_s16 + $0x50] sm:$0xf0]  ;;  %v14485_v5 = vld [vmem:[%s15155_s16 + $0x8ac] sm:$0xf] }
 0x3af   : > { %v12760_v31 = vld [vmem:[%s15155_s16 + $0x8c0] sm:$0xf0]  ;;  %v13502_v47 = vld [vmem:[%s15155_s16 + $0xe78] sm:$0xf] }
 0x3b0   : > { %8507 = vmatpush.bf16.msra.mxu2 %v12831_v25  ;;  %v12711_v25 = vor.u32 %v14476_v46, %v12710_v16  ;;  %v14263_v16 = vld [vmem:[%s15155_s16 + $0x1bc] sm:$0xf]  ;;  %v11872_v46 = vld [vmem:[%s15155_s16 + $0x1d0] sm:$0xf0] }
 0x3b1   : > { %8520 = vmatpush.bf16.msra.mxu3 %v13023_v38  ;;  %8490 = vmatpush.bf16.msra.mxu1 %v12735_v2  ;;  %v14281_v38 = vld [vmem:[%s15155_s16 + $0x24c] sm:$0xf] }
 0x3b2   : > { %8482 = vmatpush.bf16.msra.mxu0 %v12423_v37  ;;  %v15897_v61 = vpop.f32.mrf.mxu0  ;;  %v11947_v22 = vor.u32 %v14281_v38, %v11944_v28  ;;  %v11920_v37 = vld [vmem:[%s15155_s16 + $0x230] sm:$0xf0]  ;;  %v11875_v38 = vor.u32 %v14263_v16, %v11872_v46  ;;  %v13478_v46 = vld [vmem:[%s15155_s16 + $0xe48] sm:$0xf] }
 0x3b3   : > { %v11923_v45 = vor.u32 %v14275_v35, %v11920_v37  ;;  %v12592_v35 = vld [vmem:[%s15155_s16 + $0x770] sm:$0xf0]  ;;  %v14491_v37 = vld [vmem:[%s15155_s16 + $0x8dc] sm:$0xf] }
 0x3b4   : > { %8508 = vmatpush.bf16.msra.mxu2 %v12807_v40  ;;  %v13263_v40 = vor.u32 %v14614_v20, %v13262_v13  ;;  %v13551_v20 = vor.u32 %v14686_v18, %v13550_v27  ;;  %v12736_v16 = vld [vmem:[%s15155_s16 + $0x890] sm:$0xf0]  ;;  %v14329_v18 = vld [vmem:[%s15155_s16 + $0x3cc] sm:$0xf] }
 0x3b5   : > { %8521 = vmatpush.bf16.msra.mxu3 %v12999_v14  ;;  %8483 = vmatmul.bf16.vlgmr.msra.gmra.mxu0 %v15509_v7  ;;  %v11731_v14 = vor.u32 %v14227_v4, %v11728_v34  ;;  %v12208_v4 = vld [vmem:[%s15155_s16 + $0x470] sm:$0xf0]  ;;  %v14443_v34 = vld [vmem:[%s15155_s16 + $0x75c] sm:$0xf] }
 0x3b6   : > { %8527 = vmatpush.bf16.msrb.mxu0 %v13359_v24  ;;  %8491 = vmatpush.bf16.msra.mxu1 %v12711_v25  ;;  %v13238_v24 = vld [vmem:[%s15155_s16 + $0xc68] sm:$0xf]  ;;  %v11683_v25 = vor.u32 %v14215_v12, %v11680_v15  ;;  %v12544_v12 = vld [vmem:[%s15155_s16 + $0x710] sm:$0xf0]  ;;  %v14479_v15 = vld [vmem:[%s15155_s16 + $0x87c] sm:$0xf] }
 0x3b7   : > { %8509 = vmatmul.bf16.vlgmr.msra.gmra.mxu2 %v15513_v9 }
 0x3b8   : > { %8553 = vmatpush.bf16.msrb.mxu2 %v11827_v53  ;;  %8522 = vmatmul.bf16.vlgmr.msra.gmra.mxu3 %v15515_v51  ;;  %v14608_v53 = vld [vmem:[%s15155_s16 + $0xc7c] sm:$0xf0] }
 0x3b9   : > { %8566 = vmatpush.bf16.msrb.mxu3 %v12019_v21  ;;  %v14221_v21 = vld [vmem:[%s15155_s16 + $0x6c] sm:$0xf] }
 0x3ba   : > { %8528 = vmatpush.bf16.msrb.mxu0 %v13335_v54  ;;  %8492 = vmatpush.bf16.msra.mxu1 %v12687_v32  ;;  %v8302_v3 = vpop.f32.mrf.mxu2  ;;  %v8278_v54 = vpop.f32.mrf.mxu0  ;;  %v11707_v57 = vor.u32 %v14221_v21, %v11704_v43  ;;  %v14347_v32 = vld [vmem:[%s15155_s16 + $0x45c] sm:$0xf]  ;;  %v12184_v21 = vld [vmem:[%s15155_s16 + $0x440] sm:$0xf0]  ;;  %v12787_v43 = vor.u32 %v14491_v37, %v12784_v58  ;;  %v12496_v37 = vld [vmem:[%s15155_s16 + $0x6b0] sm:$0xf0] }
 0x3bb   : > { %v8315_v62 = vpop.f32.mrf.mxu3  ;;  %v8303_v50 = vadd.f32 %v8302_v3, %v5752_v39  ;;  %v13526_v39 = vld [vmem:[%s15155_s16 + $0xea8] sm:$0xf]  ;;  %v14437_v3 = vld [vmem:[%s15155_s16 + $0x72c] sm:$0xf]  ;;  %v12688_v58 = vld [vmem:[%s15155_s16 + $0x830] sm:$0xf0] }
 0x3bc   : > { %8554 = vmatpush.bf16.msrb.mxu2 %v11803_v55  ;;  %v13239_v55 = vor.u32 %v14608_v53, %v13238_v24  ;;  %v12211_v53 = vor.u32 %v14347_v32, %v12208_v4  ;;  %v12112_v32 = vld [vmem:[%s15155_s16 + $0x3b0] sm:$0xf0] }
 0x3bd   : > { %8567 = vmatpush.bf16.msrb.mxu3 %v11995_v56  ;;  %v14602_v56 = vld [vmem:[%s15155_s16 + $0xc4c] sm:$0xf0]  ;;  %v15918_v2 = vadd.f32 %v8315_v62, %v8303_v50  ;;  %v12568_v62 = vld [vmem:[%s15155_s16 + $0x740] sm:$0xf0] }
 0x3be   : > { %8529 = vmatpush.bf16.msrb.mxu0 %v13311_v23  ;;  %8493 = vmatpush.bf16.msra.mxu1 %v12663_v52  ;;  %v12614_v23 = vld [vmem:[%s15155_s16 + $0x788] sm:$0xf]  ;;  %v14341_v52 = vld [vmem:[%s15155_s16 + $0x42c] sm:$0xf]  ;;  %v14674_v50 = vld [vmem:[%s15155_s16 + $0xe8c] sm:$0xf0] }
 0x3bf   : > { %v12187_v54 = vor.u32 %v14341_v52, %v12184_v21 }
 0x3c0   : > { %8555 = vmatpush.bf16.msrb.mxu2 %v11779_v41  ;;  %v14452_v41 = vld [vmem:[%s15155_s16 + $0x79c] sm:$0xf0] }
 0x3c1   : > { %8568 = vmatpush.bf16.msrb.mxu3 %v11971_v26  ;;  %v13215_v26 = vor.u32 %v14602_v56, %v13214_v59  ;;  %v12615_v28 = vor.u32 %v14452_v41, %v12614_v23  ;;  %v12160_v59 = vld [vmem:[%s15155_s16 + $0x410] sm:$0xf0]  ;;  %v12763_v56 = vor.u32 %v14485_v5, %v12760_v31  ;;  %v14668_v23 = vld [vmem:[%s15155_s16 + $0xe5c] sm:$0xf0]  ;;  %v12664_v31 = vld [vmem:[%s15155_s16 + $0x800] sm:$0xf0] }
 0x3c2   : > { %8530 = vmatpush.bf16.msrb.mxu0 %v13287_v42  ;;  %8494 = vmatpush.bf16.msra.mxu1 %v12639_v10  ;;  %v14257_v42 = vld [vmem:[%s15155_s16 + $0x18c] sm:$0xf]  ;;  %v14431_v10 = vld [vmem:[%s15155_s16 + $0x6fc] sm:$0xf]  ;;  %v13479_v44 = vor.u32 %v14668_v23, %v13478_v46  ;;  %v12640_v46 = vld [vmem:[%s15155_s16 + $0x7d0] sm:$0xf0] }
 0x3c3   : > { %v8317_v13 = vpop.f32.mrf.mxu3  ;;  %v12547_v27 = vor.u32 %v14431_v10, %v12544_v12  ;;  %v14407_v12 = vld [vmem:[%s15155_s16 + $0x63c] sm:$0xf]  ;;  %v13382_v23 = vld [vmem:[%s15155_s16 + $0xd88] sm:$0xf] }
 0x3c4   : > { %8556 = vmatpush.bf16.msrb.mxu2 %v11755_v30  ;;  %v8304_v30 = vpop.f32.mrf.mxu2 }
 0x3c5   : > { %8569 = vmatpush.bf16.msrb.mxu3 %v11947_v22  ;;  %v11848_v22 = vld [vmem:[%s15155_s16 + $0x1a0] sm:$0xf0] }
 0x3c6   : > { %8531 = vmatpush.bf16.msrb.mxu0 %v13263_v40  ;;  %v14680_v40 = vld [vmem:[%s15155_s16 + $0xebc] sm:$0xf0]  ;;  %8495 = vmatpush.bf16.msra.mxu1 %v12615_v28  ;;  %v11851_v24 = vor.u32 %v14257_v42, %v11848_v22  ;;  %v14473_v28 = vld [vmem:[%s15155_s16 + $0x84c] sm:$0xf]  ;;  %v14662_v42 = vld [vmem:[%s15155_s16 + $0xe2c] sm:$0xf0] }
 0x3c7   : > { %v13527_v49 = vor.u32 %v14680_v40, %v13526_v39  ;;  %v14323_v22 = vld [vmem:[%s15155_s16 + $0x39c] sm:$0xf]  ;;  %v13430_v39 = vld [vmem:[%s15155_s16 + $0xde8] sm:$0xf]  ;;  %v14656_v40 = vld [vmem:[%s15155_s16 + $0xdfc] sm:$0xf0] }
 0x3c8   : > { %8557 = vmatpush.bf16.msrb.mxu2 %v11731_v14  ;;  %v11659_v14 = vor.u32 %v14209_v29, %v11656_v19  ;;  %v12712_v29 = vld [vmem:[%s15155_s16 + $0x860] sm:$0xf0]  ;;  %v13454_v19 = vld [vmem:[%s15155_s16 + $0xe18] sm:$0xf] }
 0x3c9   : > { %8570 = vmatpush.bf16.msrb.mxu3 %v11923_v45  ;;  %v12595_v45 = vor.u32 %v14443_v34, %v12592_v35  ;;  %8496 = vmatmul.bf16.vlgmr.msra.gmra.mxu1 %v15511_v8  ;;  %v12715_v4 = vor.u32 %v14473_v28, %v12712_v29  ;;  %v13455_v34 = vor.u32 %v14662_v42, %v13454_v19  ;;  %v14419_v35 = vld [vmem:[%s15155_s16 + $0x69c] sm:$0xf]  ;;  %v14401_v19 = vld [vmem:[%s15155_s16 + $0x60c] sm:$0xf]  ;;  %v12424_v42 = vld [vmem:[%s15155_s16 + $0x620] sm:$0xf0] }
 0x3ca   : > { %8532 = vmatpush.bf16.msrb.mxu0 %v13239_v55  ;;  %8540 = vmatpush.bf16.msrb.mxu1 %v13551_v20  ;;  %v12571_v55 = vor.u32 %v14437_v3, %v12568_v62  ;;  %v12472_v3 = vld [vmem:[%s15155_s16 + $0x680] sm:$0xf0]  ;;  %v14461_v62 = vld [vmem:[%s15155_s16 + $0x7ec] sm:$0xf] }
 0x3cc   : > { %8558 = vmatpush.bf16.msrb.mxu2 %v11707_v57  ;;  %v14335_v57 = vld [vmem:[%s15155_s16 + $0x3fc] sm:$0xf] }
 0x3cd   : > { %8571 = vmatpush.bf16.msrb.mxu3 %v11899_v36  ;;  %v13503_v36 = vor.u32 %v14674_v50, %v13502_v47  ;;  %v12163_v41 = vor.u32 %v14335_v57, %v12160_v59  ;;  %v13406_v47 = vld [vmem:[%s15155_s16 + $0xdb8] sm:$0xf]  ;;  %v14650_v50 = vld [vmem:[%s15155_s16 + $0xdcc] sm:$0xf0]  ;;  %v14311_v59 = vld [vmem:[%s15155_s16 + $0x33c] sm:$0xf] }
 0x3ce   : > { %8533 = vmatpush.bf16.msrb.mxu0 %v13215_v26  ;;  %8541 = vmatpush.bf16.msrb.mxu1 %v13527_v49  ;;  %v12136_v26 = vld [vmem:[%s15155_s16 + $0x3e0] sm:$0xf0]  ;;  %v14413_v49 = vld [vmem:[%s15155_s16 + $0x66c] sm:$0xf]  ;;  %v13407_v10 = vor.u32 %v14650_v50, %v13406_v47 }
 0x3cf   : > { %v12139_v13 = vor.u32 %v14329_v18, %v12136_v26  ;;  %v12475_v57 = vor.u32 %v14413_v49, %v12472_v3  ;;  %v12400_v18 = vld [vmem:[%s15155_s16 + $0x5f0] sm:$0xf0]  ;;  %v12952_v49 = vld [vmem:[%s15155_s16 + $0xa40] sm:$0xf0]  ;;  %v14677_v50 = vld [vmem:[%s15155_s16 + $0xeac] sm:$0xf] }
 0x3d0   : > { %8559 = vmatpush.bf16.msrb.mxu2 %v11683_v25  ;;  %v12739_v25 = vor.u32 %v14479_v15, %v12736_v16  ;;  %v12448_v15 = vld [vmem:[%s15155_s16 + $0x650] sm:$0xf0]  ;;  %v14455_v16 = vld [vmem:[%s15155_s16 + $0x7bc] sm:$0xf]  ;;  %v13336_v47 = vld [vmem:[%s15155_s16 + $0xd40] sm:$0xf0] }
 0x3d1   : > { %8572 = vmatpush.bf16.msrb.mxu3 %v11875_v38  ;;  %v12520_v38 = vld [vmem:[%s15155_s16 + $0x6e0] sm:$0xf0] }
 0x3d2   : > { %8534 = vmatpush.bf16.msrb.mxu0 %v13191_v63  ;;  %8542 = vmatpush.bf16.msrb.mxu1 %v13503_v36  ;;  %v15970_v30 = vpop.f32.mrf.mxu0  ;;  %v12523_v20 = vor.u32 %v14425_v60, %v12520_v38  ;;  %v14467_v63 = vld [vmem:[%s15155_s16 + $0x81c] sm:$0xf]  ;;  %v12667_v36 = vor.u32 %v14461_v62, %v12664_v31  ;;  %v12040_v60 = vld [vmem:[%s15155_s16 + $0x320] sm:$0xf0]  ;;  %v12643_v38 = vor.u32 %v14455_v16, %v12640_v46  ;;  %v14629_v31 = vld [vmem:[%s15155_s16 + $0xd2c] sm:$0xf] }
 0x3d3   : > { %v12691_v52 = vor.u32 %v14467_v63, %v12688_v58  ;;  %v14683_v63 = vld [vmem:[%s15155_s16 + $0xedc] sm:$0xf] }
 0x3d4   : > { %8560 = vmatpush.bf16.msrb.mxu2 %v11659_v14  ;;  %v12115_v14 = vor.u32 %v14323_v22, %v12112_v32  ;;  %v12616_v32 = vld [vmem:[%s15155_s16 + $0x7a0] sm:$0xf0]  ;;  %v14623_v46 = vld [vmem:[%s15155_s16 + $0xcfc] sm:$0xf] }
 0x3d5   : > { %8573 = vmatpush.bf16.msrb.mxu3 %v11851_v24  ;;  %8535 = vmatmul.bf16.vlgmr.msrb.gmra.mxu0 %v15581_v33  ;;  %v12499_v24 = vor.u32 %v14419_v35, %v12496_v37  ;;  %v14635_v35 = vld [vmem:[%s15155_s16 + $0xd5c] sm:$0xf]  ;;  %v13360_v37 = vld [vmem:[%s15155_s16 + $0xd70] sm:$0xf0] }
 0x3d6   : > { %8579 = vmatpush.bf16.msra.mxu0 %v12211_v53  ;;  %8543 = vmatpush.bf16.msrb.mxu1 %v13479_v44  ;;  %v14317_v53 = vld [vmem:[%s15155_s16 + $0x36c] sm:$0xf] }
 0x3d7   : > { %8561 = vmatmul.bf16.vlgmr.msrb.gmra.mxu2 %v15414_v0  ;;  %v14305_v44 = vld [vmem:[%s15155_s16 + $0x30c] sm:$0xf] }
 0x3d8   : > { %8605 = vmatpush.bf16.msra.mxu2 %v12595_v45  ;;  %8574 = vmatmul.bf16.vlgmr.msrb.gmra.mxu3 %v15416_v1  ;;  %v12088_v45 = vld [vmem:[%s15155_s16 + $0x380] sm:$0xf0]  ;;  %v12043_v58 = vor.u32 %v14305_v44, %v12040_v60  ;;  %v14521_v60 = vld [vmem:[%s15155_s16 + $0x9cc] sm:$0xf] }
 0x3d9   : > { %8618 = vmatpush.bf16.msra.mxu3 %v12787_v43  ;;  %v13431_v43 = vor.u32 %v14656_v40, %v13430_v39  ;;  %v13552_v39 = vld [vmem:[%s15155_s16 + $0xef0] sm:$0xf0]  ;;  %v14389_v40 = vld [vmem:[%s15155_s16 + $0x5ac] sm:$0xf] }
 0x3da   : > { %8580 = vmatpush.bf16.msra.mxu0 %v12187_v54  ;;  %8544 = vmatpush.bf16.msrb.mxu1 %v13455_v34  ;;  %v15982_v21 = vpop.f32.mrf.mxu2  ;;  %v8330_v54 = vpop.f32.mrf.mxu0  ;;  %v12976_v34 = vld [vmem:[%s15155_s16 + $0xa70] sm:$0xf0]  ;;  %v13555_v3 = vor.u32 %v14683_v63, %v13552_v39  ;;  %v14515_v63 = vld [vmem:[%s15155_s16 + $0x99c] sm:$0xf] }
 0x3db   : > { %v15987_v5 = vpop.f32.mrf.mxu3  ;;  %v8277_v54 = vadd.f32 %v15897_v61, %v15848_v17  ;;  %v14527_v61 = vld [vmem:[%s15155_s16 + $0x9fc] sm:$0xf] }
 0x3dc   : > { %8606 = vmatpush.bf16.msra.mxu2 %v12571_v55  ;;  %v12091_v55 = vor.u32 %v14317_v53, %v12088_v45 }
 0x3dd   : > { %8619 = vmatpush.bf16.msra.mxu3 %v12763_v56  ;;  %v12064_v56 = vld [vmem:[%s15155_s16 + $0x350] sm:$0xf0] }
 0x3de   : > { %8581 = vmatpush.bf16.msra.mxu0 %v12163_v41  ;;  %8545 = vmatpush.bf16.msrb.mxu1 %v13431_v43  ;;  %v14644_v41 = vld [vmem:[%s15155_s16 + $0xd9c] sm:$0xf0]  ;;  %v12067_v26 = vor.u32 %v14311_v59, %v12064_v56  ;;  %v14533_v43 = vld [vmem:[%s15155_s16 + $0xa2c] sm:$0xf]  ;;  %v12352_v59 = vld [vmem:[%s15155_s16 + $0x590] sm:$0xf0] }
 0x3df   : > { %v13383_v29 = vor.u32 %v14644_v41, %v13382_v23  ;;  %v13312_v23 = vld [vmem:[%s15155_s16 + $0xd10] sm:$0xf0]  ;;  %v14671_v41 = vld [vmem:[%s15155_s16 + $0xe7c] sm:$0xf] }
 0x3e0   : > { %8607 = vmatpush.bf16.msra.mxu2 %v12547_v27  ;;  %v14395_v27 = vld [vmem:[%s15155_s16 + $0x5dc] sm:$0xf]  ;;  %v8289_v56 = vpop.f32.mrf.mxu1  ;;  %v13315_v44 = vor.u32 %v14623_v46, %v13312_v23  ;;  %v12832_v23 = vld [vmem:[%s15155_s16 + $0x950] sm:$0xf0] }
 0x3e1   : > { %8620 = vmatpush.bf16.msra.mxu3 %v12739_v25  ;;  %v12451_v25 = vor.u32 %v14407_v12, %v12448_v15  ;;  %v12403_v22 = vor.u32 %v14395_v27, %v12400_v18  ;;  %v8290_v17 = vadd.f32 %v8289_v56, %v8277_v54  ;;  %v12928_v12 = vld [vmem:[%s15155_s16 + $0xa10] sm:$0xf0]  ;;  %v14377_v18 = vld [vmem:[%s15155_s16 + $0x54c] sm:$0xf]  ;;  %v14503_v46 = vld [vmem:[%s15155_s16 + $0x93c] sm:$0xf] }
 0x3e2   : > { %8582 = vmatpush.bf16.msra.mxu0 %v12139_v13  ;;  %8546 = vmatpush.bf16.msrb.mxu1 %v13407_v10  ;;  %v8356_v28 = vpop.f32.mrf.mxu2  ;;  %v14449_v13 = vld [vmem:[%s15155_s16 + $0x78c] sm:$0xf]  ;;  %v13339_v10 = vor.u32 %v14629_v31, %v13336_v47  ;;  %v13504_v27 = vld [vmem:[%s15155_s16 + $0xe90] sm:$0xf0]  ;;  %v12856_v31 = vld [vmem:[%s15155_s16 + $0x980] sm:$0xf0] }
 0x3e3   : > { %v12619_v53 = vor.u32 %v14449_v13, %v12616_v32  ;;  %8943 = vst [vmem:[%s16037_s8] sm:$0xff] %v8290_v17  ;;  %v13507_v28 = vor.u32 %v14671_v41, %v13504_v27  ;;  %v14665_v13 = vld [vmem:[%s15155_s16 + $0xe4c] sm:$0xf]  ;;  %v12304_v32 = vld [vmem:[%s15155_s16 + $0x530] sm:$0xf0] }
 0x3e4   : > { %8608 = vmatpush.bf16.msra.mxu2 %v12523_v20  ;;  %v8369_v20 = vpop.f32.mrf.mxu3  ;;  %v12256_v17 = vld [vmem:[%s15155_s16 + $0x4d0] sm:$0xf0] }
 0x3e5   : > { %8621 = vmatpush.bf16.msra.mxu3 %v12715_v4  ;;  %v14539_v4 = vld [vmem:[%s15155_s16 + $0xa5c] sm:$0xf]  ;;  %v13480_v20 = vld [vmem:[%s15155_s16 + $0xe60] sm:$0xf0] }
 0x3e6   : > { %8583 = vmatpush.bf16.msra.mxu0 %v12115_v14  ;;  %v12376_v14 = vld [vmem:[%s15155_s16 + $0x5c0] sm:$0xf0]  ;;  %8547 = vmatpush.bf16.msrb.mxu1 %v13383_v29  ;;  %v12979_v45 = vor.u32 %v14539_v4, %v12976_v34  ;;  %v13483_v39 = vor.u32 %v14665_v13, %v13480_v20  ;;  %v14497_v20 = vld [vmem:[%s15155_s16 + $0x90c] sm:$0xf] }
 0x3e7   : > { %v12379_v62 = vor.u32 %v14389_v40, %v12376_v14  ;;  %v14611_v14 = vld [vmem:[%s15155_s16 + $0xc9c] sm:$0xf] }
 0x3e8   : > { %8609 = vmatpush.bf16.msra.mxu2 %v12499_v24  ;;  %v12427_v24 = vor.u32 %v14401_v19, %v12424_v42  ;;  %v14617_v19 = vld [vmem:[%s15155_s16 + $0xccc] sm:$0xf]  ;;  %v13288_v42 = vld [vmem:[%s15155_s16 + $0xce0] sm:$0xf0]  ;;  %v8291_v34 = vpop.f32.mrf.mxu1 }
 0x3e9   : > { %8622 = vmatpush.bf16.msra.mxu3 %v12691_v52  ;;  %v13363_v52 = vor.u32 %v14635_v35, %v13360_v37  ;;  %8548 = vmatmul.bf16.vlgmr.msrb.gmra.mxu1 %v15708_v48  ;;  %v13291_v37 = vor.u32 %v14617_v19, %v13288_v42  ;;  %v13168_v19 = vld [vmem:[%s15155_s16 + $0xbf0] sm:$0xf0]  ;;  %v12835_v42 = vor.u32 %v14503_v46, %v12832_v23  ;;  %v14575_v46 = vld [vmem:[%s15155_s16 + $0xb7c] sm:$0xf] }
 0x3ea   : > { %8584 = vmatpush.bf16.msra.mxu0 %v12091_v55  ;;  %8592 = vmatpush.bf16.msra.mxu1 %v12403_v22  ;;  %v13528_v55 = vld [vmem:[%s15155_s16 + $0xec0] sm:$0xf0]  ;;  %v14371_v22 = vld [vmem:[%s15155_s16 + $0x51c] sm:$0xf]  ;;  %v13120_v23 = vld [vmem:[%s15155_s16 + $0xb90] sm:$0xf0] }
 0x3eb   : > { %v13531_v15 = vor.u32 %v14677_v50, %v13528_v55  ;;  %v12307_v40 = vor.u32 %v14371_v22, %v12304_v32  ;;  %v14605_v55 = vld [vmem:[%s15155_s16 + $0xc6c] sm:$0xf]  ;;  %v12808_v22 = vld [vmem:[%s15155_s16 + $0x920] sm:$0xf0] }
 0x3ec   : > { %8610 = vmatpush.bf16.msra.mxu2 %v12475_v57  ;;  %v14383_v57 = vld [vmem:[%s15155_s16 + $0x57c] sm:$0xf] }
 0x3ed   : > { %8623 = vmatpush.bf16.msra.mxu3 %v12667_v36  ;;  %v12955_v36 = vor.u32 %v14533_v43, %v12952_v49  ;;  %v12355_v16 = vor.u32 %v14383_v57, %v12352_v59  ;;  %v12280_v43 = vld [vmem:[%s15155_s16 + $0x500] sm:$0xf0]  ;;  %v14653_v59 = vld [vmem:[%s15155_s16 + $0xdec] sm:$0xf] }
 0x3ee   : > { %8585 = vmatpush.bf16.msra.mxu0 %v12067_v26  ;;  %8593 = vmatpush.bf16.msra.mxu1 %v12379_v62  ;;  %v12328_v26 = vld [vmem:[%s15155_s16 + $0x560] sm:$0xf0]  ;;  %v14509_v62 = vld [vmem:[%s15155_s16 + $0x96c] sm:$0xf] }
 0x3ef   : > { %v12331_v29 = vor.u32 %v14377_v18, %v12328_v26  ;;  %v13240_v57 = vld [vmem:[%s15155_s16 + $0xc80] sm:$0xf0]  ;;  %v14599_v18 = vld [vmem:[%s15155_s16 + $0xc3c] sm:$0xf]  ;;  %v13216_v26 = vld [vmem:[%s15155_s16 + $0xc50] sm:$0xf0] }
 0x3f0   : > { %8611 = vmatpush.bf16.msra.mxu2 %v12451_v25  ;;  %v12931_v25 = vor.u32 %v14527_v61, %v12928_v12  ;;  %v13219_v13 = vor.u32 %v14599_v18, %v13216_v26  ;;  %v11782_v26 = vld [vmem:[%s15155_s16 + $0x100] sm:$0xf] }
 0x3f1   : > { %8624 = vmatpush.bf16.msra.mxu3 %v12643_v38  ;;  %v12904_v38 = vld [vmem:[%s15155_s16 + $0x9e0] sm:$0xf0]  ;;  %v8341_v12 = vpop.f32.mrf.mxu1 }
 0x3f2   : > { %8586 = vmatpush.bf16.msra.mxu0 %v12043_v58  ;;  %8594 = vmatpush.bf16.msra.mxu1 %v12355_v16  ;;  %v16052_v4 = vpop.f32.mrf.mxu0  ;;  %v12907_v35 = vor.u32 %v14521_v60, %v12904_v38  ;;  %v12880_v58 = vld [vmem:[%s15155_s16 + $0x9b0] sm:$0xf0]  ;;  %v13243_v16 = vor.u32 %v14605_v55, %v13240_v57  ;;  %v14353_v60 = vld [vmem:[%s15155_s16 + $0x48c] sm:$0xf]  ;;  %v12232_v38 = vld [vmem:[%s15155_s16 + $0x4a0] sm:$0xf0] }
 0x3f3   : > { %v12883_v49 = vor.u32 %v14515_v63, %v12880_v58  ;;  %v12235_v34 = vor.u32 %v14353_v60, %v12232_v38  ;;  %v14641_v63 = vld [vmem:[%s15155_s16 + $0xd8c] sm:$0xf]  ;;  %v13123_v60 = vor.u32 %v14575_v46, %v13120_v23  ;;  %v12166_v38 = vld [vmem:[%s15155_s16 + $0x400] sm:$0xf]  ;;  %v14321_v46 = vld [vmem:[%s15155_s16 + $0x384] sm:$0xf0] }
 0x3f4   : > { %8612 = vmatpush.bf16.msra.mxu2 %v12427_v24  ;;  %v13264_v24 = vld [vmem:[%s15155_s16 + $0xcb0] sm:$0xf0]  ;;  %v12286_v23 = vld [vmem:[%s15155_s16 + $0x4f0] sm:$0xf] }
 0x3f5   : > { %8625 = vmatpush.bf16.msra.mxu3 %v12619_v53  ;;  %8587 = vmatmul.bf16.vlgmr.msra.gmra.mxu0 %v15418_v6  ;;  %v14659_v53 = vld [vmem:[%s15155_s16 + $0xe1c] sm:$0xf] }
 0x3f6   : > { %8631 = vmatpush.bf16.msrb.mxu0 %v12979_v45  ;;  %8595 = vmatpush.bf16.msra.mxu1 %v12331_v29  ;;  %v13456_v45 = vld [vmem:[%s15155_s16 + $0xe30] sm:$0xf0]  ;;  %v14587_v29 = vld [vmem:[%s15155_s16 + $0xbdc] sm:$0xf] }
 0x3f7   : > { %8613 = vmatmul.bf16.vlgmr.msra.gmra.mxu2 %v15509_v7  ;;  %v13459_v47 = vor.u32 %v14659_v53, %v13456_v45  ;;  %v12214_v53 = vld [vmem:[%s15155_s16 + $0x460] sm:$0xf]  ;;  %v14351_v45 = vld [vmem:[%s15155_s16 + $0x474] sm:$0xf0] }
 0x3f8   : > { %8657 = vmatpush.bf16.msrb.mxu2 %v13363_v52  ;;  %8626 = vmatmul.bf16.vlgmr.msra.gmra.mxu3 %v15511_v8  ;;  %v14365_v52 = vld [vmem:[%s15155_s16 + $0x4ec] sm:$0xf] }
 0x3f9   : > { %8670 = vmatpush.bf16.msrb.mxu3 %v13555_v3  ;;  %v13267_v3 = vor.u32 %v14611_v14, %v13264_v24  ;;  %v12283_v54 = vor.u32 %v14365_v52, %v12280_v43  ;;  %v11830_v14 = vld [vmem:[%s15155_s16 + $0x160] sm:$0xf]  ;;  %v14255_v24 = vld [vmem:[%s15155_s16 + $0x174] sm:$0xf0]  ;;  %v8343_v43 = vpop.f32.mrf.mxu1 }
 0x3fa   : > { %8632 = vmatpush.bf16.msrb.mxu0 %v12955_v36  ;;  %8596 = vmatpush.bf16.msra.mxu1 %v12307_v40  ;;  %v16064_v50 = vpop.f32.mrf.mxu2  ;;  %v13432_v36 = vld [vmem:[%s15155_s16 + $0xe00] sm:$0xf0]  ;;  %v8382_v61 = vpop.f32.mrf.mxu0  ;;  %v12406_v52 = vld [vmem:[%s15155_s16 + $0x5e0] sm:$0xf]  ;;  %v11831_v57 = vor.u32 %v14255_v24, %v11830_v14  ;;  %v13072_v14 = vld [vmem:[%s15155_s16 + $0xb30] sm:$0xf0] }
 0x3fb   : > { %v16069_v56 = vpop.f32.mrf.mxu3  ;;  %v13435_v41 = vor.u32 %v14653_v59, %v13432_v36  ;;  %v13384_v40 = vld [vmem:[%s15155_s16 + $0xda0] sm:$0xf0]  ;;  %v12215_v59 = vor.u32 %v14351_v45, %v12214_v53  ;;  %v11806_v36 = vld [vmem:[%s15155_s16 + $0x130] sm:$0xf]  ;;  %v11734_v43 = vld [vmem:[%s15155_s16 + $0xa0] sm:$0xf] }
 0x3fc   : > { %8658 = vmatpush.bf16.msrb.mxu2 %v13339_v10  ;;  %v14359_v10 = vld [vmem:[%s15155_s16 + $0x4bc] sm:$0xf]  ;;  %v13387_v55 = vor.u32 %v14641_v63, %v13384_v40  ;;  %v12142_v63 = vld [vmem:[%s15155_s16 + $0x3d0] sm:$0xf] }
 0x3fd   : > { %8671 = vmatpush.bf16.msrb.mxu3 %v13531_v15  ;;  %v12859_v15 = vor.u32 %v14509_v62, %v12856_v31  ;;  %v12259_v27 = vor.u32 %v14359_v10, %v12256_v17  ;;  %v14581_v62 = vld [vmem:[%s15155_s16 + $0xbac] sm:$0xf]  ;;  %v13144_v31 = vld [vmem:[%s15155_s16 + $0xbc0] sm:$0xf0]  ;;  %v14249_v10 = vld [vmem:[%s15155_s16 + $0x144] sm:$0xf0] }
 0x3fe   : > { %8633 = vmatpush.bf16.msrb.mxu0 %v12931_v25  ;;  %8597 = vmatpush.bf16.msra.mxu1 %v12283_v54  ;;  %v14647_v25 = vld [vmem:[%s15155_s16 + $0xdbc] sm:$0xf]  ;;  %v13147_v61 = vor.u32 %v14581_v62, %v13144_v31  ;;  %v12118_v31 = vld [vmem:[%s15155_s16 + $0x3a0] sm:$0xf] }
 0x3ff   : > { %v14563_v40 = vld [vmem:[%s15155_s16 + $0xb1c] sm:$0xf] }
 0x400   : > { %8659 = vmatpush.bf16.msrb.mxu2 %v13315_v44  ;;  %v13408_v44 = vld [vmem:[%s15155_s16 + $0xdd0] sm:$0xf0] }
 0x401   : > { %8672 = vmatpush.bf16.msrb.mxu3 %v13507_v28  ;;  %v8329_v28 = vadd.f32 %v15970_v30, %v15918_v2  ;;  %v13411_v2 = vor.u32 %v14647_v25, %v13408_v44  ;;  %v14243_v25 = vld [vmem:[%s15155_s16 + $0x114] sm:$0xf0] }
 0x402   : > { %8634 = vmatpush.bf16.msrb.mxu0 %v12907_v35  ;;  %8598 = vmatpush.bf16.msra.mxu1 %v12259_v27  ;;  %v8408_v30 = vpop.f32.mrf.mxu2  ;;  %v14593_v35 = vld [vmem:[%s15155_s16 + $0xc0c] sm:$0xf]  ;;  %v11807_v27 = vor.u32 %v14249_v10, %v11806_v36 }
 0x403   : > { %v8342_v32 = vadd.f32 %v8341_v12, %v8329_v28  ;;  %v8421_v58 = vpop.f32.mrf.mxu3  ;;  %v12190_v12 = vld [vmem:[%s15155_s16 + $0x430] sm:$0xf]  ;;  %v14339_v28 = vld [vmem:[%s15155_s16 + $0x414] sm:$0xf0]  ;;  %v14237_v30 = vld [vmem:[%s15155_s16 + $0xe4] sm:$0xf0] }
 0x404   : > { %8660 = vmatpush.bf16.msrb.mxu2 %v13291_v37  ;;  %v13192_v37 = vld [vmem:[%s15155_s16 + $0xc20] sm:$0xf0]  ;;  %v14333_v58 = vld [vmem:[%s15155_s16 + $0x3e4] sm:$0xf0] }
 0x405   : > { %8673 = vmatpush.bf16.msrb.mxu3 %v13483_v39  ;;  %v13171_v39 = vor.u32 %v14587_v29, %v13168_v19  ;;  %v13195_v54 = vor.u32 %v14593_v35, %v13192_v37  ;;  %v12358_v29 = vld [vmem:[%s15155_s16 + $0x580] sm:$0xf]  ;;  %v14569_v19 = vld [vmem:[%s15155_s16 + $0xb4c] sm:$0xf] }
 0x406   : > { %8635 = vmatpush.bf16.msrb.mxu0 %v12883_v49  ;;  %v12811_v49 = vor.u32 %v14497_v20, %v12808_v22  ;;  %8599 = vmatpush.bf16.msra.mxu1 %v12235_v34  ;;  %v11783_v20 = vor.u32 %v14243_v25, %v11782_v26  ;;  %v12167_v22 = vor.u32 %v14339_v28, %v12166_v38  ;;  %v13024_v26 = vld [vmem:[%s15155_s16 + $0xad0] sm:$0xf0]  ;;  %v11686_v38 = vld [vmem:[%s15155_s16 + $0x40] sm:$0xf]  ;;  %v14219_v28 = vld [vmem:[%s15155_s16 + $0x54] sm:$0xf0] }
 0x408   : > { %8661 = vmatpush.bf16.msrb.mxu2 %v13267_v3  ;;  %v14399_v3 = vld [vmem:[%s15155_s16 + $0x5f4] sm:$0xf0] }
 0x409   : > { %8674 = vmatpush.bf16.msrb.mxu3 %v13459_v47  ;;  %v8355_v47 = vadd.f32 %v15982_v21, %v8342_v32  ;;  %v12407_v17 = vor.u32 %v14399_v3, %v12406_v52  ;;  %8600 = vmatmul.bf16.vlgmr.msra.gmra.mxu1 %v15423_v11  ;;  %v14393_v21 = vld [vmem:[%s15155_s16 + $0x5c4] sm:$0xf0]  ;;  %v8393_v32 = vpop.f32.mrf.mxu1  ;;  %v12143_v52 = vor.u32 %v14333_v58, %v12142_v63 }
 0x40a   : > { %8636 = vmatpush.bf16.msrb.mxu0 %v12859_v15  ;;  %8644 = vmatpush.bf16.msrb.mxu1 %v13171_v39  ;;  %v14345_v15 = vld [vmem:[%s15155_s16 + $0x444] sm:$0xf0] }
 0x40b   : > { %v12191_v18 = vor.u32 %v14345_v15, %v12190_v12  ;;  %v14381_v39 = vld [vmem:[%s15155_s16 + $0x564] sm:$0xf0] }
 0x40c   : > { %8662 = vmatpush.bf16.msrb.mxu2 %v13243_v16  ;;  %v12382_v16 = vld [vmem:[%s15155_s16 + $0x5b0] sm:$0xf]  ;;  %v14213_v63 = vld [vmem:[%s15155_s16 + $0x24] sm:$0xf0] }
 0x40d   : > { %8675 = vmatpush.bf16.msrb.mxu3 %v13435_v41  ;;  %v8368_v41 = vadd.f32 %v15987_v5, %v8355_v47  ;;  %v12383_v44 = vor.u32 %v14393_v21, %v12382_v16  ;;  %v14387_v5 = vld [vmem:[%s15155_s16 + $0x594] sm:$0xf0]  ;;  %v12094_v21 = vld [vmem:[%s15155_s16 + $0x370] sm:$0xf] }
 0x40e   : > { %8637 = vmatpush.bf16.msrb.mxu0 %v12835_v42  ;;  %8645 = vmatpush.bf16.msrb.mxu1 %v13147_v61  ;;  %v13096_v42 = vld [vmem:[%s15155_s16 + $0xb60] sm:$0xf0]  ;;  %v12359_v34 = vor.u32 %v14387_v5, %v12358_v29  ;;  %v14327_v47 = vld [vmem:[%s15155_s16 + $0x3b4] sm:$0xf0]  ;;  %v14225_v61 = vld [vmem:[%s15155_s16 + $0x84] sm:$0xf0] }
 0x40f   : > { %v13099_v37 = vor.u32 %v14569_v19, %v13096_v42  ;;  %v12119_v36 = vor.u32 %v14327_v47, %v12118_v31  ;;  %v12070_v19 = vld [vmem:[%s15155_s16 + $0x340] sm:$0xf]  ;;  %v14315_v42 = vld [vmem:[%s15155_s16 + $0x354] sm:$0xf0] }
 0x410   : > { %8663 = vmatpush.bf16.msrb.mxu2 %v13219_v13  ;;  %v8381_v13 = vadd.f32 %v16052_v4, %v8368_v41  ;;  %v12334_v4 = vld [vmem:[%s15155_s16 + $0x550] sm:$0xf]  ;;  %v13174_v31 = vld [vmem:[%s15155_s16 + $0xbe0] sm:$0xf] }
 0x411   : > { %8676 = vmatpush.bf16.msrb.mxu3 %v13411_v2  ;;  %v11758_v2 = vld [vmem:[%s15155_s16 + $0xd0] sm:$0xf]  ;;  %v12335_v62 = vor.u32 %v14381_v39, %v12334_v4  ;;  %v8395_v10 = vpop.f32.mrf.mxu1 }
 0x412   : > { %8638 = vmatpush.bf16.msrb.mxu0 %v12811_v49  ;;  %8646 = vmatpush.bf16.msrb.mxu1 %v13123_v60  ;;  %v8394_v35 = vadd.f32 %v8393_v32, %v8381_v13  ;;  %v16132_v53 = vpop.f32.mrf.mxu0  ;;  %v11759_v45 = vor.u32 %v14237_v30, %v11758_v2  ;;  %v14231_v49 = vld [vmem:[%s15155_s16 + $0xb4] sm:$0xf0]  ;;  %v12095_v60 = vor.u32 %v14321_v46, %v12094_v21  ;;  %v12262_v13 = vld [vmem:[%s15155_s16 + $0x4c0] sm:$0xf]  ;;  %v13000_v32 = vld [vmem:[%s15155_s16 + $0xaa0] sm:$0xf0] }
 0x413   : > { %v12022_v2 = vld [vmem:[%s15155_s16 + $0x2e0] sm:$0xf]  ;;  %v14303_v30 = vld [vmem:[%s15155_s16 + $0x2f4] sm:$0xf0] }
 0x414   : > { %8664 = vmatpush.bf16.msrb.mxu2 %v13195_v54  ;;  %v8407_v24 = vadd.f32 %v16064_v50, %v8394_v35  ;;  %v13075_v50 = vor.u32 %v14563_v40, %v13072_v14  ;;  %v12310_v54 = vld [vmem:[%s15155_s16 + $0x520] sm:$0xf]  ;;  %v12071_v35 = vor.u32 %v14315_v42, %v12070_v19  ;;  %v12046_v40 = vld [vmem:[%s15155_s16 + $0x310] sm:$0xf]  ;;  %v14309_v14 = vld [vmem:[%s15155_s16 + $0x324] sm:$0xf0] }
 0x415   : > { %8677 = vmatpush.bf16.msrb.mxu3 %v13387_v55  ;;  %8639 = vmatmul.bf16.vlgmr.msrb.gmra.mxu0 %v15513_v9  ;;  %v14375_v55 = vld [vmem:[%s15155_s16 + $0x534] sm:$0xf0]  ;;  %v12934_v42 = vld [vmem:[%s15155_s16 + $0xa00] sm:$0xf] }
 0x416   : > { %8683 = vmatpush.bf16.msra.mxu0 %v11831_v57  ;;  %v8420_v3 = vadd.f32 %v16069_v56, %v8407_v24  ;;  %8647 = vmatpush.bf16.msrb.mxu1 %v13099_v37  ;;  %v14557_v57 = vld [vmem:[%s15155_s16 + $0xaec] sm:$0xf]  ;;  %v11735_v56 = vor.u32 %v14231_v49, %v11734_v43  ;;  %v12311_v12 = vor.u32 %v14375_v55, %v12310_v54  ;;  %v11662_v37 = vld [vmem:[%s15155_s16 + $0x10] sm:$0xf]  ;;  %v14357_v43 = vld [vmem:[%s15155_s16 + $0x4a4] sm:$0xf0] }
 0x417   : > { %8665 = vmatmul.bf16.vlgmr.msrb.gmra.mxu2 %v15581_v33  ;;  %v12238_v24 = vld [vmem:[%s15155_s16 + $0x490] sm:$0xf]  ;;  %v12598_v49 = vld [vmem:[%s15155_s16 + $0x760] sm:$0xf]  ;;  %v11663_v47 = vor.u32 %v14213_v63, %v11662_v37  ;;  %v14591_v54 = vld [vmem:[%s15155_s16 + $0xbf4] sm:$0xf0] }
 0x418   : > { %8709 = vmatpush.bf16.msra.mxu2 %v12215_v59  ;;  %8678 = vmatmul.bf16.vlgmr.msrb.gmra.mxu3 %v15708_v48  ;;  %v13048_v59 = vld [vmem:[%s15155_s16 + $0xb00] sm:$0xf0]  ;;  %8944 = vst [vmem:[%s16037_s8 + $0x8] sm:$0xff] %v8420_v3  ;;  %v14447_v3 = vld [vmem:[%s15155_s16 + $0x774] sm:$0xf0]  ;;  %v13175_v21 = vor.u32 %v14591_v54, %v13174_v31 }
 0x419   : > { %8722 = vmatpush.bf16.msra.mxu3 %v12407_v17  ;;  %v11710_v17 = vld [vmem:[%s15155_s16 + $0x70] sm:$0xf]  ;;  %v13051_v16 = vor.u32 %v14557_v57, %v13048_v59  ;;  %v14297_v57 = vld [vmem:[%s15155_s16 + $0x2c4] sm:$0xf0]  ;;  %v12047_v59 = vor.u32 %v14309_v14, %v12046_v40 }
 0x41a   : > { %8684 = vmatpush.bf16.msra.mxu0 %v11807_v27  ;;  %8648 = vmatpush.bf16.msrb.mxu1 %v13075_v50  ;;  %v16146_v15 = vpop.f32.mrf.mxu2  ;;  %v14369_v27 = vld [vmem:[%s15155_s16 + $0x504] sm:$0xf0]  ;;  %v8434_v25 = vpop.f32.mrf.mxu0  ;;  %v14543_v50 = vld [vmem:[%s15155_s16 + $0xa74] sm:$0xf0]  ;;  %v11998_v55 = vld [vmem:[%s15155_s16 + $0x2b0] sm:$0xf] }
 0x41b   : > { %v16151_v41 = vpop.f32.mrf.mxu3  ;;  %v12287_v29 = vor.u32 %v14369_v27, %v12286_v23  ;;  %v11999_v46 = vor.u32 %v14297_v57, %v11998_v55  ;;  %v12958_v23 = vld [vmem:[%s15155_s16 + $0xa30] sm:$0xf]  ;;  %v14537_v27 = vld [vmem:[%s15155_s16 + $0xa44] sm:$0xf0]  ;;  %v11974_v25 = vld [vmem:[%s15155_s16 + $0x280] sm:$0xf] }
 0x41c   : > { %8710 = vmatpush.bf16.msra.mxu2 %v12191_v18  ;;  %v14551_v18 = vld [vmem:[%s15155_s16 + $0xabc] sm:$0xf]  ;;  %v12526_v63 = vld [vmem:[%s15155_s16 + $0x6d0] sm:$0xf]  ;;  %v14525_v14 = vld [vmem:[%s15155_s16 + $0x9e4] sm:$0xf0] }
 0x41d   : > { %8723 = vmatpush.bf16.msra.mxu3 %v12383_v44  ;;  %v11711_v44 = vor.u32 %v14225_v61, %v11710_v17  ;;  %v13027_v5 = vor.u32 %v14551_v18, %v13024_v26  ;;  %v12599_v17 = vor.u32 %v14447_v3, %v12598_v49  ;;  %v13150_v18 = vld [vmem:[%s15155_s16 + $0xbb0] sm:$0xf]  ;;  %v14585_v26 = vld [vmem:[%s15155_s16 + $0xbc4] sm:$0xf0]  ;;  %v14279_v49 = vld [vmem:[%s15155_s16 + $0x234] sm:$0xf0] }
 0x41e   : > { %8685 = vmatpush.bf16.msra.mxu0 %v11783_v20  ;;  %8649 = vmatpush.bf16.msrb.mxu1 %v13051_v16  ;;  %v14363_v20 = vld [vmem:[%s15155_s16 + $0x4d4] sm:$0xf0]  ;;  %v14441_v16 = vld [vmem:[%s15155_s16 + $0x744] sm:$0xf0]  ;;  %v12910_v40 = vld [vmem:[%s15155_s16 + $0x9d0] sm:$0xf] }
 0x41f   : > { %v12263_v58 = vor.u32 %v14363_v20, %v12262_v13  ;;  %v14531_v13 = vld [vmem:[%s15155_s16 + $0xa14] sm:$0xf0]  ;;  %v13126_v20 = vld [vmem:[%s15155_s16 + $0xb80] sm:$0xf]  ;;  %v12911_v31 = vor.u32 %v14525_v14, %v12910_v40  ;;  %v12430_v40 = vld [vmem:[%s15155_s16 + $0x610] sm:$0xf] }
 0x420   : > { %8711 = vmatpush.bf16.msra.mxu2 %v12167_v22  ;;  %v14545_v22 = vld [vmem:[%s15155_s16 + $0xa8c] sm:$0xf]  ;;  %v12935_v37 = vor.u32 %v14531_v13, %v12934_v42  ;;  %v12886_v57 = vld [vmem:[%s15155_s16 + $0x9a0] sm:$0xf]  ;;  %v14405_v14 = vld [vmem:[%s15155_s16 + $0x624] sm:$0xf0] }
 0x421   : > { %8724 = vmatpush.bf16.msra.mxu3 %v12359_v34  ;;  %v11687_v34 = vor.u32 %v14219_v28, %v11686_v38  ;;  %v13003_v39 = vor.u32 %v14545_v22, %v13000_v32  ;;  %v12959_v38 = vor.u32 %v14537_v27, %v12958_v23  ;;  %v12550_v28 = vld [vmem:[%s15155_s16 + $0x700] sm:$0xf]  ;;  %v14579_v32 = vld [vmem:[%s15155_s16 + $0xb94] sm:$0xf0] }
 0x422   : > { %8686 = vmatpush.bf16.msra.mxu0 %v11759_v45  ;;  %8650 = vmatpush.bf16.msrb.mxu1 %v13027_v5  ;;  %v8460_v4 = vpop.f32.mrf.mxu2  ;;  %v13151_v5 = vor.u32 %v14585_v26, %v13150_v18  ;;  %v12862_v26 = vld [vmem:[%s15155_s16 + $0x970] sm:$0xf]  ;;  %v12454_v13 = vld [vmem:[%s15155_s16 + $0x640] sm:$0xf] }
 0x423   : > { %v8473_v45 = vpop.f32.mrf.mxu3  ;;  %v13127_v4 = vor.u32 %v14579_v32, %v13126_v20  ;;  %v14411_v20 = vld [vmem:[%s15155_s16 + $0x654] sm:$0xf0] }
 0x424   : > { %8712 = vmatpush.bf16.msra.mxu2 %v12143_v52  ;;  %v12023_v52 = vor.u32 %v14303_v30, %v12022_v2  ;;  %v11950_v2 = vld [vmem:[%s15155_s16 + $0x250] sm:$0xf]  ;;  %v14285_v30 = vld [vmem:[%s15155_s16 + $0x264] sm:$0xf0] }
 0x425   : > { %8725 = vmatpush.bf16.msra.mxu3 %v12335_v62  ;;  %v12982_v62 = vld [vmem:[%s15155_s16 + $0xa60] sm:$0xf] }
 0x426   : > { %8687 = vmatpush.bf16.msra.mxu0 %v11735_v56  ;;  %8651 = vmatpush.bf16.msrb.mxu1 %v13003_v39  ;;  %v12239_v56 = vor.u32 %v14357_v43, %v12238_v24  ;;  %v12983_v61 = vor.u32 %v14543_v50, %v12982_v62  ;;  %v11951_v39 = vor.u32 %v14285_v30, %v11950_v2  ;;  %v13102_v24 = vld [vmem:[%s15155_s16 + $0xb50] sm:$0xf]  ;;  %v11926_v43 = vld [vmem:[%s15155_s16 + $0x220] sm:$0xf]  ;;  %v14507_v30 = vld [vmem:[%s15155_s16 + $0x954] sm:$0xf0] }
 0x427   : > { %v11927_v55 = vor.u32 %v14279_v49, %v11926_v43  ;;  %v12838_v2 = vld [vmem:[%s15155_s16 + $0x940] sm:$0xf]  ;;  %v12814_v43 = vld [vmem:[%s15155_s16 + $0x910] sm:$0xf]  ;;  %v14501_v49 = vld [vmem:[%s15155_s16 + $0x924] sm:$0xf0] }
 0x428   : > { %8713 = vmatpush.bf16.msra.mxu2 %v12119_v36  ;;  %v16181_v36 = vld [vmem:[%s15735_s27] sm:$0x3f] }
 0x429   : > { %8726 = vmatpush.bf16.msra.mxu3 %v12311_v12  ;;  %v5753_v10 = vperm.slane %v16181_v36, 2  ;;  %v12574_v12 = vld [vmem:[%s15155_s16 + $0x730] sm:$0xf]  ;;  %8652 = vmatmul.bf16.vlgmr.msrb.gmra.mxu1 %v15515_v51 }
 0x42a   : > { %8688 = vmatpush.bf16.msra.mxu0 %v11711_v44  ;;  %8696 = vmatpush.bf16.msra.mxu1 %v12023_v52  ;;  %v14291_v44 = vld [vmem:[%s15155_s16 + $0x294] sm:$0xf0]  ;;  %v14573_v52 = vld [vmem:[%s15155_s16 + $0xb64] sm:$0xf0] }
 0x42b   : > { %v11975_v19 = vor.u32 %v14291_v44, %v11974_v25  ;;  %v8433_v22 = vadd.f32 %v16132_v53, %v5753_v10  ;;  %v13103_v54 = vor.u32 %v14573_v52, %v13102_v24  ;;  %v14567_v10 = vld [vmem:[%s15155_s16 + $0xb34] sm:$0xf0]  ;;  %v14513_v25 = vld [vmem:[%s15155_s16 + $0x984] sm:$0xf0]  ;;  %v13054_v44 = vld [vmem:[%s15155_s16 + $0xaf0] sm:$0xf] }
 0x42c   : > { %8714 = vmatpush.bf16.msra.mxu2 %v12095_v60  ;;  %v12575_v60 = vor.u32 %v14441_v16, %v12574_v12  ;;  %v12863_v42 = vor.u32 %v14513_v25, %v12862_v26 }
 0x42d   : > { %8727 = vmatpush.bf16.msra.mxu3 %v12287_v29  ;;  %v14435_v29 = vld [vmem:[%s15155_s16 + $0x714] sm:$0xf0] }
 0x42e   : > { %8689 = vmatpush.bf16.msra.mxu0 %v11687_v34  ;;  %8697 = vmatpush.bf16.msra.mxu1 %v11999_v46  ;;  %v8445_v34 = vpop.f32.mrf.mxu1  ;;  %v12551_v53 = vor.u32 %v14435_v29, %v12550_v28  ;;  %v14417_v46 = vld [vmem:[%s15155_s16 + $0x684] sm:$0xf0]  ;;  %v11878_v28 = vld [vmem:[%s15155_s16 + $0x1c0] sm:$0xf]  ;;  %v14267_v29 = vld [vmem:[%s15155_s16 + $0x1d4] sm:$0xf0] }
 0x42f   : > { %v11879_v32 = vor.u32 %v14267_v29, %v11878_v28  ;;  %v14294_v28 = vld [vmem:[%s15155_s16 + $0x2b4] sm:$0xf]  ;;  %v12000_v29 = vld [vmem:[%s15155_s16 + $0x2c8] sm:$0xf0] }
 0x430   : > { %8715 = vmatpush.bf16.msra.mxu2 %v12071_v35  ;;  %v8446_v35 = vadd.f32 %v8445_v34, %v8433_v22  ;;  %v13030_v34 = vld [vmem:[%s15155_s16 + $0xac0] sm:$0xf] }
 0x431   : > { %8728 = vmatpush.bf16.msra.mxu3 %v12263_v58  ;;  %v14429_v58 = vld [vmem:[%s15155_s16 + $0x6e4] sm:$0xf0] }
 0x432   : > { %8690 = vmatpush.bf16.msra.mxu0 %v11663_v47  ;;  %8698 = vmatpush.bf16.msra.mxu1 %v11975_v19  ;;  %v8459_v45 = vadd.f32 %v16146_v15, %v8446_v35  ;;  %v16214_v3 = vpop.f32.mrf.mxu0  ;;  %v12527_v50 = vor.u32 %v14429_v58, %v12526_v63  ;;  %v12502_v47 = vld [vmem:[%s15155_s16 + $0x6a0] sm:$0xf]  ;;  %v14423_v15 = vld [vmem:[%s15155_s16 + $0x6b4] sm:$0xf0] }
 0x433   : > { %v12503_v12 = vor.u32 %v14423_v15, %v12502_v47  ;;  %v14555_v35 = vld [vmem:[%s15155_s16 + $0xad4] sm:$0xf0]  ;;  %v12790_v63 = vld [vmem:[%s15155_s16 + $0x8e0] sm:$0xf]  ;;  %v14549_v15 = vld [vmem:[%s15155_s16 + $0xaa4] sm:$0xf0] }
 0x434   : > { %8716 = vmatpush.bf16.msra.mxu2 %v12047_v59  ;;  %v16217_v62 = vadd.f32 %v16151_v41, %v8459_v45  ;;  %v14519_v59 = vld [vmem:[%s15155_s16 + $0x9b4] sm:$0xf0]  ;;  %v14273_v41 = vld [vmem:[%s15155_s16 + $0x204] sm:$0xf0]  ;;  %v13031_v24 = vor.u32 %v14555_v35, %v13030_v34  ;;  %v11784_v34 = vld [vmem:[%s15155_s16 + $0x118] sm:$0xf0] }
 0x435   : > { %8729 = vmatpush.bf16.msra.mxu3 %v12239_v56  ;;  %8691 = vmatmul.bf16.vlgmr.msra.gmra.mxu0 %v15414_v0  ;;  %v13078_v56 = vld [vmem:[%s15155_s16 + $0xb20] sm:$0xf]  ;;  %v12887_v16 = vor.u32 %v14519_v59, %v12886_v57  ;;  %v14495_v58 = vld [vmem:[%s15155_s16 + $0x8f4] sm:$0xf0]  ;;  %v14252_v57 = vld [vmem:[%s15155_s16 + $0x164] sm:$0xf] }
 0x436   : > { %8735 = vmatpush.bf16.msrb.mxu0 %v12599_v17  ;;  %8699 = vmatpush.bf16.msra.mxu1 %v11951_v39  ;;  %v11902_v17 = vld [vmem:[%s15155_s16 + $0x1f0] sm:$0xf]  ;;  %v13079_v23 = vor.u32 %v14567_v10, %v13078_v56  ;;  %v12839_v39 = vor.u32 %v14507_v30, %v12838_v2  ;;  %v12791_v47 = vor.u32 %v14495_v58, %v12790_v63  ;;  %v11832_v59 = vld [vmem:[%s15155_s16 + $0x178] sm:$0xf0]  ;;  %v14300_v56 = vld [vmem:[%s15155_s16 + $0x2e4] sm:$0xf] }
 0x437   : > { %8717 = vmatmul.bf16.vlgmr.msra.gmra.mxu2 %v15418_v6  ;;  %v11903_v18 = vor.u32 %v14273_v41, %v11902_v17  ;;  %v12431_v10 = vor.u32 %v14405_v14, %v12430_v40  ;;  %v12024_v17 = vld [vmem:[%s15155_s16 + $0x2f8] sm:$0xf0]  ;;  %v12766_v41 = vld [vmem:[%s15155_s16 + $0x8b0] sm:$0xf]  ;;  %v14240_v30 = vld [vmem:[%s15155_s16 + $0x104] sm:$0xf] }
 0x438   : > { %8761 = vmatpush.bf16.msrb.mxu2 %v12983_v61  ;;  %8730 = vmatmul.bf16.vlgmr.msra.gmra.mxu3 %v15423_v11  ;;  %v8447_v61 = vpop.f32.mrf.mxu1  ;;  %v12027_v26 = vor.u32 %v14300_v56, %v12024_v17  ;;  %v14288_v35 = vld [vmem:[%s15155_s16 + $0x284] sm:$0xf]  ;;  %v14477_v63 = vld [vmem:[%s15155_s16 + $0x864] sm:$0xf0]  ;;  %v13294_v40 = vld [vmem:[%s15155_s16 + $0xcd0] sm:$0xf] }
 0x439   : > { %8774 = vmatpush.bf16.msrb.mxu3 %v13175_v21  ;;  %v12478_v21 = vld [vmem:[%s15155_s16 + $0x670] sm:$0xf]  ;;  %v14489_v61 = vld [vmem:[%s15155_s16 + $0x8c4] sm:$0xf0]  ;;  %v14228_v56 = vld [vmem:[%s15155_s16 + $0xa4] sm:$0xf] }
 0x43a   : > { %8736 = vmatpush.bf16.msrb.mxu0 %v12575_v60  ;;  %8700 = vmatpush.bf16.msra.mxu1 %v11927_v55  ;;  %v16229_v27 = vpop.f32.mrf.mxu2  ;;  %v12479_v19 = vor.u32 %v14417_v46, %v12478_v21  ;;  %v14639_v55 = vld [vmem:[%s15155_s16 + $0xd74] sm:$0xf0]  ;;  %v11835_v46 = vor.u32 %v14252_v57, %v11832_v59  ;;  %v12767_v25 = vor.u32 %v14489_v61, %v12766_v41  ;;  %v14621_v14 = vld [vmem:[%s15155_s16 + $0xce4] sm:$0xf0]  ;;  %v13270_v57 = vld [vmem:[%s15155_s16 + $0xca0] sm:$0xf] }
 0x43b   : > { %v16234_v60 = vpop.f32.mrf.mxu3  ;;  %v14615_v59 = vld [vmem:[%s15155_s16 + $0xcb4] sm:$0xf0]  ;;  %v11736_v41 = vld [vmem:[%s15155_s16 + $0xb8] sm:$0xf0]  ;;  %v14276_v61 = vld [vmem:[%s15155_s16 + $0x224] sm:$0xf] }
 0x43c   : > { %8762 = vmatpush.bf16.msrb.mxu2 %v12959_v38  ;;  %v14561_v38 = vld [vmem:[%s15155_s16 + $0xb04] sm:$0xf0] }
 0x43d   : > { %8775 = vmatpush.bf16.msrb.mxu3 %v13151_v5  ;;  %v8486_v5 = vpop.f32.mrf.mxu0  ;;  %v13055_v22 = vor.u32 %v14561_v38, %v13054_v44  ;;  %v14246_v44 = vld [vmem:[%s15155_s16 + $0x134] sm:$0xf]  ;;  %v11808_v38 = vld [vmem:[%s15155_s16 + $0x148] sm:$0xf0] }
 0x43e   : > { %8737 = vmatpush.bf16.msrb.mxu0 %v12551_v53  ;;  %8701 = vmatpush.bf16.msra.mxu1 %v11903_v18  ;;  %v11854_v53 = vld [vmem:[%s15155_s16 + $0x190] sm:$0xf]  ;;  %v14633_v18 = vld [vmem:[%s15155_s16 + $0xd44] sm:$0xf0]  ;;  %v12742_v5 = vld [vmem:[%s15155_s16 + $0x880] sm:$0xf] }
 0x440   : > { %8763 = vmatpush.bf16.msrb.mxu2 %v12935_v37  ;;  %v14261_v37 = vld [vmem:[%s15155_s16 + $0x1a4] sm:$0xf0] }
 0x441   : > { %8776 = vmatpush.bf16.msrb.mxu3 %v13127_v4  ;;  %v12455_v4 = vor.u32 %v14411_v20, %v12454_v13  ;;  %v11855_v52 = vor.u32 %v14261_v37, %v11854_v53  ;;  %v11811_v13 = vor.u32 %v14246_v44, %v11808_v38  ;;  %v13318_v20 = vld [vmem:[%s15155_s16 + $0xd00] sm:$0xf]  ;;  %v11976_v53 = vld [vmem:[%s15155_s16 + $0x298] sm:$0xf0]  ;;  %v12718_v37 = vld [vmem:[%s15155_s16 + $0x850] sm:$0xf] }
 0x442   : > { %8738 = vmatpush.bf16.msrb.mxu0 %v12527_v50  ;;  %8702 = vmatpush.bf16.msra.mxu1 %v11879_v32  ;;  %v8512_v45 = vpop.f32.mrf.mxu2  ;;  %v13006_v50 = vld [vmem:[%s15155_s16 + $0xa90] sm:$0xf]  ;;  %v12003_v32 = vor.u32 %v14294_v28, %v12000_v29  ;;  %v14609_v44 = vld [vmem:[%s15155_s16 + $0xc84] sm:$0xf0]  ;;  %v14222_v29 = vld [vmem:[%s15155_s16 + $0x74] sm:$0xf] }
 0x443   : > { %v12719_v45 = vor.u32 %v14477_v63, %v12718_v37  ;;  %v14603_v37 = vld [vmem:[%s15155_s16 + $0xc54] sm:$0xf0] }
 0x444   : > { %8764 = vmatpush.bf16.msrb.mxu2 %v12911_v31  ;;  %v8525_v31 = vpop.f32.mrf.mxu3 }
 0x445   : > { %8777 = vmatpush.bf16.msrb.mxu3 %v13103_v54  ;;  %v13366_v54 = vld [vmem:[%s15155_s16 + $0xd60] sm:$0xf] }
 0x446   : > { %8739 = vmatpush.bf16.msrb.mxu0 %v12503_v12  ;;  %8703 = vmatpush.bf16.msra.mxu1 %v11855_v52  ;;  %v12815_v12 = vor.u32 %v14501_v49, %v12814_v43  ;;  %v13367_v21 = vor.u32 %v14639_v55, %v13366_v54  ;;  %v16283_v58 = vpop.f32.mrf.mxu1  ;;  %v14234_v52 = vld [vmem:[%s15155_s16 + $0xd4] sm:$0xf]  ;;  %v11760_v43 = vld [vmem:[%s15155_s16 + $0xe8] sm:$0xf0]  ;;  %v12694_v31 = vld [vmem:[%s15155_s16 + $0x820] sm:$0xf]  ;;  %v13295_v54 = vor.u32 %v14621_v14, %v13294_v40 }
 0x447   : > { %v14282_v49 = vld [vmem:[%s15155_s16 + $0x254] sm:$0xf]  ;;  %v11763_v55 = vor.u32 %v14234_v52, %v11760_v43  ;;  %v11688_v40 = vld [vmem:[%s15155_s16 + $0x58] sm:$0xf0]  ;;  %v14264_v14 = vld [vmem:[%s15155_s16 + $0x1c4] sm:$0xf] }
 0x448   : > { %8765 = vmatpush.bf16.msrb.mxu2 %v12887_v16  ;;  %v13007_v16 = vor.u32 %v14549_v15, %v13006_v50  ;;  %v11952_v50 = vld [vmem:[%s15155_s16 + $0x268] sm:$0xf0]  ;;  %v12622_v52 = vld [vmem:[%s15155_s16 + $0x790] sm:$0xf]  ;;  %v14453_v43 = vld [vmem:[%s15155_s16 + $0x7a4] sm:$0xf0] }
 0x449   : > { %8778 = vmatpush.bf16.msrb.mxu3 %v13079_v23  ;;  %v13342_v23 = vld [vmem:[%s15155_s16 + $0xd30] sm:$0xf]  ;;  %8704 = vmatmul.bf16.vlgmr.msra.gmra.mxu1 %v15416_v1 }
 0x44a   : > { %8740 = vmatpush.bf16.msrb.mxu0 %v12479_v19  ;;  %8748 = vmatpush.bf16.msrb.mxu1 %v12791_v47  ;;  %v14483_v19 = vld [vmem:[%s15155_s16 + $0x894] sm:$0xf0] }
 0x44b   : > { %v12743_v2 = vor.u32 %v14483_v19, %v12742_v5  ;;  %v14471_v47 = vld [vmem:[%s15155_s16 + $0x834] sm:$0xf0]  ;;  %v11712_v5 = vld [vmem:[%s15155_s16 + $0x88] sm:$0xf0]  ;;  %v14270_v19 = vld [vmem:[%s15155_s16 + $0x1f4] sm:$0xf] }
 0x44c   : > { %8766 = vmatpush.bf16.msrb.mxu2 %v12863_v42  ;;  %v13343_v42 = vor.u32 %v14633_v18, %v13342_v23  ;;  %v12695_v17 = vor.u32 %v14471_v47, %v12694_v31  ;;  %v13271_v18 = vor.u32 %v14615_v59, %v13270_v57  ;;  %v12623_v59 = vor.u32 %v14453_v43, %v12622_v52  ;;  %v12744_v43 = vld [vmem:[%s15155_s16 + $0x898] sm:$0xf0] }
 0x44d   : > { %8779 = vmatpush.bf16.msrb.mxu3 %v13055_v22  ;;  %v14627_v22 = vld [vmem:[%s15155_s16 + $0xd14] sm:$0xf0] }
 0x44e   : > { %8741 = vmatpush.bf16.msrb.mxu0 %v12455_v4  ;;  %8749 = vmatpush.bf16.msrb.mxu1 %v12767_v25  ;;  %v13319_v4 = vor.u32 %v14627_v22, %v13318_v20  ;;  %v8499_v23 = vpop.f32.mrf.mxu1  ;;  %v13246_v25 = vld [vmem:[%s15155_s16 + $0xc70] sm:$0xf]  ;;  %v11904_v20 = vld [vmem:[%s15155_s16 + $0x208] sm:$0xf0]  ;;  %v12646_v22 = vld [vmem:[%s15155_s16 + $0x7c0] sm:$0xf] }
 0x44f   : > { %v11907_v63 = vor.u32 %v14270_v19, %v11904_v20  ;;  %v14492_v23 = vld [vmem:[%s15155_s16 + $0x8e4] sm:$0xf]  ;;  %v12192_v19 = vld [vmem:[%s15155_s16 + $0x448] sm:$0xf0]  ;;  %v14438_v20 = vld [vmem:[%s15155_s16 + $0x734] sm:$0xf] }
 0x450   : > { %8767 = vmatpush.bf16.msrb.mxu2 %v12839_v39  ;;  %v11787_v39 = vor.u32 %v14240_v30, %v11784_v34  ;;  %v13247_v34 = vor.u32 %v14609_v44, %v13246_v25  ;;  %v12792_v25 = vld [vmem:[%s15155_s16 + $0x8f8] sm:$0xf0]  ;;  %v13534_v44 = vld [vmem:[%s15155_s16 + $0xeb0] sm:$0xf] }
 0x451   : > { %8780 = vmatpush.bf16.msrb.mxu3 %v13031_v24  ;;  %v11979_v24 = vor.u32 %v14288_v35, %v11976_v53  ;;  %v11715_v35 = vor.u32 %v14222_v29, %v11712_v5  ;;  %v13222_v53 = vld [vmem:[%s15155_s16 + $0xc40] sm:$0xf] }
 0x452   : > { %8742 = vmatpush.bf16.msrb.mxu0 %v12431_v10  ;;  %8750 = vmatpush.bf16.msrb.mxu1 %v12743_v2  ;;  %v16293_v15 = vpop.f32.mrf.mxu0  ;;  %v11955_v10 = vor.u32 %v14282_v49, %v11952_v50  ;;  %v13558_v49 = vld [vmem:[%s15155_s16 + $0xee0] sm:$0xf]  ;;  %v14687_v50 = vld [vmem:[%s15155_s16 + $0xef4] sm:$0xf0]  ;;  %v13223_v47 = vor.u32 %v14603_v37, %v13222_v53 }
 0x453   : > { %v14675_v53 = vld [vmem:[%s15155_s16 + $0xe94] sm:$0xf0] }
 0x454   : > { %8768 = vmatpush.bf16.msrb.mxu2 %v12815_v12  ;;  %v11928_v12 = vld [vmem:[%s15155_s16 + $0x238] sm:$0xf0] }
 0x455   : > { %8781 = vmatpush.bf16.msrb.mxu3 %v13007_v16  ;;  %8743 = vmatmul.bf16.vlgmr.msrb.gmra.mxu0 %v15509_v7  ;;  %v5754_v16 = vperm.slane %v16181_v36, 3  ;;  %v11931_v38 = vor.u32 %v14276_v61, %v11928_v12  ;;  %v11856_v61 = vld [vmem:[%s15155_s16 + $0x1a8] sm:$0xf0]  ;;  %v14348_v12 = vld [vmem:[%s15155_s16 + $0x464] sm:$0xf] }
 0x456   : > { %8787 = vmatpush.bf16.msra.mxu0 %v13367_v21  ;;  %8751 = vmatpush.bf16.msrb.mxu1 %v12719_v45  ;;  %v12670_v21 = vld [vmem:[%s15155_s16 + $0x7f0] sm:$0xf]  ;;  %v11880_v45 = vld [vmem:[%s15155_s16 + $0x1d8] sm:$0xf0] }
 0x457   : > { %8769 = vmatmul.bf16.vlgmr.msrb.gmra.mxu2 %v15513_v9 }
 0x458   : > { %8813 = vmatpush.bf16.msra.mxu2 %v11835_v46  ;;  %8782 = vmatmul.bf16.vlgmr.msrb.gmra.mxu3 %v15515_v51  ;;  %v14465_v46 = vld [vmem:[%s15155_s16 + $0x804] sm:$0xf0] }
 0x459   : > { %8826 = vmatpush.bf16.msra.mxu3 %v12027_v26  ;;  %v11739_v26 = vor.u32 %v14228_v56, %v11736_v41  ;;  %v12671_v36 = vor.u32 %v14465_v46, %v12670_v21  ;;  %v14210_v56 = vld [vmem:[%s15155_s16 + $0x14] sm:$0xf]  ;;  %v13559_v41 = vor.u32 %v14687_v50, %v13558_v49  ;;  %v14444_v21 = vld [vmem:[%s15155_s16 + $0x764] sm:$0xf]  ;;  %v12600_v46 = vld [vmem:[%s15155_s16 + $0x778] sm:$0xf0] }
 0x45a   : > { %8788 = vmatpush.bf16.msra.mxu0 %v13343_v42  ;;  %8752 = vmatpush.bf16.msrb.mxu1 %v12695_v17  ;;  %v8562_v28 = vpop.f32.mrf.mxu2  ;;  %v8538_v2 = vpop.f32.mrf.mxu0  ;;  %v12603_v5 = vor.u32 %v14444_v21, %v12600_v46  ;;  %v13486_v49 = vld [vmem:[%s15155_s16 + $0xe50] sm:$0xf]  ;;  %v14669_v50 = vld [vmem:[%s15155_s16 + $0xe64] sm:$0xf0] }
 0x45b   : > { %v8563_v42 = vadd.f32 %v8562_v28, %v5754_v16  ;;  %v12216_v16 = vld [vmem:[%s15155_s16 + $0x478] sm:$0xf0] }
 0x45c   : > { %8814 = vmatpush.bf16.msra.mxu2 %v11811_v13  ;;  %v8575_v13 = vpop.f32.mrf.mxu3  ;;  %v12219_v29 = vor.u32 %v14348_v12, %v12216_v16  ;;  %v14324_v12 = vld [vmem:[%s15155_s16 + $0x3a4] sm:$0xf]  ;;  %v12120_v16 = vld [vmem:[%s15155_s16 + $0x3b8] sm:$0xf0] }
 0x45d   : > { %8827 = vmatpush.bf16.msra.mxu3 %v12003_v32  ;;  %v14459_v32 = vld [vmem:[%s15155_s16 + $0x7d4] sm:$0xf0]  ;;  %v16312_v30 = vadd.f32 %v8575_v13, %v8563_v42  ;;  %v12795_v42 = vor.u32 %v14492_v23, %v12792_v25  ;;  %v14420_v23 = vld [vmem:[%s15155_s16 + $0x6a4] sm:$0xf]  ;;  %v12696_v25 = vld [vmem:[%s15155_s16 + $0x838] sm:$0xf0] }
 0x45e   : > { %8789 = vmatpush.bf16.msra.mxu0 %v13319_v4  ;;  %8753 = vmatpush.bf16.msrb.mxu1 %v12671_v36  ;;  %v12647_v4 = vor.u32 %v14459_v32, %v12646_v22  ;;  %v12576_v22 = vld [vmem:[%s15155_s16 + $0x748] sm:$0xf0]  ;;  %v14486_v32 = vld [vmem:[%s15155_s16 + $0x8b4] sm:$0xf] }
 0x460   : > { %8815 = vmatpush.bf16.msra.mxu2 %v11787_v39  ;;  %v14216_v39 = vld [vmem:[%s15155_s16 + $0x44] sm:$0xf] }
 0x461   : > { %8828 = vmatpush.bf16.msra.mxu3 %v11979_v24  ;;  %v8485_v24 = vadd.f32 %v16214_v3, %v16217_v62  ;;  %v14597_v3 = vld [vmem:[%s15155_s16 + $0xc24] sm:$0xf0]  ;;  %v11883_v62 = vor.u32 %v14264_v14, %v11880_v45  ;;  %v14432_v14 = vld [vmem:[%s15155_s16 + $0x704] sm:$0xf] }
 0x462   : > { %8790 = vmatpush.bf16.msra.mxu0 %v13295_v54  ;;  %v11691_v54 = vor.u32 %v14216_v39, %v11688_v40  ;;  %8754 = vmatpush.bf16.msrb.mxu1 %v12647_v4  ;;  %v8564_v57 = vpop.f32.mrf.mxu2  ;;  %v14336_v4 = vld [vmem:[%s15155_s16 + $0x404] sm:$0xf] }
 0x463   : > { %v8498_v31 = vadd.f32 %v16283_v58, %v8485_v24  ;;  %v11664_v58 = vld [vmem:[%s15155_s16 + $0x28] sm:$0xf0]  ;;  %v12552_v24 = vld [vmem:[%s15155_s16 + $0x718] sm:$0xf0]  ;;  %v14480_v45 = vld [vmem:[%s15155_s16 + $0x884] sm:$0xf]  ;;  %v13487_v57 = vor.u32 %v14669_v50, %v13486_v49 }
 0x464   : > { %8816 = vmatpush.bf16.msra.mxu2 %v11763_v55  ;;  %v13198_v55 = vld [vmem:[%s15155_s16 + $0xc10] sm:$0xf]  ;;  %v8577_v17 = vpop.f32.mrf.mxu3  ;;  %v11667_v28 = vor.u32 %v14210_v56, %v11664_v58  ;;  %v12720_v56 = vld [vmem:[%s15155_s16 + $0x868] sm:$0xf0]  ;;  %v13462_v58 = vld [vmem:[%s15155_s16 + $0xe20] sm:$0xf] }
 0x465   : > { %8829 = vmatpush.bf16.msra.mxu3 %v11955_v10  ;;  %v14258_v10 = vld [vmem:[%s15155_s16 + $0x194] sm:$0xf]  ;;  %v13390_v49 = vld [vmem:[%s15155_s16 + $0xd90] sm:$0xf]  ;;  %v14645_v50 = vld [vmem:[%s15155_s16 + $0xda4] sm:$0xf0] }
 0x466   : > { %8791 = vmatpush.bf16.msra.mxu0 %v13271_v18  ;;  %v8511_v18 = vadd.f32 %v16229_v27, %v8498_v31  ;;  %8755 = vmatpush.bf16.msrb.mxu1 %v12623_v59  ;;  %v11859_v36 = vor.u32 %v14258_v10, %v11856_v61  ;;  %v14342_v27 = vld [vmem:[%s15155_s16 + $0x434] sm:$0xf]  ;;  %v8549_v31 = vpop.f32.mrf.mxu1  ;;  %v14663_v10 = vld [vmem:[%s15155_s16 + $0xe34] sm:$0xf0] }
 0x467   : > { %v12195_v37 = vor.u32 %v14342_v27, %v12192_v19  ;;  %v14474_v59 = vld [vmem:[%s15155_s16 + $0x854] sm:$0xf]  ;;  %v13463_v46 = vor.u32 %v14663_v10, %v13462_v58  ;;  %v12096_v27 = vld [vmem:[%s15155_s16 + $0x388] sm:$0xf0] }
 0x468   : > { %8817 = vmatpush.bf16.msra.mxu2 %v11739_v26  ;;  %v13199_v26 = vor.u32 %v14597_v3, %v13198_v55  ;;  %v8524_v2 = vadd.f32 %v16234_v60, %v8511_v18  ;;  %v12168_v60 = vld [vmem:[%s15155_s16 + $0x418] sm:$0xf0]  ;;  %v14330_v55 = vld [vmem:[%s15155_s16 + $0x3d4] sm:$0xf]  ;;  %v12144_v3 = vld [vmem:[%s15155_s16 + $0x3e8] sm:$0xf0]  ;;  %v12723_v21 = vor.u32 %v14474_v59, %v12720_v56 }
 0x469   : > { %8830 = vmatpush.bf16.msra.mxu3 %v11931_v38  ;;  %v14681_v38 = vld [vmem:[%s15155_s16 + $0xec4] sm:$0xf0]  ;;  %8756 = vmatmul.bf16.vlgmr.msrb.gmra.mxu1 %v15511_v8  ;;  %v12504_v18 = vld [vmem:[%s15155_s16 + $0x6b8] sm:$0xf0]  ;;  %v12432_v59 = vld [vmem:[%s15155_s16 + $0x628] sm:$0xf0] }
 0x46a   : > { %8792 = vmatpush.bf16.msra.mxu0 %v13247_v34  ;;  %8800 = vmatpush.bf16.msra.mxu1 %v13559_v41  ;;  %v13535_v13 = vor.u32 %v14681_v38, %v13534_v44  ;;  %v12768_v34 = vld [vmem:[%s15155_s16 + $0x8c8] sm:$0xf0]  ;;  %v8537_v52 = vadd.f32 %v16293_v15, %v8524_v2  ;;  %v12171_v15 = vor.u32 %v14336_v4, %v12168_v60  ;;  %v13438_v44 = vld [vmem:[%s15155_s16 + $0xdf0] sm:$0xf]  ;;  %v14657_v38 = vld [vmem:[%s15155_s16 + $0xe04] sm:$0xf0] }
 0x46b   : > { %v12771_v39 = vor.u32 %v14486_v32, %v12768_v34  ;;  %v12147_v41 = vor.u32 %v14330_v55, %v12144_v3  ;;  %v14462_v32 = vld [vmem:[%s15155_s16 + $0x7f4] sm:$0xf]  ;;  %v12672_v34 = vld [vmem:[%s15155_s16 + $0x808] sm:$0xf0]  ;;  %v14312_v60 = vld [vmem:[%s15155_s16 + $0x344] sm:$0xf] }
 0x46c   : > { %8818 = vmatpush.bf16.msra.mxu2 %v11715_v35  ;;  %v13510_v35 = vld [vmem:[%s15155_s16 + $0xe80] sm:$0xf]  ;;  %v14306_v55 = vld [vmem:[%s15155_s16 + $0x314] sm:$0xf]  ;;  %v12048_v3 = vld [vmem:[%s15155_s16 + $0x328] sm:$0xf0] }
 0x46d   : > { %8831 = vmatpush.bf16.msra.mxu3 %v11907_v63  ;;  %v12579_v63 = vor.u32 %v14438_v20, %v12576_v22  ;;  %v13511_v40 = vor.u32 %v14675_v53, %v13510_v35  ;;  %v14414_v20 = vld [vmem:[%s15155_s16 + $0x674] sm:$0xf]  ;;  %v12480_v22 = vld [vmem:[%s15155_s16 + $0x688] sm:$0xf0]  ;;  %v13414_v35 = vld [vmem:[%s15155_s16 + $0xdc0] sm:$0xf] }
 0x46e   : > { %8793 = vmatpush.bf16.msra.mxu0 %v13223_v47  ;;  %8801 = vmatpush.bf16.msra.mxu1 %v13535_v13  ;;  %v8550_v47 = vadd.f32 %v8549_v31, %v8537_v52  ;;  %v13439_v13 = vor.u32 %v14657_v38, %v13438_v44  ;;  %v14651_v53 = vld [vmem:[%s15155_s16 + $0xdd4] sm:$0xf0]  ;;  %v12483_v4 = vor.u32 %v14414_v20, %v12480_v22  ;;  %v14456_v52 = vld [vmem:[%s15155_s16 + $0x7c4] sm:$0xf]  ;;  %v14450_v56 = vld [vmem:[%s15155_s16 + $0x794] sm:$0xf] }
 0x46f   : > { %v14396_v31 = vld [vmem:[%s15155_s16 + $0x5e4] sm:$0xf]  ;;  %v13344_v20 = vld [vmem:[%s15155_s16 + $0xd48] sm:$0xf0]  ;;  %v14678_v22 = vld [vmem:[%s15155_s16 + $0xeb4] sm:$0xf] }
 0x470   : > { %8819 = vmatpush.bf16.msra.mxu2 %v11691_v54  ;;  %v12555_v54 = vor.u32 %v14432_v14, %v12552_v24  ;;  %8945 = vst [vmem:[%s16037_s8 + $0x10] sm:$0xff] %v8550_v47  ;;  %v13415_v14 = vor.u32 %v14651_v53, %v13414_v35  ;;  %v14408_v24 = vld [vmem:[%s15155_s16 + $0x644] sm:$0xf]  ;;  %v12408_v47 = vld [vmem:[%s15155_s16 + $0x5f8] sm:$0xf0] }
 0x471   : > { %8832 = vmatpush.bf16.msra.mxu3 %v11883_v62  ;;  %v12747_v62 = vor.u32 %v14480_v45, %v12744_v43  ;;  %v12456_v45 = vld [vmem:[%s15155_s16 + $0x658] sm:$0xf0]  ;;  %v12411_v10 = vor.u32 %v14396_v31, %v12408_v47  ;;  %v12912_v47 = vld [vmem:[%s15155_s16 + $0x9e8] sm:$0xf0] }
 0x472   : > { %8794 = vmatpush.bf16.msra.mxu0 %v13199_v26  ;;  %8802 = vmatpush.bf16.msra.mxu1 %v13511_v40  ;;  %v16373_v17 = vpop.f32.mrf.mxu0  ;;  %v14468_v26 = vld [vmem:[%s15155_s16 + $0x824] sm:$0xf]  ;;  %v12675_v40 = vor.u32 %v14462_v32, %v12672_v34  ;;  %v12648_v43 = vld [vmem:[%s15155_s16 + $0x7d8] sm:$0xf0]  ;;  %v13536_v32 = vld [vmem:[%s15155_s16 + $0xec8] sm:$0xf0] }
 0x473   : > { %v12699_v19 = vor.u32 %v14468_v26, %v12696_v25  ;;  %v14390_v26 = vld [vmem:[%s15155_s16 + $0x5b4] sm:$0xf]  ;;  %v12384_v25 = vld [vmem:[%s15155_s16 + $0x5c8] sm:$0xf0]  ;;  %v14384_v34 = vld [vmem:[%s15155_s16 + $0x584] sm:$0xf] }
 0x474   : > { %8820 = vmatpush.bf16.msra.mxu2 %v11667_v28  ;;  %v8551_v28 = vpop.f32.mrf.mxu1  ;;  %v12360_v35 = vld [vmem:[%s15155_s16 + $0x598] sm:$0xf0] }
 0x475   : > { %8833 = vmatpush.bf16.msra.mxu3 %v11859_v36  ;;  %8795 = vmatmul.bf16.vlgmr.msra.gmra.mxu0 %v15581_v33  ;;  %v12123_v36 = vor.u32 %v14324_v12, %v12120_v16  ;;  %v12984_v12 = vld [vmem:[%s15155_s16 + $0xa78] sm:$0xf0]  ;;  %v14636_v16 = vld [vmem:[%s15155_s16 + $0xd64] sm:$0xf] }
 0x476   : > { %8839 = vmatpush.bf16.msrb.mxu0 %v12219_v29  ;;  %8803 = vmatpush.bf16.msra.mxu1 %v13487_v57  ;;  %v12507_v29 = vor.u32 %v14420_v23, %v12504_v18  ;;  %v13391_v57 = vor.u32 %v14645_v50, %v13390_v49  ;;  %v12051_v23 = vor.u32 %v14306_v55, %v12048_v3  ;;  %v13560_v18 = vld [vmem:[%s15155_s16 + $0xef8] sm:$0xf0]  ;;  %v13296_v55 = vld [vmem:[%s15155_s16 + $0xce8] sm:$0xf0] }
 0x477   : > { %8821 = vmatmul.bf16.vlgmr.msra.gmra.mxu2 %v15414_v0  ;;  %v14426_v0 = vld [vmem:[%s15155_s16 + $0x6d4] sm:$0xf]  ;;  %v13488_v3 = vld [vmem:[%s15155_s16 + $0xe68] sm:$0xf0] }
 0x478   : > { %8865 = vmatpush.bf16.msrb.mxu2 %v12603_v5  ;;  %8834 = vmatmul.bf16.vlgmr.msra.gmra.mxu3 %v15416_v1  ;;  %v12528_v1 = vld [vmem:[%s15155_s16 + $0x6e8] sm:$0xf0]  ;;  %v14318_v5 = vld [vmem:[%s15155_s16 + $0x374] sm:$0xf] }
 0x479   : > { %8878 = vmatpush.bf16.msrb.mxu3 %v12795_v42  ;;  %v12531_v61 = vor.u32 %v14426_v0, %v12528_v1  ;;  %v12651_v0 = vor.u32 %v14456_v52, %v12648_v43  ;;  %v14402_v1 = vld [vmem:[%s15155_s16 + $0x614] sm:$0xf]  ;;  %v12336_v43 = vld [vmem:[%s15155_s16 + $0x568] sm:$0xf0] }
 0x47a   : > { %8840 = vmatpush.bf16.msrb.mxu0 %v12195_v37  ;;  %8804 = vmatpush.bf16.msra.mxu1 %v13463_v46  ;;  %v16385_v42 = vpop.f32.mrf.mxu2  ;;  %v8590_v37 = vpop.f32.mrf.mxu0  ;;  %v14684_v46 = vld [vmem:[%s15155_s16 + $0xee4] sm:$0xf]  ;;  %v12435_v44 = vor.u32 %v14402_v1, %v12432_v59  ;;  %v14378_v52 = vld [vmem:[%s15155_s16 + $0x554] sm:$0xf] }
 0x47b   : > { %v16390_v2 = vpop.f32.mrf.mxu3 }
 0x47c   : > { %8866 = vmatpush.bf16.msrb.mxu2 %v12579_v63  ;;  %v12099_v63 = vor.u32 %v14318_v5, %v12096_v27  ;;  %v12960_v5 = vld [vmem:[%s15155_s16 + $0xa48] sm:$0xf0]  ;;  %v13563_v27 = vor.u32 %v14684_v46, %v13560_v18  ;;  %v14366_v46 = vld [vmem:[%s15155_s16 + $0x4f4] sm:$0xf] }
 0x47d   : > { %8879 = vmatpush.bf16.msrb.mxu3 %v12771_v39  ;;  %v12072_v39 = vld [vmem:[%s15155_s16 + $0x358] sm:$0xf0] }
 0x47e   : > { %8841 = vmatpush.bf16.msrb.mxu0 %v12171_v15  ;;  %8805 = vmatpush.bf16.msra.mxu1 %v13439_v13  ;;  %v12075_v15 = vor.u32 %v14312_v60, %v12072_v39  ;;  %v14630_v13 = vld [vmem:[%s15155_s16 + $0xd34] sm:$0xf]  ;;  %v13539_v60 = vor.u32 %v14678_v22, %v13536_v32  ;;  %v12363_v39 = vor.u32 %v14384_v34, %v12360_v35  ;;  %v14360_v22 = vld [vmem:[%s15155_s16 + $0x4c4] sm:$0xf]  ;;  %v12264_v32 = vld [vmem:[%s15155_s16 + $0x4d8] sm:$0xf0] }
 0x47f   : > { %v13347_v37 = vor.u32 %v14630_v13, %v13344_v20  ;;  %v13440_v20 = vld [vmem:[%s15155_s16 + $0xe08] sm:$0xf0] }
 0x480   : > { %8867 = vmatpush.bf16.msrb.mxu2 %v12555_v54  ;;  %v12459_v54 = vor.u32 %v14408_v24, %v12456_v45  ;;  %v14672_v24 = vld [vmem:[%s15155_s16 + $0xe84] sm:$0xf]  ;;  %v13512_v45 = vld [vmem:[%s15155_s16 + $0xe98] sm:$0xf0] }
 0x481   : > { %8880 = vmatpush.bf16.msrb.mxu3 %v12747_v62 }
 0x482   : > { %8842 = vmatpush.bf16.msrb.mxu0 %v12147_v41  ;;  %8806 = vmatpush.bf16.msra.mxu1 %v13415_v14  ;;  %v8616_v62 = vpop.f32.mrf.mxu2  ;;  %v12624_v41 = vld [vmem:[%s15155_s16 + $0x7a8] sm:$0xf0]  ;;  %v13320_v14 = vld [vmem:[%s15155_s16 + $0xd18] sm:$0xf0] }
 0x483   : > { %v8629_v58 = vpop.f32.mrf.mxu3  ;;  %v12627_v38 = vor.u32 %v14450_v56, %v12624_v41  ;;  %v12312_v62 = vld [vmem:[%s15155_s16 + $0x538] sm:$0xf0]  ;;  %v14516_v56 = vld [vmem:[%s15155_s16 + $0x9a4] sm:$0xf] }
 0x484   : > { %8868 = vmatpush.bf16.msrb.mxu2 %v12531_v61  ;;  %v14540_v61 = vld [vmem:[%s15155_s16 + $0xa64] sm:$0xf]  ;;  %v12888_v58 = vld [vmem:[%s15155_s16 + $0x9b8] sm:$0xf0] }
 0x485   : > { %8881 = vmatpush.bf16.msrb.mxu3 %v12723_v21  ;;  %v13368_v21 = vld [vmem:[%s15155_s16 + $0xd78] sm:$0xf0]  ;;  %v12987_v28 = vor.u32 %v14540_v61, %v12984_v12  ;;  %v14612_v61 = vld [vmem:[%s15155_s16 + $0xca4] sm:$0xf] }
 0x486   : > { %8843 = vmatpush.bf16.msrb.mxu0 %v12123_v36  ;;  %8807 = vmatpush.bf16.msra.mxu1 %v13391_v57  ;;  %v13371_v36 = vor.u32 %v14636_v16, %v13368_v21  ;;  %v16439_v49 = vpop.f32.mrf.mxu1  ;;  %v13272_v12 = vld [vmem:[%s15155_s16 + $0xcb8] sm:$0xf0]  ;;  %v14660_v16 = vld [vmem:[%s15155_s16 + $0xe24] sm:$0xf] }
 0x487   : > { %v13464_v21 = vld [vmem:[%s15155_s16 + $0xe38] sm:$0xf0] }
 0x488   : > { %8869 = vmatpush.bf16.msrb.mxu2 %v12507_v29  ;;  %v14534_v29 = vld [vmem:[%s15155_s16 + $0xa34] sm:$0xf] }
 0x489   : > { %8882 = vmatpush.bf16.msrb.mxu3 %v12699_v19  ;;  %v12387_v19 = vor.u32 %v14390_v26, %v12384_v25  ;;  %8808 = vmatmul.bf16.vlgmr.msra.gmra.mxu1 %v15708_v48  ;;  %v12963_v53 = vor.u32 %v14534_v29, %v12960_v5  ;;  %v12891_v26 = vor.u32 %v14516_v56, %v12888_v58  ;;  %v14606_v5 = vld [vmem:[%s15155_s16 + $0xc74] sm:$0xf]  ;;  %v13152_v56 = vld [vmem:[%s15155_s16 + $0xbc8] sm:$0xf0] }
 0x48a   : > { %8844 = vmatpush.bf16.msrb.mxu0 %v12099_v63  ;;  %8852 = vmatpush.bf16.msrb.mxu1 %v12411_v10  ;;  %v14528_v63 = vld [vmem:[%s15155_s16 + $0xa04] sm:$0xf]  ;;  %v13275_v25 = vor.u32 %v14612_v61, %v13272_v12 }
 0x48c   : > { %8870 = vmatpush.bf16.msrb.mxu2 %v12483_v4  ;;  %v12936_v4 = vld [vmem:[%s15155_s16 + $0xa18] sm:$0xf0] }
 0x48d   : > { %8883 = vmatpush.bf16.msrb.mxu3 %v12675_v40  ;;  %v14624_v40 = vld [vmem:[%s15155_s16 + $0xd04] sm:$0xf]  ;;  %v12939_v50 = vor.u32 %v14528_v63, %v12936_v4  ;;  %v12840_v63 = vld [vmem:[%s15155_s16 + $0x958] sm:$0xf0] }
 0x48e   : > { %8845 = vmatpush.bf16.msrb.mxu0 %v12075_v15  ;;  %8853 = vmatpush.bf16.msrb.mxu1 %v12387_v19  ;;  %v13323_v31 = vor.u32 %v14624_v40, %v13320_v14  ;;  %v12339_v15 = vor.u32 %v14378_v52, %v12336_v43  ;;  %v8603_v18 = vpop.f32.mrf.mxu1  ;;  %v14654_v19 = vld [vmem:[%s15155_s16 + $0xdf4] sm:$0xf]  ;;  %v13224_v40 = vld [vmem:[%s15155_s16 + $0xc58] sm:$0xf0]  ;;  %v14648_v14 = vld [vmem:[%s15155_s16 + $0xdc4] sm:$0xf] }
 0x48f   : > { %v13443_v4 = vor.u32 %v14654_v19, %v13440_v20  ;;  %v14354_v52 = vld [vmem:[%s15155_s16 + $0x494] sm:$0xf]  ;;  %v12240_v43 = vld [vmem:[%s15155_s16 + $0x4a8] sm:$0xf0]  ;;  %v14552_v20 = vld [vmem:[%s15155_s16 + $0xac4] sm:$0xf] }
 0x490   : > { %8871 = vmatpush.bf16.msrb.mxu2 %v12459_v54  ;;  %v14618_v54 = vld [vmem:[%s15155_s16 + $0xcd4] sm:$0xf]  ;;  %v13104_v18 = vld [vmem:[%s15155_s16 + $0xb68] sm:$0xf0] }
 0x491   : > { %8884 = vmatpush.bf16.msrb.mxu3 %v12651_v0  ;;  %v14372_v0 = vld [vmem:[%s15155_s16 + $0x524] sm:$0xf]  ;;  %v13299_v59 = vor.u32 %v14618_v54, %v13296_v55  ;;  %v14498_v54 = vld [vmem:[%s15155_s16 + $0x914] sm:$0xf]  ;;  %v12816_v55 = vld [vmem:[%s15155_s16 + $0x928] sm:$0xf0] }
 0x492   : > { %8846 = vmatpush.bf16.msrb.mxu0 %v12051_v23  ;;  %8854 = vmatpush.bf16.msrb.mxu1 %v12363_v39  ;;  %v16449_v57 = vpop.f32.mrf.mxu0  ;;  %v12315_v41 = vor.u32 %v14372_v0, %v12312_v62  ;;  %v12288_v23 = vld [vmem:[%s15155_s16 + $0x508] sm:$0xf0]  ;;  %v14600_v39 = vld [vmem:[%s15155_s16 + $0xc44] sm:$0xf]  ;;  %v14642_v62 = vld [vmem:[%s15155_s16 + $0xd94] sm:$0xf] }
 0x493   : > { %v12291_v29 = vor.u32 %v14366_v46, %v12288_v23  ;;  %v14570_v23 = vld [vmem:[%s15155_s16 + $0xb54] sm:$0xf] }
 0x494   : > { %8872 = vmatpush.bf16.msrb.mxu2 %v12435_v44  ;;  %v14510_v44 = vld [vmem:[%s15155_s16 + $0x974] sm:$0xf] }
 0x495   : > { %8885 = vmatpush.bf16.msrb.mxu3 %v12627_v38  ;;  %8847 = vmatmul.bf16.vlgmr.msrb.gmra.mxu0 %v15418_v6  ;;  %v14522_v6 = vld [vmem:[%s15155_s16 + $0x9d4] sm:$0xf]  ;;  %v12864_v38 = vld [vmem:[%s15155_s16 + $0x988] sm:$0xf0] }
 0x496   : > { %8891 = vmatpush.bf16.msra.mxu0 %v12987_v28  ;;  %v12915_v1 = vor.u32 %v14522_v6, %v12912_v47  ;;  %8855 = vmatpush.bf16.msrb.mxu1 %v12339_v15  ;;  %v13467_v28 = vor.u32 %v14660_v16, %v13464_v21  ;;  %v12867_v35 = vor.u32 %v14510_v44, %v12864_v38  ;;  %v14576_v16 = vld [vmem:[%s15155_s16 + $0xb84] sm:$0xf]  ;;  %v13128_v21 = vld [vmem:[%s15155_s16 + $0xb98] sm:$0xf0] }
 0x497   : > { %8873 = vmatmul.bf16.vlgmr.msrb.gmra.mxu2 %v15509_v7  ;;  %v13515_v7 = vor.u32 %v14672_v24, %v13512_v45  ;;  %v8589_v24 = vadd.f32 %v16373_v17, %v16312_v30  ;;  %v13416_v45 = vld [vmem:[%s15155_s16 + $0xdd8] sm:$0xf0]  ;;  %v12243_v15 = vor.u32 %v14354_v52, %v12240_v43  ;;  %v14564_v44 = vld [vmem:[%s15155_s16 + $0xb24] sm:$0xf] }
 0x498   : > { %8917 = vmatpush.bf16.msra.mxu2 %v13371_v36  ;;  %8886 = vmatmul.bf16.vlgmr.msrb.gmra.mxu3 %v15511_v8  ;;  %v14666_v8 = vld [vmem:[%s15155_s16 + $0xe54] sm:$0xf]  ;;  %v13419_v30 = vor.u32 %v14648_v14, %v13416_v45  ;;  %v13080_v38 = vld [vmem:[%s15155_s16 + $0xb38] sm:$0xf0] }
 0x499   : > { %8930 = vmatpush.bf16.msra.mxu3 %v13563_v27  ;;  %v13491_v10 = vor.u32 %v14666_v8, %v13488_v3  ;;  %v13248_v27 = vld [vmem:[%s15155_s16 + $0xc88] sm:$0xf0]  ;;  %v8602_v6 = vadd.f32 %v16439_v49, %v8589_v24  ;;  %v14594_v8 = vld [vmem:[%s15155_s16 + $0xc14] sm:$0xf] }
 0x49a   : > { %8892 = vmatpush.bf16.msra.mxu0 %v12963_v53  ;;  %8856 = vmatpush.bf16.msrb.mxu1 %v12315_v41  ;;  %v16461_v36 = vpop.f32.mrf.mxu2  ;;  %v8642_v34 = vpop.f32.mrf.mxu0  ;;  %v13251_v53 = vor.u32 %v14606_v5, %v13248_v27  ;;  %v13200_v49 = vld [vmem:[%s15155_s16 + $0xc28] sm:$0xf0] }
 0x49b   : > { %v16466_v13 = vpop.f32.mrf.mxu3  ;;  %v8615_v58 = vadd.f32 %v16385_v42, %v8602_v6  ;;  %v13203_v41 = vor.u32 %v14594_v8, %v13200_v49  ;;  %v13131_v42 = vor.u32 %v14576_v16, %v13128_v21  ;;  %v13056_v5 = vld [vmem:[%s15155_s16 + $0xb08] sm:$0xf0] }
 0x49c   : > { %8918 = vmatpush.bf16.msra.mxu2 %v13347_v37  ;;  %v14504_v37 = vld [vmem:[%s15155_s16 + $0x944] sm:$0xf] }
 0x49d   : > { %8931 = vmatpush.bf16.msra.mxu3 %v13539_v60  ;;  %v12267_v60 = vor.u32 %v14360_v22, %v12264_v32  ;;  %v12843_v47 = vor.u32 %v14504_v37, %v12840_v63  ;;  %v8628_v46 = vadd.f32 %v16390_v2, %v8615_v58  ;;  %v13032_v22 = vld [vmem:[%s15155_s16 + $0xad8] sm:$0xf0] }
 0x49e   : > { %8893 = vmatpush.bf16.msra.mxu0 %v12939_v50  ;;  %8857 = vmatpush.bf16.msrb.mxu1 %v12291_v29  ;;  %v14588_v50 = vld [vmem:[%s15155_s16 + $0xbe4] sm:$0xf] }
 0x4a0   : > { %8919 = vmatpush.bf16.msra.mxu2 %v13323_v31  ;;  %v13176_v31 = vld [vmem:[%s15155_s16 + $0xbf8] sm:$0xf0] }
 0x4a1   : > { %8932 = vmatpush.bf16.msra.mxu3 %v13515_v7  ;;  %v13227_v7 = vor.u32 %v14600_v39, %v13224_v40  ;;  %v13179_v0 = vor.u32 %v14588_v50, %v13176_v31 }
 0x4a2   : > { %8894 = vmatpush.bf16.msra.mxu0 %v12915_v1  ;;  %8858 = vmatpush.bf16.msrb.mxu1 %v12267_v60  ;;  %v8668_v17 = vpop.f32.mrf.mxu2  ;;  %v13392_v1 = vld [vmem:[%s15155_s16 + $0xda8] sm:$0xf0] }
 0x4a3   : > { %v8681_v3 = vpop.f32.mrf.mxu3  ;;  %v13395_v61 = vor.u32 %v14642_v62, %v13392_v1 }
 0x4a4   : > { %8920 = vmatpush.bf16.msra.mxu2 %v13299_v59  ;;  %v14582_v59 = vld [vmem:[%s15155_s16 + $0xbb4] sm:$0xf] }
 0x4a5   : > { %8933 = vmatpush.bf16.msra.mxu3 %v13491_v10  ;;  %v12819_v10 = vor.u32 %v14498_v54, %v12816_v55  ;;  %v13155_v12 = vor.u32 %v14582_v59, %v13152_v56 }
 0x4a6   : > { %8895 = vmatpush.bf16.msra.mxu0 %v12891_v26  ;;  %8859 = vmatpush.bf16.msrb.mxu1 %v12243_v15  ;;  %v8641_v26 = vadd.f32 %v16449_v57, %v8628_v46  ;;  %v13083_v57 = vor.u32 %v14564_v44, %v13080_v38 }
 0x4a8   : > { %8921 = vmatpush.bf16.msra.mxu2 %v13275_v25  ;;  %v13107_v25 = vor.u32 %v14570_v23, %v13104_v18 }
 0x4a9   : > { %8934 = vmatpush.bf16.msra.mxu3 %v13467_v28  ;;  %8860 = vmatmul.bf16.vlgmr.msrb.gmra.mxu1 %v15423_v11  ;;  %v8653_v11 = vpop.f32.mrf.mxu1 }
 0x4aa   : > { %8896 = vmatpush.bf16.msra.mxu0 %v12867_v35  ;;  %8904 = vmatpush.bf16.msra.mxu1 %v13179_v0  ;;  %v8654_v2 = vadd.f32 %v8653_v11, %v8641_v26  ;;  %v14546_v35 = vld [vmem:[%s15155_s16 + $0xa94] sm:$0xf] }
 0x4ac   : > { %8922 = vmatpush.bf16.msra.mxu2 %v13251_v53 }
 0x4ad   : > { %8935 = vmatpush.bf16.msra.mxu3 %v13443_v4  ;;  %v14775_v4 = vld [vmem:[%s15735_s27] sm:$0x3f] }
 0x4ae   : > { %8897 = vmatpush.bf16.msra.mxu0 %v12843_v47  ;;  %8905 = vmatpush.bf16.msra.mxu1 %v13155_v12  ;;  %v5755_v60 = vperm.slane %v14775_v4, 4  ;;  %v5756_v15 = vperm.slane %v14775_v4, 5 }
 0x4b0   : > { %8923 = vmatpush.bf16.msra.mxu2 %v13227_v7 }
 0x4b1   : > { %8936 = vmatpush.bf16.msra.mxu3 %v13419_v30 }
 0x4b2   : > { %8898 = vmatpush.bf16.msra.mxu0 %v12819_v10  ;;  %8906 = vmatpush.bf16.msra.mxu1 %v13131_v42  ;;  %v8692_v28 = vpop.f32.mrf.mxu0 }
 0x4b3   : > { %v8693_v39 = vadd.f32 %v8692_v28, %v5755_v60 }
 0x4b4   : > { %8924 = vmatpush.bf16.msra.mxu2 %v13203_v41 }
 0x4b5   : > { %8937 = vmatpush.bf16.msra.mxu3 %v13395_v61  ;;  %8899 = vmatmul.bf16.vlgmr.msra.gmra.mxu0 %v15513_v9  ;;  %v8667_v9 = vadd.f32 %v16461_v36, %v8654_v2  ;;  %v13035_v36 = vor.u32 %v14552_v20, %v13032_v22 }
 0x4b6   : > { %8907 = vmatpush.bf16.msra.mxu1 %v13107_v25 }
 0x4b7   : > { %8925 = vmatmul.bf16.vlgmr.msra.gmra.mxu2 %v15581_v33  ;;  %v8680_v29 = vadd.f32 %v16466_v13, %v8667_v9  ;;  %v14558_v33 = vld [vmem:[%s15155_s16 + $0xaf4] sm:$0xf]  ;;  %v13008_v13 = vld [vmem:[%s15155_s16 + $0xaa8] sm:$0xf0] }
 0x4b8   : > { %8938 = vmatmul.bf16.vlgmr.msra.gmra.mxu3 %v15708_v48  ;;  %v8655_v48 = vpop.f32.mrf.mxu1  ;;  %v13059_v27 = vor.u32 %v14558_v33, %v13056_v5  ;;  %v13011_v53 = vor.u32 %v14546_v35, %v13008_v13 }
 0x4b9   : > { %8946 = vst [vmem:[%s16037_s8 + $0x18] sm:$0xff] %v8680_v29 }
 0x4ba   : > { %8908 = vmatpush.bf16.msra.mxu1 %v13083_v57  ;;  %v8718_v19 = vpop.f32.mrf.mxu2  ;;  %v8694_v34 = vpop.f32.mrf.mxu0 }
 0x4bb   : > { %v8731_v32 = vpop.f32.mrf.mxu3 }
 0x4be   : > { %8909 = vmatpush.bf16.msra.mxu1 %v13059_v27 }
 0x4c2   : > { %8910 = vmatpush.bf16.msra.mxu1 %v13035_v36  ;;  %v8720_v37 = vpop.f32.mrf.mxu2 }
 0x4c3   : > { %v8733_v63 = vpop.f32.mrf.mxu3 }
 0x4c6   : > { %8911 = vmatpush.bf16.msra.mxu1 %v13011_v53  ;;  %v8705_v40 = vpop.f32.mrf.mxu1 }
 0x4c7   : > { %v8706_v14 = vadd.f32 %v8705_v40, %v8693_v39 }
 0x4c9   : > { %8912 = vmatmul.bf16.vlgmr.msra.gmra.mxu1 %v15515_v51  ;;  %v8719_v24 = vadd.f32 %v8718_v19, %v8706_v14 }
 0x4cb   : > { %v8732_v52 = vadd.f32 %v8731_v32, %v8719_v24 }
 0x4ce   : > { %v8707_v43 = vpop.f32.mrf.mxu1 }
 0x4d2   : > { %v8744_v45 = vpop.f32.mrf.mxu0 }
 0x4d3   : > { %v8745_v49 = vadd.f32 %v8744_v45, %v8732_v52 }
 0x4da   : > { %v8770_v50 = vpop.f32.mrf.mxu2  ;;  %v8746_v6 = vpop.f32.mrf.mxu0 }
 0x4db   : > { %v8783_v31 = vpop.f32.mrf.mxu3 }
 0x4e2   : > { %v8772_v47 = vpop.f32.mrf.mxu2 }
 0x4e3   : > { %v8785_v7 = vpop.f32.mrf.mxu3 }
 0x4e6   : > { %v8757_v30 = vpop.f32.mrf.mxu1 }
 0x4e7   : > { %v8758_v62 = vadd.f32 %v8757_v30, %v8745_v49 }
 0x4e9   : > { %v8771_v56 = vadd.f32 %v8770_v50, %v8758_v62 }
 0x4eb   : > { %v8784_v58 = vadd.f32 %v8783_v31, %v8771_v56 }
 0x4ee   : > { %v8759_v54 = vpop.f32.mrf.mxu1 }
 0x4f2   : > { %v8796_v17 = vpop.f32.mrf.mxu0 }
 0x4f3   : > { %v8797_v10 = vadd.f32 %v8796_v17, %v8784_v58 }
 0x4fa   : > { %v8822_v51 = vpop.f32.mrf.mxu2  ;;  %v8798_v3 = vpop.f32.mrf.mxu0 }
 0x4fb   : > { %v8823_v55 = vadd.f32 %v8822_v51, %v5756_v15  ;;  %v8835_v8 = vpop.f32.mrf.mxu3 }
 0x4fd   : > { %v8836_v0 = vadd.f32 %v8835_v8, %v8823_v55 }
 0x502   : > { %v8824_v1 = vpop.f32.mrf.mxu2 }
 0x503   : > { %v8837_v59 = vpop.f32.mrf.mxu3 }
 0x506   : > { %v8809_v41 = vpop.f32.mrf.mxu1 }
 0x507   : > { %v8810_v61 = vadd.f32 %v8809_v41, %v8797_v10 }
 0x509   : > { %8947 = vst [vmem:[%s16037_s8 + $0x20] sm:$0xff] %v8810_v61 }
 0x50e   : > { %v8811_v16 = vpop.f32.mrf.mxu1 }
 0x512   : > { %v8848_v12 = vpop.f32.mrf.mxu0 }
 0x513   : > { %v8849_v9 = vadd.f32 %v8848_v12, %v8836_v0 }
 0x51a   : > { %v8874_v21 = vpop.f32.mrf.mxu2  ;;  %v8850_v42 = vpop.f32.mrf.mxu0 }
 0x51b   : > { %v8887_v46 = vpop.f32.mrf.mxu3 }
 0x522   : > { %v8876_v23 = vpop.f32.mrf.mxu2 }
 0x523   : > { %v8889_v18 = vpop.f32.mrf.mxu3 }
 0x526   : > { %v8861_v26 = vpop.f32.mrf.mxu1 }
 0x527   : > { %v8862_v28 = vadd.f32 %v8861_v26, %v8849_v9 }
 0x529   : > { %v8875_v33 = vadd.f32 %v8874_v21, %v8862_v28 }
 0x52b   : > { %v8888_v5 = vadd.f32 %v8887_v46, %v8875_v33 }
 0x52e   : > { %v8863_v2 = vpop.f32.mrf.mxu1 }
 0x532   : > { %v8900_v11 = vpop.f32.mrf.mxu0 }
 0x533   : > { %v8901_v48 = vadd.f32 %v8900_v11, %v8888_v5 }
 0x53a   : > { %v8926_v25 = vpop.f32.mrf.mxu2  ;;  %v8902_v38 = vpop.f32.mrf.mxu0 }
 0x53b   : > { %v8939_v44 = vpop.f32.mrf.mxu3 }
 0x542   : > { %v8928_v29 = vpop.f32.mrf.mxu2 }
 0x543   : > { %v8941_v57 = vpop.f32.mrf.mxu3 }
 0x546   : > { %v8913_v27 = vpop.f32.mrf.mxu1 }
 0x547   : > { %v8914_v19 = vadd.f32 %v8913_v27, %v8901_v48 }
 0x549   : > { %v8927_v20 = vadd.f32 %v8926_v25, %v8914_v19 }
 0x54b   : > { %v8940_v22 = vadd.f32 %v8939_v44, %v8927_v20 }
 0x54d   : > { %8948 = vst [vmem:[%s16037_s8 + $0x28] sm:$0xff] %v8940_v22 }
 0x54e   : > { %v8915_v32 = vpop.f32.mrf.mxu1 }
 0x54f   : > { %14923 = shalt.err (!%p14920_p10)
}
 0x550   : > { %14706 = dma.vmem_to_hbm [thread:$0]  (%p15061_p11), %s8964_s14, 768, %s8966_s18, %s8950_s6  }
 0x551 PF: > { %s16581_s3 = sld [smem:[#allocation14_spill]]  ;;  %p14731_p0 = scmp.ge.s32.totalorder %s14970_s21, 2 }
 0x553   : > { %p14723_p7 = pnand %p14731_p0, %p15065_p12 }
 0x555   : > { %p14724_p2 = pneg %p14723_p7 }
 0x557   : > { %s8977_s25 = sand.u32 1, %s16581_s3  }
 0x558   : > { %s8978_s1 = scalar_lea.sflag [#allocation4], %s8977_s25 }
 0x559   : > { %14953 = dma.done.wait (%p14724_p2), %s8978_s1, 768  }
 0x55a   : > { %14955 = vsyncadd (%p14724_p2), %s8978_s1, 4294966528  ;;  %s16583_s21 = sld [smem:[#allocation15_spill]]  ;;  %s16585_s18 = smov %s14962_s19 }
 0x55b   : > { %s16584_s26 = sld [smem:[#allocation16_spill]]  ;;  %s16586_s19 = smov %s14966_s20 }
 0x560   : > { %p17_p4 = scmp.ge.s32.totalorder %s16583_s21, 6  }
 0x561   : > { %s16587_s20 = smov %s16584_s26 }
 0x562   :  { %19 = sbr.rel (!%p17_p4) target bundleno = 8 (0x8), region = 103 }
 0x567   :  { %8984 = vsyncpa [#allocation3], 1 }
 0x568   :  { %8986 = vsyncpa [#allocation3 + $0x1], 1 }
 0x569   :  { %8987 = vsyncpa [#allocation6], 1 }
 0x56a   :  { %8988 = vsyncpa [#allocation4], 1 }
 0x56b   :  { %8990 = vsyncpa [#allocation4 + $0x1], 1 }

</bundles_post_ra>
